<compile_context>
chip_gen: v5e
topology: v5e:2x2
jax: 0.10.0
libtpu: 0.0.40
codegen_flags: <defaults>
</compile_context>

<pallas_src>
import numpy as np

import jax
import jax.numpy as jnp
from jax.experimental import pallas as pl
from jax.experimental.pallas import tpu as pltpu


# --------------------------------------------------------------------------
# Kernel: whole forward pass for one batch tile (BT images), all 2-D matmuls.
# --------------------------------------------------------------------------
def net_kernel(x_ref, g1_ref, w1_ref, b1_ref, sw1_ref, sh1_ref,
               g2_ref, w2_ref, b2_ref, sw2_ref, sh2_ref,
               gf_ref, fc1w_ref, fc1b_ref, fc2w_ref, fc2b_ref, o_ref):
    f32 = jnp.float32

    def dot(a, b):
        return jnp.dot(a, b, preferred_element_type=f32)

    x2 = x_ref[...]                                            # (BT*28, 28)

    # ---- conv1: row-group gather (3 selection matmuls) + one big matmul ----
    r1 = jnp.concatenate([dot(g1_ref[d], x2) for d in range(3)], axis=-1)
    #                                                           (BT*26, 84)
    c1 = dot(r1, w1_ref[...]) + b1_ref[...]                    # (BT*26, 260)

    # ---- 2x2 maxpool + relu (column-select matmuls, row-select matmuls) ----
    p1w = jnp.maximum(dot(c1, sw1_ref[0]), dot(c1, sw1_ref[1]))   # (BT*26, 130)
    p1 = jnp.maximum(
        jnp.maximum(dot(sh1_ref[0], p1w), dot(sh1_ref[1], p1w)), 0.0)
    #                                                           (BT*13, 130)

    # ---- conv2: row-group gather + one big matmul ----
    r2 = jnp.concatenate([dot(g2_ref[d], p1) for d in range(3)], axis=-1)
    #                                                           (BT*11, 390)
    c2 = dot(r2, w2_ref[...]) + b2_ref[...]                    # (BT*11, 220)

    # ---- 2x2 maxpool (floor) + relu ----
    p2w = jnp.maximum(dot(c2, sw2_ref[0]), dot(c2, sw2_ref[1]))   # (BT*11, 100)
    p2 = jnp.maximum(
        jnp.maximum(dot(sh2_ref[0], p2w), dot(sh2_ref[1], p2w)), 0.0)
    #                                                           (BT*5, 100)

    # ---- flatten (torch channel-major order folded into fc1w) + fc1 + fc2 ----
    flat = jnp.concatenate([dot(gf_ref[k], p2) for k in range(5)], axis=-1)
    #                                                           (BT, 500)
    h = dot(flat, fc1w_ref[...]) + fc1b_ref[...]               # (BT, 50)
    z = dot(h, fc2w_ref[...]) + fc2b_ref[...]                  # (BT, 10)

    # ---- log_softmax over classes ----
    zmax = jnp.max(z, axis=-1, keepdims=True)
    e = z - zmax
    lse = jnp.log(jnp.sum(jnp.exp(e), axis=-1, keepdims=True))
    o_ref[...] = e - lse


# --------------------------------------------------------------------------
# One-time parameter / selection-matrix packing (plain numpy, trace-time).
# Params use (kh, kw, cin, cout) conv layout and (in, out) fc layout; real
# torch weights ((cout, cin, kh, kw) / (out, in)) need a transpose first.
# --------------------------------------------------------------------------
def pack_params(p, bt):
    w1 = np.asarray(p["w1"], np.float32)        # (3, 3, 1, 10)
    b1 = np.asarray(p["b1"], np.float32)        # (10,)
    w2 = np.asarray(p["w2"], np.float32)        # (3, 3, 10, 20)
    b2 = np.asarray(p["b2"], np.float32)        # (20,)
    fc1_w = np.asarray(p["fc1_w"], np.float32)  # (500, 50)
    fc1_b = np.asarray(p["fc1_b"], np.float32)  # (50,)
    fc2_w = np.asarray(p["fc2_w"], np.float32)  # (50, 10)
    fc2_b = np.asarray(p["fc2_b"], np.float32)  # (10,)

    # conv1 as one matmul: rows index (di, input col w), cols index (out col j, cout)
    W1 = np.zeros((3 * 28, 26 * 10), np.float32)
    for di in range(3):
        for dj in range(3):
            for j in range(26):
                W1[di * 28 + j + dj, j * 10:(j + 1) * 10] = w1[di, dj, 0, :]

    # conv2 as one matmul: rows index (di, input col jp, cin), cols index (out col j, cout)
    W2 = np.zeros((3 * 130, 11 * 20), np.float32)
    for di in range(3):
        for dj in range(3):
            for j in range(11):
                r0 = di * 130 + (j + dj) * 10
                W2[r0:r0 + 10, j * 20:(j + 1) * 20] = w2[di, dj, :, :]

    # Column (W-axis) pooling selectors: pick even / odd output columns.
    def sel_cols(win, wout, c):
        s = np.zeros((2, win * c, wout * c), np.float32)
        for ph in range(2):
            for jp in range(wout):
                j = 2 * jp + ph
                for ch in range(c):
                    s[ph, j * c + ch, jp * c + ch] = 1.0
        return s

    sw1 = sel_cols(26, 13, 10)    # (2, 260, 130)
    sw2 = sel_cols(11, 5, 20)     # (2, 220, 100)

    # Row (H-axis) selectors, block-diagonal over the batch tile.
    def sel_rows(rin, rout, offset_fns):
        s = np.zeros((len(offset_fns), bt * rout, bt * rin), np.float32)
        for k, f in enumerate(offset_fns):
            for b in range(bt):
                for i in range(rout):
                    s[k, b * rout + i, b * rin + f(i)] = 1.0
        return s

    g1 = sel_rows(28, 26, [(lambda i, d=d: i + d) for d in range(3)])   # conv1 im2col rows
    sh1 = sel_rows(26, 13, [lambda i: 2 * i, lambda i: 2 * i + 1])      # pool1 rows
    g2 = sel_rows(13, 11, [(lambda i, d=d: i + d) for d in range(3)])   # conv2 im2col rows
    sh2 = sel_rows(11, 5, [lambda i: 2 * i, lambda i: 2 * i + 1])       # pool2 rows
    gf = sel_rows(5, 1, [(lambda i, k=k: k) for k in range(5)])         # flatten rows

    # fc1 rows permuted so the kernel's (ip, jp, co) flatten order matches
    # torch's channel-major flatten index co*25 + ip*5 + jp.
    fc1w = fc1_w.reshape(20, 5, 5, 50).transpose(1, 2, 0, 3).reshape(500, 50)

    packed = dict(
        g1=g1, w1=W1, b1=np.tile(b1, 26)[None, :],
        sw1=sw1, sh1=sh1,
        g2=g2, w2=W2, b2=np.tile(b2, 11)[None, :],
        sw2=sw2, sh2=sh2, gf=gf,
        fc1w=fc1w, fc1b=fc1_b[None, :],
        fc2w=fc2_w, fc2b=fc2_b[None, :],
    )
    return {k: jnp.asarray(v, jnp.float32) for k, v in packed.items()}


# --------------------------------------------------------------------------
# Wrapper: batch-blocked grid, lane-dense input, 2-D (B, 10) output.
# --------------------------------------------------------------------------
def net_forward(x_nchw, packed):
    B = x_nchw.shape[0]
    bt = packed["gf"].shape[1]                 # batch tile (static)
    Bp = ((B + bt - 1) // bt) * bt

    x3 = x_nchw.reshape(B, 28, 28)             # drop size-1 channel dim (lane-dense)
    if Bp != B:
        x3 = jnp.concatenate([x3, jnp.zeros((Bp - B, 28, 28), x3.dtype)], axis=0)
    x2 = x3.reshape(Bp * 28, 28)               # rows = b*28 + h, lanes = w

    zero2 = lambda b: (0, 0)
    zero3 = lambda b: (0, 0, 0)
    full2 = lambda a: pl.BlockSpec(a.shape, zero2)     # whole-array constant block
    full3 = lambda a: pl.BlockSpec(a.shape, zero3)

    out = pl.pallas_call(
        net_kernel,
        out_shape=jax.ShapeDtypeStruct((Bp, 10), jnp.float32),
        grid=(Bp // bt,),
        in_specs=[
            pl.BlockSpec((bt * 28, 28), lambda b: (b, 0)),       # x (batch-tiled)
            full3(packed["g1"]), full2(packed["w1"]), full2(packed["b1"]),
            full3(packed["sw1"]), full3(packed["sh1"]),
            full3(packed["g2"]), full2(packed["w2"]), full2(packed["b2"]),
            full3(packed["sw2"]), full3(packed["sh2"]), full3(packed["gf"]),
            full2(packed["fc1w"]), full2(packed["fc1b"]),
            full2(packed["fc2w"]), full2(packed["fc2b"]),
        ],
        out_specs=pl.BlockSpec((bt, 10), lambda b: (b, 0)),
        compiler_params=pltpu.CompilerParams(
            dimension_semantics=("parallel",)),    # batch tiles across v7x's 2 TCs
    )(x2, packed["g1"], packed["w1"], packed["b1"], packed["sw1"], packed["sh1"],
      packed["g2"], packed["w2"], packed["b2"], packed["sw2"], packed["sh2"],
      packed["gf"], packed["fc1w"], packed["fc1b"], packed["fc2w"], packed["fc2b"])

    return out[:B]


# ---------------- pure-jnp reference (for correctness check) ----------------
def net_reference(x_nchw, params):
    hp = jax.lax.Precision.HIGHEST
    x = jnp.transpose(x_nchw, (0, 2, 3, 1))

    def conv(x, w, b):
        B, H, W, C = x.shape
        cout = w.shape[-1]
        cols = jnp.concatenate(
            [x[:, i:i + H - 2, j:j + W - 2, :] for i in range(3) for j in range(3)],
            axis=-1)
        y = jnp.dot(cols.reshape(B * (H - 2) * (W - 2), 9 * C),
                    w.reshape(9 * C, cout), precision=hp) + b
        return y.reshape(B, H - 2, W - 2, cout)

    def pool_relu(x):
        B, H, W, C = x.shape
        Hp, Wp = H // 2, W // 2
        y = x[:, :2 * Hp, :2 * Wp, :].reshape(B, Hp, 2, Wp, 2, C).max(axis=(2, 4))
        return jnp.maximum(y, 0.0)

    x = pool_relu(conv(x, params["w1"], params["b1"]))
    x = pool_relu(conv(x, params["w2"], params["b2"]))
    B = x.shape[0]
    x = jnp.transpose(x, (0, 3, 1, 2)).reshape(B, -1)     # torch channel-major flatten
    h = jnp.dot(x, params["fc1_w"], precision=hp) + params["fc1_b"]
    z = jnp.dot(h, params["fc2_w"], precision=hp) + params["fc2_b"]
    return jax.nn.log_softmax(z, axis=-1)


if __name__ == "__main__":
    key = jax.random.PRNGKey(0)
    ks = jax.random.split(key, 9)
    s = 0.05  # deterministic synthetic init (torch-shape-equivalent params)
    params = {
        "w1": s * jax.random.normal(ks[0], (3, 3, 1, 10), jnp.float32),
        "b1": s * jax.random.normal(ks[1], (10,), jnp.float32),
        "w2": s * jax.random.normal(ks[2], (3, 3, 10, 20), jnp.float32),
        "b2": s * jax.random.normal(ks[3], (20,), jnp.float32),
        "fc1_w": s * jax.random.normal(ks[4], (500, 50), jnp.float32),
        "fc1_b": s * jax.random.normal(ks[5], (50,), jnp.float32),
        "fc2_w": s * jax.random.normal(ks[6], (50, 10), jnp.float32),
        "fc2_b": s * jax.random.normal(ks[7], (10,), jnp.float32),
    }
    # 28x28 input is the smallest consistent with the forward pass (20*5*5 = 500)
    B = 10                         # exercises a 2-step grid plus batch padding
    x = jax.random.normal(ks[8], (B, 1, 28, 28), jnp.float32)

    BT = 8                         # batch tile per grid step
    packed = pack_params(params, BT)

    out = jax.jit(net_forward)(x, packed)
    out = jax.block_until_ready(out)

    ref = net_reference(x, params)
    assert out.shape == (B, 10)
    # Kernel matmuls run at default TPU matmul precision (bf16 passes on the
    # MXU), so ~1e-3-level deviation from the HIGHEST-precision reference is
    # expected; 3e-3 is still tight enough to catch any layout/permutation
    # regression (those produce O(1) errors).
    assert jnp.allclose(out, ref, atol=3e-3, rtol=3e-3), "kernel/reference mismatch"
    print("KERNEL_OK")
</pallas_src>

<mosaic_0001>
module attributes {stable_mosaic.version = 11 : i64} {
  func.func @net_kernel(%arg0: i32, %arg1: memref<224x28xf32, #tpu.memory_space<vmem>>, %arg2: memref<3x208x224xf32, #tpu.memory_space<vmem>>, %arg3: memref<84x260xf32, #tpu.memory_space<vmem>>, %arg4: memref<1x260xf32, #tpu.memory_space<vmem>>, %arg5: memref<2x260x130xf32, #tpu.memory_space<vmem>>, %arg6: memref<2x104x208xf32, #tpu.memory_space<vmem>>, %arg7: memref<3x88x104xf32, #tpu.memory_space<vmem>>, %arg8: memref<390x220xf32, #tpu.memory_space<vmem>>, %arg9: memref<1x220xf32, #tpu.memory_space<vmem>>, %arg10: memref<2x220x100xf32, #tpu.memory_space<vmem>>, %arg11: memref<2x40x88xf32, #tpu.memory_space<vmem>>, %arg12: memref<5x8x40xf32, #tpu.memory_space<vmem>>, %arg13: memref<500x50xf32, #tpu.memory_space<vmem>>, %arg14: memref<1x50xf32, #tpu.memory_space<vmem>>, %arg15: memref<50x10xf32, #tpu.memory_space<vmem>>, %arg16: memref<1x10xf32, #tpu.memory_space<vmem>>, %arg17: memref<8x10xf32, #tpu.memory_space<vmem>>) attributes {dimension_semantics = [#tpu.dimension_semantics<parallel>], iteration_bounds = array<i64: 2>, scalar_prefetch = 0 : i64, scratch_operands = 0 : i64, tpu.core_type = #tpu.core_type<tc>, window_params = [{transform_indices = @transform_0, window_bounds = array<i64: 224, 28>}, {pipeline_mode = #tpu.pipeline_mode<synchronous>, transform_indices = @transform_1, window_bounds = array<i64: 3, 208, 224>}, {pipeline_mode = #tpu.pipeline_mode<synchronous>, transform_indices = @transform_2, window_bounds = array<i64: 84, 260>}, {pipeline_mode = #tpu.pipeline_mode<synchronous>, transform_indices = @transform_3, window_bounds = array<i64: 1, 260>}, {pipeline_mode = #tpu.pipeline_mode<synchronous>, transform_indices = @transform_4, window_bounds = array<i64: 2, 260, 130>}, {pipeline_mode = #tpu.pipeline_mode<synchronous>, transform_indices = @transform_5, window_bounds = array<i64: 2, 104, 208>}, {pipeline_mode = #tpu.pipeline_mode<synchronous>, transform_indices = @transform_6, window_bounds = array<i64: 3, 88, 104>}, {pipeline_mode = #tpu.pipeline_mode<synchronous>, transform_indices = @transform_7, window_bounds = array<i64: 390, 220>}, {pipeline_mode = #tpu.pipeline_mode<synchronous>, transform_indices = @transform_8, window_bounds = array<i64: 1, 220>}, {pipeline_mode = #tpu.pipeline_mode<synchronous>, transform_indices = @transform_9, window_bounds = array<i64: 2, 220, 100>}, {pipeline_mode = #tpu.pipeline_mode<synchronous>, transform_indices = @transform_10, window_bounds = array<i64: 2, 40, 88>}, {pipeline_mode = #tpu.pipeline_mode<synchronous>, transform_indices = @transform_11, window_bounds = array<i64: 5, 8, 40>}, {pipeline_mode = #tpu.pipeline_mode<synchronous>, transform_indices = @transform_12, window_bounds = array<i64: 500, 50>}, {pipeline_mode = #tpu.pipeline_mode<synchronous>, transform_indices = @transform_13, window_bounds = array<i64: 1, 50>}, {pipeline_mode = #tpu.pipeline_mode<synchronous>, transform_indices = @transform_14, window_bounds = array<i64: 50, 10>}, {pipeline_mode = #tpu.pipeline_mode<synchronous>, transform_indices = @transform_15, window_bounds = array<i64: 1, 10>}, {transform_indices = @transform_16, window_bounds = array<i64: 8, 10>}]} {
    %c0 = arith.constant 0 : index
    %c0_0 = arith.constant 0 : index
    %0 = vector.load %arg1[%c0, %c0_0] : memref<224x28xf32, #tpu.memory_space<vmem>>, vector<224x28xf32>
    %c0_1 = arith.constant 0 : index
    %c0_2 = arith.constant 0 : index
    %c0_3 = arith.constant 0 : index
    %1 = vector.load %arg2[%c0_1, %c0_2, %c0_3] : memref<3x208x224xf32, #tpu.memory_space<vmem>>, vector<1x208x224xf32>
    %2 = vector.shape_cast %1 : vector<1x208x224xf32> to vector<208x224xf32>
    %cst = arith.constant dense<0.000000e+00> : vector<208x28xf32>
    %3 = tpu.matmul %2, %0, %cst {dimension_numbers = #tpu.dot_dimension_numbers<[1], [0], [0], [1], [0, 0, 1, 1], [], []>} : vector<208x224xf32>, vector<224x28xf32>, vector<208x28xf32> -> vector<208x28xf32>
    %c1 = arith.constant 1 : index
    %c0_4 = arith.constant 0 : index
    %c0_5 = arith.constant 0 : index
    %4 = vector.load %arg2[%c1, %c0_4, %c0_5] : memref<3x208x224xf32, #tpu.memory_space<vmem>>, vector<1x208x224xf32>
    %5 = vector.shape_cast %4 : vector<1x208x224xf32> to vector<208x224xf32>
    %cst_6 = arith.constant dense<0.000000e+00> : vector<208x28xf32>
    %6 = tpu.matmul %5, %0, %cst_6 {dimension_numbers = #tpu.dot_dimension_numbers<[1], [0], [0], [1], [0, 0, 1, 1], [], []>} : vector<208x224xf32>, vector<224x28xf32>, vector<208x28xf32> -> vector<208x28xf32>
    %c2 = arith.constant 2 : index
    %c0_7 = arith.constant 0 : index
    %c0_8 = arith.constant 0 : index
    %7 = vector.load %arg2[%c2, %c0_7, %c0_8] : memref<3x208x224xf32, #tpu.memory_space<vmem>>, vector<1x208x224xf32>
    %8 = vector.shape_cast %7 : vector<1x208x224xf32> to vector<208x224xf32>
    %cst_9 = arith.constant dense<0.000000e+00> : vector<208x28xf32>
    %9 = tpu.matmul %8, %0, %cst_9 {dimension_numbers = #tpu.dot_dimension_numbers<[1], [0], [0], [1], [0, 0, 1, 1], [], []>} : vector<208x224xf32>, vector<224x28xf32>, vector<208x28xf32> -> vector<208x28xf32>
    %10 = tpu.concatenate %3, %6, %9 in 1 : vector<208x28xf32>, vector<208x28xf32>, vector<208x28xf32> -> vector<208x84xf32>
    %c0_10 = arith.constant 0 : index
    %c0_11 = arith.constant 0 : index
    %11 = vector.load %arg3[%c0_10, %c0_11] : memref<84x260xf32, #tpu.memory_space<vmem>>, vector<84x260xf32>
    %cst_12 = arith.constant dense<0.000000e+00> : vector<208x260xf32>
    %12 = tpu.matmul %10, %11, %cst_12 {dimension_numbers = #tpu.dot_dimension_numbers<[1], [0], [0], [1], [0, 0, 1, 1], [], []>} : vector<208x84xf32>, vector<84x260xf32>, vector<208x260xf32> -> vector<208x260xf32>
    %c0_13 = arith.constant 0 : index
    %c0_14 = arith.constant 0 : index
    %13 = vector.load %arg4[%c0_13, %c0_14] : memref<1x260xf32, #tpu.memory_space<vmem>>, vector<1x260xf32>
    %14 = vector.broadcast %13 : vector<1x260xf32> to vector<208x260xf32>
    %15 = arith.addf %12, %14 : vector<208x260xf32>
    %c0_15 = arith.constant 0 : index
    %c0_16 = arith.constant 0 : index
    %c0_17 = arith.constant 0 : index
    %16 = vector.load %arg5[%c0_15, %c0_16, %c0_17] : memref<2x260x130xf32, #tpu.memory_space<vmem>>, vector<1x260x130xf32>
    %17 = vector.shape_cast %16 : vector<1x260x130xf32> to vector<260x130xf32>
    %cst_18 = arith.constant dense<0.000000e+00> : vector<208x130xf32>
    %18 = tpu.matmul %15, %17, %cst_18 {dimension_numbers = #tpu.dot_dimension_numbers<[1], [0], [0], [1], [0, 0, 1, 1], [], []>} : vector<208x260xf32>, vector<260x130xf32>, vector<208x130xf32> -> vector<208x130xf32>
    %c1_19 = arith.constant 1 : index
    %c0_20 = arith.constant 0 : index
    %c0_21 = arith.constant 0 : index
    %19 = vector.load %arg5[%c1_19, %c0_20, %c0_21] : memref<2x260x130xf32, #tpu.memory_space<vmem>>, vector<1x260x130xf32>
    %20 = vector.shape_cast %19 : vector<1x260x130xf32> to vector<260x130xf32>
    %cst_22 = arith.constant dense<0.000000e+00> : vector<208x130xf32>
    %21 = tpu.matmul %15, %20, %cst_22 {dimension_numbers = #tpu.dot_dimension_numbers<[1], [0], [0], [1], [0, 0, 1, 1], [], []>} : vector<208x260xf32>, vector<260x130xf32>, vector<208x130xf32> -> vector<208x130xf32>
    %22 = arith.maximumf %18, %21 : vector<208x130xf32>
    %c0_23 = arith.constant 0 : index
    %c0_24 = arith.constant 0 : index
    %c0_25 = arith.constant 0 : index
    %23 = vector.load %arg6[%c0_23, %c0_24, %c0_25] : memref<2x104x208xf32, #tpu.memory_space<vmem>>, vector<1x104x208xf32>
    %24 = vector.shape_cast %23 : vector<1x104x208xf32> to vector<104x208xf32>
    %cst_26 = arith.constant dense<0.000000e+00> : vector<104x130xf32>
    %25 = tpu.matmul %24, %22, %cst_26 {dimension_numbers = #tpu.dot_dimension_numbers<[1], [0], [0], [1], [0, 0, 1, 1], [], []>} : vector<104x208xf32>, vector<208x130xf32>, vector<104x130xf32> -> vector<104x130xf32>
    %c1_27 = arith.constant 1 : index
    %c0_28 = arith.constant 0 : index
    %c0_29 = arith.constant 0 : index
    %26 = vector.load %arg6[%c1_27, %c0_28, %c0_29] : memref<2x104x208xf32, #tpu.memory_space<vmem>>, vector<1x104x208xf32>
    %27 = vector.shape_cast %26 : vector<1x104x208xf32> to vector<104x208xf32>
    %cst_30 = arith.constant dense<0.000000e+00> : vector<104x130xf32>
    %28 = tpu.matmul %27, %22, %cst_30 {dimension_numbers = #tpu.dot_dimension_numbers<[1], [0], [0], [1], [0, 0, 1, 1], [], []>} : vector<104x208xf32>, vector<208x130xf32>, vector<104x130xf32> -> vector<104x130xf32>
    %29 = arith.maximumf %25, %28 : vector<104x130xf32>
    %cst_31 = arith.constant 0.000000e+00 : f32
    %30 = vector.broadcast %cst_31 : f32 to vector<104x130xf32>
    %31 = arith.maximumf %29, %30 : vector<104x130xf32>
    %c0_32 = arith.constant 0 : index
    %c0_33 = arith.constant 0 : index
    %c0_34 = arith.constant 0 : index
    %32 = vector.load %arg7[%c0_32, %c0_33, %c0_34] : memref<3x88x104xf32, #tpu.memory_space<vmem>>, vector<1x88x104xf32>
    %33 = vector.shape_cast %32 : vector<1x88x104xf32> to vector<88x104xf32>
    %cst_35 = arith.constant dense<0.000000e+00> : vector<88x130xf32>
    %34 = tpu.matmul %33, %31, %cst_35 {dimension_numbers = #tpu.dot_dimension_numbers<[1], [0], [0], [1], [0, 0, 1, 1], [], []>} : vector<88x104xf32>, vector<104x130xf32>, vector<88x130xf32> -> vector<88x130xf32>
    %c1_36 = arith.constant 1 : index
    %c0_37 = arith.constant 0 : index
    %c0_38 = arith.constant 0 : index
    %35 = vector.load %arg7[%c1_36, %c0_37, %c0_38] : memref<3x88x104xf32, #tpu.memory_space<vmem>>, vector<1x88x104xf32>
    %36 = vector.shape_cast %35 : vector<1x88x104xf32> to vector<88x104xf32>
    %cst_39 = arith.constant dense<0.000000e+00> : vector<88x130xf32>
    %37 = tpu.matmul %36, %31, %cst_39 {dimension_numbers = #tpu.dot_dimension_numbers<[1], [0], [0], [1], [0, 0, 1, 1], [], []>} : vector<88x104xf32>, vector<104x130xf32>, vector<88x130xf32> -> vector<88x130xf32>
    %c2_40 = arith.constant 2 : index
    %c0_41 = arith.constant 0 : index
    %c0_42 = arith.constant 0 : index
    %38 = vector.load %arg7[%c2_40, %c0_41, %c0_42] : memref<3x88x104xf32, #tpu.memory_space<vmem>>, vector<1x88x104xf32>
    %39 = vector.shape_cast %38 : vector<1x88x104xf32> to vector<88x104xf32>
    %cst_43 = arith.constant dense<0.000000e+00> : vector<88x130xf32>
    %40 = tpu.matmul %39, %31, %cst_43 {dimension_numbers = #tpu.dot_dimension_numbers<[1], [0], [0], [1], [0, 0, 1, 1], [], []>} : vector<88x104xf32>, vector<104x130xf32>, vector<88x130xf32> -> vector<88x130xf32>
    %41 = tpu.concatenate %34, %37, %40 in 1 : vector<88x130xf32>, vector<88x130xf32>, vector<88x130xf32> -> vector<88x390xf32>
    %c0_44 = arith.constant 0 : index
    %c0_45 = arith.constant 0 : index
    %42 = vector.load %arg8[%c0_44, %c0_45] : memref<390x220xf32, #tpu.memory_space<vmem>>, vector<390x220xf32>
    %cst_46 = arith.constant dense<0.000000e+00> : vector<88x220xf32>
    %43 = tpu.matmul %41, %42, %cst_46 {dimension_numbers = #tpu.dot_dimension_numbers<[1], [0], [0], [1], [0, 0, 1, 1], [], []>} : vector<88x390xf32>, vector<390x220xf32>, vector<88x220xf32> -> vector<88x220xf32>
    %c0_47 = arith.constant 0 : index
    %c0_48 = arith.constant 0 : index
    %44 = vector.load %arg9[%c0_47, %c0_48] : memref<1x220xf32, #tpu.memory_space<vmem>>, vector<1x220xf32>
    %45 = vector.broadcast %44 : vector<1x220xf32> to vector<88x220xf32>
    %46 = arith.addf %43, %45 : vector<88x220xf32>
    %c0_49 = arith.constant 0 : index
    %c0_50 = arith.constant 0 : index
    %c0_51 = arith.constant 0 : index
    %47 = vector.load %arg10[%c0_49, %c0_50, %c0_51] : memref<2x220x100xf32, #tpu.memory_space<vmem>>, vector<1x220x100xf32>
    %48 = vector.shape_cast %47 : vector<1x220x100xf32> to vector<220x100xf32>
    %cst_52 = arith.constant dense<0.000000e+00> : vector<88x100xf32>
    %49 = tpu.matmul %46, %48, %cst_52 {dimension_numbers = #tpu.dot_dimension_numbers<[1], [0], [0], [1], [0, 0, 1, 1], [], []>} : vector<88x220xf32>, vector<220x100xf32>, vector<88x100xf32> -> vector<88x100xf32>
    %c1_53 = arith.constant 1 : index
    %c0_54 = arith.constant 0 : index
    %c0_55 = arith.constant 0 : index
    %50 = vector.load %arg10[%c1_53, %c0_54, %c0_55] : memref<2x220x100xf32, #tpu.memory_space<vmem>>, vector<1x220x100xf32>
    %51 = vector.shape_cast %50 : vector<1x220x100xf32> to vector<220x100xf32>
    %cst_56 = arith.constant dense<0.000000e+00> : vector<88x100xf32>
    %52 = tpu.matmul %46, %51, %cst_56 {dimension_numbers = #tpu.dot_dimension_numbers<[1], [0], [0], [1], [0, 0, 1, 1], [], []>} : vector<88x220xf32>, vector<220x100xf32>, vector<88x100xf32> -> vector<88x100xf32>
    %53 = arith.maximumf %49, %52 : vector<88x100xf32>
    %c0_57 = arith.constant 0 : index
    %c0_58 = arith.constant 0 : index
    %c0_59 = arith.constant 0 : index
    %54 = vector.load %arg11[%c0_57, %c0_58, %c0_59] : memref<2x40x88xf32, #tpu.memory_space<vmem>>, vector<1x40x88xf32>
    %55 = vector.shape_cast %54 : vector<1x40x88xf32> to vector<40x88xf32>
    %cst_60 = arith.constant dense<0.000000e+00> : vector<40x100xf32>
    %56 = tpu.matmul %55, %53, %cst_60 {dimension_numbers = #tpu.dot_dimension_numbers<[1], [0], [0], [1], [0, 0, 1, 1], [], []>} : vector<40x88xf32>, vector<88x100xf32>, vector<40x100xf32> -> vector<40x100xf32>
    %c1_61 = arith.constant 1 : index
    %c0_62 = arith.constant 0 : index
    %c0_63 = arith.constant 0 : index
    %57 = vector.load %arg11[%c1_61, %c0_62, %c0_63] : memref<2x40x88xf32, #tpu.memory_space<vmem>>, vector<1x40x88xf32>
    %58 = vector.shape_cast %57 : vector<1x40x88xf32> to vector<40x88xf32>
    %cst_64 = arith.constant dense<0.000000e+00> : vector<40x100xf32>
    %59 = tpu.matmul %58, %53, %cst_64 {dimension_numbers = #tpu.dot_dimension_numbers<[1], [0], [0], [1], [0, 0, 1, 1], [], []>} : vector<40x88xf32>, vector<88x100xf32>, vector<40x100xf32> -> vector<40x100xf32>
    %60 = arith.maximumf %56, %59 : vector<40x100xf32>
    %cst_65 = arith.constant 0.000000e+00 : f32
    %61 = vector.broadcast %cst_65 : f32 to vector<40x100xf32>
    %62 = arith.maximumf %60, %61 : vector<40x100xf32>
    %c0_66 = arith.constant 0 : index
    %c0_67 = arith.constant 0 : index
    %c0_68 = arith.constant 0 : index
    %63 = vector.load %arg12[%c0_66, %c0_67, %c0_68] : memref<5x8x40xf32, #tpu.memory_space<vmem>>, vector<1x8x40xf32>
    %64 = vector.shape_cast %63 : vector<1x8x40xf32> to vector<8x40xf32>
    %cst_69 = arith.constant dense<0.000000e+00> : vector<8x100xf32>
    %65 = tpu.matmul %64, %62, %cst_69 {dimension_numbers = #tpu.dot_dimension_numbers<[1], [0], [0], [1], [0, 0, 1, 1], [], []>} : vector<8x40xf32>, vector<40x100xf32>, vector<8x100xf32> -> vector<8x100xf32>
    %c1_70 = arith.constant 1 : index
    %c0_71 = arith.constant 0 : index
    %c0_72 = arith.constant 0 : index
    %66 = vector.load %arg12[%c1_70, %c0_71, %c0_72] : memref<5x8x40xf32, #tpu.memory_space<vmem>>, vector<1x8x40xf32>
    %67 = vector.shape_cast %66 : vector<1x8x40xf32> to vector<8x40xf32>
    %cst_73 = arith.constant dense<0.000000e+00> : vector<8x100xf32>
    %68 = tpu.matmul %67, %62, %cst_73 {dimension_numbers = #tpu.dot_dimension_numbers<[1], [0], [0], [1], [0, 0, 1, 1], [], []>} : vector<8x40xf32>, vector<40x100xf32>, vector<8x100xf32> -> vector<8x100xf32>
    %c2_74 = arith.constant 2 : index
    %c0_75 = arith.constant 0 : index
    %c0_76 = arith.constant 0 : index
    %69 = vector.load %arg12[%c2_74, %c0_75, %c0_76] : memref<5x8x40xf32, #tpu.memory_space<vmem>>, vector<1x8x40xf32>
    %70 = vector.shape_cast %69 : vector<1x8x40xf32> to vector<8x40xf32>
    %cst_77 = arith.constant dense<0.000000e+00> : vector<8x100xf32>
    %71 = tpu.matmul %70, %62, %cst_77 {dimension_numbers = #tpu.dot_dimension_numbers<[1], [0], [0], [1], [0, 0, 1, 1], [], []>} : vector<8x40xf32>, vector<40x100xf32>, vector<8x100xf32> -> vector<8x100xf32>
    %c3 = arith.constant 3 : index
    %c0_78 = arith.constant 0 : index
    %c0_79 = arith.constant 0 : index
    %72 = vector.load %arg12[%c3, %c0_78, %c0_79] : memref<5x8x40xf32, #tpu.memory_space<vmem>>, vector<1x8x40xf32>
    %73 = vector.shape_cast %72 : vector<1x8x40xf32> to vector<8x40xf32>
    %cst_80 = arith.constant dense<0.000000e+00> : vector<8x100xf32>
    %74 = tpu.matmul %73, %62, %cst_80 {dimension_numbers = #tpu.dot_dimension_numbers<[1], [0], [0], [1], [0, 0, 1, 1], [], []>} : vector<8x40xf32>, vector<40x100xf32>, vector<8x100xf32> -> vector<8x100xf32>
    %c4 = arith.constant 4 : index
    %c0_81 = arith.constant 0 : index
    %c0_82 = arith.constant 0 : index
    %75 = vector.load %arg12[%c4, %c0_81, %c0_82] : memref<5x8x40xf32, #tpu.memory_space<vmem>>, vector<1x8x40xf32>
    %76 = vector.shape_cast %75 : vector<1x8x40xf32> to vector<8x40xf32>
    %cst_83 = arith.constant dense<0.000000e+00> : vector<8x100xf32>
    %77 = tpu.matmul %76, %62, %cst_83 {dimension_numbers = #tpu.dot_dimension_numbers<[1], [0], [0], [1], [0, 0, 1, 1], [], []>} : vector<8x40xf32>, vector<40x100xf32>, vector<8x100xf32> -> vector<8x100xf32>
    %78 = tpu.concatenate %65, %68, %71, %74, %77 in 1 : vector<8x100xf32>, vector<8x100xf32>, vector<8x100xf32>, vector<8x100xf32>, vector<8x100xf32> -> vector<8x500xf32>
    %c0_84 = arith.constant 0 : index
    %c0_85 = arith.constant 0 : index
    %79 = vector.load %arg13[%c0_84, %c0_85] : memref<500x50xf32, #tpu.memory_space<vmem>>, vector<500x50xf32>
    %cst_86 = arith.constant dense<0.000000e+00> : vector<8x50xf32>
    %80 = tpu.matmul %78, %79, %cst_86 {dimension_numbers = #tpu.dot_dimension_numbers<[1], [0], [0], [1], [0, 0, 1, 1], [], []>} : vector<8x500xf32>, vector<500x50xf32>, vector<8x50xf32> -> vector<8x50xf32>
    %c0_87 = arith.constant 0 : index
    %c0_88 = arith.constant 0 : index
    %81 = vector.load %arg14[%c0_87, %c0_88] : memref<1x50xf32, #tpu.memory_space<vmem>>, vector<1x50xf32>
    %82 = vector.broadcast %81 : vector<1x50xf32> to vector<8x50xf32>
    %83 = arith.addf %80, %82 : vector<8x50xf32>
    %c0_89 = arith.constant 0 : index
    %c0_90 = arith.constant 0 : index
    %84 = vector.load %arg15[%c0_89, %c0_90] : memref<50x10xf32, #tpu.memory_space<vmem>>, vector<50x10xf32>
    %cst_91 = arith.constant dense<0.000000e+00> : vector<8x10xf32>
    %85 = tpu.matmul %83, %84, %cst_91 {dimension_numbers = #tpu.dot_dimension_numbers<[1], [0], [0], [1], [0, 0, 1, 1], [], []>} : vector<8x50xf32>, vector<50x10xf32>, vector<8x10xf32> -> vector<8x10xf32>
    %c0_92 = arith.constant 0 : index
    %c0_93 = arith.constant 0 : index
    %86 = vector.load %arg16[%c0_92, %c0_93] : memref<1x10xf32, #tpu.memory_space<vmem>>, vector<1x10xf32>
    %87 = vector.broadcast %86 : vector<1x10xf32> to vector<8x10xf32>
    %88 = arith.addf %85, %87 : vector<8x10xf32>
    %cst_94 = arith.constant dense<0xFF800000> : vector<8xf32>
    %89 = vector.multi_reduction <maximumf>, %88, %cst_94 [1] : vector<8x10xf32> to vector<8xf32>
    %90 = vector.shape_cast %89 : vector<8xf32> to vector<8x1xf32>
    %91 = vector.broadcast %90 : vector<8x1xf32> to vector<8x10xf32>
    %92 = arith.subf %88, %91 : vector<8x10xf32>
    %93 = math.exp %92 : vector<8x10xf32>
    %cst_95 = arith.constant dense<0.000000e+00> : vector<8xf32>
    %94 = vector.multi_reduction <add>, %93, %cst_95 [1] : vector<8x10xf32> to vector<8xf32>
    %95 = vector.shape_cast %94 : vector<8xf32> to vector<8x1xf32>
    %96 = math.log %95 : vector<8x1xf32>
    %97 = vector.broadcast %96 : vector<8x1xf32> to vector<8x10xf32>
    %98 = arith.subf %92, %97 : vector<8x10xf32>
    %c0_96 = arith.constant 0 : index
    %c0_97 = arith.constant 0 : index
    %99 = vector.load %arg17[%c0_96, %c0_97] : memref<8x10xf32, #tpu.memory_space<vmem>>, vector<8x10xf32>
    tpu.vector_store %arg17[%c0_96, %c0_97], %98 {strides = array<i32>} : memref<8x10xf32, #tpu.memory_space<vmem>>, vector<8x10xf32>,
    return
  }
  func.func @transform_0(%arg0: i32) -> (i32, i32) {
    %c0_i32 = arith.constant 0 : i32
    %c0_i32_0 = arith.constant 0 : i32
    return %arg0, %c0_i32 : i32, i32
  }
  func.func @transform_1(%arg0: i32) -> (i32, i32, i32) {
    %c0_i32 = arith.constant 0 : i32
    %c0_i32_0 = arith.constant 0 : i32
    %c0_i32_1 = arith.constant 0 : i32
    %c0_i32_2 = arith.constant 0 : i32
    return %c0_i32, %c0_i32_0, %c0_i32_1 : i32, i32, i32
  }
  func.func @transform_2(%arg0: i32) -> (i32, i32) {
    %c0_i32 = arith.constant 0 : i32
    %c0_i32_0 = arith.constant 0 : i32
    %c0_i32_1 = arith.constant 0 : i32
    return %c0_i32, %c0_i32_0 : i32, i32
  }
  func.func @transform_3(%arg0: i32) -> (i32, i32) {
    %c0_i32 = arith.constant 0 : i32
    %c0_i32_0 = arith.constant 0 : i32
    %c0_i32_1 = arith.constant 0 : i32
    return %c0_i32, %c0_i32_0 : i32, i32
  }
  func.func @transform_4(%arg0: i32) -> (i32, i32, i32) {
    %c0_i32 = arith.constant 0 : i32
    %c0_i32_0 = arith.constant 0 : i32
    %c0_i32_1 = arith.constant 0 : i32
    %c0_i32_2 = arith.constant 0 : i32
    return %c0_i32, %c0_i32_0, %c0_i32_1 : i32, i32, i32
  }
  func.func @transform_5(%arg0: i32) -> (i32, i32, i32) {
    %c0_i32 = arith.constant 0 : i32
    %c0_i32_0 = arith.constant 0 : i32
    %c0_i32_1 = arith.constant 0 : i32
    %c0_i32_2 = arith.constant 0 : i32
    return %c0_i32, %c0_i32_0, %c0_i32_1 : i32, i32, i32
  }
  func.func @transform_6(%arg0: i32) -> (i32, i32, i32) {
    %c0_i32 = arith.constant 0 : i32
    %c0_i32_0 = arith.constant 0 : i32
    %c0_i32_1 = arith.constant 0 : i32
    %c0_i32_2 = arith.constant 0 : i32
    return %c0_i32, %c0_i32_0, %c0_i32_1 : i32, i32, i32
  }
  func.func @transform_7(%arg0: i32) -> (i32, i32) {
    %c0_i32 = arith.constant 0 : i32
    %c0_i32_0 = arith.constant 0 : i32
    %c0_i32_1 = arith.constant 0 : i32
    return %c0_i32, %c0_i32_0 : i32, i32
  }
  func.func @transform_8(%arg0: i32) -> (i32, i32) {
    %c0_i32 = arith.constant 0 : i32
    %c0_i32_0 = arith.constant 0 : i32
    %c0_i32_1 = arith.constant 0 : i32
    return %c0_i32, %c0_i32_0 : i32, i32
  }
  func.func @transform_9(%arg0: i32) -> (i32, i32, i32) {
    %c0_i32 = arith.constant 0 : i32
    %c0_i32_0 = arith.constant 0 : i32
    %c0_i32_1 = arith.constant 0 : i32
    %c0_i32_2 = arith.constant 0 : i32
    return %c0_i32, %c0_i32_0, %c0_i32_1 : i32, i32, i32
  }
  func.func @transform_10(%arg0: i32) -> (i32, i32, i32) {
    %c0_i32 = arith.constant 0 : i32
    %c0_i32_0 = arith.constant 0 : i32
    %c0_i32_1 = arith.constant 0 : i32
    %c0_i32_2 = arith.constant 0 : i32
    return %c0_i32, %c0_i32_0, %c0_i32_1 : i32, i32, i32
  }
  func.func @transform_11(%arg0: i32) -> (i32, i32, i32) {
    %c0_i32 = arith.constant 0 : i32
    %c0_i32_0 = arith.constant 0 : i32
    %c0_i32_1 = arith.constant 0 : i32
    %c0_i32_2 = arith.constant 0 : i32
    return %c0_i32, %c0_i32_0, %c0_i32_1 : i32, i32, i32
  }
  func.func @transform_12(%arg0: i32) -> (i32, i32) {
    %c0_i32 = arith.constant 0 : i32
    %c0_i32_0 = arith.constant 0 : i32
    %c0_i32_1 = arith.constant 0 : i32
    return %c0_i32, %c0_i32_0 : i32, i32
  }
  func.func @transform_13(%arg0: i32) -> (i32, i32) {
    %c0_i32 = arith.constant 0 : i32
    %c0_i32_0 = arith.constant 0 : i32
    %c0_i32_1 = arith.constant 0 : i32
    return %c0_i32, %c0_i32_0 : i32, i32
  }
  func.func @transform_14(%arg0: i32) -> (i32, i32) {
    %c0_i32 = arith.constant 0 : i32
    %c0_i32_0 = arith.constant 0 : i32
    %c0_i32_1 = arith.constant 0 : i32
    return %c0_i32, %c0_i32_0 : i32, i32
  }
  func.func @transform_15(%arg0: i32) -> (i32, i32) {
    %c0_i32 = arith.constant 0 : i32
    %c0_i32_0 = arith.constant 0 : i32
    %c0_i32_1 = arith.constant 0 : i32
    return %c0_i32, %c0_i32_0 : i32, i32
  }
  func.func @transform_16(%arg0: i32) -> (i32, i32) {
    %c0_i32 = arith.constant 0 : i32
    %c0_i32_0 = arith.constant 0 : i32
    return %arg0, %c0_i32 : i32, i32
  }
}

</mosaic_0001>

<bundles_post_ra>
// kernel: net_forward.1
= control target key start
LH: loop header
LB: loop body
LE: loop exit
PB: predicated region body
PF: predicated region fallthrough
CT: control target
= control target key end

     0   :  { %s12715_s0 = inlined_call_operand.vmem [shape: f32[448,28], index: 0, kind: input, shape index: {}]   ;;  %s12716_s1 = inlined_call_operand.vmem [shape: f32[3,208,224], index: 1, kind: input, shape index: {}]   ;;  %s12717_s2 = inlined_call_operand.vmem [shape: f32[84,260], index: 2, kind: input, shape index: {}]   ;;  %s12718_s3 = inlined_call_operand.vmem [shape: f32[1,260], index: 3, kind: input, shape index: {}]   ;;  %s12719_s4 = inlined_call_operand.vmem [shape: f32[2,260,130], index: 4, kind: input, shape index: {}]   ;;  %s12720_s5 = inlined_call_operand.vmem [shape: f32[2,104,208], index: 5, kind: input, shape index: {}]   ;;  %s12721_s6 = inlined_call_operand.vmem [shape: f32[3,88,104], index: 6, kind: input, shape index: {}]   ;;  %s12722_s7 = inlined_call_operand.vmem [shape: f32[390,220], index: 7, kind: input, shape index: {}]   ;;  %s12723_s8 = inlined_call_operand.vmem [shape: f32[1,220], index: 8, kind: input, shape index: {}]   ;;  %s12724_s9 = inlined_call_operand.vmem [shape: f32[2,220,100], index: 9, kind: input, shape index: {}]   ;;  %s12725_s10 = inlined_call_operand.vmem [shape: f32[2,40,88], index: 10, kind: input, shape index: {}]   ;;  %s12726_s11 = inlined_call_operand.vmem [shape: f32[5,8,40], index: 11, kind: input, shape index: {}]   ;;  %s12727_s12 = inlined_call_operand.vmem [shape: f32[500,50], index: 12, kind: input, shape index: {}]   ;;  %s12728_s13 = inlined_call_operand.vmem [shape: f32[1,50], index: 13, kind: input, shape index: {}]   ;;  %s12729_s14 = inlined_call_operand.vmem [shape: f32[50,10], index: 14, kind: input, shape index: {}]   ;;  %s12730_s15 = inlined_call_operand.vmem [shape: f32[1,10], index: 15, kind: input, shape index: {}]   ;;  %s12731_s16 = inlined_call_operand.hbm [shape: f32[16,10], index: 16, kind: output, shape index: {}]  }
   0x1   :  { %12831 = sst [smem:[#allocation186_spill]] %s12715_s0 }
   0x2   :  { %12832 = sst [smem:[#allocation187_spill]] %s12716_s1 }
   0x3   :  { %12833 = sst [smem:[#allocation188_spill]] %s12717_s2 }
   0x4   :  { %21 = vsyncpa [#allocation3], 0 }
   0x5   :  { %23 = vsyncpa [#allocation3 + $0x1], 0  ;;  %s7260_s21 = smov 0   ;;  %s7262_s22 = smov 0  }
   0x6   :  { %s7264_s23 = smov 0   ;;  %s7266_s24 = smov 0  }
   0x7 LB: > { %12834 = sst [smem:[#allocation5_spill]] %s7161_s23  ;;  %s7281_s25 = sadd.s32 4294967295, %s7165_s24   ;;  %s7165_s24 = sphi %s7266_s24, %s13405_s24   ;;  %s7161_s23 = sphi %s7264_s23, %s13407_s23   ;;  %s7157_s22 = sphi %s7262_s22, %s13409_s22   ;;  %s7153_s21 = sphi %s7260_s21, %s13408_s21  }
   0x8   : > { %s6272_s26 = sadd.s32 4294967294, %s7165_s24   ;;  %s7285_s27 = sadd.s32 1, %s7165_s24  }
   0x9   : > { %12835 = sst [smem:[#allocation6_spill]] %s7285_s27  ;;  %s377_s28 = sadd.s32 1, %s7161_s23 }
   0xa   : > { %s374_s29 = ssub.s32 %s7165_s24, %s7285_s27  ;;  %p387_p0 = scmp.ne.s32.totalorder %s7161_s23, %s7157_s22 }
   0xb   : > { %p375_p1 = scmp.eq.s32.totalorder %s374_s29, 0  ;;  %p388_p2 = scmp.eq.s32.totalorder %s7281_s25, 1 }
   0xc   : > { %p393_p3 = scmp.ne.s32.totalorder %s7157_s22, %s7153_s21  ;;  %p394_p4 = scmp.eq.s32.totalorder %s6272_s26, 1 }
   0xd   : > { %s7296_s30 = scalar_select %p375_p1, %s7161_s23, %s377_s28  }
   0xe   : > { %p7298_p5 = por %p388_p2, %p387_p0  ;;  %p7302_p6 = por %p394_p4, %p393_p3 }
   0xf   : > { %12836 = sst [smem:[#allocation7_spill]] %s7296_s30  ;;  %p6275_p7 = scmp.ge.s32.totalorder %s7165_s24, 1 }
  0x10   : > { %s12838_s17 = scalar_select %p7302_p6, 1, 0 }
  0x11   : > { %p466_p8 = scmp.lt.s32.totalorder %s7165_s24, 3 }
  0x12   : > { %12839 = sst [smem:[#allocation8_spill]] %s12838_s17 }
  0x13   : > { %p467_p9 = pnand %p6275_p7, %p466_p8 }
  0x15   : > { %470 = sbr.rel (%p467_p9) target bundleno = 3630 (0xe2e), region = 84 }
  0x1a   : > { %s516_s18 = smul.u32 28, %s7281_s25  ;;  %s12840_s28 = sld [smem:[#allocation186_spill]]  ;;  %vm602_vm0 = vcmask 785408   ;;  %vm1895_vm1 = vcmask 1043456   ;;  %vm1721_vm2 = vcmask 228352   ;;  %vm1816_vm3 = vcmask 687104  }
  0x1b   : > { %s12841_s1 = sld [smem:[#allocation187_spill]]  ;;  %s12736_s26 = smov 28   ;;  %vm1748_vm4 = vcmask 457728   ;;  %vm2256_vm5 = vcmask 31744   ;;  %vm3632_vm6 = vcmask 654336   ;;  %vm4249_vm7 = vcmask 850944  }
  0x1c   : > { %p517_p10 = scmp.lt.s32.totalorder %s516_s18, 55  ;;  %s12852_s2 = sld [smem:[#allocation188_spill]]  ;;  %vm5010_vm8 = vcmask 1045504   ;;  %vm4987_vm9 = vcmask 48128   ;;  %vm4739_vm10 = vcmask 15360   ;;  %vm5445_vm11 = vcmask 752640  }
  0x1d   : > { %s12853_s23 = smov 56   ;;  %s7169_s20 = smov 4   ;;  %vm5730_vm12 = vcmask 719872   ;;  %vm5842_vm13 = vcmask 326656   ;;  %vm5982_vm14 = vcmask 818176   ;;  %vm5984_vm15 = vcmask 588800  }
  0x1e   : > { %s13411_s18 = smov (!%p517_p10, %s516_s18), 55  ;;  %s7171_s17 = smov 100  }
  0x1f   : > { %s6277_s19 = sshll.u32 %s13411_s18, 3  ;;  %s12854_s18 = smov 28  }
  0x20   : > { %s7312_s29 = scalar_lea.vmem %s12840_s28, %s6277_s19  ;;  %s12738_s19 = smov 56  }
  0x21   : > { %v7315_v0 = vld [vmem:[%s7312_s29 + $0x78] sm:$0xff]  ;;  %v7321_v2 = vld [vmem:[%s7312_s29 + $0x70] sm:$0xff]  ;;  %v7330_v4 = vld [vmem:[%s7312_s29 + $0x68] sm:$0xff]  ;;  %s6986_s30 = sshll.u32 %s7281_s25, 3 }
  0x22   : > { %v7318_v1 = vld [vmem:[%s7312_s29 + $0xd8] sm:$0xff]  ;;  %681 = vmatpush.msra.mxu0 %v7315_v0  ;;  %1002 = vmatpush.msra.mxu2 %v7315_v0  ;;  %v7326_v3 = vld [vmem:[%s7312_s29 + $0xd0] sm:$0xff]  ;;  %v7336_v5 = vld [vmem:[%s7312_s29 + $0xc8] sm:$0xff] }
  0x23   : > { %1101 = vmatpush.msra.mxu3 %v7318_v1  ;;  %780 = vmatpush.msra.mxu1 %v7318_v1  ;;  %v7340_v6 = vld [vmem:[%s7312_s29 + $0x60] sm:$0xff]  ;;  %v7350_v8 = vld [vmem:[%s7312_s29 + $0x58] sm:$0xff]  ;;  %v7360_v10 = vld [vmem:[%s7312_s29 + $0x50] sm:$0xff] }
  0x24   : > { %682 = vmatpush.msra.mxu0 %v7321_v2  ;;  %1003 = vmatpush.msra.mxu2 %v7321_v2  ;;  %v7346_v7 = vld [vmem:[%s7312_s29 + $0xc0] sm:$0xff]  ;;  %v7356_v9 = vld [vmem:[%s7312_s29 + $0xb8] sm:$0xff]  ;;  %v7366_v11 = vld [vmem:[%s7312_s29 + $0xb0] sm:$0xff] }
  0x25   : > { %1102 = vmatpush.msra.mxu3 %v7326_v3  ;;  %781 = vmatpush.msra.mxu1 %v7326_v3  ;;  %v7370_v12 = vld [vmem:[%s7312_s29 + $0x48] sm:$0xff]  ;;  %v7380_v14 = vld [vmem:[%s7312_s29 + $0x40] sm:$0xff]  ;;  %v7390_v16 = vld [vmem:[%s7312_s29 + $0x38] sm:$0xff] }
  0x26   : > { %683 = vmatpush.msra.mxu0 %v7330_v4  ;;  %1004 = vmatpush.msra.mxu2 %v7330_v4  ;;  %v7376_v13 = vld [vmem:[%s7312_s29 + $0xa8] sm:$0xff]  ;;  %v7386_v15 = vld [vmem:[%s7312_s29 + $0xa0] sm:$0xff]  ;;  %v7396_v17 = vld [vmem:[%s7312_s29 + $0x98] sm:$0xff] }
  0x27   : > { %1103 = vmatpush.msra.mxu3 %v7336_v5  ;;  %782 = vmatpush.msra.mxu1 %v7336_v5  ;;  %v7400_v18 = vld [vmem:[%s7312_s29 + $0x30] sm:$0xff]  ;;  %v7410_v20 = vld [vmem:[%s7312_s29 + $0x28] sm:$0xff]  ;;  %v7420_v22 = vld [vmem:[%s7312_s29 + $0x20] sm:$0xff] }
  0x28   : > { %684 = vmatpush.msra.mxu0 %v7340_v6  ;;  %1005 = vmatpush.msra.mxu2 %v7340_v6  ;;  %v7406_v19 = vld [vmem:[%s7312_s29 + $0x90] sm:$0xff]  ;;  %v7416_v21 = vld [vmem:[%s7312_s29 + $0x88] sm:$0xff]  ;;  %v7426_v23 = vld [vmem:[%s7312_s29 + $0x80] sm:$0xff] }
  0x29   : > { %1104 = vmatpush.msra.mxu3 %v7346_v7  ;;  %783 = vmatpush.msra.mxu1 %v7346_v7  ;;  %v6305_v24 = vld [vmem:[%s12841_s1 + $0x1a8] sm:$0xff]  ;;  %v7433_v25 = vld [vmem:[%s7312_s29 + $0x18] sm:$0xff]  ;;  %v7443_v27 = vld [vmem:[%s7312_s29 + $0x10] sm:$0xff] }
  0x2a   : > { %685 = vmatpush.msra.mxu0 %v7350_v8  ;;  %1006 = vmatpush.msra.mxu2 %v7350_v8  ;;  %v551_v26 = vld [vmem:[%s12841_s1 + $0x8] sm:$0xff]  ;;  %v7457_v29 = vld [vmem:[%s7312_s29] sm:$0xff]  ;;  %v6307_v32 = vld [vmem:[%s12841_s1 + $0x1b8] sm:$0xff] }
  0x2b   : > { %1105 = vmatpush.msra.mxu3 %v7356_v9  ;;  %784 = vmatpush.msra.mxu1 %v7356_v9  ;;  %v7450_v28 = vld [vmem:[%s7312_s29 + $0x8] sm:$0xff]  ;;  %v550_v30 = vld [vmem:[%s12841_s1] sm:$0xff]  ;;  %v553_v33 = vld [vmem:[%s12841_s1 + $0x18] sm:$0xff]  ;;  %s513_s29 = sand.u32 1, %s7157_s22  }
  0x2c   : > { %686 = vmatpush.msra.mxu0 %v7360_v10  ;;  %1007 = vmatpush.msra.mxu2 %v7360_v10  ;;  %v6304_v31 = vld [vmem:[%s12841_s1 + $0x1a0] sm:$0xff]  ;;  %v552_v34 = vld [vmem:[%s12841_s1 + $0x10] sm:$0xff]  ;;  %v6309_v36 = vld [vmem:[%s12841_s1 + $0x1c8] sm:$0xff] }
  0x2d   : > { %1106 = vmatpush.msra.mxu3 %v7366_v11  ;;  %785 = vmatpush.msra.mxu1 %v7366_v11  ;;  %v6306_v35 = vld [vmem:[%s12841_s1 + $0x1b0] sm:$0xff]  ;;  %v555_v37 = vld [vmem:[%s12841_s1 + $0x28] sm:$0xff]  ;;  %v554_v38 = vld [vmem:[%s12841_s1 + $0x20] sm:$0xff] }
  0x2e   : > { %687 = vmatpush.msra.mxu0 %v7370_v12  ;;  %1008 = vmatpush.msra.mxu2 %v7370_v12  ;;  %v6308_v39 = vld [vmem:[%s12841_s1 + $0x1c0] sm:$0xff]  ;;  %v6311_v40 = vld [vmem:[%s12841_s1 + $0x1d8] sm:$0xff]  ;;  %v556_v42 = vld [vmem:[%s12841_s1 + $0x30] sm:$0xff] }
  0x2f   : > { %1107 = vmatpush.msra.mxu3 %v7376_v13  ;;  %786 = vmatpush.msra.mxu1 %v7376_v13  ;;  %v557_v41 = vld [vmem:[%s12841_s1 + $0x38] sm:$0xff]  ;;  %v6310_v43 = vld [vmem:[%s12841_s1 + $0x1d0] sm:$0xff]  ;;  %v6313_v44 = vld [vmem:[%s12841_s1 + $0x1e8] sm:$0xff] }
  0x30   : > { %688 = vmatpush.msra.mxu0 %v7380_v14  ;;  %1009 = vmatpush.msra.mxu2 %v7380_v14  ;;  %v559_v45 = vld [vmem:[%s12841_s1 + $0x48] sm:$0xff]  ;;  %v558_v46 = vld [vmem:[%s12841_s1 + $0x40] sm:$0xff]  ;;  %v6315_v48 = vld [vmem:[%s12841_s1 + $0x1f8] sm:$0xff] }
  0x31   : > { %1108 = vmatpush.msra.mxu3 %v7386_v15  ;;  %787 = vmatpush.msra.mxu1 %v7386_v15  ;;  %v6312_v47 = vld [vmem:[%s12841_s1 + $0x1e0] sm:$0xff]  ;;  %v561_v49 = vld [vmem:[%s12841_s1 + $0x58] sm:$0xff]  ;;  %v560_v50 = vld [vmem:[%s12841_s1 + $0x50] sm:$0xff] }
  0x32   : > { %689 = vmatpush.msra.mxu0 %v7390_v16  ;;  %1010 = vmatpush.msra.mxu2 %v7390_v16  ;;  %v6314_v51 = vld [vmem:[%s12841_s1 + $0x1f0] sm:$0xff]  ;;  %v6317_v52 = vld [vmem:[%s12841_s1 + $0x208] sm:$0xff]  ;;  %v562_v54 = vld [vmem:[%s12841_s1 + $0x60] sm:$0xff] }
  0x33   : > { %1109 = vmatpush.msra.mxu3 %v7396_v17  ;;  %788 = vmatpush.msra.mxu1 %v7396_v17  ;;  %v563_v53 = vld [vmem:[%s12841_s1 + $0x68] sm:$0xff]  ;;  %v6316_v55 = vld [vmem:[%s12841_s1 + $0x200] sm:$0xff]  ;;  %v6319_v56 = vld [vmem:[%s12841_s1 + $0x218] sm:$0xff] }
  0x34   : > { %690 = vmatpush.msra.mxu0 %v7400_v18  ;;  %1011 = vmatpush.msra.mxu2 %v7400_v18  ;;  %v565_v57 = vld [vmem:[%s12841_s1 + $0x78] sm:$0xff]  ;;  %v564_v58 = vld [vmem:[%s12841_s1 + $0x70] sm:$0xff]  ;;  %v6321_v60 = vld [vmem:[%s12841_s1 + $0x228] sm:$0xff] }
  0x35   : > { %1110 = vmatpush.msra.mxu3 %v7406_v19  ;;  %789 = vmatpush.msra.mxu1 %v7406_v19  ;;  %v6318_v59 = vld [vmem:[%s12841_s1 + $0x210] sm:$0xff]  ;;  %v567_v61 = vld [vmem:[%s12841_s1 + $0x88] sm:$0xff]  ;;  %v566_v62 = vld [vmem:[%s12841_s1 + $0x80] sm:$0xff] }
  0x36   : > { %691 = vmatpush.msra.mxu0 %v7410_v20  ;;  %1012 = vmatpush.msra.mxu2 %v7410_v20  ;;  %v6320_v63 = vld [vmem:[%s12841_s1 + $0x220] sm:$0xff] }
  0x37   : > { %1111 = vmatpush.msra.mxu3 %v7416_v21  ;;  %790 = vmatpush.msra.mxu1 %v7416_v21 }
  0x38   : > { %692 = vmatpush.msra.mxu0 %v7420_v22  ;;  %1013 = vmatpush.msra.mxu2 %v7420_v22 }
  0x39   : > { %1112 = vmatpush.msra.mxu3 %v7426_v23  ;;  %791 = vmatpush.msra.mxu1 %v7426_v23 }
  0x3a   : > { %6356 = vmatmul.msk.f32.vlgmr.msra.gmra.mxu3 %vm602_vm0, %v6305_v24  ;;  %693 = vmatpush.msra.mxu0 %v7433_v25  ;;  %v6335_v24 = vld [vmem:[%s12841_s1 + $0x298] sm:$0xff] }
  0x3b   : > { %1014 = vmatpush.msra.mxu2 %v7433_v25  ;;  %6278 = vmatmul.msk.f32.vlgmr.msra.gmra.mxu1 %vm602_vm0, %v551_v26  ;;  %v580_v26 = vld [vmem:[%s12841_s1 + $0xf0] sm:$0xff] }
  0x3c   : > { %694 = vmatpush.msra.mxu0 %v7443_v27  ;;  %1422 = vmatpush.msrb.mxu3 %v7318_v1  ;;  %v569_v1 = vld [vmem:[%s12841_s1 + $0x98] sm:$0xff] }
  0x3d   : > { %1015 = vmatpush.msra.mxu2 %v7443_v27  ;;  %1323 = vmatpush.msrb.mxu1 %v7315_v0  ;;  %v6323_v0 = vld [vmem:[%s12841_s1 + $0x238] sm:$0xff] }
  0x3e   : > { %695 = vmatpush.msra.mxu0 %v7450_v28  ;;  %1423 = vmatpush.msrb.mxu3 %v7326_v3  ;;  %v6322_v3 = vld [vmem:[%s12841_s1 + $0x230] sm:$0xff] }
  0x3f   : > { %1016 = vmatpush.msra.mxu2 %v7450_v28  ;;  %1324 = vmatpush.msrb.mxu1 %v7321_v2  ;;  %v568_v2 = vld [vmem:[%s12841_s1 + $0x90] sm:$0xff] }
  0x40   : > { %696 = vmatpush.msra.mxu0 %v7457_v29  ;;  %1424 = vmatpush.msrb.mxu3 %v7336_v5  ;;  %v571_v5 = vld [vmem:[%s12841_s1 + $0xa8] sm:$0xff] }
  0x41   : > { %1017 = vmatpush.msra.mxu2 %v7457_v29  ;;  %697 = vmatmul.f32.vlgmr.msra.gmra.mxu0 %v550_v30  ;;  %v583_v30 = vld [vmem:[%s12841_s1 + $0x108] sm:$0xff] }
  0x42   : > { %1018 = vmatmul.f32.vlgmr.msra.gmra.mxu2 %v6304_v31  ;;  %6357 = vmatmul.msk.f32.gmra.mxu3 %vm602_vm0, %v6307_v32  ;;  %v582_v32 = vld [vmem:[%s12841_s1 + $0x100] sm:$0xff] }
  0x43   : > { %6279 = vmatmul.msk.f32.gmra.mxu1 %vm602_vm0, %v553_v33  ;;  %1425 = vmatpush.msrb.mxu3 %v7346_v7  ;;  %v6324_v7 = vld [vmem:[%s12841_s1 + $0x240] sm:$0xff] }
  0x44   : > { %1325 = vmatpush.msrb.mxu1 %v7330_v4  ;;  %v6325_v4 = vld [vmem:[%s12841_s1 + $0x248] sm:$0xff]  ;;  %v6336_v33 = vld [vmem:[%s12841_s1 + $0x2a0] sm:$0xff] }
  0x45   : > { %1426 = vmatpush.msrb.mxu3 %v7356_v9  ;;  %v573_v9 = vld [vmem:[%s12841_s1 + $0xb8] sm:$0xff] }
  0x46   : > { %1326 = vmatpush.msrb.mxu1 %v7340_v6  ;;  %v570_v6 = vld [vmem:[%s12841_s1 + $0xa0] sm:$0xff] }
  0x47   : > { %1427 = vmatpush.msrb.mxu3 %v7366_v11  ;;  %v6326_v11 = vld [vmem:[%s12841_s1 + $0x250] sm:$0xff] }
  0x48   : > { %1327 = vmatpush.msrb.mxu1 %v7350_v8  ;;  %v6327_v8 = vld [vmem:[%s12841_s1 + $0x258] sm:$0xff] }
  0x49   : > { %700 = vmatmul.f32.gmra.mxu0 %v552_v34  ;;  %1428 = vmatpush.msrb.mxu3 %v7376_v13  ;;  %v575_v13 = vld [vmem:[%s12841_s1 + $0xc8] sm:$0xff]  ;;  %v6339_v34 = vld [vmem:[%s12841_s1 + $0x2b8] sm:$0xff] }
  0x4a   : > { %1021 = vmatmul.f32.gmra.mxu2 %v6306_v35  ;;  %6358 = vmatmul.msk.f32.gmra.mxu3 %vm602_vm0, %v6309_v36  ;;  %v585_v36 = vld [vmem:[%s12841_s1 + $0x118] sm:$0xff] }
  0x4b   : > { %6280 = vmatmul.msk.f32.gmra.mxu1 %vm602_vm0, %v555_v37  ;;  %1429 = vmatpush.msrb.mxu3 %v7386_v15  ;;  %v6328_v15 = vld [vmem:[%s12841_s1 + $0x260] sm:$0xff] }
  0x4c   : > { %1328 = vmatpush.msrb.mxu1 %v7360_v10  ;;  %v572_v10 = vld [vmem:[%s12841_s1 + $0xb0] sm:$0xff] }
  0x4d   : > { %1430 = vmatpush.msrb.mxu3 %v7396_v17  ;;  %v577_v17 = vld [vmem:[%s12841_s1 + $0xd8] sm:$0xff] }
  0x4e   : > { %1329 = vmatpush.msrb.mxu1 %v7370_v12  ;;  %v6329_v12 = vld [vmem:[%s12841_s1 + $0x268] sm:$0xff] }
  0x4f   : > { %1431 = vmatpush.msrb.mxu3 %v7406_v19  ;;  %v6330_v19 = vld [vmem:[%s12841_s1 + $0x270] sm:$0xff] }
  0x50   : > { %1330 = vmatpush.msrb.mxu1 %v7380_v14  ;;  %v574_v14 = vld [vmem:[%s12841_s1 + $0xc0] sm:$0xff] }
  0x51   : > { %703 = vmatmul.f32.gmra.mxu0 %v554_v38  ;;  %1432 = vmatpush.msrb.mxu3 %v7416_v21  ;;  %v579_v21 = vld [vmem:[%s12841_s1 + $0xe8] sm:$0xff] }
  0x52   : > { %1024 = vmatmul.f32.gmra.mxu2 %v6308_v39  ;;  %6359 = vmatmul.msk.f32.gmra.mxu3 %vm602_vm0, %v6311_v40  ;;  %v584_v40 = vld [vmem:[%s12841_s1 + $0x110] sm:$0xff] }
  0x53   : > { %6281 = vmatmul.msk.f32.gmra.mxu1 %vm602_vm0, %v557_v41  ;;  %1433 = vmatpush.msrb.mxu3 %v7426_v23  ;;  %v6332_v23 = vld [vmem:[%s12841_s1 + $0x280] sm:$0xff]  ;;  %v6338_v41 = vld [vmem:[%s12841_s1 + $0x2b0] sm:$0xff] }
  0x54   : > { %1331 = vmatpush.msrb.mxu1 %v7390_v16  ;;  %v6331_v16 = vld [vmem:[%s12841_s1 + $0x278] sm:$0xff] }
  0x56   : > { %1332 = vmatpush.msrb.mxu1 %v7400_v18  ;;  %v576_v18 = vld [vmem:[%s12841_s1 + $0xd0] sm:$0xff] }
  0x58   : > { %1333 = vmatpush.msrb.mxu1 %v7410_v20  ;;  %v6333_v20 = vld [vmem:[%s12841_s1 + $0x288] sm:$0xff] }
  0x59   : > { %706 = vmatmul.f32.gmra.mxu0 %v556_v42  ;;  %v6341_v42 = vld [vmem:[%s12841_s1 + $0x2c8] sm:$0xff] }
  0x5a   : > { %1027 = vmatmul.f32.gmra.mxu2 %v6310_v43  ;;  %6360 = vmatmul.msk.f32.gmra.mxu3 %vm602_vm0, %v6313_v44  ;;  %v587_v44 = vld [vmem:[%s12841_s1 + $0x128] sm:$0xff] }
  0x5b   : > { %6282 = vmatmul.msk.f32.gmra.mxu1 %vm602_vm0, %v559_v45 }
  0x5c   : > { %1334 = vmatpush.msrb.mxu1 %v7420_v22  ;;  %v578_v22 = vld [vmem:[%s12841_s1 + $0xe0] sm:$0xff] }
  0x5e   : > { %1335 = vmatpush.msrb.mxu1 %v7433_v25  ;;  %v581_v25 = vld [vmem:[%s12841_s1 + $0xf8] sm:$0xff] }
  0x60   : > { %1336 = vmatpush.msrb.mxu1 %v7443_v27  ;;  %v6334_v27 = vld [vmem:[%s12841_s1 + $0x290] sm:$0xff] }
  0x61   : > { %709 = vmatmul.f32.gmra.mxu0 %v558_v46 }
  0x62   : > { %1030 = vmatmul.f32.gmra.mxu2 %v6312_v47  ;;  %6361 = vmatmul.msk.f32.gmra.mxu3 %vm602_vm0, %v6315_v48  ;;  %v586_v48 = vld [vmem:[%s12841_s1 + $0x120] sm:$0xff] }
  0x63   : > { %6283 = vmatmul.msk.f32.gmra.mxu1 %vm602_vm0, %v561_v49  ;;  %v6340_v49 = vld [vmem:[%s12841_s1 + $0x2c0] sm:$0xff] }
  0x64   : > { %1337 = vmatpush.msrb.mxu1 %v7450_v28  ;;  %v6337_v28 = vld [vmem:[%s12841_s1 + $0x2a8] sm:$0xff] }
  0x66   : > { %1338 = vmatpush.msrb.mxu1 %v7457_v29 }
  0x69   : > { %712 = vmatmul.f32.gmra.mxu0 %v560_v50  ;;  %v6343_v50 = vld [vmem:[%s12841_s1 + $0x2d8] sm:$0xff] }
  0x6a   : > { %1033 = vmatmul.f32.gmra.mxu2 %v6314_v51  ;;  %6362 = vmatmul.msk.f32.gmra.mxu3 %vm602_vm0, %v6317_v52  ;;  %v589_v52 = vld [vmem:[%s12841_s1 + $0x138] sm:$0xff] }
  0x6b   : > { %6284 = vmatmul.msk.f32.gmra.mxu1 %vm602_vm0, %v563_v53 }
  0x71   : > { %715 = vmatmul.f32.gmra.mxu0 %v562_v54 }
  0x72   : > { %1036 = vmatmul.f32.gmra.mxu2 %v6316_v55  ;;  %6363 = vmatmul.msk.f32.gmra.mxu3 %vm602_vm0, %v6319_v56  ;;  %v588_v56 = vld [vmem:[%s12841_s1 + $0x130] sm:$0xff] }
  0x73   : > { %6285 = vmatmul.msk.f32.gmra.mxu1 %vm602_vm0, %v565_v57  ;;  %v6342_v57 = vld [vmem:[%s12841_s1 + $0x2d0] sm:$0xff] }
  0x79   : > { %718 = vmatmul.f32.gmra.mxu0 %v564_v58  ;;  %v6345_v58 = vld [vmem:[%s12841_s1 + $0x2e8] sm:$0xff] }
  0x7a   : > { %1039 = vmatmul.f32.gmra.mxu2 %v6318_v59  ;;  %6364 = vmatmul.msk.f32.gmra.mxu3 %vm602_vm0, %v6321_v60  ;;  %v591_v60 = vld [vmem:[%s12841_s1 + $0x148] sm:$0xff] }
  0x7b   : > { %6286 = vmatmul.msk.f32.gmra.mxu1 %vm602_vm0, %v567_v61 }
  0x81   : > { %721 = vmatmul.f32.gmra.mxu0 %v566_v62  ;;  %v590_v62 = vld [vmem:[%s12841_s1 + $0x140] sm:$0xff] }
  0x82   : > { %1042 = vmatmul.f32.gmra.mxu2 %v6320_v63  ;;  %6365 = vmatmul.msk.f32.gmra.mxu3 %vm602_vm0, %v6323_v0  ;;  %v6344_v63 = vld [vmem:[%s12841_s1 + $0x2e0] sm:$0xff]  ;;  %v6347_v0 = vld [vmem:[%s12841_s1 + $0x2f8] sm:$0xff] }
  0x83   : > { %6287 = vmatmul.msk.f32.gmra.mxu1 %vm602_vm0, %v569_v1 }
  0x89   : > { %724 = vmatmul.f32.gmra.mxu0 %v568_v2  ;;  %v593_v2 = vld [vmem:[%s12841_s1 + $0x158] sm:$0xff] }
  0x8a   : > { %1045 = vmatmul.f32.gmra.mxu2 %v6322_v3  ;;  %6366 = vmatmul.msk.f32.gmra.mxu3 %vm602_vm0, %v6325_v4  ;;  %v592_v4 = vld [vmem:[%s12841_s1 + $0x150] sm:$0xff] }
  0x8b   : > { %6288 = vmatmul.msk.f32.gmra.mxu1 %vm602_vm0, %v571_v5  ;;  %v6346_v5 = vld [vmem:[%s12841_s1 + $0x2f0] sm:$0xff] }
  0x91   : > { %727 = vmatmul.f32.gmra.mxu0 %v570_v6  ;;  %v6349_v6 = vld [vmem:[%s12841_s1 + $0x308] sm:$0xff] }
  0x92   : > { %1048 = vmatmul.f32.gmra.mxu2 %v6324_v7  ;;  %6367 = vmatmul.msk.f32.gmra.mxu3 %vm602_vm0, %v6327_v8  ;;  %v595_v8 = vld [vmem:[%s12841_s1 + $0x168] sm:$0xff] }
  0x93   : > { %6289 = vmatmul.msk.f32.gmra.mxu1 %vm602_vm0, %v573_v9 }
  0x99   : > { %730 = vmatmul.f32.gmra.mxu0 %v572_v10  ;;  %v594_v10 = vld [vmem:[%s12841_s1 + $0x160] sm:$0xff] }
  0x9a   : > { %1051 = vmatmul.f32.gmra.mxu2 %v6326_v11  ;;  %6368 = vmatmul.msk.f32.gmra.mxu3 %vm602_vm0, %v6329_v12  ;;  %v6348_v11 = vld [vmem:[%s12841_s1 + $0x300] sm:$0xff]  ;;  %v6351_v12 = vld [vmem:[%s12841_s1 + $0x318] sm:$0xff] }
  0x9b   : > { %6290 = vmatmul.msk.f32.gmra.mxu1 %vm602_vm0, %v575_v13 }
  0xa1   : > { %733 = vmatmul.f32.gmra.mxu0 %v574_v14  ;;  %v597_v14 = vld [vmem:[%s12841_s1 + $0x178] sm:$0xff] }
  0xa2   : > { %1054 = vmatmul.f32.gmra.mxu2 %v6328_v15  ;;  %6369 = vmatmul.msk.f32.gmra.mxu3 %vm602_vm0, %v6331_v16  ;;  %v596_v16 = vld [vmem:[%s12841_s1 + $0x170] sm:$0xff] }
  0xa3   : > { %6291 = vmatmul.msk.f32.gmra.mxu1 %vm602_vm0, %v577_v17  ;;  %v6350_v17 = vld [vmem:[%s12841_s1 + $0x310] sm:$0xff] }
  0xa9   : > { %736 = vmatmul.f32.gmra.mxu0 %v576_v18  ;;  %v6353_v18 = vld [vmem:[%s12841_s1 + $0x328] sm:$0xff] }
  0xaa   : > { %1057 = vmatmul.f32.gmra.mxu2 %v6330_v19  ;;  %6370 = vmatmul.msk.f32.gmra.mxu3 %vm602_vm0, %v6333_v20  ;;  %v599_v20 = vld [vmem:[%s12841_s1 + $0x188] sm:$0xff] }
  0xab   : > { %6292 = vmatmul.msk.f32.gmra.mxu1 %vm602_vm0, %v579_v21 }
  0xb1   : > { %739 = vmatmul.f32.gmra.mxu0 %v578_v22  ;;  %v598_v22 = vld [vmem:[%s12841_s1 + $0x180] sm:$0xff] }
  0xb2   : > { %1060 = vmatmul.f32.gmra.mxu2 %v6332_v23  ;;  %6371 = vmatmul.msk.f32.gmra.mxu3 %vm602_vm0, %v6335_v24  ;;  %v6352_v24 = vld [vmem:[%s12841_s1 + $0x320] sm:$0xff] }
  0xb3   : > { %6293 = vmatmul.msk.f32.gmra.mxu1 %vm602_vm0, %v581_v25  ;;  %v6355_v25 = vld [vmem:[%s12841_s1 + $0x338] sm:$0xff] }
  0xb8   : > { %v7709_v29 = vpop.f32.mrf.mxu1 }
  0xb9   : > { %742 = vmatmul.f32.gmra.mxu0 %v580_v26 }
  0xba   : > { %1063 = vmatmul.f32.gmra.mxu2 %v6334_v27  ;;  %6372 = vmatmul.msk.f32.gmra.mxu3 %vm602_vm0, %v6337_v28  ;;  %v601_v27 = vld [vmem:[%s12841_s1 + $0x198] sm:$0xff] }
  0xbb   : > { %6294 = vmatmul.msk.f32.gmra.mxu1 %vm602_vm0, %v583_v30  ;;  %v600_v30 = vld [vmem:[%s12841_s1 + $0x190] sm:$0xff] }
  0xbd   : > { %v1114_v31 = vpop.f32.mrf.mxu3 }
  0xbe   : > { %v7862_v23 = vpop.f32.mrf.mxu0 }
  0xc0   : > { %v7725_v35 = vpop.f32.mrf.mxu1 }
  0xc1   : > { %745 = vmatmul.f32.gmra.mxu0 %v582_v32  ;;  %v6383_v32 = vld [vmem:[%s12841_s1 + $0x348] sm:$0xff] }
  0xc2   : > { %1066 = vmatmul.f32.gmra.mxu2 %v6336_v33  ;;  %6373 = vmatmul.msk.f32.gmra.mxu3 %vm602_vm0, %v6339_v34  ;;  %v6382_v34 = vld [vmem:[%s12841_s1 + $0x340] sm:$0xff] }
  0xc3   : > { %6295 = vmatmul.msk.f32.gmra.mxu1 %vm602_vm0, %v585_v36 }
  0xc5   : > { %v1019_v37 = vpop.f32.mrf.mxu2  ;;  %v1117_v38 = vpop.f32.mrf.mxu3 }
  0xc6   : > { %v1115_v39 = vadd.f32 %v1114_v31, %v1019_v37  ;;  %v6354_v31 = vld [vmem:[%s12841_s1 + $0x330] sm:$0xff]  ;;  %v7893_v36 = vpop.f32.mrf.mxu0 }
  0xc8   : > { %1539 = vrot.lane.b32.xlu0 %v1115_v39, %s12736_s26  ;;  %v7742_v43 = vpop.f32.mrf.mxu1 }
  0xc9   : > { %748 = vmatmul.f32.gmra.mxu0 %v584_v40  ;;  %v6384_v40 = vld [vmem:[%s12841_s1 + $0x350] sm:$0xff] }
  0xca   : > { %1069 = vmatmul.f32.gmra.mxu2 %v6338_v41  ;;  %6374 = vmatmul.msk.f32.gmra.mxu3 %vm602_vm0, %v6341_v42  ;;  %v6387_v42 = vld [vmem:[%s12841_s1 + $0x368] sm:$0xff] }
  0xcb   : > { %6296 = vmatmul.msk.f32.gmra.mxu1 %vm602_vm0, %v587_v44 }
  0xcd   : > { %v1022_v45 = vpop.f32.mrf.mxu2  ;;  %v1120_v46 = vpop.f32.mrf.mxu3 }
  0xce   : > { %v1118_v47 = vadd.f32 %v1117_v38, %v1022_v45  ;;  %v6385_v38 = vld [vmem:[%s12841_s1 + $0x358] sm:$0xff]  ;;  %v6386_v45 = vld [vmem:[%s12841_s1 + $0x360] sm:$0xff] }
  0xd0   : > { %1541 = vrot.lane.b32.xlu1 %v1118_v47, %s12736_s26  ;;  %v7759_v51 = vpop.f32.mrf.mxu1  ;;  %v6389_v47 = vld [vmem:[%s12841_s1 + $0x378] sm:$0xff] }
  0xd1   : > { %751 = vmatmul.f32.gmra.mxu0 %v586_v48 }
  0xd2   : > { %1072 = vmatmul.f32.gmra.mxu2 %v6340_v49  ;;  %6375 = vmatmul.msk.f32.gmra.mxu3 %vm602_vm0, %v6343_v50  ;;  %v6388_v49 = vld [vmem:[%s12841_s1 + $0x370] sm:$0xff] }
  0xd3   : > { %6297 = vmatmul.msk.f32.gmra.mxu1 %vm602_vm0, %v589_v52  ;;  %v6391_v52 = vld [vmem:[%s12841_s1 + $0x388] sm:$0xff] }
  0xd5   : > { %v1025_v53 = vpop.f32.mrf.mxu2  ;;  %v7766_v54 = vpop.f32.mrf.mxu3 }
  0xd6   : > { %v1121_v55 = vadd.f32 %v1120_v46, %v1025_v53 }
  0xd8   : > { %1543 = vrot.lane.b32.xlu2 %v1121_v55, %s12736_s26  ;;  %v7778_v59 = vpop.f32.mrf.mxu1  ;;  %v6390_v55 = vld [vmem:[%s12841_s1 + $0x380] sm:$0xff] }
  0xd9   : > { %754 = vmatmul.f32.gmra.mxu0 %v588_v56 }
  0xda   : > { %1075 = vmatmul.f32.gmra.mxu2 %v6342_v57  ;;  %6376 = vmatmul.msk.f32.gmra.mxu3 %vm602_vm0, %v6345_v58  ;;  %v6393_v57 = vld [vmem:[%s12841_s1 + $0x398] sm:$0xff] }
  0xdb   : > { %6298 = vmatmul.msk.f32.gmra.mxu1 %vm602_vm0, %v591_v60  ;;  %v6392_v60 = vld [vmem:[%s12841_s1 + $0x390] sm:$0xff] }
  0xdd   : > { %v7785_v61 = vpop.f32.mrf.mxu3 }
  0xe0   : > { %v7796_v1 = vpop.f32.mrf.mxu1 }
  0xe1   : > { %757 = vmatmul.f32.gmra.mxu0 %v590_v62 }
  0xe2   : > { %1078 = vmatmul.f32.gmra.mxu2 %v6344_v63  ;;  %6377 = vmatmul.msk.f32.gmra.mxu3 %vm602_vm0, %v6347_v0  ;;  %v6395_v63 = vld [vmem:[%s12841_s1 + $0x3a8] sm:$0xff] }
  0xe3   : > { %6299 = vmatmul.msk.f32.gmra.mxu1 %vm602_vm0, %v593_v2  ;;  %v6394_v2 = vld [vmem:[%s12841_s1 + $0x3a0] sm:$0xff] }
  0xe5   : > { %v7803_v3 = vpop.f32.mrf.mxu3 }
  0xe8   : > { %v7814_v7 = vpop.f32.mrf.mxu1 }
  0xe9   : > { %760 = vmatmul.f32.gmra.mxu0 %v592_v4 }
  0xea   : > { %1081 = vmatmul.f32.gmra.mxu2 %v6346_v5  ;;  %6378 = vmatmul.msk.f32.gmra.mxu3 %vm602_vm0, %v6349_v6  ;;  %v6397_v5 = vld [vmem:[%s12841_s1 + $0x3b8] sm:$0xff] }
  0xeb   : > { %6300 = vmatmul.msk.f32.gmra.mxu1 %vm602_vm0, %v595_v8  ;;  %v6396_v8 = vld [vmem:[%s12841_s1 + $0x3b0] sm:$0xff] }
  0xed   : > { %v7821_v9 = vpop.f32.mrf.mxu3 }
  0xf0   : > { %v7832_v13 = vpop.f32.mrf.mxu1 }
  0xf1   : > { %763 = vmatmul.f32.gmra.mxu0 %v594_v10 }
  0xf2   : > { %1084 = vmatmul.f32.gmra.mxu2 %v6348_v11  ;;  %6379 = vmatmul.msk.f32.gmra.mxu3 %vm602_vm0, %v6351_v12  ;;  %v6399_v11 = vld [vmem:[%s12841_s1 + $0x3c8] sm:$0xff] }
  0xf3   : > { %6301 = vmatmul.msk.f32.gmra.mxu1 %vm602_vm0, %v597_v14  ;;  %v6398_v14 = vld [vmem:[%s12841_s1 + $0x3c0] sm:$0xff] }
  0xf5   : > { %v7839_v15 = vpop.f32.mrf.mxu3 }
  0xf8   : > { %v7850_v19 = vpop.f32.mrf.mxu1 }
  0xf9   : > { %766 = vmatmul.f32.gmra.mxu0 %v596_v16 }
  0xfa   : > { %1087 = vmatmul.f32.gmra.mxu2 %v6350_v17  ;;  %6380 = vmatmul.msk.f32.gmra.mxu3 %vm602_vm0, %v6353_v18  ;;  %v6401_v17 = vld [vmem:[%s12841_s1 + $0x3d8] sm:$0xff] }
  0xfb   : > { %6302 = vmatmul.msk.f32.gmra.mxu1 %vm602_vm0, %v599_v20  ;;  %v6400_v20 = vld [vmem:[%s12841_s1 + $0x3d0] sm:$0xff] }
  0xfd   : > { %v7857_v21 = vpop.f32.mrf.mxu3 }
 0x100   : > { %v7870_v26 = vpop.f32.mrf.mxu1 }
 0x101   : > { %769 = vmatmul.f32.gmra.mxu0 %v598_v22 }
 0x102   : > { %1090 = vmatmul.f32.gmra.mxu2 %v6352_v24  ;;  %6381 = vmatmul.msk.f32.gmra.mxu3 %vm602_vm0, %v6355_v25  ;;  %v6403_v24 = vld [vmem:[%s12841_s1 + $0x3e8] sm:$0xff] }
 0x103   : > { %6303 = vmatmul.msk.f32.gmra.mxu1 %vm602_vm0, %v601_v27  ;;  %v6402_v27 = vld [vmem:[%s12841_s1 + $0x3e0] sm:$0xff] }
 0x105   : > { %v7877_v28 = vpop.f32.mrf.mxu3 }
 0x108   : > { %v7888_v33 = vpop.f32.mrf.mxu1 }
 0x109   : > { %772 = vmatmul.f32.gmra.mxu0 %v600_v30 }
 0x10a   : > { %1093 = vmatmul.f32.gmra.mxu2 %v6354_v31  ;;  %6434 = vmatmul.msk.f32.vlgmr.msrb.gmra.mxu3 %vm602_vm0, %v6383_v32  ;;  %v6405_v31 = vld [vmem:[%s12841_s1 + $0x3f8] sm:$0xff] }
 0x10b   : > { %1339 = vmatmul.f32.vlgmr.msrb.gmra.mxu1 %v6382_v34  ;;  %v6404_v34 = vld [vmem:[%s12841_s1 + $0x3f0] sm:$0xff] }
 0x10d   : > { %v7896_v37 = vpop.f32.mrf.mxu3 }
 0x110   : > { %v7901_v39 = vpop.f32.mrf.mxu1 }
 0x112   : > { %6435 = vmatmul.msk.f32.gmra.mxu3 %vm602_vm0, %v6385_v38 }
 0x113   : > { %1342 = vmatmul.f32.gmra.mxu1 %v6384_v40  ;;  %v6407_v40 = vld [vmem:[%s12841_s1 + $0x408] sm:$0xff] }
 0x115   : > { %v7907_v41 = vpop.f32.mrf.mxu3 }
 0x118   : > { %v7912_v44 = vpop.f32.mrf.mxu1 }
 0x11a   : > { %6436 = vmatmul.msk.f32.gmra.mxu3 %vm602_vm0, %v6387_v42 }
 0x11b   : > { %1345 = vmatmul.f32.gmra.mxu1 %v6386_v45  ;;  %v6406_v45 = vld [vmem:[%s12841_s1 + $0x400] sm:$0xff] }
 0x11d   : > { %v7918_v46 = vpop.f32.mrf.mxu3 }
 0x120   : > { %v7923_v48 = vpop.f32.mrf.mxu1 }
 0x122   : > { %6437 = vmatmul.msk.f32.gmra.mxu3 %vm602_vm0, %v6389_v47 }
 0x123   : > { %1348 = vmatmul.f32.gmra.mxu1 %v6388_v49  ;;  %v1028_v49 = vpop.f32.mrf.mxu2 }
 0x125   : > { %v7929_v50 = vpop.f32.mrf.mxu3 }
 0x128   : > { %v7934_v53 = vpop.f32.mrf.mxu1 }
 0x12a   : > { %6438 = vmatmul.msk.f32.gmra.mxu3 %vm602_vm0, %v6391_v52  ;;  %v6409_v52 = vld [vmem:[%s12841_s1 + $0x418] sm:$0xff] }
 0x12b   : > { %1351 = vmatmul.f32.gmra.mxu1 %v6390_v55 }
 0x12d   : > { %v7940_v56 = vpop.f32.mrf.mxu3 }
 0x130   : > { %v7945_v58 = vpop.f32.mrf.mxu1 }
 0x132   : > { %6439 = vmatmul.msk.f32.gmra.mxu3 %vm602_vm0, %v6393_v57  ;;  %v6408_v57 = vld [vmem:[%s12841_s1 + $0x410] sm:$0xff] }
 0x133   : > { %1354 = vmatmul.f32.gmra.mxu1 %v6392_v60 }
 0x135   : > { %v7951_v62 = vpop.f32.mrf.mxu3 }
 0x138   : > { %v7956_v0 = vpop.f32.mrf.mxu1 }
 0x139   : > { %12842 = vst [vmem:[#allocation9_spill] sm:$0xff] %v7956_v0 }
 0x13a   : > { %6440 = vmatmul.msk.f32.gmra.mxu3 %vm602_vm0, %v6395_v63  ;;  %v6411_v63 = vld [vmem:[%s12841_s1 + $0x428] sm:$0xff] }
 0x13b   : > { %1357 = vmatmul.f32.gmra.mxu1 %v6394_v2 }
 0x13d   : > { %v7962_v4 = vpop.f32.mrf.mxu3 }
 0x140   : > { %v7967_v6 = vpop.f32.mrf.mxu1 }
 0x141   : > { %12843 = vst [vmem:[#allocation10_spill] sm:$0xff] %v7967_v6 }
 0x142   : > { %6441 = vmatmul.msk.f32.gmra.mxu3 %vm602_vm0, %v6397_v5  ;;  %v6410_v5 = vld [vmem:[%s12841_s1 + $0x420] sm:$0xff] }
 0x143   : > { %1360 = vmatmul.f32.gmra.mxu1 %v6396_v8  ;;  %v1031_v8 = vpop.f32.mrf.mxu2 }
 0x145   : > { %v7973_v10 = vpop.f32.mrf.mxu3 }
 0x148   : > { %v7978_v12 = vpop.f32.mrf.mxu1 }
 0x149   : > { %12844 = vst [vmem:[#allocation11_spill] sm:$0xff] %v7978_v12  ;;  %v1783_v12 = vld [vmem:[%s12852_s2 + $0x40] sm:$0xff] }
 0x14a   : > { %6442 = vmatmul.msk.f32.gmra.mxu3 %vm602_vm0, %v6399_v11 }
 0x14b   : > { %1363 = vmatmul.f32.gmra.mxu1 %v6398_v14  ;;  %v6413_v14 = vld [vmem:[%s12841_s1 + $0x438] sm:$0xff] }
 0x14d   : > { %v7984_v16 = vpop.f32.mrf.mxu3 }
 0x150   : > { %v7989_v18 = vpop.f32.mrf.mxu1 }
 0x151   : > { %12845 = vst [vmem:[#allocation12_spill] sm:$0xff] %v7989_v18  ;;  %v1782_v18 = vld [vmem:[%s12852_s2 + $0x38] sm:$0xff] }
 0x152   : > { %6443 = vmatmul.msk.f32.gmra.mxu3 %vm602_vm0, %v6401_v17 }
 0x153   : > { %1366 = vmatmul.f32.gmra.mxu1 %v6400_v20  ;;  %v6412_v20 = vld [vmem:[%s12841_s1 + $0x430] sm:$0xff] }
 0x155   : > { %v7995_v22 = vpop.f32.mrf.mxu3 }
 0x158   : > { %v8000_v25 = vpop.f32.mrf.mxu1 }
 0x159   : > { %12846 = vst [vmem:[#allocation13_spill] sm:$0xff] %v8000_v25  ;;  %v1781_v25 = vld [vmem:[%s12852_s2 + $0x30] sm:$0xff] }
 0x15a   : > { %6444 = vmatmul.msk.f32.gmra.mxu3 %vm602_vm0, %v6403_v24  ;;  %v1034_v24 = vpop.f32.mrf.mxu2 }
 0x15b   : > { %1369 = vmatmul.f32.gmra.mxu1 %v6402_v27 }
 0x15d   : > { %v8006_v30 = vpop.f32.mrf.mxu3 }
 0x160   : > { %v8011_v32 = vpop.f32.mrf.mxu1 }
 0x161   : > { %12847 = vst [vmem:[#allocation14_spill] sm:$0xff] %v8011_v32 }
 0x162   : > { %6445 = vmatmul.msk.f32.gmra.mxu3 %vm602_vm0, %v6405_v31  ;;  %v6415_v31 = vld [vmem:[%s12841_s1 + $0x448] sm:$0xff] }
 0x163   : > { %1372 = vmatmul.f32.gmra.mxu1 %v6404_v34 }
 0x165   : > { %v8017_v38 = vpop.f32.mrf.mxu3 }
 0x168   : > { %v8022_v42 = vpop.f32.mrf.mxu1 }
 0x169   : > { %12848 = vst [vmem:[#allocation15_spill] sm:$0xff] %v8022_v42 }
 0x16a   : > { %6446 = vmatmul.msk.f32.gmra.mxu3 %vm602_vm0, %v6407_v40  ;;  %v6414_v40 = vld [vmem:[%s12841_s1 + $0x440] sm:$0xff] }
 0x16b   : > { %1375 = vmatmul.f32.gmra.mxu1 %v6406_v45  ;;  %v8070_v45 = vpop.f32.mrf.mxu2 }
 0x16d   : > { %v8028_v47 = vpop.f32.mrf.mxu3 }
 0x170   : > { %v8033_v55 = vpop.f32.mrf.mxu1 }
 0x171   : > { %12849 = vst [vmem:[#allocation16_spill] sm:$0xff] %v8033_v55  ;;  %v6425_v55 = vld [vmem:[%s12841_s1 + $0x498] sm:$0xff] }
 0x172   : > { %6447 = vmatmul.msk.f32.gmra.mxu3 %vm602_vm0, %v6409_v52 }
 0x173   : > { %1378 = vmatmul.f32.gmra.mxu1 %v6408_v57 }
 0x175   : > { %v8039_v60 = vpop.f32.mrf.mxu3 }
 0x178   : > { %v8044_v2 = vpop.f32.mrf.mxu1 }
 0x179   : > { %12850 = vst [vmem:[#allocation17_spill] sm:$0xff] %v8044_v2  ;;  %v8123_v2 = vld [vmem:[%s12852_s2 + $0x100] sm:$0xf] }
 0x17a   : > { %6448 = vmatmul.msk.f32.gmra.mxu3 %vm602_vm0, %v6411_v63  ;;  %v1806_v63 = vld [vmem:[%s12852_s2 + $0xf8] sm:$0xf]  ;;  %6514 = vmatpush.msk.msra.mxu1 %vm1895_vm1, %v8123_v2 }
 0x17b   : > { %1381 = vmatmul.f32.gmra.mxu1 %v6410_v5  ;;  %v6417_v5 = vld [vmem:[%s12841_s1 + $0x458] sm:$0xff]  ;;  %6487 = vmatpush.msk.msrb.mxu2 %vm1895_vm1, %v1806_v63 }
 0x17d   : > { %v8050_v11 = vpop.f32.mrf.mxu3 }
 0x180   : > { %v8055_v17 = vpop.f32.mrf.mxu1 }
 0x181   : > { %12851 = vst [vmem:[#allocation18_spill] sm:$0xff] %v8055_v17  ;;  %v8087_v17 = vpop.f32.mrf.mxu2 }
 0x182   : > { %6449 = vmatmul.msk.f32.gmra.mxu3 %vm602_vm0, %v6413_v14 }
 0x183   : > { %1384 = vmatmul.f32.gmra.mxu1 %v6412_v20  ;;  %v6416_v20 = vld [vmem:[%s12841_s1 + $0x450] sm:$0xff] }
 0x185   : > { %v8061_v27 = vpop.f32.mrf.mxu3 }
 0x188   : > { %v1340_v34 = vpop.f32.mrf.mxu1 }
 0x18a   : > { %6450 = vmatmul.msk.f32.gmra.mxu3 %vm602_vm0, %v6415_v31  ;;  %v8083_v31 = vpop.f32.mrf.mxu0 }
 0x18b   : > { %1387 = vmatmul.f32.gmra.mxu1 %v6414_v40  ;;  %v1124_v40 = vadd.f32 %v7766_v54, %v1028_v49 }
 0x18d   : > { %v1435_v52 = vpop.f32.mrf.mxu3 }
 0x18e   : > { %v1436_v57 = vadd.f32 %v1435_v52, %v1340_v34 }
 0x190   : > { %1643 = vrot.lane.b32.xlu0 %v1436_v57, %s12738_s19  ;;  %v1343_v14 = vpop.f32.mrf.mxu1  ;;  %v6419_v57 = vld [vmem:[%s12841_s1 + $0x468] sm:$0xff] }
 0x192   : > { %6451 = vmatmul.msk.f32.gmra.mxu3 %vm602_vm0, %v6417_v5  ;;  %v6418_v5 = vld [vmem:[%s12841_s1 + $0x460] sm:$0xff]  ;;  %v8098_v54 = vpop.f32.mrf.mxu0 }
 0x193   : > { %1390 = vmatmul.f32.gmra.mxu1 %v6416_v20  ;;  %v1805_v20 = vld [vmem:[%s12852_s2 + $0xf0] sm:$0xf] }
 0x194   : > { %6460 = vmatpush.msk.msrb.mxu0 %vm1895_vm1, %v1805_v20 }
 0x195   : > { %v1438_v34 = vpop.f32.mrf.mxu3 }
 0x196   : > { %v1439_v52 = vadd.f32 %v1438_v34, %v1343_v14  ;;  %v6421_v34 = vld [vmem:[%s12841_s1 + $0x478] sm:$0xff] }
 0x198   : > { %1645 = vrot.lane.b32.xlu1 %v1439_v52, %s12738_s19  ;;  %1545 = vrot.lane.b32.xlu0 %v1124_v40, %s12736_s26  ;;  %v1346_v63 = vpop.f32.mrf.mxu1  ;;  %v6420_v52 = vld [vmem:[%s12841_s1 + $0x470] sm:$0xff] }
 0x19a   : > { %6452 = vmatmul.msk.f32.gmra.mxu3 %vm602_vm0, %v6419_v57  ;;  %v8111_v57 = vpop.f32.mrf.mxu2 }
 0x19b   : > { %1393 = vmatmul.f32.gmra.mxu1 %v6418_v5 }
 0x19d   : > { %v1441_v49 = vpop.f32.mrf.mxu3 }
 0x19e   : > { %v1442_v14 = vadd.f32 %v1441_v49, %v1346_v63  ;;  %v1803_v63 = vld [vmem:[%s12852_s2 + $0xe0] sm:$0xff]  ;;  %v8117_v49 = vpop.f32.mrf.mxu0 }
 0x19f   : > { %2006 = vmatpush.msrb.mxu2 %v1803_v63  ;;  %v1130_v63 = vadd.f32 %v7803_v3, %v1034_v24  ;;  %v1802_v3 = vld [vmem:[%s12852_s2 + $0xd8] sm:$0xff] }
 0x1a0   : > { %1647 = vrot.lane.b32.xlu2 %v1442_v14, %s12738_s19  ;;  %v1349_v40 = vpop.f32.mrf.mxu1  ;;  %v1127_v14 = vadd.f32 %v7785_v61, %v1031_v8  ;;  %v6422_v61 = vld [vmem:[%s12841_s1 + $0x480] sm:$0xff]  ;;  %1911 = vmatpush.msrb.mxu0 %v1802_v3  ;;  %v1136_v3 = vadd.f32 %v7839_v15, %v8087_v17 }
 0x1a1   : > { %v1799_v15 = vld [vmem:[%s12852_s2 + $0xc0] sm:$0xff] }
 0x1a2   : > { %6453 = vmatmul.msk.f32.gmra.mxu3 %vm602_vm0, %v6421_v34  ;;  %v6423_v34 = vld [vmem:[%s12841_s1 + $0x488] sm:$0xff]  ;;  %v1046_v8 = vpop.f32.mrf.mxu2  ;;  %1912 = vmatpush.msrb.mxu0 %v1799_v15 }
 0x1a3   : > { %1396 = vmatmul.f32.gmra.mxu1 %v6420_v52  ;;  %v1142_v15 = vadd.f32 %v7877_v28, %v1046_v8  ;;  %v6432_v28 = vld [vmem:[%s12841_s1 + $0x4d0] sm:$0xff] }
 0x1a5   : > { %v1444_v5 = vpop.f32.mrf.mxu3 }
 0x1a6   : > { %v1445_v20 = vadd.f32 %v1444_v5, %v1349_v40 }
 0x1a8   : > { %1649 = vrot.lane.b32.xlu1 %v1445_v20, %s12738_s19  ;;  %1547 = vrot.lane.b32.xlu2 %v1127_v14, %s12736_s26  ;;  %v1352_v52 = vpop.f32.mrf.mxu1  ;;  %v8140_v20 = vpop.f32.mrf.mxu0 }
 0x1aa   : > { %6454 = vmatmul.msk.f32.gmra.mxu3 %vm602_vm0, %v6423_v34  ;;  %v6424_v34 = vld [vmem:[%s12841_s1 + $0x490] sm:$0xff]  ;;  %v1049_v24 = vpop.f32.mrf.mxu2 }
 0x1ab   : > { %1399 = vmatmul.f32.gmra.mxu1 %v6422_v61  ;;  %v1133_v61 = vadd.f32 %v7821_v9, %v8070_v45  ;;  %v8167_v9 = vld [vmem:[%s12852_s2 + $0xe8] sm:$0xff] }
 0x1ac   : > { %2101 = vmatpush.msra.mxu1 %v8167_v9 }
 0x1ad   : > { %v1447_v40 = vpop.f32.mrf.mxu3 }
 0x1ae   : > { %v1448_v5 = vadd.f32 %v1447_v40, %v1352_v52 }
 0x1b0   : > { %1651 = vrot.lane.b32.xlu0 %v1448_v5, %s12738_s19  ;;  %1549 = vrot.lane.b32.xlu1 %v1130_v63, %s12736_s26  ;;  %v1355_v14 = vpop.f32.mrf.mxu1  ;;  %v1800_v63 = vld [vmem:[%s12852_s2 + $0xc8] sm:$0xff]  ;;  %v8170_v45 = vpop.f32.mrf.mxu0 }
 0x1b1   : > { %v6427_v5 = vld [vmem:[%s12841_s1 + $0x4a8] sm:$0xff]  ;;  %2007 = vmatpush.msrb.mxu2 %v1800_v63 }
 0x1b2   : > { %6455 = vmatmul.msk.f32.gmra.mxu3 %vm602_vm0, %v6425_v55 }
 0x1b3   : > { %1402 = vmatmul.f32.gmra.mxu1 %v6424_v34  ;;  %v6426_v34 = vld [vmem:[%s12841_s1 + $0x4a0] sm:$0xff] }
 0x1b5   : > { %v1450_v52 = vpop.f32.mrf.mxu3 }
 0x1b6   : > { %v1451_v40 = vadd.f32 %v1450_v52, %v1355_v14 }
 0x1b8   : > { %1653 = vrot.lane.b32.xlu2 %v1451_v40, %s12738_s19  ;;  %1551 = vrot.lane.b32.xlu0 %v1133_v61, %s12736_s26  ;;  %v1358_v55 = vpop.f32.mrf.mxu1  ;;  %v8175_v61 = vpop.f32.mrf.mxu2  ;;  %v6429_v40 = vld [vmem:[%s12841_s1 + $0x4b8] sm:$0xff] }
 0x1b9   : > { %v8189_v17 = vpop.f32.mrf.mxu0 }
 0x1ba   : > { %6456 = vmatmul.msk.f32.gmra.mxu3 %vm602_vm0, %v6427_v5  ;;  %v6428_v5 = vld [vmem:[%s12841_s1 + $0x4b0] sm:$0xff] }
 0x1bb   : > { %1405 = vmatmul.f32.gmra.mxu1 %v6426_v34  ;;  %v1139_v34 = vadd.f32 %v7857_v21, %v8111_v57 }
 0x1bd   : > { %v1453_v14 = vpop.f32.mrf.mxu3 }
 0x1be   : > { %v1454_v52 = vadd.f32 %v1453_v14, %v1358_v55 }
 0x1c0   : > { %1655 = vrot.lane.b32.xlu1 %v1454_v52, %s12738_s19  ;;  %1553 = vrot.lane.b32.xlu2 %v1136_v3, %s12736_s26  ;;  %v1361_v63 = vpop.f32.mrf.mxu1  ;;  %v1797_v3 = vld [vmem:[%s12852_s2 + $0xb0] sm:$0xff]  ;;  %v6431_v52 = vld [vmem:[%s12841_s1 + $0x4c8] sm:$0xff]  ;;  %v8204_v21 = vpop.f32.mrf.mxu2 }
 0x1c1   : > { %2008 = vmatpush.msrb.mxu2 %v1797_v3 }
 0x1c2   : > { %6457 = vmatmul.msk.f32.gmra.mxu3 %vm602_vm0, %v6429_v40 }
 0x1c3   : > { %1408 = vmatmul.f32.gmra.mxu1 %v6428_v5  ;;  %v6430_v5 = vld [vmem:[%s12841_s1 + $0x4c0] sm:$0xff] }
 0x1c5   : > { %v1456_v55 = vpop.f32.mrf.mxu3 }
 0x1c6   : > { %v1457_v14 = vadd.f32 %v1456_v55, %v1361_v63  ;;  %v8207_v63 = vpop.f32.mrf.mxu0 }
 0x1c8   : > { %1657 = vrot.lane.b32.xlu0 %v1457_v14, %s12738_s19  ;;  %1555 = vrot.lane.b32.xlu1 %v1139_v34, %s12736_s26  ;;  %v1364_v40 = vpop.f32.mrf.mxu1  ;;  %v8213_v34 = vld [vmem:[%s12852_s2 + $0xd0] sm:$0xff]  ;;  %v6433_v14 = vld [vmem:[%s12841_s1 + $0x4d8] sm:$0xff]  ;;  %v8225_v8 = vpop.f32.mrf.mxu2  ;;  %s7170_s1 = smov 2  }
 0x1c9   : > { %2102 = vmatpush.msra.mxu1 %v8213_v34 }
 0x1ca   : > { %6458 = vmatmul.msk.f32.gmra.mxu3 %vm602_vm0, %v6431_v52  ;;  %v1796_v52 = vld [vmem:[%s12852_s2 + $0xa8] sm:$0xff] }
 0x1cb   : > { %1411 = vmatmul.f32.gmra.mxu1 %v6430_v5  ;;  %1913 = vmatpush.msrb.mxu0 %v1796_v52 }
 0x1cd   : > { %v1459_v57 = vpop.f32.mrf.mxu3 }
 0x1ce   : > { %v1460_v55 = vadd.f32 %v1459_v57, %v1364_v40  ;;  %v8233_v40 = vld [vmem:[%s12852_s2 + $0xb8] sm:$0xff]  ;;  %v1145_v57 = vadd.f32 %v7896_v37, %v1049_v24  ;;  %v8248_v52 = vpop.f32.mrf.mxu0 }
 0x1cf   : > { %2103 = vmatpush.msra.mxu1 %v8233_v40  ;;  %v1790_v24 = vld [vmem:[%s12852_s2 + $0x78] sm:$0xff] }
 0x1d0   : > { %1659 = vrot.lane.b32.xlu2 %v1460_v55, %s12738_s19  ;;  %1557 = vrot.lane.b32.xlu0 %v1142_v15, %s12736_s26  ;;  %v1367_v3 = vpop.f32.mrf.mxu1  ;;  %v1793_v55 = vld [vmem:[%s12852_s2 + $0x90] sm:$0xff]  ;;  %v1061_v42 = vpop.f32.mrf.mxu2 }
 0x1d1   : > { %1914 = vmatpush.msrb.mxu0 %v1793_v55  ;;  %v1789_v55 = vld [vmem:[%s12852_s2 + $0x70] sm:$0xff] }
 0x1d2   : > { %6459 = vmatmul.msk.f32.gmra.mxu3 %vm602_vm0, %v6433_v14  ;;  %v1794_v14 = vld [vmem:[%s12852_s2 + $0x98] sm:$0xff]  ;;  %vm5986_vm0 = vcmask 359424  }
 0x1d3   : > { %1414 = vmatmul.f32.gmra.mxu1 %v6432_v28  ;;  %v8246_v28 = vld [vmem:[%s12852_s2 + $0xa0] sm:$0xff]  ;;  %2009 = vmatpush.msrb.mxu2 %v1794_v14  ;;  %v1784_v14 = vld [vmem:[%s12852_s2 + $0x48] sm:$0xff] }
 0x1d4   : > { %2104 = vmatpush.msra.mxu1 %v8246_v28  ;;  %1915 = vmatpush.msrb.mxu0 %v1790_v24  ;;  %v1785_v24 = vld [vmem:[%s12852_s2 + $0x50] sm:$0xff] }
 0x1d5   : > { %v1462_v5 = vpop.f32.mrf.mxu3 }
 0x1d6   : > { %v1463_v15 = vadd.f32 %v1462_v5, %v1367_v3  ;;  %v1791_v3 = vld [vmem:[%s12852_s2 + $0x80] sm:$0xff]  ;;  %v1792_v5 = vld [vmem:[%s12852_s2 + $0x88] sm:$0xff] }
 0x1d7   : > { %2010 = vmatpush.msrb.mxu2 %v1791_v3  ;;  %2105 = vmatpush.msra.mxu1 %v1792_v5  ;;  %v1786_v3 = vld [vmem:[%s12852_s2 + $0x58] sm:$0xff] }
 0x1d8   : > { %1661 = vrot.lane.b32.xlu1 %v1463_v15, %s12738_s19  ;;  %1559 = vrot.lane.b32.xlu2 %v1145_v57, %s12736_s26  ;;  %v1370_v37 = vpop.f32.mrf.mxu1  ;;  %v1787_v57 = vld [vmem:[%s12852_s2 + $0x60] sm:$0xff]  ;;  %v1788_v15 = vld [vmem:[%s12852_s2 + $0x68] sm:$0xff]  ;;  %v1064_v6 = vpop.f32.mrf.mxu2  ;;  %s6198_s26 = scalar_lea.sflag [#allocation3], %s513_s29 }
 0x1d9   : > { %1916 = vmatpush.msrb.mxu0 %v1787_v57  ;;  %2011 = vmatpush.msrb.mxu2 %v1788_v15  ;;  %v1148_v57 = vadd.f32 %v7907_v41, %v8175_v61  ;;  %v1779_v61 = vld [vmem:[%s12852_s2 + $0x20] sm:$0xff] }
 0x1da   : > { %2106 = vmatpush.msra.mxu1 %v1789_v55 }
 0x1db   : > { %1917 = vmatpush.msrb.mxu0 %v1784_v14  ;;  %2012 = vmatpush.msrb.mxu2 %v1785_v24  ;;  %v1775_v14 = vld [vmem:[%s12852_s2] sm:$0xff]  ;;  %v1776_v24 = vld [vmem:[%s12852_s2 + $0x8] sm:$0xff] }
 0x1dc   : > { %2107 = vmatpush.msra.mxu1 %v1786_v3 }
 0x1dd   : > { %v1465_v32 = vpop.f32.mrf.mxu3  ;;  %1918 = vmatpush.msrb.mxu0 %v1781_v25  ;;  %2013 = vmatpush.msrb.mxu2 %v1782_v18  ;;  %v8302_v25 = vpop.f32.mrf.mxu0  ;;  %v1777_v18 = vld [vmem:[%s12852_s2 + $0x10] sm:$0xff] }
 0x1de   : > { %v1466_v15 = vadd.f32 %v1465_v32, %v1370_v37  ;;  %v1778_v32 = vld [vmem:[%s12852_s2 + $0x18] sm:$0xff]  ;;  %2108 = vmatpush.msra.mxu1 %v1783_v12  ;;  %v1780_v37 = vld [vmem:[%s12852_s2 + $0x28] sm:$0xff] }
 0x1df   : > { %1919 = vmatpush.msrb.mxu0 %v1778_v32  ;;  %2014 = vmatpush.msrb.mxu2 %v1779_v61 }
 0x1e0   : > { %1663 = vrot.lane.b32.xlu0 %v1466_v15, %s12853_s23  ;;  %1561 = vrot.lane.b32.xlu1 %v1148_v57, %s12854_s18  ;;  %v1373_v41 = vpop.f32.mrf.mxu1  ;;  %v1151_v15 = vadd.f32 %v7918_v46, %v8204_v21  ;;  %v1154_v46 = vadd.f32 %v7929_v50, %v8225_v8 }
 0x1e1   : > { %2109 = vmatpush.msra.mxu1 %v1780_v37  ;;  %1920 = vmatpush.msrb.mxu0 %v1775_v14 }
 0x1e2   : > { %2015 = vmatpush.msrb.mxu2 %v1776_v24 }
 0x1e3   : > { %2110 = vmatpush.msra.mxu1 %v1777_v18 }
 0x1e4   : > { %6989 = vmatpush.msk.msra.mxu2 %vm1895_vm1, %v8123_v2 }
 0x1e5   : > { %v1468_v57 = vpop.f32.mrf.mxu3  ;;  %v8321_v61 = vpop.f32.mrf.mxu0 }
 0x1e6   : > { %v1469_v32 = vadd.f32 %v1468_v57, %v1373_v41  ;;  %6990 = vmatpush.msra.mxu2 %v8167_v9  ;;  %v1067_v41 = vpop.f32.mrf.mxu2 }
 0x1e8   : > { %1665 = vrot.lane.b32.xlu2 %v1469_v32, %s12853_s23  ;;  %1563 = vrot.lane.b32.xlu0 %v1151_v15, %s12854_s18  ;;  %v1376_v0 = vpop.f32.mrf.mxu1  ;;  %v797_v15 = vadd.f32 %v7725_v35, %v7893_v36  ;;  %v1544_v32 = vpop.permute.xlu2 %1543 }
 0x1e9   : > { %6991 = vmatpush.msra.mxu2 %v8213_v34 }
 0x1eb   : > { %6992 = vmatpush.msra.mxu2 %v8233_v40  ;;  %v1157_v40 = vadd.f32 %v7940_v56, %v1061_v42  ;;  %v1542_v42 = vpop.permute.xlu1 %1541 }
 0x1ed   : > { %v1471_v14 = vpop.f32.mrf.mxu3  ;;  %6993 = vmatpush.msra.mxu2 %v8246_v28  ;;  %v8329_v34 = vpop.f32.mrf.mxu0 }
 0x1ee   : > { %v1472_v21 = vadd.f32 %v1471_v14, %v1376_v0  ;;  %v1540_v0 = vpop.permute.xlu0 %1539  ;;  %v1070_v8 = vpop.f32.mrf.mxu2 }
 0x1ef   : > { %6994 = vmatpush.msra.mxu2 %v1792_v5  ;;  %v1160_v5 = vadd.f32 %v7951_v62, %v1064_v6  ;;  %v1163_v6 = vadd.f32 %v7962_v4, %v1067_v41  ;;  %v1166_v36 = vadd.f32 %v7973_v10, %v1070_v8 }
 0x1f0   : > { %1667 = vrot.lane.b32.xlu1 %v1472_v21, %s12853_s23  ;;  %1565 = vrot.lane.b32.xlu2 %v1154_v46, %s12854_s18  ;;  %v1379_v2 = vpop.f32.mrf.mxu1  ;;  %v1723_v21 = vsel %vm1721_vm2, %v797_v15, %v1542_v42 }
 0x1f1   : > { %6995 = vmatpush.msra.mxu2 %v1789_v55 }
 0x1f3   : > { %6996 = vmatpush.msra.mxu2 %v1786_v3  ;;  %v794_v3 = vadd.f32 %v7709_v29, %v7862_v23 }
 0x1f5   : > { %v1474_v9 = vpop.f32.mrf.mxu3  ;;  %6997 = vmatpush.msra.mxu2 %v1783_v12  ;;  %v8337_v57 = vpop.f32.mrf.mxu0  ;;  %v1722_v12 = vsel %vm1721_vm2, %v794_v3, %v1540_v0 }
 0x1f6   : > { %v1475_v24 = vadd.f32 %v1474_v9, %v1379_v2  ;;  %v1073_v29 = vpop.f32.mrf.mxu2 }
 0x1f7   : > { %6998 = vmatpush.msra.mxu2 %v1780_v37 }
 0x1f8   : > { %1669 = vrot.lane.b32.xlu0 %v1475_v24, %s12853_s23  ;;  %1567 = vrot.lane.b32.xlu1 %v1157_v40, %s12854_s18  ;;  %v1382_v50 = vpop.f32.mrf.mxu1  ;;  %v800_v40 = vadd.f32 %v7742_v43, %v8083_v31  ;;  %v1169_v43 = vadd.f32 %v7984_v16, %v1073_v29 }
 0x1f9   : > { %6999 = vmatpush.msra.mxu2 %v1777_v18 }
 0x1fa   : > { %v1648_v24 = vpop.permute.xlu2 %1647  ;;  %v1724_v0 = vsel %vm1721_vm2, %v800_v40, %v1544_v32 }
 0x1fd   : > { %v1477_v28 = vpop.f32.mrf.mxu3  ;;  %v8351_v46 = vpop.f32.mrf.mxu0 }
 0x1fe   : > { %v1478_v55 = vadd.f32 %v1477_v28, %v1382_v50  ;;  %v1076_v41 = vpop.f32.mrf.mxu2  ;;  %v1751_v28 = vsel %vm1748_vm4, %v1724_v0, %v1648_v24 }
 0x200   : > { %1671 = vrot.lane.b32.xlu2 %v1478_v55, %s12853_s23  ;;  %1569 = vrot.lane.b32.xlu0 %v1160_v5, %s12854_s18  ;;  %v1385_v56 = vpop.f32.mrf.mxu1  ;;  %v803_v55 = vadd.f32 %v7759_v51, %v8098_v54  ;;  %v1172_v51 = vadd.f32 %v7995_v22, %v1076_v41 }
 0x202   : > { %v1644_v37 = vpop.permute.xlu0 %1643  ;;  %v1548_v29 = vpop.permute.xlu2 %1547 }
 0x203   : > { %v1749_v62 = vsel %vm1748_vm4, %v1722_v12, %v1644_v37 }
 0x204   : > { %6461 = vmatmul.msk.f32.vlgmr.msrb.gmra.mxu0 %vm1816_vm3, %v1749_v62  ;;  %6488 = vmatmul.msk.f32.vlgmr.msrb.gmra.mxu2 %vm1816_vm3, %v1749_v62 }
 0x205   : > { %6515 = vmatmul.msk.f32.vlgmr.msra.gmra.mxu1 %vm1816_vm3, %v1749_v62  ;;  %v1480_v23 = vpop.f32.mrf.mxu3  ;;  %v8365_v5 = vpop.f32.mrf.mxu0 }
 0x206   : > { %v1481_v18 = vadd.f32 %v1480_v23, %v1385_v56  ;;  %v1079_v56 = vpop.f32.mrf.mxu2  ;;  %v806_v23 = vadd.f32 %v7778_v59, %v8117_v49  ;;  %v809_v59 = vadd.f32 %v7796_v1, %v8140_v20 }
 0x207   : > { %v1175_v49 = vadd.f32 %v8006_v30, %v1079_v56 }
 0x208   : > { %1673 = vrot.lane.b32.xlu1 %v1481_v18, %s12853_s23  ;;  %1571 = vrot.lane.b32.xlu2 %v1163_v6, %s12854_s18  ;;  %v1388_v14 = vpop.f32.mrf.mxu1  ;;  %v1726_v18 = vsel %vm1721_vm2, %v806_v23, %v1548_v29 }
 0x20a   : > { %v1646_v2 = vpop.permute.xlu1 %1645  ;;  %v1546_v8 = vpop.permute.xlu0 %1545 }
 0x20b   : > { %v1750_v9 = vsel %vm1748_vm4, %v1723_v21, %v1646_v2  ;;  %v1725_v12 = vsel %vm1721_vm2, %v803_v55, %v1546_v8 }
 0x20c   : > { %6462 = vmatmul.msk.f32.gmra.mxu0 %vm1816_vm3, %v1750_v9  ;;  %6489 = vmatmul.msk.f32.gmra.mxu2 %vm1816_vm3, %v1750_v9 }
 0x20d   : > { %6516 = vmatmul.msk.f32.gmra.mxu1 %vm1816_vm3, %v1750_v9  ;;  %v1483_v35 = vpop.f32.mrf.mxu3  ;;  %v8380_v62 = vpop.f32.mrf.mxu0 }
 0x20e   : > { %v1484_v4 = vadd.f32 %v1483_v35, %v1388_v14  ;;  %v1082_v32 = vpop.f32.mrf.mxu2 }
 0x20f   : > { %v1178_v20 = vadd.f32 %v8017_v38, %v1082_v32 }
 0x210   : > { %1675 = vrot.lane.b32.xlu0 %v1484_v4, %s12853_s23  ;;  %1573 = vrot.lane.b32.xlu1 %v1166_v36, %s12854_s18  ;;  %v1391_v50 = vpop.f32.mrf.mxu1 }
 0x212   : > { %v1654_v4 = vpop.permute.xlu2 %1653 }
 0x214   : > { %6463 = vmatmul.msk.f32.gmra.mxu0 %vm1816_vm3, %v1751_v28  ;;  %6490 = vmatmul.msk.f32.gmra.mxu2 %vm1816_vm3, %v1751_v28 }
 0x215   : > { %6517 = vmatmul.msk.f32.gmra.mxu1 %vm1816_vm3, %v1751_v28  ;;  %v1486_v10 = vpop.f32.mrf.mxu3  ;;  %v8395_v9 = vpop.f32.mrf.mxu0 }
 0x216   : > { %v1487_v31 = vadd.f32 %v1486_v10, %v1391_v50  ;;  %v1085_v1 = vpop.f32.mrf.mxu2  ;;  %v812_v50 = vadd.f32 %v7814_v7, %v8170_v45 }
 0x217   : > { %v1181_v7 = vadd.f32 %v8028_v47, %v1085_v1 }
 0x218   : > { %1677 = vrot.lane.b32.xlu2 %v1487_v31, %s12853_s23  ;;  %1575 = vrot.lane.b32.xlu0 %v1169_v43, %s12854_s18  ;;  %v1394_v3 = vpop.f32.mrf.mxu1 }
 0x21a   : > { %v1650_v42 = vpop.permute.xlu1 %1649  ;;  %v1554_v55 = vpop.permute.xlu2 %1553 }
 0x21b   : > { %v1752_v37 = vsel %vm1748_vm4, %v1725_v12, %v1650_v42 }
 0x21c   : > { %6464 = vmatmul.msk.f32.gmra.mxu0 %vm1816_vm3, %v1752_v37  ;;  %6491 = vmatmul.msk.f32.gmra.mxu2 %vm1816_vm3, %v1752_v37 }
 0x21d   : > { %6518 = vmatmul.msk.f32.gmra.mxu1 %vm1816_vm3, %v1752_v37  ;;  %v1489_v16 = vpop.f32.mrf.mxu3  ;;  %v8409_v28 = vpop.f32.mrf.mxu0 }
 0x21e   : > { %v1490_v54 = vadd.f32 %v1489_v16, %v1394_v3  ;;  %v1088_v8 = vpop.f32.mrf.mxu2  ;;  %v815_v3 = vadd.f32 %v7832_v13, %v8189_v17  ;;  %v818_v17 = vadd.f32 %v7850_v19, %v8207_v63 }
 0x220   : > { %1679 = vrot.lane.b32.xlu1 %v1490_v54, %s12853_s23  ;;  %1577 = vrot.lane.b32.xlu2 %v1172_v51, %s12854_s18  ;;  %v1397_v6 = vpop.f32.mrf.mxu1  ;;  %v1729_v12 = vsel %vm1721_vm2, %v815_v3, %v1554_v55  ;;  %v1184_v51 = vadd.f32 %v8039_v60, %v1088_v8  ;;  %v2220_v60 = vld [vmem:[%s12719_s4 + $0xf0] sm:$0xff]  ;;  %v2202_v55 = vld [vmem:[%s12719_s4 + $0x60] sm:$0xff] }
 0x221   : > { %2341 = vmatpush.msra.mxu3 %v2220_v60 }
 0x222   : > { %v1652_v15 = vpop.permute.xlu0 %1651  ;;  %v1550_v22 = vpop.permute.xlu1 %1549 }
 0x223   : > { %v1753_v14 = vsel %vm1748_vm4, %v1726_v18, %v1652_v15  ;;  %v1727_v35 = vsel %vm1721_vm2, %v809_v59, %v1550_v22  ;;  %v821_v59 = vadd.f32 %v7870_v26, %v8248_v52  ;;  %v2214_v26 = vld [vmem:[%s12719_s4 + $0xc0] sm:$0xff] }
 0x224   : > { %6465 = vmatmul.msk.f32.gmra.mxu0 %vm1816_vm3, %v1753_v14  ;;  %6492 = vmatmul.msk.f32.gmra.mxu2 %vm1816_vm3, %v1753_v14  ;;  %v1754_v41 = vsel %vm1748_vm4, %v1727_v35, %v1654_v4 }
 0x225   : > { %6519 = vmatmul.msk.f32.gmra.mxu1 %vm1816_vm3, %v1753_v14  ;;  %v1492_v21 = vpop.f32.mrf.mxu3  ;;  %v8423_v16 = vpop.f32.mrf.mxu0  ;;  %v2218_v14 = vld [vmem:[%s12719_s4 + $0xe0] sm:$0xff] }
 0x226   : > { %v1493_v2 = vadd.f32 %v1492_v21, %v1397_v6  ;;  %v1091_v6 = vpop.f32.mrf.mxu2  ;;  %2342 = vmatpush.msra.mxu3 %v2218_v14  ;;  %v836_v14 = vadd.f32 %v7934_v53, %v8351_v46  ;;  %v2221_v53 = vld [vmem:[%s12719_s4 + $0xf8] sm:$0xff] }
 0x227   : > { %v1187_v63 = vadd.f32 %v8050_v11, %v1091_v6  ;;  %v2216_v11 = vld [vmem:[%s12719_s4 + $0xd0] sm:$0xff]  ;;  %v2190_v6 = vld [vmem:[%s12719_s4] sm:$0xff]  ;;  %2626 = vmatpush.msrb.mxu1 %v2221_v53 }
 0x228   : > { %1681 = vrot.lane.b32.xlu0 %v1493_v2, %s12853_s23  ;;  %1579 = vrot.lane.b32.xlu1 %v1175_v49, %s12854_s18  ;;  %v1400_v36 = vpop.f32.mrf.mxu1 }
 0x229   : > { %2343 = vmatpush.msra.mxu3 %v2216_v11 }
 0x22a   : > { %v1552_v24 = vpop.permute.xlu0 %1551  ;;  %v1660_v18 = vpop.permute.xlu2 %1659 }
 0x22b   : > { %v1728_v10 = vsel %vm1721_vm2, %v812_v50, %v1552_v24  ;;  %2344 = vmatpush.msra.mxu3 %v2214_v26  ;;  %v824_v24 = vadd.f32 %v7888_v33, %v8302_v25  ;;  %v2208_v50 = vld [vmem:[%s12719_s4 + $0x90] sm:$0xff]  ;;  %v2206_v33 = vld [vmem:[%s12719_s4 + $0x80] sm:$0xff] }
 0x22c   : > { %6466 = vmatmul.msk.f32.gmra.mxu0 %vm1816_vm3, %v1754_v41  ;;  %6493 = vmatmul.msk.f32.gmra.mxu2 %vm1816_vm3, %v1754_v41 }
 0x22d   : > { %6520 = vmatmul.msk.f32.gmra.mxu1 %vm1816_vm3, %v1754_v41  ;;  %v1495_v30 = vpop.f32.mrf.mxu3  ;;  %v8445_v22 = vpop.f32.mrf.mxu0  ;;  %v2212_v41 = vld [vmem:[%s12719_s4 + $0xb0] sm:$0xff] }
 0x22e   : > { %v1496_v40 = vadd.f32 %v1495_v30, %v1400_v36  ;;  %v1094_v36 = vpop.f32.mrf.mxu2  ;;  %2345 = vmatpush.msra.mxu3 %v2212_v41 }
 0x22f   : > { %v1190_v1 = vadd.f32 %v8061_v27, %v1094_v36 }
 0x230   : > { %1683 = vrot.lane.b32.xlu2 %v1496_v40, %s12853_s23  ;;  %1581 = vrot.lane.b32.xlu0 %v1178_v20, %s12854_s18  ;;  %v1403_v0 = vpop.f32.mrf.mxu1  ;;  %v2210_v20 = vld [vmem:[%s12719_s4 + $0xa0] sm:$0xff] }
 0x231   : > { %2346 = vmatpush.msra.mxu3 %v2210_v20 }
 0x232   : > { %v1656_v43 = vpop.permute.xlu1 %1655  ;;  %v1560_v40 = vpop.permute.xlu2 %1559 }
 0x233   : > { %v1755_v31 = vsel %vm1748_vm4, %v1728_v10, %v1656_v43  ;;  %v1732_v27 = vsel %vm1721_vm2, %v824_v24, %v1560_v40  ;;  %2347 = vmatpush.msra.mxu3 %v2208_v50 }
 0x234   : > { %6467 = vmatmul.msk.f32.gmra.mxu0 %vm1816_vm3, %v1755_v31  ;;  %6494 = vmatmul.msk.f32.gmra.mxu2 %vm1816_vm3, %v1755_v31 }
 0x235   : > { %6521 = vmatmul.msk.f32.gmra.mxu1 %vm1816_vm3, %v1755_v31  ;;  %v1498_v38 = vpop.f32.mrf.mxu3  ;;  %2348 = vmatpush.msra.mxu3 %v2206_v33 }
 0x236   : > { %v1499_v45 = vadd.f32 %v1498_v38, %v1403_v0  ;;  %v8476_v0 = vpop.f32.mrf.mxu0 }
 0x238   : > { %1685 = vrot.lane.b32.xlu1 %v1499_v45, %s12853_s23  ;;  %1583 = vrot.lane.b32.xlu2 %v1181_v7, %s12854_s18  ;;  %v1406_v56 = vpop.f32.mrf.mxu1  ;;  %v2204_v7 = vld [vmem:[%s12719_s4 + $0x70] sm:$0xff]  ;;  %v827_v45 = vadd.f32 %v7901_v39, %v8321_v61  ;;  %v2198_v61 = vld [vmem:[%s12719_s4 + $0x40] sm:$0xff] }
 0x239   : > { %2349 = vmatpush.msra.mxu3 %v2204_v7 }
 0x23a   : > { %v1658_v42 = vpop.permute.xlu0 %1657  ;;  %v1556_v47 = vpop.permute.xlu1 %1555 }
 0x23b   : > { %v1756_v37 = vsel %vm1748_vm4, %v1729_v12, %v1658_v42  ;;  %v1730_v29 = vsel %vm1721_vm2, %v818_v17, %v1556_v47  ;;  %2350 = vmatpush.msra.mxu3 %v2202_v55  ;;  %v2194_v47 = vld [vmem:[%s12719_s4 + $0x20] sm:$0xff]  ;;  %v830_v17 = vadd.f32 %v7912_v44, %v8329_v34 }
 0x23c   : > { %6468 = vmatmul.msk.f32.gmra.mxu0 %vm1816_vm3, %v1756_v37  ;;  %6495 = vmatmul.msk.f32.gmra.mxu2 %vm1816_vm3, %v1756_v37  ;;  %v1757_v15 = vsel %vm1748_vm4, %v1730_v29, %v1660_v18  ;;  %v833_v18 = vadd.f32 %v7923_v48, %v8337_v57 }
 0x23d   : > { %6522 = vmatmul.msk.f32.gmra.mxu1 %vm1816_vm3, %v1756_v37  ;;  %v1501_v13 = vpop.f32.mrf.mxu3  ;;  %v2196_v37 = vld [vmem:[%s12719_s4 + $0x30] sm:$0xff] }
 0x23e   : > { %v1502_v54 = vadd.f32 %v1501_v13, %v1406_v56  ;;  %v2200_v56 = vld [vmem:[%s12719_s4 + $0x50] sm:$0xff]  ;;  %v8499_v42 = vpop.f32.mrf.mxu0 }
 0x23f   : > { %2351 = vmatpush.msra.mxu3 %v2200_v56  ;;  %v12857_v56 = vld [vmem:[#allocation11_spill] sm:$0xff] }
 0x240   : > { %1687 = vrot.lane.b32.xlu0 %v1502_v54, %s12853_s23  ;;  %1585 = vrot.lane.b32.xlu1 %v1184_v51, %s12854_s18  ;;  %v1409_v23 = vpop.f32.mrf.mxu1  ;;  %v2192_v51 = vld [vmem:[%s12719_s4 + $0x10] sm:$0xff] }
 0x241   : > { %2352 = vmatpush.msra.mxu3 %v2198_v61 }
 0x242   : > { %v1558_v21 = vpop.permute.xlu0 %1557  ;;  %v1666_v12 = vpop.permute.xlu2 %1665 }
 0x243   : > { %v1731_v2 = vsel %vm1721_vm2, %v821_v59, %v1558_v21  ;;  %2353 = vmatpush.msra.mxu3 %v2196_v37 }
 0x244   : > { %6469 = vmatmul.msk.f32.gmra.mxu0 %vm1816_vm3, %v1757_v15  ;;  %6496 = vmatmul.msk.f32.gmra.mxu2 %vm1816_vm3, %v1757_v15 }
 0x245   : > { %6523 = vmatmul.msk.f32.gmra.mxu1 %vm1816_vm3, %v1757_v15  ;;  %v1504_v19 = vpop.f32.mrf.mxu3  ;;  %2354 = vmatpush.msra.mxu3 %v2194_v47 }
 0x246   : > { %v1505_v32 = vadd.f32 %v1504_v19, %v1409_v23  ;;  %v8526_v44 = vpop.f32.mrf.mxu0 }
 0x247   : > { %2355 = vmatpush.msra.mxu3 %v2192_v51 }
 0x248   : > { %1689 = vrot.lane.b32.xlu2 %v1505_v32, %s12853_s23  ;;  %1587 = vrot.lane.b32.xlu0 %v1187_v63, %s12854_s18  ;;  %v1412_v49 = vpop.f32.mrf.mxu1  ;;  %v2252_v32 = vld [vmem:[%s12719_s4 + $0x1f0] sm:$0xff] }
 0x249   : > { %2356 = vmatpush.msra.mxu3 %v2190_v6  ;;  %2436 = vmatpush.msra.mxu0 %v2252_v32 }
 0x24a   : > { %v1662_v35 = vpop.permute.xlu1 %1661  ;;  %v1566_v34 = vpop.permute.xlu2 %1565 }
 0x24b   : > { %v1758_v4 = vsel %vm1748_vm4, %v1731_v2, %v1662_v35  ;;  %v1735_v15 = vsel %vm1721_vm2, %v833_v18, %v1566_v34  ;;  %v2211_v34 = vld [vmem:[%s12719_s4 + $0xa8] sm:$0xff] }
 0x24c   : > { %6470 = vmatmul.msk.f32.gmra.mxu0 %vm1816_vm3, %v1758_v4  ;;  %6497 = vmatmul.msk.f32.gmra.mxu2 %vm1816_vm3, %v1758_v4  ;;  %v12858_v18 = vld [vmem:[#allocation12_spill] sm:$0xff] }
 0x24d   : > { %6524 = vmatmul.msk.f32.gmra.mxu1 %vm1816_vm3, %v1758_v4  ;;  %v1507_v52 = vpop.f32.mrf.mxu3  ;;  %v8560_v4 = vld [vmem:[%s12718_s3] sm:$0x7] }
 0x24e   : > { %v1508_v30 = vadd.f32 %v1507_v52, %v1412_v49  ;;  %v8541_v48 = vpop.f32.mrf.mxu0  ;;  %v839_v49 = vadd.f32 %v7945_v58, %v8365_v5  ;;  %v2250_v58 = vld [vmem:[%s12719_s4 + $0x1e0] sm:$0xff]  ;;  %v8569_v5 = vperm.slane %v8560_v4, 0  ;;  %v12855_v52 = vld [vmem:[#allocation9_spill] sm:$0xff] }
 0x24f   : > { %2437 = vmatpush.msra.mxu0 %v2250_v58  ;;  %v842_v41 = vadd.f32 %v12855_v52, %v8380_v62  ;;  %v2219_v62 = vld [vmem:[%s12719_s4 + $0xe8] sm:$0xff] }
 0x250   : > { %1691 = vrot.lane.b32.xlu1 %v1508_v30, %s12853_s23  ;;  %1589 = vrot.lane.b32.xlu2 %v1190_v1, %s12854_s18  ;;  %v1415_v31 = vpop.f32.mrf.mxu1  ;;  %s7174_s18 = smov 16  }
 0x251   : > { %2627 = vmatpush.msrb.mxu1 %v2219_v62  ;;  %v2236_v62 = vld [vmem:[%s12719_s4 + $0x170] sm:$0xff] }
 0x252   : > { %v1664_v10 = vpop.permute.xlu0 %1663  ;;  %v1562_v25 = vpop.permute.xlu1 %1561 }
 0x253   : > { %v1759_v43 = vsel %vm1748_vm4, %v1732_v27, %v1664_v10  ;;  %v1733_v3 = vsel %vm1721_vm2, %v827_v45, %v1562_v25  ;;  %v12856_v10 = vld [vmem:[#allocation10_spill] sm:$0xff]  ;;  %v2248_v25 = vld [vmem:[%s12719_s4 + $0x1d0] sm:$0xff] }
 0x254   : > { %6471 = vmatmul.msk.f32.gmra.mxu0 %vm1816_vm3, %v1759_v43  ;;  %6498 = vmatmul.msk.f32.gmra.mxu2 %vm1816_vm3, %v1759_v43  ;;  %v1760_v39 = vsel %vm1748_vm4, %v1733_v3, %v1666_v12  ;;  %v848_v12 = vadd.f32 %v12857_v56, %v8409_v28  ;;  %v2215_v28 = vld [vmem:[%s12719_s4 + $0xc8] sm:$0xff] }
 0x255   : > { %6525 = vmatmul.msk.f32.gmra.mxu1 %vm1816_vm3, %v1759_v43  ;;  %v1510_v38 = vpop.f32.mrf.mxu3  ;;  %v845_v43 = vadd.f32 %v12856_v10, %v8395_v9  ;;  %2438 = vmatpush.msra.mxu0 %v2248_v25  ;;  %v2234_v25 = vld [vmem:[%s12719_s4 + $0x160] sm:$0xff] }
 0x256   : > { %v1511_v8 = vadd.f32 %v1510_v38, %v1415_v31  ;;  %v8553_v46 = vpop.f32.mrf.mxu0 }
 0x258   : > { %1693 = vrot.lane.b32.xlu0 %v1511_v8, %s12853_s23  ;;  %s7172_s23 = smov 72  }
 0x25a   : > { %v1564_v13 = vpop.permute.xlu0 %1563  ;;  %v1672_v21 = vpop.permute.xlu2 %1671 }
 0x25b   : > { %v1734_v54 = vsel %vm1721_vm2, %v830_v17, %v1564_v13 }
 0x25c   : > { %6472 = vmatmul.msk.f32.gmra.mxu0 %vm1816_vm3, %v1760_v39  ;;  %6499 = vmatmul.msk.f32.gmra.mxu2 %vm1816_vm3, %v1760_v39 }
 0x25d   : > { %6526 = vmatmul.msk.f32.gmra.mxu1 %vm1816_vm3, %v1760_v39  ;;  %v2217_v39 = vld [vmem:[%s12719_s4 + $0xd8] sm:$0xff] }
 0x25e   : > { %2628 = vmatpush.msrb.mxu1 %v2217_v39 }
 0x260   : > { %2629 = vmatpush.msrb.mxu1 %v2215_v28 }
 0x262   : > { %v1668_v29 = vpop.permute.xlu1 %1667  ;;  %v1572_v26 = vpop.permute.xlu2 %1571 }
 0x263   : > { %v1761_v23 = vsel %vm1748_vm4, %v1734_v54, %v1668_v29  ;;  %v1738_v30 = vsel %vm1721_vm2, %v842_v41, %v1572_v26  ;;  %v2246_v54 = vld [vmem:[%s12719_s4 + $0x1c0] sm:$0xff]  ;;  %v2213_v29 = vld [vmem:[%s12719_s4 + $0xb8] sm:$0xff] }
 0x264   : > { %6473 = vmatmul.msk.f32.gmra.mxu0 %vm1816_vm3, %v1761_v23  ;;  %6500 = vmatmul.msk.f32.gmra.mxu2 %vm1816_vm3, %v1761_v23 }
 0x265   : > { %6527 = vmatmul.msk.f32.gmra.mxu1 %vm1816_vm3, %v1761_v23  ;;  %2439 = vmatpush.msra.mxu0 %v2246_v54 }
 0x266   : > { %2630 = vmatpush.msrb.mxu1 %v2213_v29  ;;  %v2193_v29 = vld [vmem:[%s12719_s4 + $0x18] sm:$0xff] }
 0x268   : > { %2631 = vmatpush.msrb.mxu1 %v2211_v34  ;;  %v12863_v34 = vld [vmem:[#allocation15_spill] sm:$0xff] }
 0x26a   : > { %v1670_v19 = vpop.permute.xlu0 %1669  ;;  %v1568_v63 = vpop.permute.xlu1 %1567 }
 0x26b   : > { %v1762_v60 = vsel %vm1748_vm4, %v1735_v15, %v1670_v19  ;;  %v1736_v57 = vsel %vm1721_vm2, %v836_v14, %v1568_v63  ;;  %v851_v15 = vadd.f32 %v12858_v18, %v8423_v16  ;;  %v860_v18 = vadd.f32 %v12863_v34, %v8499_v42  ;;  %v2226_v42 = vld [vmem:[%s12719_s4 + $0x120] sm:$0xff] }
 0x26c   : > { %6474 = vmatmul.msk.f32.gmra.mxu0 %vm1816_vm3, %v1762_v60  ;;  %6501 = vmatmul.msk.f32.gmra.mxu2 %vm1816_vm3, %v1762_v60  ;;  %v1763_v59 = vsel %vm1748_vm4, %v1736_v57, %v1672_v21  ;;  %v2209_v21 = vld [vmem:[%s12719_s4 + $0x98] sm:$0xff] }
 0x26d   : > { %6528 = vmatmul.msk.f32.gmra.mxu1 %vm1816_vm3, %v1762_v60 }
 0x26e   : > { %2632 = vmatpush.msrb.mxu1 %v2209_v21 }
 0x272   : > { %v1570_v11 = vpop.permute.xlu0 %1569  ;;  %v1678_v7 = vpop.permute.xlu2 %1677 }
 0x273   : > { %v1737_v2 = vsel %vm1721_vm2, %v839_v49, %v1570_v11  ;;  %v2244_v11 = vld [vmem:[%s12719_s4 + $0x1b0] sm:$0xff] }
 0x274   : > { %6475 = vmatmul.msk.f32.gmra.mxu0 %vm1816_vm3, %v1763_v59  ;;  %6502 = vmatmul.msk.f32.gmra.mxu2 %vm1816_vm3, %v1763_v59  ;;  %v12859_v49 = vld [vmem:[#allocation13_spill] sm:$0xff] }
 0x275   : > { %6529 = vmatmul.msk.f32.gmra.mxu1 %vm1816_vm3, %v1763_v59  ;;  %v2207_v59 = vld [vmem:[%s12719_s4 + $0x88] sm:$0xff]  ;;  %v854_v53 = vadd.f32 %v12859_v49, %v8445_v22  ;;  %2440 = vmatpush.msra.mxu0 %v2244_v11  ;;  %v2240_v22 = vld [vmem:[%s12719_s4 + $0x190] sm:$0xff] }
 0x276   : > { %2633 = vmatpush.msrb.mxu1 %v2207_v59  ;;  %v2224_v11 = vld [vmem:[%s12719_s4 + $0x110] sm:$0xff]  ;;  %v12865_v49 = vld [vmem:[#allocation16_spill] sm:$0xff] }
 0x27a   : > { %v1674_v35 = vpop.permute.xlu1 %1673  ;;  %v1578_v23 = vpop.permute.xlu2 %1577 }
 0x27b   : > { %v1764_v36 = vsel %vm1748_vm4, %v1737_v2, %v1674_v35  ;;  %v1741_v60 = vsel %vm1721_vm2, %v851_v15, %v1578_v23  ;;  %v2205_v35 = vld [vmem:[%s12719_s4 + $0x78] sm:$0xff]  ;;  %v2228_v23 = vld [vmem:[%s12719_s4 + $0x130] sm:$0xff] }
 0x27c   : > { %6476 = vmatmul.msk.f32.gmra.mxu0 %vm1816_vm3, %v1764_v36  ;;  %6503 = vmatmul.msk.f32.gmra.mxu2 %vm1816_vm3, %v1764_v36 }
 0x27d   : > { %6530 = vmatmul.msk.f32.gmra.mxu1 %vm1816_vm3, %v1764_v36  ;;  %v2242_v36 = vld [vmem:[%s12719_s4 + $0x1a0] sm:$0xff] }
 0x27e   : > { %2441 = vmatpush.msra.mxu0 %v2242_v36  ;;  %2634 = vmatpush.msrb.mxu1 %v2205_v35  ;;  %v2222_v36 = vld [vmem:[%s12719_s4 + $0x100] sm:$0xff] }
 0x280   : > { %2442 = vmatpush.msra.mxu0 %v2240_v22 }
 0x281   : > { %v1922_v1 = vpop.f32.mrf.mxu0 }
 0x282   : > { %v8575_v20 = vadd.f32 %v1922_v1, %v8569_v5  ;;  %v8577_v40 = vpop.f32.mrf.mxu1  ;;  %v1676_v24 = vpop.permute.xlu0 %1675 }
 0x283   : > { %v1765_v50 = vsel %vm1748_vm4, %v1738_v30, %v1676_v24  ;;  %v1574_v27 = vpop.permute.xlu1 %1573  ;;  %v2203_v24 = vld [vmem:[%s12719_s4 + $0x68] sm:$0xff] }
 0x284   : > { %6477 = vmatmul.msk.f32.gmra.mxu0 %vm1816_vm3, %v1765_v50  ;;  %6504 = vmatmul.msk.f32.gmra.mxu2 %vm1816_vm3, %v1765_v50  ;;  %v1739_v33 = vsel %vm1721_vm2, %v845_v43, %v1574_v27  ;;  %v2201_v27 = vld [vmem:[%s12719_s4 + $0x58] sm:$0xff] }
 0x285   : > { %6531 = vmatmul.msk.f32.gmra.mxu1 %vm1816_vm3, %v1765_v50  ;;  %2357 = vmatmul.f32.vlgmr.msra.gmra.mxu3 %v8575_v20  ;;  %v1766_v55 = vsel %vm1748_vm4, %v1739_v33, %v1678_v7  ;;  %v2238_v50 = vld [vmem:[%s12719_s4 + $0x180] sm:$0xff]  ;;  %v2199_v33 = vld [vmem:[%s12719_s4 + $0x48] sm:$0xff] }
 0x286   : > { %2635 = vmatpush.msrb.mxu1 %v2203_v24  ;;  %2443 = vmatpush.msra.mxu0 %v2238_v50  ;;  %v2254_v24 = vld [vmem:[%s12719_s4 + $0x200] sm:$0xf] }
 0x287   : > { %v8589_v31 = vpop.f32.mrf.mxu2  ;;  %6541 = vmatpush.msk.msrb.mxu2 %vm1895_vm1, %v2254_v24 }
 0x288   : > { %2636 = vmatpush.msrb.mxu1 %v2201_v27  ;;  %2444 = vmatpush.msra.mxu0 %v2236_v62  ;;  %v12867_v62 = vld [vmem:[#allocation17_spill] sm:$0xff] }
 0x289   : > { %v1925_v38 = vpop.f32.mrf.mxu0 }
 0x28a   : > { %v8596_v45 = vadd.f32 %v1925_v38, %v8569_v5  ;;  %v8598_v8 = vpop.f32.mrf.mxu1  ;;  %v1576_v9 = vpop.permute.xlu0 %1575  ;;  %v12861_v38 = vld [vmem:[#allocation14_spill] sm:$0xff]  ;;  %2637 = vmatpush.msrb.mxu1 %v2199_v33  ;;  %2445 = vmatpush.msra.mxu0 %v2234_v25 }
 0x28b   : > { %v1740_v37 = vsel %vm1721_vm2, %v848_v12, %v1576_v9  ;;  %v1684_v52 = vpop.permute.xlu2 %1683  ;;  %v857_v7 = vadd.f32 %v12861_v38, %v8476_v0  ;;  %v2232_v0 = vld [vmem:[%s12719_s4 + $0x150] sm:$0xff] }
 0x28c   : > { %6478 = vmatmul.msk.f32.gmra.mxu0 %vm1816_vm3, %v1766_v55  ;;  %6505 = vmatmul.msk.f32.gmra.mxu2 %vm1816_vm3, %v1766_v55 }
 0x28d   : > { %6532 = vmatmul.msk.f32.gmra.mxu1 %vm1816_vm3, %v1766_v55  ;;  %2360 = vmatmul.f32.gmra.mxu3 %v8596_v45 }
 0x28e   : > { %2446 = vmatpush.msra.mxu0 %v2232_v0 }
 0x28f   : > { %v8605_v3 = vpop.f32.mrf.mxu2 }
 0x291   : > { %v1928_v61 = vpop.f32.mrf.mxu0 }
 0x292   : > { %v8614_v47 = vadd.f32 %v1928_v61, %v8569_v5  ;;  %v8616_v13 = vpop.f32.mrf.mxu1  ;;  %v1680_v17 = vpop.permute.xlu1 %1679 }
 0x293   : > { %v1767_v51 = vsel %vm1748_vm4, %v1740_v37, %v1680_v17  ;;  %v2197_v37 = vld [vmem:[%s12719_s4 + $0x38] sm:$0xff]  ;;  %v2195_v17 = vld [vmem:[%s12719_s4 + $0x28] sm:$0xff]  ;;  %v1584_v28 = vpop.permute.xlu2 %1583 }
 0x294   : > { %6479 = vmatmul.msk.f32.gmra.mxu0 %vm1816_vm3, %v1767_v51  ;;  %6506 = vmatmul.msk.f32.gmra.mxu2 %vm1816_vm3, %v1767_v51 }
 0x295   : > { %6533 = vmatmul.msk.f32.gmra.mxu1 %vm1816_vm3, %v1767_v51  ;;  %2363 = vmatmul.f32.gmra.mxu3 %v8614_v47  ;;  %v2230_v51 = vld [vmem:[%s12719_s4 + $0x140] sm:$0xff] }
 0x296   : > { %2638 = vmatpush.msrb.mxu1 %v2197_v37  ;;  %2447 = vmatpush.msra.mxu0 %v2230_v51 }
 0x297   : > { %v8632_v6 = vpop.f32.mrf.mxu2 }
 0x298   : > { %2639 = vmatpush.msrb.mxu1 %v2195_v17  ;;  %2448 = vmatpush.msra.mxu0 %v2228_v23 }
 0x299   : > { %v1931_v19 = vpop.f32.mrf.mxu0 }
 0x29a   : > { %v8641_v63 = vadd.f32 %v1931_v19, %v8569_v5  ;;  %v8643_v32 = vpop.f32.mrf.mxu1  ;;  %v1682_v14 = vpop.permute.xlu0 %1681  ;;  %v1744_v19 = vsel %vm1721_vm2, %v860_v18, %v1584_v28  ;;  %2640 = vmatpush.msrb.mxu1 %v2193_v29  ;;  %2449 = vmatpush.msra.mxu0 %v2226_v42 }
 0x29b   : > { %v1768_v57 = vsel %vm1748_vm4, %v1741_v60, %v1682_v14  ;;  %v1580_v16 = vpop.permute.xlu1 %1579 }
 0x29c   : > { %6480 = vmatmul.msk.f32.gmra.mxu0 %vm1816_vm3, %v1768_v57  ;;  %6507 = vmatmul.msk.f32.gmra.mxu2 %vm1816_vm3, %v1768_v57  ;;  %v1742_v58 = vsel %vm1721_vm2, %v854_v53, %v1580_v16  ;;  %v2191_v16 = vld [vmem:[%s12719_s4 + $0x8] sm:$0xff]  ;;  %v863_v53 = vadd.f32 %v12865_v49, %v8526_v44 }
 0x29d   : > { %6534 = vmatmul.msk.f32.gmra.mxu1 %vm1816_vm3, %v1768_v57  ;;  %2366 = vmatmul.f32.gmra.mxu3 %v8641_v63  ;;  %v1769_v30 = vsel %vm1748_vm4, %v1742_v58, %v1684_v52 }
 0x29e   : > { %2641 = vmatpush.msrb.mxu1 %v2191_v16  ;;  %2450 = vmatpush.msra.mxu0 %v2224_v11 }
 0x29f   : > { %v8661_v2 = vpop.f32.mrf.mxu2 }
 0x2a0   : > { %2451 = vmatpush.msra.mxu0 %v2222_v36 }
 0x2a1   : > { %v1934_v26 = vpop.f32.mrf.mxu0 }
 0x2a2   : > { %v8674_v41 = vadd.f32 %v1934_v26, %v8569_v5  ;;  %v8676_v1 = vpop.f32.mrf.mxu1  ;;  %v1582_v10 = vpop.permute.xlu0 %1581 }
 0x2a3   : > { %v1743_v9 = vsel %vm1721_vm2, %v857_v7, %v1582_v10  ;;  %v1690_v22 = vpop.permute.xlu2 %1689  ;;  %v866_v10 = vadd.f32 %v12867_v62, %v8541_v48 }
 0x2a4   : > { %12860 = vst [vmem:[#allocation9_spill] sm:$0xff] %v8674_v41  ;;  %6481 = vmatmul.msk.f32.gmra.mxu0 %vm1816_vm3, %v1769_v30  ;;  %6508 = vmatmul.msk.f32.gmra.mxu2 %vm1816_vm3, %v1769_v30 }
 0x2a5   : > { %6535 = vmatmul.msk.f32.gmra.mxu1 %vm1816_vm3, %v1769_v30  ;;  %2369 = vmatmul.f32.gmra.mxu3 %v8674_v41 }
 0x2a7   : > { %v8695_v43 = vpop.f32.mrf.mxu2 }
 0x2a9   : > { %v1937_v55 = vpop.f32.mrf.mxu0 }
 0x2aa   : > { %v8707_v56 = vadd.f32 %v1937_v55, %v8569_v5  ;;  %v8709_v12 = vpop.f32.mrf.mxu1  ;;  %v1686_v39 = vpop.permute.xlu1 %1685 }
 0x2ab   : > { %v1770_v61 = vsel %vm1748_vm4, %v1743_v9, %v1686_v39  ;;  %v1590_v48 = vpop.permute.xlu2 %1589 }
 0x2ac   : > { %12862 = vst [vmem:[#allocation10_spill] sm:$0xff] %v8707_v56  ;;  %6482 = vmatmul.msk.f32.gmra.mxu0 %vm1816_vm3, %v1770_v61  ;;  %6509 = vmatmul.msk.f32.gmra.mxu2 %vm1816_vm3, %v1770_v61 }
 0x2ad   : > { %6536 = vmatmul.msk.f32.gmra.mxu1 %vm1816_vm3, %v1770_v61  ;;  %2372 = vmatmul.f32.gmra.mxu3 %v8707_v56  ;;  %v12869_v61 = vld [vmem:[#allocation18_spill] sm:$0xff] }
 0x2ae   : > { %v869_v37 = vadd.f32 %v12869_v61, %v8553_v46  ;;  %v8811_v46 = vperm.slane %v8560_v4, 1 }
 0x2af   : > { %v8728_v54 = vpop.f32.mrf.mxu2 }
 0x2b0   : > { %v1747_v17 = vsel %vm1721_vm2, %v869_v37, %v1590_v48  ;;  %v8899_v62 = vadd.f32 %v8695_v43, %v8811_v46 }
 0x2b1   : > { %v1940_v15 = vpop.f32.mrf.mxu0 }
 0x2b2   : > { %v8740_v60 = vadd.f32 %v1940_v15, %v8569_v5  ;;  %v8742_v14 = vpop.f32.mrf.mxu1  ;;  %v1688_v57 = vpop.permute.xlu0 %1687  ;;  %v8817_v15 = vadd.f32 %v8589_v31, %v8811_v46 }
 0x2b3   : > { %v1771_v21 = vsel %vm1748_vm4, %v1744_v19, %v1688_v57  ;;  %v1586_v59 = vpop.permute.xlu1 %1585 }
 0x2b4   : > { %12864 = vst [vmem:[#allocation11_spill] sm:$0xff] %v8740_v60  ;;  %6483 = vmatmul.msk.f32.gmra.mxu0 %vm1816_vm3, %v1771_v21  ;;  %6510 = vmatmul.msk.f32.gmra.mxu2 %vm1816_vm3, %v1771_v21  ;;  %v1745_v58 = vsel %vm1721_vm2, %v863_v53, %v1586_v59  ;;  %v8839_v59 = vadd.f32 %v8605_v3, %v8811_v46 }
 0x2b5   : > { %6537 = vmatmul.msk.f32.gmra.mxu1 %vm1816_vm3, %v1771_v21  ;;  %2375 = vmatmul.f32.gmra.mxu3 %v8740_v60  ;;  %v1772_v44 = vsel %vm1748_vm4, %v1745_v58, %v1690_v22  ;;  %v8829_v21 = vperm.slane %v8560_v4, 2  ;;  %v8859_v53 = vadd.f32 %v8632_v6, %v8811_v46  ;;  %v8879_v22 = vadd.f32 %v8661_v2, %v8811_v46 }
 0x2b7   : > { %v8760_v35 = vpop.f32.mrf.mxu2  ;;  %v8835_v42 = vadd.f32 %v8577_v40, %v8829_v21  ;;  %v8855_v3 = vadd.f32 %v8598_v8, %v8829_v21  ;;  %v8875_v6 = vadd.f32 %v8616_v13, %v8829_v21  ;;  %v8895_v2 = vadd.f32 %v8643_v32, %v8829_v21 }
 0x2b8   : > { %v8915_v43 = vadd.f32 %v8676_v1, %v8829_v21  ;;  %v8939_v37 = vadd.f32 %v8760_v35, %v8811_v46 }
 0x2b9   : > { %v1943_v26 = vpop.f32.mrf.mxu0 }
 0x2ba   : > { %v8767_v52 = vadd.f32 %v1943_v26, %v8569_v5  ;;  %v8769_v30 = vpop.f32.mrf.mxu1  ;;  %v1588_v50 = vpop.permute.xlu0 %1587  ;;  %12878 = vst [vmem:[#allocation22_spill] sm:$0xff] %v8939_v37 }
 0x2bb   : > { %v1746_v25 = vsel %vm1721_vm2, %v866_v10, %v1588_v50  ;;  %vm6057_vm2 = vcmask 949248  }
 0x2bc   : > { %12866 = vst [vmem:[#allocation12_spill] sm:$0xff] %v8767_v52  ;;  %6484 = vmatmul.msk.f32.gmra.mxu0 %vm1816_vm3, %v1772_v44  ;;  %6511 = vmatmul.msk.f32.gmra.mxu2 %vm1816_vm3, %v1772_v44 }
 0x2bd   : > { %6538 = vmatmul.msk.f32.gmra.mxu1 %vm1816_vm3, %v1772_v44  ;;  %2378 = vmatmul.f32.gmra.mxu3 %v8767_v52 }
 0x2bf   : > { %v8780_v27 = vpop.f32.mrf.mxu2 }
 0x2c1   : > { %v1946_v33 = vpop.f32.mrf.mxu0 }
 0x2c2   : > { %v8786_v38 = vadd.f32 %v1946_v33, %v8569_v5  ;;  %v8788_v7 = vpop.f32.mrf.mxu1  ;;  %v1692_v55 = vpop.permute.xlu1 %1691 }
 0x2c3   : > { %v1773_v9 = vsel %vm1748_vm4, %v1746_v25, %v1692_v55  ;;  %v8919_v55 = vadd.f32 %v8728_v54, %v8811_v46  ;;  %v8935_v54 = vadd.f32 %v8709_v12, %v8829_v21 }
 0x2c4   : > { %12868 = vst [vmem:[#allocation13_spill] sm:$0xff] %v8786_v38  ;;  %6485 = vmatmul.msk.f32.gmra.mxu0 %vm1816_vm3, %v1773_v9  ;;  %6512 = vmatmul.msk.f32.gmra.mxu2 %vm1816_vm3, %v1773_v9 }
 0x2c5   : > { %6539 = vmatmul.msk.f32.gmra.mxu1 %vm1816_vm3, %v1773_v9  ;;  %2381 = vmatmul.f32.gmra.mxu3 %v8786_v38  ;;  %12877 = vst [vmem:[#allocation21_spill] sm:$0xff] %v8935_v54 }
 0x2c7   : > { %v8795_v39 = vpop.f32.mrf.mxu2 }
 0x2c9   : > { %v1949_v0 = vpop.f32.mrf.mxu0 }
 0x2ca   : > { %v8801_v51 = vadd.f32 %v1949_v0, %v8569_v5  ;;  %v8803_v28 = vpop.f32.mrf.mxu1  ;;  %v1694_v29 = vpop.permute.xlu0 %1693 }
 0x2cb   : > { %v1774_v23 = vsel %vm1748_vm4, %v1747_v17, %v1694_v29  ;;  %vm6155_vm4 = vcmask 408576  }
 0x2cc   : > { %12870 = vst [vmem:[#allocation14_spill] sm:$0xff] %v8801_v51  ;;  %6486 = vmatmul.msk.f32.gmra.mxu0 %vm1816_vm3, %v1774_v23  ;;  %6513 = vmatmul.msk.f32.gmra.mxu2 %vm1816_vm3, %v1774_v23 }
 0x2cd   : > { %2384 = vmatmul.f32.gmra.mxu3 %v8801_v51  ;;  %2642 = vmatmul.f32.vlgmr.msrb.gmra.mxu1 %v8575_v20 }
 0x2cf   : > { %v8813_v34 = vpop.f32.mrf.mxu2 }
 0x2d1   : > { %v1952_v18 = vpop.f32.mrf.mxu0 }
 0x2d2   : > { %v8820_v19 = vadd.f32 %v1952_v18, %v8569_v5  ;;  %v8822_v57 = vpop.f32.mrf.mxu1  ;;  %v8961_v18 = vadd.f32 %v8780_v27, %v8811_v46 }
 0x2d4   : > { %12871 = vst [vmem:[#allocation15_spill] sm:$0xff] %v8820_v19  ;;  %6540 = vmatmul.msk.f32.vlgmr.msra.gmra.mxu2 %vm1816_vm3, %v1774_v23  ;;  %2452 = vmatmul.f32.vlgmr.msra.gmra.mxu0 %v8817_v15  ;;  %v8957_v23 = vadd.f32 %v8742_v14, %v8829_v21  ;;  %vm6159_vm3 = vcmask 1041408  }
 0x2d5   : > { %2387 = vmatmul.f32.gmra.mxu3 %v8820_v19  ;;  %2645 = vmatmul.f32.gmra.mxu1 %v8596_v45  ;;  %12882 = vst [vmem:[#allocation26_spill] sm:$0xff] %v8961_v18 }
 0x2d6   : > { %12881 = vst [vmem:[#allocation25_spill] sm:$0xff] %v8957_v23 }
 0x2d7   : > { %v8831_v16 = vpop.f32.mrf.mxu2 }
 0x2d9   : > { %v1955_v31 = vpop.f32.mrf.mxu0 }
 0x2da   : > { %v8842_v11 = vadd.f32 %v1955_v31, %v8569_v5  ;;  %v8844_v49 = vpop.f32.mrf.mxu1 }
 0x2dc   : > { %12872 = vst [vmem:[#allocation16_spill] sm:$0xff] %v8842_v11  ;;  %2455 = vmatmul.f32.gmra.mxu0 %v8839_v59  ;;  %6542 = vmatmul.msk.f32.vlgmr.msrb.gmra.mxu2 %vm2256_vm5, %v8835_v42 }
 0x2dd   : > { %2390 = vmatmul.f32.gmra.mxu3 %v8842_v11  ;;  %2648 = vmatmul.f32.gmra.mxu1 %v8614_v47 }
 0x2df   : > { %v8851_v4 = vpop.f32.mrf.mxu2 }
 0x2e1   : > { %v1958_v40 = vpop.f32.mrf.mxu0 }
 0x2e2   : > { %v8862_v36 = vadd.f32 %v1958_v40, %v8569_v5  ;;  %v8864_v58 = vpop.f32.mrf.mxu1 }
 0x2e4   : > { %12873 = vst [vmem:[#allocation17_spill] sm:$0xff] %v8862_v36  ;;  %2458 = vmatmul.f32.gmra.mxu0 %v8859_v53  ;;  %6543 = vmatmul.msk.f32.gmra.mxu2 %vm2256_vm5, %v8855_v3 }
 0x2e5   : > { %2393 = vmatmul.f32.gmra.mxu3 %v8862_v36  ;;  %2651 = vmatmul.f32.gmra.mxu1 %v8641_v63 }
 0x2e7   : > { %v8871_v8 = vpop.f32.mrf.mxu2 }
 0x2e9   : > { %v1961_v26 = vpop.f32.mrf.mxu0 }
 0x2ea   : > { %v8882_v44 = vadd.f32 %v1961_v26, %v8569_v5  ;;  %v8884_v24 = vpop.f32.mrf.mxu1 }
 0x2ec   : > { %12874 = vst [vmem:[#allocation18_spill] sm:$0xff] %v8882_v44  ;;  %2461 = vmatmul.f32.gmra.mxu0 %v8879_v22  ;;  %6544 = vmatmul.msk.f32.gmra.mxu2 %vm2256_vm5, %v8875_v6 }
 0x2ed   : > { %2396 = vmatmul.f32.gmra.mxu3 %v8882_v44  ;;  %2654 = vmatmul.f32.gmra.mxu1 %v8674_v41 }
 0x2ef   : > { %v8891_v13 = vpop.f32.mrf.mxu2 }
 0x2f1   : > { %v1964_v50 = vpop.f32.mrf.mxu0 }
 0x2f2   : > { %v8902_v10 = vadd.f32 %v1964_v50, %v8569_v5  ;;  %v8904_v33 = vpop.f32.mrf.mxu1  ;;  %v8979_v50 = vadd.f32 %v8769_v30, %v8829_v21  ;;  %v2253_v30 = vld [vmem:[%s12719_s4 + $0x1f8] sm:$0xff] }
 0x2f3   : > { %2721 = vmatpush.msrb.mxu3 %v2253_v30  ;;  %v9014_v30 = vadd.f32 %v8813_v34, %v8811_v46 }
 0x2f4   : > { %12875 = vst [vmem:[#allocation19_spill] sm:$0xff] %v8902_v10  ;;  %2464 = vmatmul.f32.gmra.mxu0 %v8899_v62  ;;  %6545 = vmatmul.msk.f32.gmra.mxu2 %vm2256_vm5, %v8895_v2 }
 0x2f5   : > { %2399 = vmatmul.f32.gmra.mxu3 %v8902_v10  ;;  %2657 = vmatmul.f32.gmra.mxu1 %v8707_v56  ;;  %12885 = vst [vmem:[#allocation29_spill] sm:$0xff] %v8979_v50 }
 0x2f6   : > { %12890 = vst [vmem:[#allocation34_spill] sm:$0xff] %v9014_v30 }
 0x2f7   : > { %v8911_v32 = vpop.f32.mrf.mxu2 }
 0x2f9   : > { %v1967_v25 = vpop.f32.mrf.mxu0 }
 0x2fa   : > { %v8922_v9 = vadd.f32 %v1967_v25, %v8569_v5  ;;  %v8924_v48 = vpop.f32.mrf.mxu1  ;;  %v8983_v25 = vadd.f32 %v8795_v39, %v8811_v46 }
 0x2fc   : > { %12876 = vst [vmem:[#allocation20_spill] sm:$0xff] %v8922_v9  ;;  %2467 = vmatmul.f32.gmra.mxu0 %v8919_v55  ;;  %6546 = vmatmul.msk.f32.gmra.mxu2 %vm2256_vm5, %v8915_v43 }
 0x2fd   : > { %2402 = vmatmul.f32.gmra.mxu3 %v8922_v9  ;;  %2660 = vmatmul.f32.gmra.mxu1 %v8740_v60  ;;  %12886 = vst [vmem:[#allocation30_spill] sm:$0xff] %v8983_v25 }
 0x2ff   : > { %v8931_v1 = vpop.f32.mrf.mxu2 }
 0x301   : > { %v1970_v61 = vpop.f32.mrf.mxu0 }
 0x302   : > { %v8942_v0 = vadd.f32 %v1970_v61, %v8569_v5  ;;  %v8944_v17 = vpop.f32.mrf.mxu1 }
 0x304   : > { %12879 = vst [vmem:[#allocation23_spill] sm:$0xff] %v8942_v0  ;;  %2470 = vmatmul.f32.gmra.mxu0 %v8939_v37  ;;  %6547 = vmatmul.msk.f32.gmra.mxu2 %vm2256_vm5, %v8935_v54 }
 0x305   : > { %2405 = vmatmul.f32.gmra.mxu3 %v8942_v0  ;;  %2663 = vmatmul.f32.gmra.mxu1 %v8767_v52 }
 0x307   : > { %v8951_v12 = vpop.f32.mrf.mxu2 }
 0x308   : > { %v8953_v29 = vpop.f32.mrf.mxu3 }
 0x309   : > { %12880 = vst [vmem:[#allocation24_spill] sm:$0xff] %v8953_v29  ;;  %v1973_v35 = vpop.f32.mrf.mxu0 }
 0x30a   : > { %v8964_v31 = vadd.f32 %v1973_v35, %v8569_v5  ;;  %v8966_v40 = vpop.f32.mrf.mxu1 }
 0x30c   : > { %12883 = vst [vmem:[#allocation27_spill] sm:$0xff] %v8964_v31  ;;  %2473 = vmatmul.f32.gmra.mxu0 %v8961_v18  ;;  %6548 = vmatmul.msk.f32.gmra.mxu2 %vm2256_vm5, %v8957_v23 }
 0x30d   : > { %2408 = vmatmul.f32.gmra.mxu3 %v8964_v31  ;;  %2666 = vmatmul.f32.gmra.mxu1 %v8786_v38  ;;  %v2249_v38 = vld [vmem:[%s12719_s4 + $0x1d8] sm:$0xff] }
 0x30f   : > { %v8973_v14 = vpop.f32.mrf.mxu2 }
 0x310   : > { %v8975_v26 = vpop.f32.mrf.mxu3 }
 0x311   : > { %12884 = vst [vmem:[#allocation28_spill] sm:$0xff] %v8975_v26  ;;  %v1976_v27 = vpop.f32.mrf.mxu0 }
 0x312   : > { %v8986_v61 = vadd.f32 %v1976_v27, %v8569_v5  ;;  %v8988_v35 = vpop.f32.mrf.mxu1  ;;  %v2251_v27 = vld [vmem:[%s12719_s4 + $0x1e8] sm:$0xff] }
 0x313   : > { %2722 = vmatpush.msrb.mxu3 %v2251_v27  ;;  %v2247_v27 = vld [vmem:[%s12719_s4 + $0x1c8] sm:$0xff] }
 0x314   : > { %12887 = vst [vmem:[#allocation31_spill] sm:$0xff] %v8986_v61  ;;  %2476 = vmatmul.f32.gmra.mxu0 %v8983_v25  ;;  %6549 = vmatmul.msk.f32.gmra.mxu2 %vm2256_vm5, %v8979_v50 }
 0x315   : > { %2411 = vmatmul.f32.gmra.mxu3 %v8986_v61  ;;  %2669 = vmatmul.f32.gmra.mxu1 %v8801_v51  ;;  %v9010_v51 = vadd.f32 %v8788_v7, %v8829_v21  ;;  %v2245_v7 = vld [vmem:[%s12719_s4 + $0x1b8] sm:$0xff] }
 0x316   : > { %2723 = vmatpush.msrb.mxu3 %v2249_v38  ;;  %v2243_v38 = vld [vmem:[%s12719_s4 + $0x1a8] sm:$0xff] }
 0x317   : > { %v8998_v39 = vpop.f32.mrf.mxu2  ;;  %12889 = vst [vmem:[#allocation33_spill] sm:$0xff] %v9010_v51 }
 0x318   : > { %v9003_v26 = vpop.f32.mrf.mxu3  ;;  %2724 = vmatpush.msrb.mxu3 %v2247_v27 }
 0x319   : > { %12888 = vst [vmem:[#allocation32_spill] sm:$0xff] %v9003_v26  ;;  %v1979_v29 = vpop.f32.mrf.mxu0 }
 0x31a   : > { %v9017_v52 = vadd.f32 %v1979_v29, %v8569_v5  ;;  %v9019_v60 = vpop.f32.mrf.mxu1  ;;  %2725 = vmatpush.msrb.mxu3 %v2245_v7 }
 0x31c   : > { %12891 = vst [vmem:[#allocation35_spill] sm:$0xff] %v9017_v52  ;;  %2479 = vmatmul.f32.gmra.mxu0 %v9014_v30  ;;  %6550 = vmatmul.msk.f32.gmra.mxu2 %vm2256_vm5, %v9010_v51  ;;  %v9041_v51 = vadd.f32 %v8803_v28, %v8829_v21  ;;  %v2239_v28 = vld [vmem:[%s12719_s4 + $0x188] sm:$0xff] }
 0x31d   : > { %2414 = vmatmul.f32.gmra.mxu3 %v9017_v52  ;;  %2672 = vmatmul.f32.gmra.mxu1 %v8820_v19  ;;  %v9045_v19 = vadd.f32 %v8831_v16, %v8811_v46 }
 0x31e   : > { %12893 = vst [vmem:[#allocation37_spill] sm:$0xff] %v9041_v51  ;;  %2726 = vmatpush.msrb.mxu3 %v2243_v38 }
 0x31f   : > { %v9032_v34 = vpop.f32.mrf.mxu2  ;;  %12894 = vst [vmem:[#allocation38_spill] sm:$0xff] %v9045_v19 }
 0x320   : > { %v9037_v29 = vpop.f32.mrf.mxu3 }
 0x321   : > { %12892 = vst [vmem:[#allocation36_spill] sm:$0xff] %v9037_v29  ;;  %v1982_v26 = vpop.f32.mrf.mxu0  ;;  %v2241_v29 = vld [vmem:[%s12719_s4 + $0x198] sm:$0xff] }
 0x322   : > { %v9048_v27 = vadd.f32 %v1982_v26, %v8569_v5  ;;  %v9050_v50 = vpop.f32.mrf.mxu1  ;;  %2727 = vmatpush.msrb.mxu3 %v2241_v29  ;;  %v2237_v26 = vld [vmem:[%s12719_s4 + $0x178] sm:$0xff] }
 0x324   : > { %12895 = vst [vmem:[#allocation39_spill] sm:$0xff] %v9048_v27  ;;  %2482 = vmatmul.f32.gmra.mxu0 %v9045_v19  ;;  %6551 = vmatmul.msk.f32.gmra.mxu2 %vm2256_vm5, %v9041_v51  ;;  %v9072_v51 = vadd.f32 %v8822_v57, %v8829_v21  ;;  %v2233_v57 = vld [vmem:[%s12719_s4 + $0x158] sm:$0xff] }
 0x325   : > { %2417 = vmatmul.f32.gmra.mxu3 %v9048_v27  ;;  %2675 = vmatmul.f32.gmra.mxu1 %v8842_v11  ;;  %v9076_v11 = vadd.f32 %v8851_v4, %v8811_v46 }
 0x326   : > { %2728 = vmatpush.msrb.mxu3 %v2239_v28  ;;  %12897 = vst [vmem:[#allocation41_spill] sm:$0xff] %v9072_v51  ;;  %v2231_v28 = vld [vmem:[%s12719_s4 + $0x148] sm:$0xff] }
 0x327   : > { %v9063_v16 = vpop.f32.mrf.mxu2  ;;  %12898 = vst [vmem:[#allocation42_spill] sm:$0xff] %v9076_v11 }
 0x328   : > { %v9068_v7 = vpop.f32.mrf.mxu3  ;;  %2729 = vmatpush.msrb.mxu3 %v2237_v26 }
 0x329   : > { %12896 = vst [vmem:[#allocation40_spill] sm:$0xff] %v9068_v7  ;;  %v1985_v38 = vpop.f32.mrf.mxu0  ;;  %v2235_v7 = vld [vmem:[%s12719_s4 + $0x168] sm:$0xff] }
 0x32a   : > { %v9079_v29 = vadd.f32 %v1985_v38, %v8569_v5  ;;  %v9081_v56 = vpop.f32.mrf.mxu1  ;;  %2730 = vmatpush.msrb.mxu3 %v2235_v7 }
 0x32c   : > { %12899 = vst [vmem:[#allocation43_spill] sm:$0xff] %v9079_v29  ;;  %2485 = vmatmul.f32.gmra.mxu0 %v9076_v11  ;;  %6552 = vmatmul.msk.f32.gmra.mxu2 %vm2256_vm5, %v9072_v51  ;;  %v9103_v51 = vadd.f32 %v8844_v49, %v8829_v21  ;;  %v2227_v49 = vld [vmem:[%s12719_s4 + $0x128] sm:$0xff] }
 0x32d   : > { %2420 = vmatmul.f32.gmra.mxu3 %v9079_v29  ;;  %2678 = vmatmul.f32.gmra.mxu1 %v8862_v36  ;;  %v9107_v36 = vadd.f32 %v8871_v8, %v8811_v46 }
 0x32e   : > { %2731 = vmatpush.msrb.mxu3 %v2233_v57  ;;  %12901 = vst [vmem:[#allocation45_spill] sm:$0xff] %v9103_v51  ;;  %v2225_v57 = vld [vmem:[%s12719_s4 + $0x118] sm:$0xff] }
 0x32f   : > { %v9094_v4 = vpop.f32.mrf.mxu2  ;;  %12902 = vst [vmem:[#allocation46_spill] sm:$0xff] %v9107_v36 }
 0x330   : > { %v9099_v26 = vpop.f32.mrf.mxu3  ;;  %2732 = vmatpush.msrb.mxu3 %v2231_v28 }
 0x331   : > { %12900 = vst [vmem:[#allocation44_spill] sm:$0xff] %v9099_v26  ;;  %v1988_v38 = vpop.f32.mrf.mxu0  ;;  %v2229_v26 = vld [vmem:[%s12719_s4 + $0x138] sm:$0xff] }
 0x332   : > { %v9110_v7 = vadd.f32 %v1988_v38, %v8569_v5  ;;  %v9112_v23 = vpop.f32.mrf.mxu1  ;;  %2733 = vmatpush.msrb.mxu3 %v2229_v26  ;;  %v6625_v38 = vld [vmem:[%s12719_s4 + $0x300] sm:$0xff]  ;;  %v9141_v26 = vadd.f32 %v8891_v13, %v8811_v46 }
 0x333   : > { %2984 = vmatpush.msra.mxu2 %v6625_v38 }
 0x334   : > { %2488 = vmatmul.f32.gmra.mxu0 %v9107_v36  ;;  %6553 = vmatmul.msk.f32.gmra.mxu2 %vm2256_vm5, %v9103_v51  ;;  %12905 = vst [vmem:[#allocation49_spill] sm:$0xff] %v9141_v26 }
 0x335   : > { %2423 = vmatmul.f32.gmra.mxu3 %v9110_v7  ;;  %2681 = vmatmul.f32.gmra.mxu1 %v8882_v44  ;;  %v9137_v44 = vadd.f32 %v8864_v58, %v8829_v21 }
 0x336   : > { %2734 = vmatpush.msrb.mxu3 %v2227_v49  ;;  %v2223_v49 = vld [vmem:[%s12719_s4 + $0x108] sm:$0xff] }
 0x337   : > { %v9125_v8 = vpop.f32.mrf.mxu2  ;;  %12904 = vst [vmem:[#allocation48_spill] sm:$0xff] %v9137_v44 }
 0x338   : > { %v9130_v28 = vpop.f32.mrf.mxu3  ;;  %2735 = vmatpush.msrb.mxu3 %v2225_v57  ;;  %v6657_v57 = vld [vmem:[%s12719_s4 + $0x400] sm:$0xff] }
 0x339   : > { %12903 = vst [vmem:[#allocation47_spill] sm:$0xff] %v9130_v28  ;;  %v1991_v51 = vpop.f32.mrf.mxu0  ;;  %3079 = vmatpush.msra.mxu1 %v6657_v57  ;;  %v9169_v28 = vadd.f32 %v8884_v24, %v8829_v21  ;;  %v6623_v24 = vld [vmem:[%s12719_s4 + $0x2f0] sm:$0xff] }
 0x33a   : > { %v9144_v41 = vadd.f32 %v1991_v51, %v8569_v5  ;;  %v9146_v54 = vpop.f32.mrf.mxu1  ;;  %v2255_v51 = vld [vmem:[%s12719_s4 + $0x208] sm:$0xf]  ;;  %2736 = vmatpush.msrb.mxu3 %v2223_v49  ;;  %2985 = vmatpush.msra.mxu2 %v6623_v24 }
 0x33b   : > { %6568 = vmatpush.msk.msrb.mxu0 %vm1895_vm1, %v2255_v51  ;;  %12907 = vst [vmem:[#allocation51_spill] sm:$0xff] %v9169_v28 }
 0x33c   : > { %2491 = vmatmul.f32.gmra.mxu0 %v9141_v26  ;;  %6554 = vmatmul.msk.f32.gmra.mxu2 %vm2256_vm5, %v9137_v44 }
 0x33d   : > { %2426 = vmatmul.f32.gmra.mxu3 %v9144_v41  ;;  %2684 = vmatmul.f32.gmra.mxu1 %v8902_v10  ;;  %v9173_v10 = vadd.f32 %v8911_v32, %v8811_v46 }
 0x33f   : > { %v9160_v58 = vpop.f32.mrf.mxu2  ;;  %12908 = vst [vmem:[#allocation52_spill] sm:$0xff] %v9173_v10 }
 0x340   : > { %v9162_v13 = vpop.f32.mrf.mxu3 }
 0x341   : > { %12906 = vst [vmem:[#allocation50_spill] sm:$0xff] %v9162_v13  ;;  %v1994_v38 = vpop.f32.mrf.mxu0  ;;  %v9194_v13 = vadd.f32 %v8904_v33, %v8829_v21  ;;  %v6655_v33 = vld [vmem:[%s12719_s4 + $0x3f0] sm:$0xff] }
 0x342   : > { %v9176_v49 = vadd.f32 %v1994_v38, %v8569_v5  ;;  %v9178_v51 = vpop.f32.mrf.mxu1  ;;  %3080 = vmatpush.msra.mxu1 %v6655_v33  ;;  %v6621_v33 = vld [vmem:[%s12719_s4 + $0x2e0] sm:$0xff] }
 0x343   : > { %2986 = vmatpush.msra.mxu2 %v6621_v33  ;;  %v9249_v33 = vadd.f32 %v8973_v14, %v8811_v46 }
 0x344   : > { %2494 = vmatmul.f32.gmra.mxu0 %v9173_v10  ;;  %6555 = vmatmul.msk.f32.gmra.mxu2 %vm2256_vm5, %v9169_v28  ;;  %v9198_v28 = vadd.f32 %v8931_v1, %v8811_v46 }
 0x345   : > { %2429 = vmatmul.f32.gmra.mxu3 %v9176_v49  ;;  %2687 = vmatmul.f32.gmra.mxu1 %v8922_v9  ;;  %12918 = vst [vmem:[#allocation62_spill] sm:$0xff] %v9249_v33 }
 0x346   : > { %12910 = vst [vmem:[#allocation54_spill] sm:$0xff] %v9198_v28 }
 0x347   : > { %v9188_v32 = vpop.f32.mrf.mxu2 }
 0x348   : > { %v9190_v57 = vpop.f32.mrf.mxu3 }
 0x349   : > { %12909 = vst [vmem:[#allocation53_spill] sm:$0xff] %v9190_v57  ;;  %v1997_v38 = vpop.f32.mrf.mxu0 }
 0x34a   : > { %v9201_v9 = vadd.f32 %v1997_v38, %v8569_v5  ;;  %v9203_v44 = vpop.f32.mrf.mxu1  ;;  %v9221_v38 = vadd.f32 %v8924_v48, %v8829_v21 }
 0x34b   : > { %12911 = vst [vmem:[#allocation55_spill] sm:$0xff] %v9203_v44  ;;  %v9225_v44 = vadd.f32 %v8951_v12, %v8811_v46 }
 0x34c   : > { %2497 = vmatmul.f32.gmra.mxu0 %v9198_v28  ;;  %6556 = vmatmul.msk.f32.gmra.mxu2 %vm2256_vm5, %v9194_v13 }
 0x34d   : > { %2432 = vmatmul.f32.gmra.mxu3 %v9201_v9  ;;  %2690 = vmatmul.f32.gmra.mxu1 %v8942_v0  ;;  %12914 = vst [vmem:[#allocation58_spill] sm:$0xff] %v9225_v44 }
 0x34f   : > { %v9213_v1 = vpop.f32.mrf.mxu2 }
 0x350   : > { %v9215_v5 = vpop.f32.mrf.mxu3 }
 0x351   : > { %12912 = vst [vmem:[#allocation56_spill] sm:$0xff] %v9215_v5  ;;  %v9217_v24 = vpop.f32.mrf.mxu0 }
 0x352   : > { %12913 = vst [vmem:[#allocation57_spill] sm:$0xff] %v9217_v24  ;;  %v9227_v57 = vpop.f32.mrf.mxu1 }
 0x353   : > { %12915 = vst [vmem:[#allocation59_spill] sm:$0xff] %v9227_v57  ;;  %v9245_v57 = vadd.f32 %v8944_v17, %v8829_v21  ;;  %v6619_v17 = vld [vmem:[%s12719_s4 + $0x2d0] sm:$0xff] }
 0x354   : > { %2500 = vmatmul.f32.gmra.mxu0 %v9225_v44  ;;  %6557 = vmatmul.msk.f32.gmra.mxu2 %vm2256_vm5, %v9221_v38 }
 0x355   : > { %2693 = vmatmul.f32.gmra.mxu1 %v8964_v31  ;;  %2737 = vmatmul.f32.vlgmr.msrb.gmra.mxu3 %v8817_v15  ;;  %v6653_v31 = vld [vmem:[%s12719_s4 + $0x3e0] sm:$0xff] }
 0x356   : > { %3081 = vmatpush.msra.mxu1 %v6653_v31  ;;  %2987 = vmatpush.msra.mxu2 %v6619_v17  ;;  %v9272_v31 = vadd.f32 %v8966_v40, %v8829_v21  ;;  %v6651_v17 = vld [vmem:[%s12719_s4 + $0x3d0] sm:$0xff]  ;;  %v6649_v40 = vld [vmem:[%s12719_s4 + $0x3c0] sm:$0xff] }
 0x357   : > { %v9237_v48 = vpop.f32.mrf.mxu2 }
 0x358   : > { %v9239_v12 = vpop.f32.mrf.mxu3  ;;  %3082 = vmatpush.msra.mxu1 %v6651_v17  ;;  %v6647_v17 = vld [vmem:[%s12719_s4 + $0x3b0] sm:$0xff] }
 0x359   : > { %12916 = vst [vmem:[#allocation60_spill] sm:$0xff] %v9239_v12  ;;  %v9241_v5 = vpop.f32.mrf.mxu0 }
 0x35a   : > { %12917 = vst [vmem:[#allocation61_spill] sm:$0xff] %v9241_v5  ;;  %v9251_v24 = vpop.f32.mrf.mxu1  ;;  %v9276_v5 = vadd.f32 %v8998_v39, %v8811_v46  ;;  %3083 = vmatpush.msra.mxu1 %v6649_v40  ;;  %v9309_v40 = vadd.f32 %v9032_v34, %v8811_v46 }
 0x35b   : > { %12919 = vst [vmem:[#allocation63_spill] sm:$0xff] %v9251_v24 }
 0x35c   : > { %2503 = vmatmul.f32.gmra.mxu0 %v9249_v33  ;;  %6558 = vmatmul.msk.f32.gmra.mxu2 %vm2256_vm5, %v9245_v57  ;;  %12923 = vst [vmem:[#allocation67_spill] sm:$0xff] %v9276_v5 }
 0x35d   : > { %2696 = vmatmul.f32.gmra.mxu1 %v8986_v61  ;;  %2740 = vmatmul.f32.gmra.mxu3 %v8839_v59  ;;  %12928 = vst [vmem:[#allocation72_spill] sm:$0xff] %v9309_v40 }
 0x35e   : > { %3084 = vmatpush.msra.mxu1 %v6647_v17  ;;  %v6617_v17 = vld [vmem:[%s12719_s4 + $0x2c0] sm:$0xff] }
 0x35f   : > { %v9264_v14 = vpop.f32.mrf.mxu2  ;;  %2988 = vmatpush.msra.mxu2 %v6617_v17 }
 0x360   : > { %12920 = vst [vmem:[#allocation64_spill] sm:$0xff] %v9264_v14  ;;  %v9266_v24 = vpop.f32.mrf.mxu3  ;;  %v9305_v14 = vadd.f32 %v8988_v35, %v8829_v21  ;;  %v6641_v35 = vld [vmem:[%s12719_s4 + $0x380] sm:$0xff] }
 0x361   : > { %12921 = vst [vmem:[#allocation65_spill] sm:$0xff] %v9266_v24  ;;  %v9268_v12 = vpop.f32.mrf.mxu0 }
 0x362   : > { %12922 = vst [vmem:[#allocation66_spill] sm:$0xff] %v9268_v12  ;;  %v9278_v61 = vpop.f32.mrf.mxu1  ;;  %v6645_v12 = vld [vmem:[%s12719_s4 + $0x3a0] sm:$0xff] }
 0x363   : > { %12924 = vst [vmem:[#allocation68_spill] sm:$0xff] %v9278_v61  ;;  %3085 = vmatpush.msra.mxu1 %v6645_v12  ;;  %v6639_v12 = vld [vmem:[%s12719_s4 + $0x370] sm:$0xff] }
 0x364   : > { %2506 = vmatmul.f32.gmra.mxu0 %v9276_v5  ;;  %6559 = vmatmul.msk.f32.gmra.mxu2 %vm2256_vm5, %v9272_v31 }
 0x365   : > { %2699 = vmatmul.f32.gmra.mxu1 %v9017_v52  ;;  %2743 = vmatmul.f32.gmra.mxu3 %v8859_v53 }
 0x367   : > { %v9291_v39 = vpop.f32.mrf.mxu2 }
 0x368   : > { %12925 = vst [vmem:[#allocation69_spill] sm:$0xff] %v9291_v39  ;;  %v9296_v61 = vpop.f32.mrf.mxu3 }
 0x369   : > { %12926 = vst [vmem:[#allocation70_spill] sm:$0xff] %v9296_v61  ;;  %v9298_v24 = vpop.f32.mrf.mxu0  ;;  %v6643_v61 = vld [vmem:[%s12719_s4 + $0x390] sm:$0xff] }
 0x36a   : > { %12927 = vst [vmem:[#allocation71_spill] sm:$0xff] %v9298_v24  ;;  %v9311_v39 = vpop.f32.mrf.mxu1  ;;  %3086 = vmatpush.msra.mxu1 %v6643_v61  ;;  %v9338_v24 = vadd.f32 %v9019_v60, %v8829_v21  ;;  %v6635_v60 = vld [vmem:[%s12719_s4 + $0x350] sm:$0xff] }
 0x36b   : > { %12929 = vst [vmem:[#allocation73_spill] sm:$0xff] %v9311_v39 }
 0x36c   : > { %2509 = vmatmul.f32.gmra.mxu0 %v9309_v40  ;;  %6560 = vmatmul.msk.f32.gmra.mxu2 %vm2256_vm5, %v9305_v14 }
 0x36d   : > { %2702 = vmatmul.f32.gmra.mxu1 %v9048_v27  ;;  %2746 = vmatmul.f32.gmra.mxu3 %v8879_v22  ;;  %v9342_v27 = vadd.f32 %v9063_v16, %v8811_v46 }
 0x36e   : > { %3087 = vmatpush.msra.mxu1 %v6641_v35  ;;  %v6633_v35 = vld [vmem:[%s12719_s4 + $0x340] sm:$0xff] }
 0x36f   : > { %v9327_v34 = vpop.f32.mrf.mxu2  ;;  %12933 = vst [vmem:[#allocation77_spill] sm:$0xff] %v9342_v27 }
 0x370   : > { %12930 = vst [vmem:[#allocation74_spill] sm:$0xff] %v9327_v34  ;;  %v9332_v17 = vpop.f32.mrf.mxu3  ;;  %3088 = vmatpush.msra.mxu1 %v6639_v12  ;;  %v6637_v34 = vld [vmem:[%s12719_s4 + $0x360] sm:$0xff]  ;;  %v6615_v12 = vld [vmem:[%s12719_s4 + $0x2b0] sm:$0xff] }
 0x371   : > { %12931 = vst [vmem:[#allocation75_spill] sm:$0xff] %v9332_v17  ;;  %v9334_v39 = vpop.f32.mrf.mxu0  ;;  %2989 = vmatpush.msra.mxu2 %v6615_v12  ;;  %v6611_v12 = vld [vmem:[%s12719_s4 + $0x290] sm:$0xff] }
 0x372   : > { %12932 = vst [vmem:[#allocation76_spill] sm:$0xff] %v9334_v39  ;;  %v9344_v61 = vpop.f32.mrf.mxu1  ;;  %3089 = vmatpush.msra.mxu1 %v6637_v34  ;;  %v6613_v34 = vld [vmem:[%s12719_s4 + $0x2a0] sm:$0xff]  ;;  %v9374_v39 = vadd.f32 %v9050_v50, %v8829_v21 }
 0x373   : > { %12934 = vst [vmem:[#allocation78_spill] sm:$0xff] %v9344_v61  ;;  %2990 = vmatpush.msra.mxu2 %v6613_v34  ;;  %v6629_v50 = vld [vmem:[%s12719_s4 + $0x320] sm:$0xff]  ;;  %v6627_v34 = vld [vmem:[%s12719_s4 + $0x310] sm:$0xff] }
 0x374   : > { %2512 = vmatmul.f32.gmra.mxu0 %v9342_v27  ;;  %6561 = vmatmul.msk.f32.gmra.mxu2 %vm2256_vm5, %v9338_v24 }
 0x375   : > { %2705 = vmatmul.f32.gmra.mxu1 %v9079_v29  ;;  %2749 = vmatmul.f32.gmra.mxu3 %v8899_v62 }
 0x376   : > { %3090 = vmatpush.msra.mxu1 %v6635_v60  ;;  %v6631_v60 = vld [vmem:[%s12719_s4 + $0x330] sm:$0xff]  ;;  %2991 = vmatpush.msra.mxu2 %v6611_v12  ;;  %v9417_v12 = vadd.f32 %v9125_v8, %v8811_v46 }
 0x377   : > { %v9357_v16 = vpop.f32.mrf.mxu2 }
 0x378   : > { %12935 = vst [vmem:[#allocation79_spill] sm:$0xff] %v9357_v16  ;;  %v9365_v61 = vpop.f32.mrf.mxu3  ;;  %v9378_v16 = vadd.f32 %v9094_v4, %v8811_v46  ;;  %3091 = vmatpush.msra.mxu1 %v6633_v35  ;;  %v6609_v4 = vld [vmem:[%s12719_s4 + $0x280] sm:$0xff] }
 0x379   : > { %12936 = vst [vmem:[#allocation80_spill] sm:$0xff] %v9365_v61  ;;  %v9367_v17 = vpop.f32.mrf.mxu0  ;;  %2992 = vmatpush.msra.mxu2 %v6609_v4 }
 0x37a   : > { %12937 = vst [vmem:[#allocation81_spill] sm:$0xff] %v9367_v17  ;;  %v9380_v29 = vpop.f32.mrf.mxu1  ;;  %3092 = vmatpush.msra.mxu1 %v6631_v60  ;;  %v9413_v60 = vadd.f32 %v9081_v56, %v8829_v21  ;;  %v6603_v56 = vld [vmem:[%s12719_s4 + $0x250] sm:$0xff] }
 0x37b   : > { %12938 = vst [vmem:[#allocation82_spill] sm:$0xff] %v9378_v16 }
 0x37c   : > { %12939 = vst [vmem:[#allocation83_spill] sm:$0xff] %v9380_v29  ;;  %2515 = vmatmul.f32.gmra.mxu0 %v9378_v16  ;;  %6562 = vmatmul.msk.f32.gmra.mxu2 %vm2256_vm5, %v9374_v39  ;;  %v6607_v29 = vld [vmem:[%s12719_s4 + $0x270] sm:$0xff] }
 0x37d   : > { %2708 = vmatmul.f32.gmra.mxu1 %v9110_v7  ;;  %2752 = vmatmul.f32.gmra.mxu3 %v8919_v55  ;;  %12943 = vst [vmem:[#allocation87_spill] sm:$0xff] %v9417_v12 }
 0x37e   : > { %3093 = vmatpush.msra.mxu1 %v6629_v50  ;;  %2993 = vmatpush.msra.mxu2 %v6607_v29  ;;  %v6601_v29 = vld [vmem:[%s12719_s4 + $0x240] sm:$0xff] }
 0x37f   : > { %v9399_v35 = vpop.f32.mrf.mxu2 }
 0x380   : > { %12940 = vst [vmem:[#allocation84_spill] sm:$0xff] %v9399_v35  ;;  %v9407_v61 = vpop.f32.mrf.mxu3  ;;  %3094 = vmatpush.msra.mxu1 %v6627_v34  ;;  %v9443_v34 = vadd.f32 %v9112_v23, %v8829_v21  ;;  %v6597_v23 = vld [vmem:[%s12719_s4 + $0x220] sm:$0xff] }
 0x381   : > { %12941 = vst [vmem:[#allocation85_spill] sm:$0xff] %v9407_v61  ;;  %v9409_v17 = vpop.f32.mrf.mxu0  ;;  %v6605_v61 = vld [vmem:[%s12719_s4 + $0x260] sm:$0xff] }
 0x382   : > { %12942 = vst [vmem:[#allocation86_spill] sm:$0xff] %v9409_v17  ;;  %v9419_v35 = vpop.f32.mrf.mxu1  ;;  %2994 = vmatpush.msra.mxu2 %v6605_v61  ;;  %v6599_v17 = vld [vmem:[%s12719_s4 + $0x230] sm:$0xff] }
 0x383   : > { %12944 = vst [vmem:[#allocation88_spill] sm:$0xff] %v9419_v35  ;;  %v9447_v35 = vadd.f32 %v9160_v58, %v8811_v46 }
 0x384   : > { %2518 = vmatmul.f32.gmra.mxu0 %v9417_v12  ;;  %6563 = vmatmul.msk.f32.gmra.mxu2 %vm2256_vm5, %v9413_v60 }
 0x385   : > { %2711 = vmatmul.f32.gmra.mxu1 %v9144_v41  ;;  %2755 = vmatmul.f32.gmra.mxu3 %v8939_v37  ;;  %12948 = vst [vmem:[#allocation92_spill] sm:$0xff] %v9447_v35 }
 0x386   : > { %2995 = vmatpush.msra.mxu2 %v6603_v56  ;;  %v6595_v56 = vld [vmem:[%s12719_s4 + $0x210] sm:$0xff] }
 0x387   : > { %v9432_v8 = vpop.f32.mrf.mxu2 }
 0x388   : > { %12945 = vst [vmem:[#allocation89_spill] sm:$0xff] %v9432_v8  ;;  %v9437_v50 = vpop.f32.mrf.mxu3  ;;  %2996 = vmatpush.msra.mxu2 %v6601_v29 }
 0x389   : > { %12946 = vst [vmem:[#allocation90_spill] sm:$0xff] %v9437_v50  ;;  %v9439_v4 = vpop.f32.mrf.mxu0  ;;  %v9473_v50 = vadd.f32 %v9146_v54, %v8829_v21 }
 0x38a   : > { %12947 = vst [vmem:[#allocation91_spill] sm:$0xff] %v9439_v4  ;;  %v9449_v61 = vpop.f32.mrf.mxu1  ;;  %2997 = vmatpush.msra.mxu2 %v6599_v17  ;;  %v9477_v4 = vadd.f32 %v9188_v32, %v8811_v46  ;;  %v9494_v32 = vadd.f32 %v9178_v51, %v8829_v21 }
 0x38b   : > { %12949 = vst [vmem:[#allocation93_spill] sm:$0xff] %v9449_v61 }
 0x38c   : > { %2521 = vmatmul.f32.gmra.mxu0 %v9447_v35  ;;  %6564 = vmatmul.msk.f32.gmra.mxu2 %vm2256_vm5, %v9443_v34 }
 0x38d   : > { %2714 = vmatmul.f32.gmra.mxu1 %v9176_v49  ;;  %2758 = vmatmul.f32.gmra.mxu3 %v8961_v18 }
 0x38e   : > { %2998 = vmatpush.msra.mxu2 %v6597_v23 }
 0x38f   : > { %v9462_v58 = vpop.f32.mrf.mxu2 }
 0x390   : > { %12950 = vst [vmem:[#allocation94_spill] sm:$0xff] %v9462_v58  ;;  %v9467_v29 = vpop.f32.mrf.mxu3  ;;  %2999 = vmatpush.msra.mxu2 %v6595_v56  ;;  %v9498_v56 = vadd.f32 %v9213_v1, %v8811_v46  ;;  %v9515_v46 = vadd.f32 %v9237_v48, %v8829_v21 }
 0x391   : > { %12951 = vst [vmem:[#allocation95_spill] sm:$0xff] %v9467_v29  ;;  %v9469_v61 = vpop.f32.mrf.mxu0 }
 0x392   : > { %12952 = vst [vmem:[#allocation96_spill] sm:$0xff] %v9469_v61  ;;  %v9479_v17 = vpop.f32.mrf.mxu1 }
 0x393   : > { %12953 = vst [vmem:[#allocation97_spill] sm:$0xff] %v9479_v17 }
 0x394   : > { %2524 = vmatmul.f32.gmra.mxu0 %v9477_v4  ;;  %6565 = vmatmul.msk.f32.gmra.mxu2 %vm2256_vm5, %v9473_v50 }
 0x395   : > { %2717 = vmatmul.f32.gmra.mxu1 %v9201_v9  ;;  %2761 = vmatmul.f32.gmra.mxu3 %v8983_v25 }
 0x397   : > { %v9486_v23 = vpop.f32.mrf.mxu2 }
 0x398   : > { %12954 = vst [vmem:[#allocation98_spill] sm:$0xff] %v9486_v23  ;;  %v9488_v54 = vpop.f32.mrf.mxu3 }
 0x399   : > { %12955 = vst [vmem:[#allocation99_spill] sm:$0xff] %v9488_v54  ;;  %v9490_v29 = vpop.f32.mrf.mxu0 }
 0x39a   : > { %12956 = vst [vmem:[#allocation100_spill] sm:$0xff] %v9490_v29  ;;  %v9500_v17 = vpop.f32.mrf.mxu1 }
 0x39b   : > { %12957 = vst [vmem:[#allocation101_spill] sm:$0xff] %v9500_v17 }
 0x39c   : > { %2527 = vmatmul.f32.gmra.mxu0 %v9498_v56  ;;  %6566 = vmatmul.msk.f32.gmra.mxu2 %vm2256_vm5, %v9494_v32 }
 0x39d   : > { %2764 = vmatmul.f32.gmra.mxu3 %v9014_v30  ;;  %3095 = vmatmul.f32.vlgmr.msra.gmra.mxu1 %v8817_v15 }
 0x39f   : > { %v9507_v54 = vpop.f32.mrf.mxu2 }
 0x3a0   : > { %12958 = vst [vmem:[#allocation102_spill] sm:$0xff] %v9507_v54  ;;  %v9509_v29 = vpop.f32.mrf.mxu3 }
 0x3a1   : > { %12959 = vst [vmem:[#allocation103_spill] sm:$0xff] %v9509_v29  ;;  %v9511_v51 = vpop.f32.mrf.mxu0 }
 0x3a2   : > { %12960 = vst [vmem:[#allocation104_spill] sm:$0xff] %v9511_v51  ;;  %v9517_v1 = vpop.f32.mrf.mxu1 }
 0x3a3   : > { %12961 = vst [vmem:[#allocation105_spill] sm:$0xff] %v9517_v1 }
 0x3a4   : > { %6567 = vmatmul.msk.f32.gmra.mxu2 %vm2256_vm5, %v9515_v46  ;;  %6569 = vmatmul.msk.f32.vlgmr.msrb.gmra.mxu0 %vm2256_vm5, %v8835_v42 }
 0x3a5   : > { %2767 = vmatmul.f32.gmra.mxu3 %v9045_v19  ;;  %3098 = vmatmul.f32.gmra.mxu1 %v8839_v59 }
 0x3a7   : > { %v9525_v17 = vpop.f32.mrf.mxu2 }
 0x3a8   : > { %12962 = vst [vmem:[#allocation106_spill] sm:$0xff] %v9525_v17  ;;  %v9527_v29 = vpop.f32.mrf.mxu3 }
 0x3a9   : > { %12963 = vst [vmem:[#allocation107_spill] sm:$0xff] %v9527_v29  ;;  %v9529_v51 = vpop.f32.mrf.mxu0 }
 0x3aa   : > { %12964 = vst [vmem:[#allocation108_spill] sm:$0xff] %v9529_v51  ;;  %v9531_v21 = vpop.f32.mrf.mxu1 }
 0x3ab   : > { %12965 = vst [vmem:[#allocation109_spill] sm:$0xff] %v9531_v21 }
 0x3ac   : > { %6570 = vmatmul.msk.f32.gmra.mxu0 %vm2256_vm5, %v8855_v3  ;;  %3000 = vmatmul.f32.vlgmr.msra.gmra.mxu2 %v8575_v20 }
 0x3ad   : > { %2770 = vmatmul.f32.gmra.mxu3 %v9076_v11  ;;  %3101 = vmatmul.f32.gmra.mxu1 %v8859_v53 }
 0x3af   : > { %v9538_v48 = vpop.f32.mrf.mxu2 }
 0x3b0   : > { %12966 = vst [vmem:[#allocation110_spill] sm:$0xff] %v9538_v48  ;;  %v9540_v1 = vpop.f32.mrf.mxu3 }
 0x3b1   : > { %12967 = vst [vmem:[#allocation111_spill] sm:$0xff] %v9540_v1  ;;  %v9542_v17 = vpop.f32.mrf.mxu0 }
 0x3b2   : > { %12968 = vst [vmem:[#allocation112_spill] sm:$0xff] %v9542_v17  ;;  %v9544_v29 = vpop.f32.mrf.mxu1 }
 0x3b3   : > { %12969 = vst [vmem:[#allocation113_spill] sm:$0xff] %v9544_v29 }
 0x3b4   : > { %6571 = vmatmul.msk.f32.gmra.mxu0 %vm2256_vm5, %v8875_v6  ;;  %3003 = vmatmul.f32.gmra.mxu2 %v8596_v45 }
 0x3b5   : > { %2773 = vmatmul.f32.gmra.mxu3 %v9107_v36  ;;  %3104 = vmatmul.f32.gmra.mxu1 %v8879_v22 }
 0x3b7   : > { %v9551_v21 = vpop.f32.mrf.mxu2 }
 0x3b8   : > { %12970 = vst [vmem:[#allocation114_spill] sm:$0xff] %v9551_v21  ;;  %v9553_v51 = vpop.f32.mrf.mxu3 }
 0x3b9   : > { %12971 = vst [vmem:[#allocation115_spill] sm:$0xff] %v9553_v51  ;;  %v9555_v48 = vpop.f32.mrf.mxu0 }
 0x3ba   : > { %12972 = vst [vmem:[#allocation116_spill] sm:$0xff] %v9555_v48  ;;  %v9557_v1 = vpop.f32.mrf.mxu1 }
 0x3bb   : > { %12973 = vst [vmem:[#allocation117_spill] sm:$0xff] %v9557_v1 }
 0x3bc   : > { %6572 = vmatmul.msk.f32.gmra.mxu0 %vm2256_vm5, %v8895_v2  ;;  %3006 = vmatmul.f32.gmra.mxu2 %v8614_v47 }
 0x3bd   : > { %2776 = vmatmul.f32.gmra.mxu3 %v9141_v26  ;;  %3107 = vmatmul.f32.gmra.mxu1 %v8899_v62 }
 0x3bf   : > { %v9564_v29 = vpop.f32.mrf.mxu2 }
 0x3c0   : > { %12974 = vst [vmem:[#allocation118_spill] sm:$0xff] %v9564_v29  ;;  %v9566_v17 = vpop.f32.mrf.mxu3 }
 0x3c1   : > { %12975 = vst [vmem:[#allocation119_spill] sm:$0xff] %v9566_v17  ;;  %v9568_v21 = vpop.f32.mrf.mxu0 }
 0x3c2   : > { %12976 = vst [vmem:[#allocation120_spill] sm:$0xff] %v9568_v21  ;;  %v9570_v51 = vpop.f32.mrf.mxu1  ;;  %v12982_v21 = vld [vmem:[#allocation21_spill] sm:$0xff] }
 0x3c3   : > { %12977 = vst [vmem:[#allocation121_spill] sm:$0xff] %v9570_v51  ;;  %v12983_v51 = vld [vmem:[#allocation9_spill] sm:$0xff] }
 0x3c4   : > { %6573 = vmatmul.msk.f32.gmra.mxu0 %vm2256_vm5, %v8915_v43  ;;  %3009 = vmatmul.f32.gmra.mxu2 %v8641_v63 }
 0x3c5   : > { %2779 = vmatmul.f32.gmra.mxu3 %v9173_v10  ;;  %3110 = vmatmul.f32.gmra.mxu1 %v8919_v55 }
 0x3c7   : > { %v9577_v1 = vpop.f32.mrf.mxu2 }
 0x3c8   : > { %12978 = vst [vmem:[#allocation122_spill] sm:$0xff] %v9577_v1  ;;  %v9579_v48 = vpop.f32.mrf.mxu3 }
 0x3c9   : > { %12979 = vst [vmem:[#allocation123_spill] sm:$0xff] %v9579_v48  ;;  %v9581_v29 = vpop.f32.mrf.mxu0 }
 0x3ca   : > { %12980 = vst [vmem:[#allocation124_spill] sm:$0xff] %v9581_v29  ;;  %v9583_v17 = vpop.f32.mrf.mxu1  ;;  %v12988_v29 = vld [vmem:[#allocation25_spill] sm:$0xff] }
 0x3cb   : > { %12981 = vst [vmem:[#allocation125_spill] sm:$0xff] %v9583_v17  ;;  %v12989_v17 = vld [vmem:[#allocation10_spill] sm:$0xff] }
 0x3cc   : > { %6574 = vmatmul.msk.f32.gmra.mxu0 %vm2256_vm5, %v12982_v21  ;;  %3012 = vmatmul.f32.gmra.mxu2 %v12983_v51 }
 0x3cd   : > { %2782 = vmatmul.f32.gmra.mxu3 %v9198_v28  ;;  %3113 = vmatmul.f32.gmra.mxu1 %v8939_v37  ;;  %v13006_v37 = vld [vmem:[#allocation37_spill] sm:$0xff] }
 0x3cf   : > { %v9590_v54 = vpop.f32.mrf.mxu2 }
 0x3d0   : > { %12984 = vst [vmem:[#allocation21_spill] sm:$0xff] %v9590_v54  ;;  %v9592_v61 = vpop.f32.mrf.mxu3 }
 0x3d1   : > { %12985 = vst [vmem:[#allocation9_spill] sm:$0xff] %v9592_v61  ;;  %v9594_v1 = vpop.f32.mrf.mxu0 }
 0x3d2   : > { %12986 = vst [vmem:[#allocation126_spill] sm:$0xff] %v9594_v1  ;;  %v9596_v48 = vpop.f32.mrf.mxu1  ;;  %v12994_v1 = vld [vmem:[#allocation29_spill] sm:$0xff] }
 0x3d3   : > { %12987 = vst [vmem:[#allocation127_spill] sm:$0xff] %v9596_v48  ;;  %v12995_v48 = vld [vmem:[#allocation11_spill] sm:$0xff] }
 0x3d4   : > { %6575 = vmatmul.msk.f32.gmra.mxu0 %vm2256_vm5, %v12988_v29  ;;  %3015 = vmatmul.f32.gmra.mxu2 %v12989_v17 }
 0x3d5   : > { %2785 = vmatmul.f32.gmra.mxu3 %v9225_v44  ;;  %3116 = vmatmul.f32.gmra.mxu1 %v8961_v18 }
 0x3d7   : > { %v9603_v23 = vpop.f32.mrf.mxu2 }
 0x3d8   : > { %12990 = vst [vmem:[#allocation25_spill] sm:$0xff] %v9603_v23  ;;  %v9605_v58 = vpop.f32.mrf.mxu3 }
 0x3d9   : > { %12991 = vst [vmem:[#allocation10_spill] sm:$0xff] %v9605_v58  ;;  %v9607_v54 = vpop.f32.mrf.mxu0 }
 0x3da   : > { %12992 = vst [vmem:[#allocation128_spill] sm:$0xff] %v9607_v54  ;;  %v9609_v61 = vpop.f32.mrf.mxu1  ;;  %v13000_v54 = vld [vmem:[#allocation33_spill] sm:$0xff] }
 0x3db   : > { %12993 = vst [vmem:[#allocation129_spill] sm:$0xff] %v9609_v61  ;;  %v13001_v61 = vld [vmem:[#allocation12_spill] sm:$0xff] }
 0x3dc   : > { %6576 = vmatmul.msk.f32.gmra.mxu0 %vm2256_vm5, %v12994_v1  ;;  %3018 = vmatmul.f32.gmra.mxu2 %v12995_v48 }
 0x3dd   : > { %2788 = vmatmul.f32.gmra.mxu3 %v9249_v33  ;;  %3119 = vmatmul.f32.gmra.mxu1 %v8983_v25  ;;  %v6659_v25 = vld [vmem:[%s12719_s4 + $0x410] sm:$0xf] }
 0x3de   : > { %6661 = vmatpush.msk.msra.mxu3 %vm1895_vm1, %v6659_v25 }
 0x3df   : > { %v9616_v8 = vpop.f32.mrf.mxu2 }
 0x3e0   : > { %12996 = vst [vmem:[#allocation29_spill] sm:$0xff] %v9616_v8  ;;  %v9618_v18 = vpop.f32.mrf.mxu3 }
 0x3e1   : > { %12997 = vst [vmem:[#allocation11_spill] sm:$0xff] %v9618_v18  ;;  %v9620_v23 = vpop.f32.mrf.mxu0 }
 0x3e2   : > { %12998 = vst [vmem:[#allocation130_spill] sm:$0xff] %v9620_v23  ;;  %v9622_v58 = vpop.f32.mrf.mxu1 }
 0x3e3   : > { %12999 = vst [vmem:[#allocation131_spill] sm:$0xff] %v9622_v58 }
 0x3e4   : > { %6577 = vmatmul.msk.f32.gmra.mxu0 %vm2256_vm5, %v13000_v54  ;;  %3021 = vmatmul.f32.gmra.mxu2 %v13001_v61  ;;  %v13007_v61 = vld [vmem:[#allocation13_spill] sm:$0xff] }
 0x3e5   : > { %2791 = vmatmul.f32.gmra.mxu3 %v9276_v5  ;;  %3122 = vmatmul.f32.gmra.mxu1 %v9014_v30 }
 0x3e7   : > { %v9633_v8 = vpop.f32.mrf.mxu2 }
 0x3e8   : > { %13002 = vst [vmem:[#allocation33_spill] sm:$0xff] %v9633_v8  ;;  %v9635_v23 = vpop.f32.mrf.mxu3 }
 0x3e9   : > { %13003 = vst [vmem:[#allocation132_spill] sm:$0xff] %v9635_v23  ;;  %v9637_v58 = vpop.f32.mrf.mxu0 }
 0x3ea   : > { %13004 = vst [vmem:[#allocation133_spill] sm:$0xff] %v9637_v58  ;;  %v9639_v18 = vpop.f32.mrf.mxu1  ;;  %v13012_v58 = vld [vmem:[#allocation41_spill] sm:$0xff] }
 0x3eb   : > { %13005 = vst [vmem:[#allocation134_spill] sm:$0xff] %v9639_v18  ;;  %v13013_v18 = vld [vmem:[#allocation14_spill] sm:$0xff] }
 0x3ec   : > { %6578 = vmatmul.msk.f32.gmra.mxu0 %vm2256_vm5, %v13006_v37  ;;  %3024 = vmatmul.f32.gmra.mxu2 %v13007_v61 }
 0x3ed   : > { %2794 = vmatmul.f32.gmra.mxu3 %v9309_v40  ;;  %3125 = vmatmul.f32.gmra.mxu1 %v9045_v19 }
 0x3ef   : > { %v9646_v30 = vpop.f32.mrf.mxu2 }
 0x3f0   : > { %13008 = vst [vmem:[#allocation37_spill] sm:$0xff] %v9646_v30  ;;  %v9648_v25 = vpop.f32.mrf.mxu3 }
 0x3f1   : > { %13009 = vst [vmem:[#allocation135_spill] sm:$0xff] %v9648_v25  ;;  %v9650_v8 = vpop.f32.mrf.mxu0 }
 0x3f2   : > { %13010 = vst [vmem:[#allocation136_spill] sm:$0xff] %v9650_v8  ;;  %v9652_v23 = vpop.f32.mrf.mxu1  ;;  %v13018_v8 = vld [vmem:[#allocation45_spill] sm:$0xff] }
 0x3f3   : > { %13011 = vst [vmem:[#allocation137_spill] sm:$0xff] %v9652_v23  ;;  %v13019_v23 = vld [vmem:[#allocation15_spill] sm:$0xff] }
 0x3f4   : > { %6579 = vmatmul.msk.f32.gmra.mxu0 %vm2256_vm5, %v13012_v58  ;;  %3027 = vmatmul.f32.gmra.mxu2 %v13013_v18 }
 0x3f5   : > { %2797 = vmatmul.f32.gmra.mxu3 %v9342_v27  ;;  %3128 = vmatmul.f32.gmra.mxu1 %v9076_v11 }
 0x3f7   : > { %v9659_v61 = vpop.f32.mrf.mxu2 }
 0x3f8   : > { %13014 = vst [vmem:[#allocation41_spill] sm:$0xff] %v9659_v61  ;;  %v9661_v19 = vpop.f32.mrf.mxu3 }
 0x3f9   : > { %13015 = vst [vmem:[#allocation138_spill] sm:$0xff] %v9661_v19  ;;  %v9663_v30 = vpop.f32.mrf.mxu0 }
 0x3fa   : > { %13016 = vst [vmem:[#allocation139_spill] sm:$0xff] %v9663_v30  ;;  %v9665_v25 = vpop.f32.mrf.mxu1  ;;  %v13024_v30 = vld [vmem:[#allocation48_spill] sm:$0xff] }
 0x3fb   : > { %13017 = vst [vmem:[#allocation140_spill] sm:$0xff] %v9665_v25  ;;  %v13025_v25 = vld [vmem:[#allocation16_spill] sm:$0xff] }
 0x3fc   : > { %6580 = vmatmul.msk.f32.gmra.mxu0 %vm2256_vm5, %v13018_v8  ;;  %3030 = vmatmul.f32.gmra.mxu2 %v13019_v23 }
 0x3fd   : > { %2800 = vmatmul.f32.gmra.mxu3 %v9378_v16  ;;  %3131 = vmatmul.f32.gmra.mxu1 %v9107_v36 }
 0x3ff   : > { %v9672_v18 = vpop.f32.mrf.mxu2 }
 0x400   : > { %13020 = vst [vmem:[#allocation45_spill] sm:$0xff] %v9672_v18  ;;  %v9674_v11 = vpop.f32.mrf.mxu3 }
 0x401   : > { %13021 = vst [vmem:[#allocation141_spill] sm:$0xff] %v9674_v11  ;;  %v9676_v61 = vpop.f32.mrf.mxu0  ;;  %v6658_v11 = vld [vmem:[%s12719_s4 + $0x408] sm:$0xff] }
 0x402   : > { %13022 = vst [vmem:[#allocation142_spill] sm:$0xff] %v9676_v61  ;;  %v9678_v19 = vpop.f32.mrf.mxu1  ;;  %3364 = vmatpush.msrb.mxu2 %v6658_v11  ;;  %v13030_v61 = vld [vmem:[#allocation51_spill] sm:$0xff]  ;;  %v6660_v11 = vld [vmem:[%s12719_s4 + $0x418] sm:$0xf] }
 0x403   : > { %13023 = vst [vmem:[#allocation143_spill] sm:$0xff] %v9678_v19  ;;  %6688 = vmatpush.msk.msrb.mxu1 %vm1895_vm1, %v6660_v11 }
 0x404   : > { %6581 = vmatmul.msk.f32.gmra.mxu0 %vm2256_vm5, %v13024_v30  ;;  %3033 = vmatmul.f32.gmra.mxu2 %v13025_v25  ;;  %v13031_v25 = vld [vmem:[#allocation17_spill] sm:$0xff] }
 0x405   : > { %2803 = vmatmul.f32.gmra.mxu3 %v9417_v12  ;;  %3134 = vmatmul.f32.gmra.mxu1 %v9141_v26 }
 0x407   : > { %v9685_v23 = vpop.f32.mrf.mxu2 }
 0x408   : > { %13026 = vst [vmem:[#allocation48_spill] sm:$0xff] %v9685_v23  ;;  %v9687_v36 = vpop.f32.mrf.mxu3 }
 0x409   : > { %13027 = vst [vmem:[#allocation144_spill] sm:$0xff] %v9687_v36  ;;  %v9689_v18 = vpop.f32.mrf.mxu0  ;;  %v6626_v36 = vld [vmem:[%s12719_s4 + $0x308] sm:$0xff] }
 0x40a   : > { %13028 = vst [vmem:[#allocation145_spill] sm:$0xff] %v9689_v18  ;;  %v9694_v19 = vpop.f32.mrf.mxu1  ;;  %3269 = vmatpush.msra.mxu0 %v6626_v36  ;;  %v6656_v36 = vld [vmem:[%s12719_s4 + $0x3f8] sm:$0xff] }
 0x40b   : > { %13029 = vst [vmem:[#allocation146_spill] sm:$0xff] %v9694_v19  ;;  %3365 = vmatpush.msrb.mxu2 %v6656_v36 }
 0x40c   : > { %6582 = vmatmul.msk.f32.gmra.mxu0 %vm2256_vm5, %v13030_v61  ;;  %3036 = vmatmul.f32.gmra.mxu2 %v13031_v25 }
 0x40d   : > { %2806 = vmatmul.f32.gmra.mxu3 %v9447_v35  ;;  %3137 = vmatmul.f32.gmra.mxu1 %v9173_v10  ;;  %v13036_v10 = vld [vmem:[#allocation18_spill] sm:$0xff] }
 0x40f   : > { %v9704_v18 = vpop.f32.mrf.mxu2 }
 0x410   : > { %13032 = vst [vmem:[#allocation51_spill] sm:$0xff] %v9704_v18  ;;  %v9706_v23 = vpop.f32.mrf.mxu3  ;;  %v6624_v18 = vld [vmem:[%s12719_s4 + $0x2f8] sm:$0xff] }
 0x411   : > { %13033 = vst [vmem:[#allocation147_spill] sm:$0xff] %v9706_v23  ;;  %v9708_v19 = vpop.f32.mrf.mxu0  ;;  %3270 = vmatpush.msra.mxu0 %v6624_v18  ;;  %v6654_v18 = vld [vmem:[%s12719_s4 + $0x3e8] sm:$0xff] }
 0x412   : > { %13034 = vst [vmem:[#allocation148_spill] sm:$0xff] %v9708_v19  ;;  %v9713_v26 = vpop.f32.mrf.mxu1  ;;  %3366 = vmatpush.msrb.mxu2 %v6654_v18  ;;  %v6622_v18 = vld [vmem:[%s12719_s4 + $0x2e8] sm:$0xff] }
 0x413   : > { %13035 = vst [vmem:[#allocation149_spill] sm:$0xff] %v9713_v26  ;;  %3271 = vmatpush.msra.mxu0 %v6622_v18 }
 0x414   : > { %6583 = vmatmul.msk.f32.gmra.mxu0 %vm2256_vm5, %v9194_v13  ;;  %3039 = vmatmul.f32.gmra.mxu2 %v13036_v10  ;;  %v6606_v10 = vld [vmem:[%s12719_s4 + $0x268] sm:$0xff] }
 0x415   : > { %2809 = vmatmul.f32.gmra.mxu3 %v9477_v4  ;;  %3140 = vmatmul.f32.gmra.mxu1 %v9198_v28  ;;  %v13040_v28 = vld [vmem:[#allocation19_spill] sm:$0xff] }
 0x417   : > { %v9724_v23 = vpop.f32.mrf.mxu2 }
 0x418   : > { %13037 = vst [vmem:[#allocation150_spill] sm:$0xff] %v9724_v23  ;;  %v9726_v19 = vpop.f32.mrf.mxu3 }
 0x419   : > { %13038 = vst [vmem:[#allocation151_spill] sm:$0xff] %v9726_v19  ;;  %v9728_v26 = vpop.f32.mrf.mxu0 }
 0x41a   : > { %13039 = vst [vmem:[#allocation152_spill] sm:$0xff] %v9728_v26  ;;  %v3096_v11 = vpop.f32.mrf.mxu1 }
 0x41c   : > { %6584 = vmatmul.msk.f32.gmra.mxu0 %vm2256_vm5, %v9221_v38  ;;  %3042 = vmatmul.f32.gmra.mxu2 %v13040_v28  ;;  %v13044_v28 = vld [vmem:[#allocation20_spill] sm:$0xff] }
 0x41d   : > { %2812 = vmatmul.f32.gmra.mxu3 %v9498_v56  ;;  %3143 = vmatmul.f32.gmra.mxu1 %v9225_v44 }
 0x41f   : > { %v9738_v36 = vpop.f32.mrf.mxu2 }
 0x420   : > { %13041 = vst [vmem:[#allocation153_spill] sm:$0xff] %v9738_v36  ;;  %v9740_v19 = vpop.f32.mrf.mxu3 }
 0x421   : > { %13042 = vst [vmem:[#allocation154_spill] sm:$0xff] %v9740_v19  ;;  %v9742_v26 = vpop.f32.mrf.mxu0 }
 0x422   : > { %13043 = vst [vmem:[#allocation155_spill] sm:$0xff] %v9742_v26  ;;  %v3099_v23 = vpop.f32.mrf.mxu1 }
 0x424   : > { %6585 = vmatmul.msk.f32.gmra.mxu0 %vm2256_vm5, %v9245_v57  ;;  %3045 = vmatmul.f32.gmra.mxu2 %v13044_v28 }
 0x425   : > { %3146 = vmatmul.f32.gmra.mxu1 %v9249_v33  ;;  %6662 = vmatmul.msk.f32.vlgmr.msra.gmra.mxu3 %vm2256_vm5, %v8835_v42 }
 0x427   : > { %v9753_v36 = vpop.f32.mrf.mxu2 }
 0x428   : > { %13045 = vst [vmem:[#allocation156_spill] sm:$0xff] %v9753_v36  ;;  %v9755_v19 = vpop.f32.mrf.mxu3 }
 0x429   : > { %13046 = vst [vmem:[#allocation157_spill] sm:$0xff] %v9755_v19  ;;  %v9757_v26 = vpop.f32.mrf.mxu0  ;;  %v6652_v19 = vld [vmem:[%s12719_s4 + $0x3d8] sm:$0xff] }
 0x42a   : > { %13047 = vst [vmem:[#allocation158_spill] sm:$0xff] %v9757_v26  ;;  %v3102_v44 = vpop.f32.mrf.mxu1  ;;  %3367 = vmatpush.msrb.mxu2 %v6652_v19  ;;  %v6620_v19 = vld [vmem:[%s12719_s4 + $0x2d8] sm:$0xff] }
 0x42b   : > { %3272 = vmatpush.msra.mxu0 %v6620_v19 }
 0x42c   : > { %6586 = vmatmul.msk.f32.gmra.mxu0 %vm2256_vm5, %v9272_v31  ;;  %3048 = vmatmul.f32.gmra.mxu2 %v8942_v0 }
 0x42d   : > { %3149 = vmatmul.f32.gmra.mxu1 %v9276_v5  ;;  %6663 = vmatmul.msk.f32.gmra.mxu3 %vm2256_vm5, %v8855_v3  ;;  %v13050_v5 = vld [vmem:[#allocation27_spill] sm:$0xff] }
 0x42f   : > { %v3001_v36 = vpop.f32.mrf.mxu2 }
 0x430   : > { %v9771_v26 = vpop.f32.mrf.mxu3  ;;  %v9773_v33 = vadd.f32 %v3096_v11, %v3001_v36 }
 0x431   : > { %13048 = vst [vmem:[#allocation159_spill] sm:$0xff] %v9771_v26  ;;  %v9775_v18 = vpop.f32.mrf.mxu0 }
 0x432   : > { %13049 = vst [vmem:[#allocation160_spill] sm:$0xff] %v9775_v18  ;;  %v3105_v28 = vpop.f32.mrf.mxu1 }
 0x434   : > { %6587 = vmatmul.msk.f32.gmra.mxu0 %vm2256_vm5, %v9305_v14  ;;  %3051 = vmatmul.f32.gmra.mxu2 %v13050_v5  ;;  %v13053_v5 = vld [vmem:[#allocation31_spill] sm:$0xff] }
 0x435   : > { %3152 = vmatmul.f32.gmra.mxu1 %v9309_v40  ;;  %6664 = vmatmul.msk.f32.gmra.mxu3 %vm2256_vm5, %v8875_v6  ;;  %v6650_v40 = vld [vmem:[%s12719_s4 + $0x3c8] sm:$0xff] }
 0x436   : > { %3368 = vmatpush.msrb.mxu2 %v6650_v40  ;;  %v6616_v40 = vld [vmem:[%s12719_s4 + $0x2b8] sm:$0xff] }
 0x437   : > { %v3004_v11 = vpop.f32.mrf.mxu2 }
 0x438   : > { %v9786_v36 = vpop.f32.mrf.mxu3  ;;  %v9788_v18 = vadd.f32 %v3099_v23, %v3004_v11  ;;  %v6618_v23 = vld [vmem:[%s12719_s4 + $0x2c8] sm:$0xff] }
 0x439   : > { %13051 = vst [vmem:[#allocation161_spill] sm:$0xff] %v9786_v36  ;;  %v9790_v26 = vpop.f32.mrf.mxu0  ;;  %3273 = vmatpush.msra.mxu0 %v6618_v23  ;;  %v6612_v23 = vld [vmem:[%s12719_s4 + $0x298] sm:$0xff] }
 0x43a   : > { %13052 = vst [vmem:[#allocation162_spill] sm:$0xff] %v9790_v26  ;;  %v3108_v0 = vpop.f32.mrf.mxu1 }
 0x43b   : > { %3274 = vmatpush.msra.mxu0 %v6616_v40  ;;  %v6648_v40 = vld [vmem:[%s12719_s4 + $0x3b8] sm:$0xff] }
 0x43c   : > { %6588 = vmatmul.msk.f32.gmra.mxu0 %vm2256_vm5, %v9338_v24  ;;  %3054 = vmatmul.f32.gmra.mxu2 %v13053_v5 }
 0x43d   : > { %3155 = vmatmul.f32.gmra.mxu1 %v9342_v27  ;;  %6665 = vmatmul.msk.f32.gmra.mxu3 %vm2256_vm5, %v8895_v2  ;;  %v6614_v27 = vld [vmem:[%s12719_s4 + $0x2a8] sm:$0xff] }
 0x43e   : > { %3275 = vmatpush.msra.mxu0 %v6614_v27  ;;  %3369 = vmatpush.msrb.mxu2 %v6648_v40 }
 0x43f   : > { %v3007_v19 = vpop.f32.mrf.mxu2 }
 0x440   : > { %v9807_v11 = vpop.f32.mrf.mxu3  ;;  %v9809_v26 = vadd.f32 %v3102_v44, %v3007_v19  ;;  %v6610_v44 = vld [vmem:[%s12719_s4 + $0x288] sm:$0xff]  ;;  %3276 = vmatpush.msra.mxu0 %v6612_v23  ;;  %v6608_v19 = vld [vmem:[%s12719_s4 + $0x278] sm:$0xff] }
 0x441   : > { %13054 = vst [vmem:[#allocation163_spill] sm:$0xff] %v9807_v11  ;;  %v9811_v36 = vpop.f32.mrf.mxu0  ;;  %v6646_v23 = vld [vmem:[%s12719_s4 + $0x3a8] sm:$0xff] }
 0x442   : > { %13055 = vst [vmem:[#allocation164_spill] sm:$0xff] %v9811_v36  ;;  %v3111_v5 = vpop.f32.mrf.mxu1  ;;  %3277 = vmatpush.msra.mxu0 %v6610_v44  ;;  %3370 = vmatpush.msrb.mxu2 %v6646_v23  ;;  %v13058_v44 = vld [vmem:[#allocation39_spill] sm:$0xff]  ;;  %v6602_v23 = vld [vmem:[%s12719_s4 + $0x248] sm:$0xff] }
 0x444   : > { %6589 = vmatmul.msk.f32.gmra.mxu0 %vm2256_vm5, %v9374_v39  ;;  %3057 = vmatmul.f32.gmra.mxu2 %v9017_v52 }
 0x445   : > { %3158 = vmatmul.f32.gmra.mxu1 %v9378_v16  ;;  %6666 = vmatmul.msk.f32.gmra.mxu3 %vm2256_vm5, %v8915_v43 }
 0x446   : > { %3278 = vmatpush.msra.mxu0 %v6608_v19  ;;  %v6642_v19 = vld [vmem:[%s12719_s4 + $0x388] sm:$0xff] }
 0x447   : > { %v3010_v27 = vpop.f32.mrf.mxu2 }
 0x448   : > { %v9834_v36 = vpop.f32.mrf.mxu3  ;;  %v9836_v11 = vadd.f32 %v3105_v28, %v3010_v27  ;;  %v6644_v28 = vld [vmem:[%s12719_s4 + $0x398] sm:$0xff]  ;;  %3279 = vmatpush.msra.mxu0 %v6606_v10 }
 0x449   : > { %13056 = vst [vmem:[#allocation165_spill] sm:$0xff] %v9834_v36  ;;  %v9838_v16 = vpop.f32.mrf.mxu0  ;;  %v6604_v27 = vld [vmem:[%s12719_s4 + $0x258] sm:$0xff]  ;;  %3371 = vmatpush.msrb.mxu2 %v6644_v28  ;;  %v6638_v28 = vld [vmem:[%s12719_s4 + $0x368] sm:$0xff] }
 0x44a   : > { %13057 = vst [vmem:[#allocation166_spill] sm:$0xff] %v9838_v16  ;;  %v3114_v52 = vpop.f32.mrf.mxu1  ;;  %v6640_v16 = vld [vmem:[%s12719_s4 + $0x378] sm:$0xff]  ;;  %3280 = vmatpush.msra.mxu0 %v6604_v27 }
 0x44b   : > { %3372 = vmatpush.msrb.mxu2 %v6642_v19  ;;  %v6600_v10 = vld [vmem:[%s12719_s4 + $0x238] sm:$0xff] }
 0x44c   : > { %6590 = vmatmul.msk.f32.gmra.mxu0 %vm2256_vm5, %v9413_v60  ;;  %3060 = vmatmul.f32.gmra.mxu2 %v13058_v44  ;;  %v6636_v27 = vld [vmem:[%s12719_s4 + $0x358] sm:$0xff] }
 0x44d   : > { %3161 = vmatmul.f32.gmra.mxu1 %v9417_v12  ;;  %6667 = vmatmul.msk.f32.gmra.mxu3 %vm2256_vm5, %v12982_v21 }
 0x44e   : > { %3281 = vmatpush.msra.mxu0 %v6602_v23  ;;  %3373 = vmatpush.msrb.mxu2 %v6640_v16  ;;  %v6598_v16 = vld [vmem:[%s12719_s4 + $0x228] sm:$0xff] }
 0x44f   : > { %v3013_v40 = vpop.f32.mrf.mxu2  ;;  %v6634_v23 = vld [vmem:[%s12719_s4 + $0x348] sm:$0xff] }
 0x450   : > { %v9867_v36 = vpop.f32.mrf.mxu3  ;;  %v9869_v12 = vadd.f32 %v3108_v0, %v3013_v40  ;;  %v13061_v0 = vld [vmem:[#allocation43_spill] sm:$0xff]  ;;  %3282 = vmatpush.msra.mxu0 %v6600_v10  ;;  %3374 = vmatpush.msrb.mxu2 %v6638_v28  ;;  %v6596_v40 = vld [vmem:[%s12719_s4 + $0x218] sm:$0xff] }
 0x451   : > { %13059 = vst [vmem:[#allocation167_spill] sm:$0xff] %v9867_v36  ;;  %v9871_v44 = vpop.f32.mrf.mxu0  ;;  %v6632_v10 = vld [vmem:[%s12719_s4 + $0x338] sm:$0xff] }
 0x452   : > { %13060 = vst [vmem:[#allocation168_spill] sm:$0xff] %v9871_v44  ;;  %v3117_v25 = vpop.f32.mrf.mxu1  ;;  %3283 = vmatpush.msra.mxu0 %v6598_v16  ;;  %3375 = vmatpush.msrb.mxu2 %v6636_v27  ;;  %v6628_v16 = vld [vmem:[%s12719_s4 + $0x318] sm:$0xff] }
 0x454   : > { %6591 = vmatmul.msk.f32.gmra.mxu0 %vm2256_vm5, %v9443_v34  ;;  %3063 = vmatmul.f32.gmra.mxu2 %v13061_v0 }
 0x455   : > { %3164 = vmatmul.f32.gmra.mxu1 %v9447_v35  ;;  %6668 = vmatmul.msk.f32.gmra.mxu3 %vm2256_vm5, %v12988_v29 }
 0x456   : > { %3284 = vmatpush.msra.mxu0 %v6596_v40  ;;  %3376 = vmatpush.msrb.mxu2 %v6634_v23 }
 0x457   : > { %v3016_v19 = vpop.f32.mrf.mxu2 }
 0x458   : > { %v9897_v44 = vpop.f32.mrf.mxu3  ;;  %v9899_v36 = vadd.f32 %v3111_v5, %v3016_v19  ;;  %v6630_v5 = vld [vmem:[%s12719_s4 + $0x328] sm:$0xff]  ;;  %3377 = vmatpush.msrb.mxu2 %v6632_v10 }
 0x459   : > { %13062 = vst [vmem:[#allocation169_spill] sm:$0xff] %v9897_v44  ;;  %v9901_v35 = vpop.f32.mrf.mxu0 }
 0x45a   : > { %13063 = vst [vmem:[#allocation170_spill] sm:$0xff] %v9901_v35  ;;  %v3120_v0 = vpop.f32.mrf.mxu1  ;;  %3378 = vmatpush.msrb.mxu2 %v6630_v5 }
 0x45c   : > { %6592 = vmatmul.msk.f32.gmra.mxu0 %vm2256_vm5, %v9473_v50  ;;  %3066 = vmatmul.f32.gmra.mxu2 %v9110_v7 }
 0x45d   : > { %3167 = vmatmul.f32.gmra.mxu1 %v9477_v4  ;;  %6669 = vmatmul.msk.f32.gmra.mxu3 %vm2256_vm5, %v12994_v1 }
 0x45e   : > { %3379 = vmatpush.msrb.mxu2 %v6628_v16 }
 0x45f   : > { %v3019_v28 = vpop.f32.mrf.mxu2 }
 0x460   : > { %v9918_v27 = vpop.f32.mrf.mxu3  ;;  %v9920_v19 = vadd.f32 %v3114_v52, %v3019_v28 }
 0x461   : > { %13064 = vst [vmem:[#allocation171_spill] sm:$0xff] %v9918_v27  ;;  %v9922_v40 = vpop.f32.mrf.mxu0 }
 0x462   : > { %13065 = vst [vmem:[#allocation172_spill] sm:$0xff] %v9922_v40  ;;  %v3123_v23 = vpop.f32.mrf.mxu1 }
 0x464   : > { %6593 = vmatmul.msk.f32.gmra.mxu0 %vm2256_vm5, %v9494_v32  ;;  %3069 = vmatmul.f32.gmra.mxu2 %v9144_v41 }
 0x465   : > { %3170 = vmatmul.f32.gmra.mxu1 %v9498_v56  ;;  %6670 = vmatmul.msk.f32.gmra.mxu3 %vm2256_vm5, %v13000_v54 }
 0x467   : > { %v3022_v10 = vpop.f32.mrf.mxu2 }
 0x468   : > { %v9930_v44 = vpop.f32.mrf.mxu3  ;;  %v9932_v52 = vadd.f32 %v3117_v25, %v3022_v10 }
 0x469   : > { %13066 = vst [vmem:[#allocation173_spill] sm:$0xff] %v9930_v44  ;;  %v9934_v5 = vpop.f32.mrf.mxu0 }
 0x46a   : > { %13067 = vst [vmem:[#allocation174_spill] sm:$0xff] %v9934_v5  ;;  %v3126_v28 = vpop.f32.mrf.mxu1  ;;  %v13154_v5 = vld [vmem:[#allocation58_spill] sm:$0xff] }
 0x46c   : > { %6594 = vmatmul.msk.f32.gmra.mxu0 %vm2256_vm5, %v9515_v46  ;;  %3072 = vmatmul.f32.gmra.mxu2 %v9176_v49 }
 0x46d   : > { %6671 = vmatmul.msk.f32.gmra.mxu3 %vm2256_vm5, %v13006_v37  ;;  %6689 = vmatmul.msk.f32.vlgmr.msrb.gmra.mxu1 %vm2256_vm5, %v8835_v42 }
 0x46f   : > { %v3025_v16 = vpop.f32.mrf.mxu2 }
 0x470   : > { %v9943_v27 = vpop.f32.mrf.mxu3  ;;  %v9945_v44 = vadd.f32 %v3120_v0, %v3025_v16 }
 0x471   : > { %13068 = vst [vmem:[#allocation175_spill] sm:$0xff] %v9943_v27  ;;  %v9947_v25 = vpop.f32.mrf.mxu0 }
 0x472   : > { %13069 = vst [vmem:[#allocation176_spill] sm:$0xff] %v9947_v25  ;;  %v3129_v10 = vpop.f32.mrf.mxu1  ;;  %v13159_v25 = vld [vmem:[#allocation114_spill] sm:$0xff] }
 0x474   : > { %3075 = vmatmul.f32.gmra.mxu2 %v9201_v9  ;;  %3285 = vmatmul.f32.vlgmr.msra.gmra.mxu0 %v8575_v20 }
 0x475   : > { %6672 = vmatmul.msk.f32.gmra.mxu3 %vm2256_vm5, %v13012_v58  ;;  %6690 = vmatmul.msk.f32.gmra.mxu1 %vm2256_vm5, %v8855_v3 }
 0x477   : > { %v3028_v35 = vpop.f32.mrf.mxu2 }
 0x478   : > { %v9955_v42 = vpop.f32.mrf.mxu3  ;;  %v9957_v40 = vadd.f32 %v3123_v23, %v3028_v35 }
 0x479   : > { %13070 = vst [vmem:[#allocation177_spill] sm:$0xff] %v9955_v42  ;;  %v9959_v0 = vpop.f32.mrf.mxu0 }
 0x47a   : > { %13071 = vst [vmem:[#allocation178_spill] sm:$0xff] %v9959_v0  ;;  %v3132_v16 = vpop.f32.mrf.mxu1 }
 0x47c   : > { %3288 = vmatmul.f32.gmra.mxu0 %v8596_v45  ;;  %3380 = vmatmul.f32.vlgmr.msrb.gmra.mxu2 %v8817_v15 }
 0x47d   : > { %6673 = vmatmul.msk.f32.gmra.mxu3 %vm2256_vm5, %v13018_v8  ;;  %6691 = vmatmul.msk.f32.gmra.mxu1 %vm2256_vm5, %v8875_v6 }
 0x47f   : > { %v3031_v20 = vpop.f32.mrf.mxu2 }
 0x480   : > { %v9967_v3 = vpop.f32.mrf.mxu3  ;;  %v9969_v27 = vadd.f32 %v3126_v28, %v3031_v20 }
 0x481   : > { %13072 = vst [vmem:[#allocation179_spill] sm:$0xff] %v9967_v3  ;;  %v9971_v35 = vpop.f32.mrf.mxu0 }
 0x482   : > { %13073 = vst [vmem:[#allocation180_spill] sm:$0xff] %v9971_v35  ;;  %v3135_v23 = vpop.f32.mrf.mxu1 }
 0x484   : > { %3291 = vmatmul.f32.gmra.mxu0 %v8614_v47  ;;  %3383 = vmatmul.f32.gmra.mxu2 %v8839_v59 }
 0x485   : > { %6674 = vmatmul.msk.f32.gmra.mxu3 %vm2256_vm5, %v13024_v30  ;;  %6692 = vmatmul.msk.f32.gmra.mxu1 %vm2256_vm5, %v8895_v2 }
 0x487   : > { %v3034_v45 = vpop.f32.mrf.mxu2 }
 0x488   : > { %v9979_v15 = vpop.f32.mrf.mxu3  ;;  %v9981_v6 = vadd.f32 %v3129_v10, %v3034_v45 }
 0x489   : > { %13074 = vst [vmem:[#allocation181_spill] sm:$0xff] %v9979_v15  ;;  %v9983_v28 = vpop.f32.mrf.mxu0 }
 0x48a   : > { %v3138_v20 = vpop.f32.mrf.mxu1 }
 0x48c   : > { %3294 = vmatmul.f32.gmra.mxu0 %v8641_v63  ;;  %3386 = vmatmul.f32.gmra.mxu2 %v8859_v53 }
 0x48d   : > { %6675 = vmatmul.msk.f32.gmra.mxu3 %vm2256_vm5, %v13030_v61  ;;  %6693 = vmatmul.msk.f32.gmra.mxu1 %vm2256_vm5, %v8915_v43 }
 0x48f   : > { %v3037_v47 = vpop.f32.mrf.mxu2 }
 0x490   : > { %v9991_v59 = vpop.f32.mrf.mxu3  ;;  %v9993_v2 = vadd.f32 %v3132_v16, %v3037_v47 }
 0x491   : > { %13075 = vst [vmem:[#allocation182_spill] sm:$0xff] %v9991_v59  ;;  %v9995_v10 = vpop.f32.mrf.mxu0 }
 0x492   : > { %v3141_v45 = vpop.f32.mrf.mxu1 }
 0x494   : > { %3297 = vmatmul.f32.gmra.mxu0 %v12983_v51  ;;  %3389 = vmatmul.f32.gmra.mxu2 %v8879_v22 }
 0x495   : > { %6676 = vmatmul.msk.f32.gmra.mxu3 %vm2256_vm5, %v9194_v13  ;;  %6694 = vmatmul.msk.f32.gmra.mxu1 %vm2256_vm5, %v12982_v21 }
 0x497   : > { %v3040_v63 = vpop.f32.mrf.mxu2 }
 0x498   : > { %v10003_v53 = vpop.f32.mrf.mxu3  ;;  %v10005_v43 = vadd.f32 %v3135_v23, %v3040_v63 }
 0x499   : > { %13076 = vst [vmem:[#allocation183_spill] sm:$0xff] %v10003_v53  ;;  %v10007_v16 = vpop.f32.mrf.mxu0  ;;  %v13084_v53 = vld [vmem:[#allocation12_spill] sm:$0xff] }
 0x49a   : > { %v3144_v47 = vpop.f32.mrf.mxu1 }
 0x49c   : > { %3300 = vmatmul.f32.gmra.mxu0 %v12989_v17  ;;  %3392 = vmatmul.f32.gmra.mxu2 %v8899_v62  ;;  %v13079_v62 = vld [vmem:[#allocation24_spill] sm:$0xff] }
 0x49d   : > { %6677 = vmatmul.msk.f32.gmra.mxu3 %vm2256_vm5, %v9221_v38  ;;  %6695 = vmatmul.msk.f32.gmra.mxu1 %vm2256_vm5, %v12988_v29  ;;  %v13080_v29 = vld [vmem:[#allocation57_spill] sm:$0xff] }
 0x49e   : > { %v2454_v17 = vadd.f32 %v13080_v29, %v13079_v62 }
 0x49f   : > { %v3043_v22 = vpop.f32.mrf.mxu2 }
 0x4a0   : > { %v10015_v51 = vpop.f32.mrf.mxu3  ;;  %v10017_v21 = vadd.f32 %v3138_v20, %v3043_v22  ;;  %v13081_v22 = vld [vmem:[#allocation64_spill] sm:$0xff] }
 0x4a1   : > { %13077 = vst [vmem:[#allocation184_spill] sm:$0xff] %v10015_v51  ;;  %v10019_v23 = vpop.f32.mrf.mxu0  ;;  %v13085_v51 = vld [vmem:[#allocation22_spill] sm:$0xff] }
 0x4a2   : > { %13078 = vst [vmem:[#allocation185_spill] sm:$0xff] %v10019_v23  ;;  %v3147_v63 = vpop.f32.mrf.mxu1  ;;  %v2549_v23 = vadd.f32 %v13081_v22, %v2454_v17  ;;  %v13088_v17 = vld [vmem:[#allocation69_spill] sm:$0xff] }
 0x4a3   : > { %v13091_v22 = vld [vmem:[#allocation13_spill] sm:$0xff] }
 0x4a4   : > { %3303 = vmatmul.f32.gmra.mxu0 %v12995_v48  ;;  %3395 = vmatmul.f32.gmra.mxu2 %v8919_v55 }
 0x4a5   : > { %6678 = vmatmul.msk.f32.gmra.mxu3 %vm2256_vm5, %v9245_v57  ;;  %6696 = vmatmul.msk.f32.gmra.mxu1 %vm2256_vm5, %v12994_v1  ;;  %v13086_v1 = vld [vmem:[#allocation28_spill] sm:$0xff] }
 0x4a7   : > { %v3046_v42 = vpop.f32.mrf.mxu2 }
 0x4a8   : > { %v10029_v3 = vadd.f32 %v3141_v45, %v3046_v42  ;;  %v3191_v20 = vpop.f32.mrf.mxu3  ;;  %v13087_v42 = vld [vmem:[#allocation61_spill] sm:$0xff] }
 0x4a9   : > { %v3192_v15 = vadd.f32 %v3191_v20, %v9773_v33  ;;  %v10033_v48 = vpop.f32.mrf.mxu0  ;;  %v2457_v45 = vadd.f32 %v13087_v42, %v13086_v1 }
 0x4aa   : > { %13082 = vst [vmem:[#allocation24_spill] sm:$0xff] %v10033_v48  ;;  %v3150_v55 = vpop.f32.mrf.mxu1  ;;  %v13092_v48 = vld [vmem:[#allocation26_spill] sm:$0xff] }
 0x4ab   : > { %v10035_v59 = vmax.f32 %v2549_v23, %v3192_v15  ;;  %v2552_v15 = vadd.f32 %v13088_v17, %v2457_v45 }
 0x4ac   : > { %3306 = vmatmul.f32.gmra.mxu0 %v13084_v53  ;;  %3398 = vmatmul.f32.gmra.mxu2 %v13085_v51 }
 0x4ad   : > { %13083 = vst [vmem:[#allocation57_spill] sm:$0xff] %v10035_v59  ;;  %6679 = vmatmul.msk.f32.gmra.mxu3 %vm2256_vm5, %v9272_v31  ;;  %6697 = vmatmul.msk.f32.gmra.mxu1 %vm2256_vm5, %v13000_v54  ;;  %v13093_v54 = vld [vmem:[#allocation32_spill] sm:$0xff] }
 0x4af   : > { %v3049_v62 = vpop.f32.mrf.mxu2 }
 0x4b0   : > { %v10045_v33 = vadd.f32 %v3144_v47, %v3049_v62  ;;  %v3194_v29 = vpop.f32.mrf.mxu3  ;;  %v13094_v47 = vld [vmem:[#allocation66_spill] sm:$0xff] }
 0x4b1   : > { %v3195_v23 = vadd.f32 %v3194_v29, %v9788_v18  ;;  %v10049_v53 = vpop.f32.mrf.mxu0  ;;  %v2460_v1 = vadd.f32 %v13094_v47, %v13093_v54  ;;  %v13095_v62 = vld [vmem:[#allocation74_spill] sm:$0xff] }
 0x4b2   : > { %13089 = vst [vmem:[#allocation64_spill] sm:$0xff] %v10049_v53  ;;  %v3153_v51 = vpop.f32.mrf.mxu1  ;;  %v13099_v53 = vld [vmem:[#allocation30_spill] sm:$0xff] }
 0x4b3   : > { %v10051_v20 = vmax.f32 %v2552_v15, %v3195_v23  ;;  %v2555_v29 = vadd.f32 %v13095_v62, %v2460_v1 }
 0x4b4   : > { %3309 = vmatmul.f32.gmra.mxu0 %v13091_v22  ;;  %3401 = vmatmul.f32.gmra.mxu2 %v13092_v48  ;;  %v13098_v22 = vld [vmem:[#allocation14_spill] sm:$0xff] }
 0x4b5   : > { %13090 = vst [vmem:[#allocation12_spill] sm:$0xff] %v10051_v20  ;;  %6680 = vmatmul.msk.f32.gmra.mxu3 %vm2256_vm5, %v9305_v14  ;;  %6698 = vmatmul.msk.f32.gmra.mxu1 %vm2256_vm5, %v13006_v37  ;;  %v13100_v37 = vld [vmem:[#allocation36_spill] sm:$0xff] }
 0x4b7   : > { %v3052_v42 = vpop.f32.mrf.mxu2 }
 0x4b8   : > { %v10061_v18 = vadd.f32 %v3147_v63, %v3052_v42  ;;  %v3197_v45 = vpop.f32.mrf.mxu3  ;;  %v13101_v63 = vld [vmem:[#allocation71_spill] sm:$0xff] }
 0x4b9   : > { %v3198_v17 = vadd.f32 %v3197_v45, %v9809_v26  ;;  %v10065_v15 = vpop.f32.mrf.mxu0  ;;  %v2463_v54 = vadd.f32 %v13101_v63, %v13100_v37  ;;  %v13102_v42 = vld [vmem:[#allocation79_spill] sm:$0xff] }
 0x4ba   : > { %13096 = vst [vmem:[#allocation22_spill] sm:$0xff] %v10065_v15  ;;  %v3156_v48 = vpop.f32.mrf.mxu1  ;;  %v13106_v15 = vld [vmem:[#allocation34_spill] sm:$0xff] }
 0x4bb   : > { %v10067_v23 = vmax.f32 %v2555_v29, %v3198_v17  ;;  %v2558_v45 = vadd.f32 %v13102_v42, %v2463_v54 }
 0x4bc   : > { %3312 = vmatmul.f32.gmra.mxu0 %v13098_v22  ;;  %3404 = vmatmul.f32.gmra.mxu2 %v13099_v53  ;;  %v13105_v22 = vld [vmem:[#allocation15_spill] sm:$0xff] }
 0x4bd   : > { %13097 = vst [vmem:[#allocation28_spill] sm:$0xff] %v10067_v23  ;;  %6681 = vmatmul.msk.f32.gmra.mxu3 %vm2256_vm5, %v9338_v24  ;;  %6699 = vmatmul.msk.f32.gmra.mxu1 %vm2256_vm5, %v13012_v58  ;;  %v13107_v58 = vld [vmem:[#allocation40_spill] sm:$0xff] }
 0x4bf   : > { %v3055_v47 = vpop.f32.mrf.mxu2 }
 0x4c0   : > { %v10077_v26 = vadd.f32 %v3150_v55, %v3055_v47  ;;  %v3200_v1 = vpop.f32.mrf.mxu3  ;;  %v13108_v55 = vld [vmem:[#allocation76_spill] sm:$0xff] }
 0x4c1   : > { %v3201_v62 = vadd.f32 %v3200_v1, %v9836_v11  ;;  %v10081_v29 = vpop.f32.mrf.mxu0  ;;  %v2466_v37 = vadd.f32 %v13108_v55, %v13107_v58  ;;  %v13109_v47 = vld [vmem:[#allocation84_spill] sm:$0xff] }
 0x4c2   : > { %13103 = vst [vmem:[#allocation61_spill] sm:$0xff] %v10081_v29  ;;  %v3159_v53 = vpop.f32.mrf.mxu1  ;;  %v13113_v29 = vld [vmem:[#allocation38_spill] sm:$0xff] }
 0x4c3   : > { %v10083_v17 = vmax.f32 %v2558_v45, %v3201_v62  ;;  %v2561_v1 = vadd.f32 %v13109_v47, %v2466_v37 }
 0x4c4   : > { %3315 = vmatmul.f32.gmra.mxu0 %v13105_v22  ;;  %3407 = vmatmul.f32.gmra.mxu2 %v13106_v15  ;;  %v13112_v22 = vld [vmem:[#allocation16_spill] sm:$0xff] }
 0x4c5   : > { %13104 = vst [vmem:[#allocation69_spill] sm:$0xff] %v10083_v17  ;;  %6682 = vmatmul.msk.f32.gmra.mxu3 %vm2256_vm5, %v9374_v39  ;;  %6700 = vmatmul.msk.f32.gmra.mxu1 %vm2256_vm5, %v13018_v8  ;;  %v13114_v8 = vld [vmem:[#allocation44_spill] sm:$0xff] }
 0x4c7   : > { %v3058_v63 = vpop.f32.mrf.mxu2 }
 0x4c8   : > { %v10093_v11 = vadd.f32 %v3153_v51, %v3058_v63  ;;  %v3203_v54 = vpop.f32.mrf.mxu3  ;;  %v13115_v51 = vld [vmem:[#allocation81_spill] sm:$0xff] }
 0x4c9   : > { %v3204_v42 = vadd.f32 %v3203_v54, %v9869_v12  ;;  %v10097_v45 = vpop.f32.mrf.mxu0  ;;  %v2469_v58 = vadd.f32 %v13115_v51, %v13114_v8  ;;  %v13116_v63 = vld [vmem:[#allocation89_spill] sm:$0xff] }
 0x4ca   : > { %13110 = vst [vmem:[#allocation13_spill] sm:$0xff] %v10097_v45  ;;  %v3162_v15 = vpop.f32.mrf.mxu1  ;;  %v13120_v45 = vld [vmem:[#allocation42_spill] sm:$0xff] }
 0x4cb   : > { %v10099_v62 = vmax.f32 %v2561_v1, %v3204_v42  ;;  %v2564_v54 = vadd.f32 %v13116_v63, %v2469_v58 }
 0x4cc   : > { %3318 = vmatmul.f32.gmra.mxu0 %v13112_v22  ;;  %3410 = vmatmul.f32.gmra.mxu2 %v13113_v29  ;;  %v13119_v22 = vld [vmem:[#allocation17_spill] sm:$0xff] }
 0x4cd   : > { %13111 = vst [vmem:[#allocation26_spill] sm:$0xff] %v10099_v62  ;;  %6683 = vmatmul.msk.f32.gmra.mxu3 %vm2256_vm5, %v9413_v60  ;;  %6701 = vmatmul.msk.f32.gmra.mxu1 %vm2256_vm5, %v13024_v30  ;;  %v13121_v30 = vld [vmem:[#allocation47_spill] sm:$0xff] }
 0x4cf   : > { %v3061_v55 = vpop.f32.mrf.mxu2 }
 0x4d0   : > { %v10109_v12 = vadd.f32 %v3156_v48, %v3061_v55  ;;  %v3206_v37 = vpop.f32.mrf.mxu3  ;;  %v13122_v48 = vld [vmem:[#allocation86_spill] sm:$0xff] }
 0x4d1   : > { %v3207_v47 = vadd.f32 %v3206_v37, %v9899_v36  ;;  %v10113_v1 = vpop.f32.mrf.mxu0  ;;  %v2472_v8 = vadd.f32 %v13122_v48, %v13121_v30  ;;  %v13123_v55 = vld [vmem:[#allocation94_spill] sm:$0xff] }
 0x4d2   : > { %13117 = vst [vmem:[#allocation32_spill] sm:$0xff] %v10113_v1  ;;  %v3165_v29 = vpop.f32.mrf.mxu1  ;;  %v13127_v1 = vld [vmem:[#allocation46_spill] sm:$0xff] }
 0x4d3   : > { %v10115_v42 = vmax.f32 %v2564_v54, %v3207_v47  ;;  %v2567_v37 = vadd.f32 %v13123_v55, %v2472_v8 }
 0x4d4   : > { %3321 = vmatmul.f32.gmra.mxu0 %v13119_v22  ;;  %3413 = vmatmul.f32.gmra.mxu2 %v13120_v45  ;;  %v13126_v22 = vld [vmem:[#allocation18_spill] sm:$0xff] }
 0x4d5   : > { %13118 = vst [vmem:[#allocation66_spill] sm:$0xff] %v10115_v42  ;;  %6684 = vmatmul.msk.f32.gmra.mxu3 %vm2256_vm5, %v9443_v34  ;;  %6702 = vmatmul.msk.f32.gmra.mxu1 %vm2256_vm5, %v13030_v61  ;;  %v13128_v61 = vld [vmem:[#allocation50_spill] sm:$0xff] }
 0x4d7   : > { %v3064_v51 = vpop.f32.mrf.mxu2 }
 0x4d8   : > { %v10125_v36 = vadd.f32 %v3159_v53, %v3064_v51  ;;  %v3209_v58 = vpop.f32.mrf.mxu3  ;;  %v13129_v53 = vld [vmem:[#allocation91_spill] sm:$0xff]  ;;  %v13130_v51 = vld [vmem:[#allocation98_spill] sm:$0xff] }
 0x4d9   : > { %v3210_v63 = vadd.f32 %v3209_v58, %v9920_v19  ;;  %v10129_v54 = vpop.f32.mrf.mxu0  ;;  %v2475_v30 = vadd.f32 %v13129_v53, %v13128_v61 }
 0x4da   : > { %13124 = vst [vmem:[#allocation74_spill] sm:$0xff] %v10129_v54  ;;  %v3168_v45 = vpop.f32.mrf.mxu1  ;;  %v13134_v54 = vld [vmem:[#allocation49_spill] sm:$0xff] }
 0x4db   : > { %v10131_v47 = vmax.f32 %v2567_v37, %v3210_v63  ;;  %v2570_v58 = vadd.f32 %v13130_v51, %v2475_v30 }
 0x4dc   : > { %3324 = vmatmul.f32.gmra.mxu0 %v13126_v22  ;;  %3416 = vmatmul.f32.gmra.mxu2 %v13127_v1  ;;  %v13133_v22 = vld [vmem:[#allocation19_spill] sm:$0xff] }
 0x4dd   : > { %13125 = vst [vmem:[#allocation14_spill] sm:$0xff] %v10131_v47  ;;  %6685 = vmatmul.msk.f32.gmra.mxu3 %vm2256_vm5, %v9473_v50  ;;  %6703 = vmatmul.msk.f32.gmra.mxu1 %vm2256_vm5, %v9194_v13  ;;  %v13135_v13 = vld [vmem:[#allocation53_spill] sm:$0xff] }
 0x4df   : > { %v3067_v48 = vpop.f32.mrf.mxu2 }
 0x4e0   : > { %v10141_v19 = vadd.f32 %v3162_v15, %v3067_v48  ;;  %v3212_v8 = vpop.f32.mrf.mxu3  ;;  %v13136_v15 = vld [vmem:[#allocation96_spill] sm:$0xff]  ;;  %v13137_v48 = vld [vmem:[#allocation102_spill] sm:$0xff] }
 0x4e1   : > { %v3213_v55 = vadd.f32 %v3212_v8, %v9932_v52  ;;  %v10145_v37 = vpop.f32.mrf.mxu0  ;;  %v2478_v61 = vadd.f32 %v13136_v15, %v13135_v13 }
 0x4e2   : > { %13131 = vst [vmem:[#allocation30_spill] sm:$0xff] %v10145_v37  ;;  %v3171_v1 = vpop.f32.mrf.mxu1  ;;  %v13141_v37 = vld [vmem:[#allocation52_spill] sm:$0xff] }
 0x4e3   : > { %v10147_v63 = vmax.f32 %v2570_v58, %v3213_v55  ;;  %v2573_v8 = vadd.f32 %v13137_v48, %v2478_v61 }
 0x4e4   : > { %3327 = vmatmul.f32.gmra.mxu0 %v13133_v22  ;;  %3419 = vmatmul.f32.gmra.mxu2 %v13134_v54  ;;  %v13140_v22 = vld [vmem:[#allocation20_spill] sm:$0xff] }
 0x4e5   : > { %13132 = vst [vmem:[#allocation36_spill] sm:$0xff] %v10147_v63  ;;  %6686 = vmatmul.msk.f32.gmra.mxu3 %vm2256_vm5, %v9494_v32  ;;  %6704 = vmatmul.msk.f32.gmra.mxu1 %vm2256_vm5, %v9221_v38  ;;  %v13142_v38 = vld [vmem:[#allocation56_spill] sm:$0xff] }
 0x4e7   : > { %v3070_v53 = vpop.f32.mrf.mxu2 }
 0x4e8   : > { %v10157_v52 = vadd.f32 %v3165_v29, %v3070_v53  ;;  %v3215_v30 = vpop.f32.mrf.mxu3  ;;  %v13143_v29 = vld [vmem:[#allocation100_spill] sm:$0xff]  ;;  %v13144_v53 = vld [vmem:[#allocation106_spill] sm:$0xff] }
 0x4e9   : > { %v3216_v51 = vadd.f32 %v3215_v30, %v9945_v44  ;;  %v10161_v58 = vpop.f32.mrf.mxu0  ;;  %v2481_v13 = vadd.f32 %v13143_v29, %v13142_v38  ;;  %v13149_v38 = vld [vmem:[#allocation104_spill] sm:$0xff] }
 0x4ea   : > { %13138 = vst [vmem:[#allocation71_spill] sm:$0xff] %v10161_v58  ;;  %v3476_v54 = vpop.f32.mrf.mxu1  ;;  %v13147_v58 = vld [vmem:[#allocation54_spill] sm:$0xff] }
 0x4eb   : > { %v10163_v55 = vmax.f32 %v2573_v8, %v3216_v51  ;;  %v2576_v30 = vadd.f32 %v13144_v53, %v2481_v13  ;;  %v13150_v53 = vld [vmem:[#allocation110_spill] sm:$0xff] }
 0x4ec   : > { %3330 = vmatmul.f32.gmra.mxu0 %v13140_v22  ;;  %3422 = vmatmul.f32.gmra.mxu2 %v13141_v37  ;;  %v13146_v22 = vld [vmem:[#allocation23_spill] sm:$0xff] }
 0x4ed   : > { %13139 = vst [vmem:[#allocation79_spill] sm:$0xff] %v10163_v55  ;;  %6687 = vmatmul.msk.f32.gmra.mxu3 %vm2256_vm5, %v9515_v46  ;;  %6705 = vmatmul.msk.f32.gmra.mxu1 %vm2256_vm5, %v9245_v57  ;;  %v13148_v57 = vld [vmem:[#allocation60_spill] sm:$0xff] }
 0x4ef   : > { %v3073_v15 = vpop.f32.mrf.mxu2 }
 0x4f0   : > { %v10173_v44 = vadd.f32 %v3168_v45, %v3073_v15  ;;  %v3218_v61 = vpop.f32.mrf.mxu3  ;;  %v2484_v45 = vadd.f32 %v13149_v38, %v13148_v57 }
 0x4f1   : > { %v3219_v48 = vadd.f32 %v3218_v61, %v9957_v40  ;;  %v3286_v8 = vpop.f32.mrf.mxu0 }
 0x4f2   : > { %v3479_v51 = vpop.f32.mrf.mxu1  ;;  %v2579_v40 = vadd.f32 %v13150_v53, %v2484_v45  ;;  %v13158_v45 = vld [vmem:[#allocation10_spill] sm:$0xff] }
 0x4f3   : > { %v10177_v37 = vmax.f32 %v2576_v30, %v3219_v48 }
 0x4f4   : > { %3333 = vmatmul.f32.gmra.mxu0 %v13146_v22  ;;  %3425 = vmatmul.f32.gmra.mxu2 %v13147_v58  ;;  %v13153_v58 = vld [vmem:[#allocation27_spill] sm:$0xff] }
 0x4f5   : > { %13145 = vst [vmem:[#allocation15_spill] sm:$0xff] %v10177_v37  ;;  %6706 = vmatmul.msk.f32.gmra.mxu1 %vm2256_vm5, %v9272_v31  ;;  %v13155_v31 = vld [vmem:[#allocation65_spill] sm:$0xff] }
 0x4f7   : > { %v3076_v29 = vpop.f32.mrf.mxu2 }
 0x4f8   : > { %v10185_v15 = vadd.f32 %v3171_v1, %v3076_v29  ;;  %v3221_v13 = vpop.f32.mrf.mxu3  ;;  %v13156_v1 = vld [vmem:[#allocation108_spill] sm:$0xff]  ;;  %v13157_v29 = vld [vmem:[#allocation55_spill] sm:$0xff] }
 0x4f9   : > { %v3222_v61 = vadd.f32 %v3221_v13, %v9969_v27  ;;  %v3289_v30 = vpop.f32.mrf.mxu0  ;;  %v2487_v57 = vadd.f32 %v13156_v1, %v13155_v31  ;;  %v2739_v53 = vadd.f32 %v13158_v45, %v13157_v29  ;;  %v13164_v31 = vld [vmem:[#allocation31_spill] sm:$0xff]  ;;  %v13165_v1 = vld [vmem:[#allocation62_spill] sm:$0xff] }
 0x4fa   : > { %v10189_v48 = vpop.f32.mrf.mxu1  ;;  %v13170_v45 = vld [vmem:[#allocation11_spill] sm:$0xff] }
 0x4fb   : > { %13151 = vst [vmem:[#allocation34_spill] sm:$0xff] %v10189_v48  ;;  %v10191_v22 = vmax.f32 %v2579_v40, %v3222_v61  ;;  %v2582_v48 = vadd.f32 %v13159_v25, %v2487_v57  ;;  %v13167_v25 = vld [vmem:[#allocation70_spill] sm:$0xff] }
 0x4fc   : > { %3336 = vmatmul.f32.gmra.mxu0 %v13153_v58  ;;  %3428 = vmatmul.f32.gmra.mxu2 %v13154_v5  ;;  %v13161_v58 = vld [vmem:[#allocation155_spill] sm:$0xff] }
 0x4fd   : > { %13152 = vst [vmem:[#allocation40_spill] sm:$0xff] %v10191_v22  ;;  %6707 = vmatmul.msk.f32.gmra.mxu1 %vm2256_vm5, %v9305_v14  ;;  %v2834_v5 = vadd.f32 %v13161_v58, %v2739_v53 }
 0x4ff   : > { %v3381_v38 = vpop.f32.mrf.mxu2 }
 0x500   : > { %v3224_v27 = vpop.f32.mrf.mxu3  ;;  %v3382_v13 = vadd.f32 %v3381_v38, %v3286_v8  ;;  %v13169_v38 = vld [vmem:[#allocation59_spill] sm:$0xff] }
 0x501   : > { %v3225_v40 = vadd.f32 %v3224_v27, %v9981_v6  ;;  %v10203_v61 = vpop.f32.mrf.mxu0  ;;  %v13168_v6 = vld [vmem:[#allocation112_spill] sm:$0xff] }
 0x502   : > { %13160 = vst [vmem:[#allocation76_spill] sm:$0xff] %v10203_v61  ;;  %v3477_v0 = vadd.f32 %v3476_v54, %v3382_v13  ;;  %v10206_v35 = vpop.f32.mrf.mxu1  ;;  %v2490_v8 = vadd.f32 %v13168_v6, %v13167_v25  ;;  %v2742_v54 = vadd.f32 %v13170_v45, %v13169_v38  ;;  %v13175_v25 = vld [vmem:[#allocation35_spill] sm:$0xff] }
 0x503   : > { %13162 = vst [vmem:[#allocation84_spill] sm:$0xff] %v10206_v35  ;;  %v10208_v14 = vmax.f32 %v2582_v48, %v3225_v40  ;;  %v13171_v48 = vld [vmem:[#allocation118_spill] sm:$0xff]  ;;  %v13176_v6 = vld [vmem:[#allocation67_spill] sm:$0xff]  ;;  %v13225_v35 = vld [vmem:[#allocation148_spill] sm:$0xff] }
 0x504   : > { %3339 = vmatmul.f32.gmra.mxu0 %v13164_v31  ;;  %3431 = vmatmul.f32.gmra.mxu2 %v13165_v1  ;;  %v10212_v29 = vmax.f32 %v2834_v5, %v3477_v0  ;;  %v2585_v13 = vadd.f32 %v13171_v48, %v2490_v8  ;;  %v13172_v0 = vld [vmem:[#allocation158_spill] sm:$0xff] }
 0x505   : > { %13163 = vst [vmem:[#allocation16_spill] sm:$0xff] %v10208_v14  ;;  %6708 = vmatmul.msk.f32.gmra.mxu1 %vm2256_vm5, %v9338_v24  ;;  %v2837_v5 = vadd.f32 %v13172_v0, %v2742_v54  ;;  %v13185_v0 = vld [vmem:[#allocation72_spill] sm:$0xff] }
 0x506   : > { %13166 = vst [vmem:[#allocation38_spill] sm:$0xff] %v10212_v29 }
 0x507   : > { %v3384_v57 = vpop.f32.mrf.mxu2 }
 0x508   : > { %v3227_v53 = vpop.f32.mrf.mxu3  ;;  %v3385_v27 = vadd.f32 %v3384_v57, %v3289_v30  ;;  %v13178_v30 = vld [vmem:[#allocation75_spill] sm:$0xff] }
 0x509   : > { %v3228_v40 = vadd.f32 %v3227_v53, %v9993_v2  ;;  %v10222_v58 = vpop.f32.mrf.mxu0  ;;  %v13179_v2 = vld [vmem:[#allocation116_spill] sm:$0xff] }
 0x50a   : > { %v3480_v31 = vadd.f32 %v3479_v51, %v3385_v27  ;;  %v10225_v1 = vpop.f32.mrf.mxu1  ;;  %v2493_v8 = vadd.f32 %v13179_v2, %v13178_v30  ;;  %v13181_v51 = vld [vmem:[#allocation122_spill] sm:$0xff] }
 0x50b   : > { %13173 = vst [vmem:[#allocation44_spill] sm:$0xff] %v10225_v1  ;;  %v10227_v24 = vmax.f32 %v2585_v13, %v3228_v40  ;;  %v13184_v40 = vld [vmem:[#allocation39_spill] sm:$0xff]  ;;  %v13226_v1 = vld [vmem:[#allocation153_spill] sm:$0xff] }
 0x50c   : > { %3342 = vmatmul.f32.gmra.mxu0 %v13175_v25  ;;  %3434 = vmatmul.f32.gmra.mxu2 %v13176_v6  ;;  %v10231_v38 = vmax.f32 %v2837_v5, %v3480_v31  ;;  %v2588_v54 = vadd.f32 %v13181_v51, %v2493_v8  ;;  %v13187_v5 = vld [vmem:[#allocation120_spill] sm:$0xff] }
 0x50d   : > { %13174 = vst [vmem:[#allocation81_spill] sm:$0xff] %v10227_v24  ;;  %6709 = vmatmul.msk.f32.gmra.mxu1 %vm2256_vm5, %v9374_v39  ;;  %v13186_v39 = vld [vmem:[#allocation80_spill] sm:$0xff] }
 0x50e   : > { %13177 = vst [vmem:[#allocation89_spill] sm:$0xff] %v10231_v38  ;;  %v2496_v31 = vadd.f32 %v13187_v5, %v13186_v39 }
 0x50f   : > { %v10237_v57 = vpop.f32.mrf.mxu2 }
 0x510   : > { %13180 = vst [vmem:[#allocation17_spill] sm:$0xff] %v10237_v57  ;;  %v3230_v45 = vpop.f32.mrf.mxu3 }
 0x511   : > { %v3231_v53 = vadd.f32 %v3230_v45, %v10005_v43  ;;  %v10241_v27 = vpop.f32.mrf.mxu0  ;;  %v13188_v43 = vld [vmem:[#allocation21_spill] sm:$0xff] }
 0x512   : > { %v10243_v48 = vpop.f32.mrf.mxu1  ;;  %v2591_v30 = vadd.f32 %v13188_v43, %v2496_v31 }
 0x513   : > { %13182 = vst [vmem:[#allocation42_spill] sm:$0xff] %v10243_v48  ;;  %v10245_v13 = vmax.f32 %v2588_v54, %v3231_v53  ;;  %v13189_v54 = vld [vmem:[#allocation43_spill] sm:$0xff]  ;;  %v13190_v53 = vld [vmem:[#allocation77_spill] sm:$0xff] }
 0x514   : > { %3345 = vmatmul.f32.gmra.mxu0 %v13184_v40  ;;  %3437 = vmatmul.f32.gmra.mxu2 %v13185_v0  ;;  %v13192_v40 = vld [vmem:[#allocation124_spill] sm:$0xff] }
 0x515   : > { %13183 = vst [vmem:[#allocation47_spill] sm:$0xff] %v10245_v13  ;;  %6710 = vmatmul.msk.f32.gmra.mxu1 %vm2256_vm5, %v9413_v60  ;;  %v13191_v60 = vld [vmem:[#allocation85_spill] sm:$0xff] }
 0x516   : > { %v2499_v0 = vadd.f32 %v13192_v40, %v13191_v60 }
 0x517   : > { %v10253_v25 = vpop.f32.mrf.mxu2 }
 0x518   : > { %v3233_v6 = vpop.f32.mrf.mxu3 }
 0x519   : > { %v3234_v2 = vadd.f32 %v3233_v6, %v10017_v21  ;;  %v10257_v8 = vpop.f32.mrf.mxu0  ;;  %v13193_v21 = vld [vmem:[#allocation25_spill] sm:$0xff] }
 0x51a   : > { %v10259_v45 = vpop.f32.mrf.mxu1  ;;  %v2594_v31 = vadd.f32 %v13193_v21, %v2499_v0  ;;  %v13197_v0 = vld [vmem:[#allocation29_spill] sm:$0xff] }
 0x51b   : > { %v10261_v51 = vmax.f32 %v2591_v30, %v3234_v2 }
 0x51c   : > { %3348 = vmatmul.f32.gmra.mxu0 %v13189_v54  ;;  %3440 = vmatmul.f32.gmra.mxu2 %v13190_v53  ;;  %v13194_v54 = vld [vmem:[#allocation82_spill] sm:$0xff] }
 0x51d   : > { %6711 = vmatmul.msk.f32.gmra.mxu1 %vm2256_vm5, %v9443_v34  ;;  %v13195_v34 = vld [vmem:[#allocation90_spill] sm:$0xff] }
 0x51e   : > { %v13196_v53 = vld [vmem:[#allocation126_spill] sm:$0xff] }
 0x51f   : > { %v10269_v39 = vpop.f32.mrf.mxu2  ;;  %v2502_v60 = vadd.f32 %v13196_v53, %v13195_v34 }
 0x520   : > { %v3236_v5 = vpop.f32.mrf.mxu3 }
 0x521   : > { %v3237_v6 = vadd.f32 %v3236_v5, %v10029_v3  ;;  %v10273_v43 = vpop.f32.mrf.mxu0  ;;  %v2597_v5 = vadd.f32 %v13197_v0, %v2502_v60 }
 0x522   : > { %v10275_v30 = vpop.f32.mrf.mxu1 }
 0x523   : > { %v10277_v2 = vmax.f32 %v2594_v31, %v3237_v6  ;;  %v13198_v6 = vld [vmem:[#allocation87_spill] sm:$0xff] }
 0x524   : > { %3351 = vmatmul.f32.gmra.mxu0 %v9110_v7  ;;  %3443 = vmatmul.f32.gmra.mxu2 %v13194_v54  ;;  %v13200_v54 = vld [vmem:[#allocation128_spill] sm:$0xff] }
 0x525   : > { %6712 = vmatmul.msk.f32.gmra.mxu1 %vm2256_vm5, %v9473_v50  ;;  %3672 = vmatpush.msrb.mxu3 %v10277_v2 }
 0x527   : > { %3673 = vmatpush.msrb.mxu3 %v10261_v51  ;;  %v10287_v3 = vpop.f32.mrf.mxu2 }
 0x528   : > { %v3239_v40 = vpop.f32.mrf.mxu3 }
 0x529   : > { %v3240_v21 = vadd.f32 %v3239_v40, %v10045_v33  ;;  %3674 = vmatpush.msrb.mxu3 %v10245_v13  ;;  %v10292_v7 = vpop.f32.mrf.mxu0  ;;  %v13199_v33 = vld [vmem:[#allocation95_spill] sm:$0xff]  ;;  %v13201_v40 = vld [vmem:[#allocation33_spill] sm:$0xff] }
 0x52a   : > { %v10294_v31 = vpop.f32.mrf.mxu1  ;;  %v2505_v34 = vadd.f32 %v13200_v54, %v13199_v33  ;;  %v13204_v33 = vld [vmem:[#allocation130_spill] sm:$0xff]  ;;  %v10425_v13 = vld [vmem:[%s12720_s5 + $0x30] sm:$0xff] }
 0x52b   : > { %v10296_v50 = vmax.f32 %v2597_v5, %v3240_v21  ;;  %3675 = vmatpush.msrb.mxu3 %v10227_v24  ;;  %13233 = vst [vmem:[#allocation98_spill] sm:$0xff] %v10425_v13 }
 0x52c   : > { %3354 = vmatmul.f32.gmra.mxu0 %v9144_v41  ;;  %3446 = vmatmul.f32.gmra.mxu2 %v13198_v6  ;;  %v2600_v0 = vadd.f32 %v13201_v40, %v2505_v34  ;;  %v13202_v6 = vld [vmem:[#allocation92_spill] sm:$0xff]  ;;  %v13205_v40 = vld [vmem:[#allocation37_spill] sm:$0xff] }
 0x52d   : > { %6713 = vmatmul.msk.f32.gmra.mxu1 %vm2256_vm5, %v9494_v32  ;;  %3676 = vmatpush.msrb.mxu3 %v10208_v14  ;;  %v13221_v14 = vld [vmem:[#allocation150_spill] sm:$0xff] }
 0x52f   : > { %3677 = vmatpush.msrb.mxu3 %v10191_v22  ;;  %v10307_v53 = vpop.f32.mrf.mxu2 }
 0x530   : > { %v3242_v60 = vpop.f32.mrf.mxu3 }
 0x531   : > { %v3243_v5 = vadd.f32 %v3242_v60, %v10061_v18  ;;  %3678 = vmatpush.msrb.mxu3 %v10177_v37  ;;  %v10312_v41 = vpop.f32.mrf.mxu0  ;;  %v13203_v18 = vld [vmem:[#allocation99_spill] sm:$0xff] }
 0x532   : > { %v10314_v21 = vpop.f32.mrf.mxu1  ;;  %v2508_v54 = vadd.f32 %v13204_v33, %v13203_v18  ;;  %v13206_v18 = vld [vmem:[#allocation103_spill] sm:$0xff]  ;;  %v13207_v33 = vld [vmem:[#allocation133_spill] sm:$0xff] }
 0x533   : > { %v10316_v32 = vmax.f32 %v2600_v0, %v3243_v5  ;;  %3679 = vmatpush.msrb.mxu3 %v10163_v55 }
 0x534   : > { %3357 = vmatmul.f32.gmra.mxu0 %v9176_v49  ;;  %3449 = vmatmul.f32.gmra.mxu2 %v13202_v6  ;;  %v2603_v0 = vadd.f32 %v13205_v40, %v2508_v54  ;;  %v2511_v54 = vadd.f32 %v13207_v33, %v13206_v18  ;;  %v13208_v40 = vld [vmem:[#allocation41_spill] sm:$0xff]  ;;  %v13209_v18 = vld [vmem:[#allocation107_spill] sm:$0xff]  ;;  %v13210_v33 = vld [vmem:[#allocation136_spill] sm:$0xff] }
 0x535   : > { %6714 = vmatmul.msk.f32.gmra.mxu1 %vm2256_vm5, %v9515_v46  ;;  %3680 = vmatpush.msrb.mxu3 %v10147_v63 }
 0x536   : > { %v2606_v29 = vadd.f32 %v13208_v40, %v2511_v54  ;;  %v13211_v40 = vld [vmem:[#allocation45_spill] sm:$0xff] }
 0x537   : > { %3681 = vmatpush.msrb.mxu3 %v10131_v47  ;;  %v10327_v34 = vpop.f32.mrf.mxu2 }
 0x538   : > { %v3245_v60 = vpop.f32.mrf.mxu3 }
 0x539   : > { %v3246_v5 = vadd.f32 %v3245_v60, %v10077_v26  ;;  %3682 = vmatpush.msrb.mxu3 %v10115_v42  ;;  %v10332_v49 = vpop.f32.mrf.mxu0 }
 0x53a   : > { %v10334_v6 = vpop.f32.mrf.mxu1 }
 0x53b   : > { %v10336_v46 = vmax.f32 %v2603_v0, %v3246_v5  ;;  %3683 = vmatpush.msrb.mxu3 %v10099_v62 }
 0x53c   : > { %3360 = vmatmul.f32.gmra.mxu0 %v9201_v9  ;;  %3452 = vmatmul.f32.gmra.mxu2 %v9477_v4 }
 0x53d   : > { %3684 = vmatpush.msrb.mxu3 %v10083_v17 }
 0x53f   : > { %3685 = vmatpush.msrb.mxu3 %v10067_v23  ;;  %v10345_v26 = vpop.f32.mrf.mxu2  ;;  %v2514_v23 = vadd.f32 %v13210_v33, %v13209_v18  ;;  %v13214_v18 = vld [vmem:[#allocation48_spill] sm:$0xff] }
 0x540   : > { %v3248_v60 = vpop.f32.mrf.mxu3 }
 0x541   : > { %v3249_v0 = vadd.f32 %v3248_v60, %v10093_v11  ;;  %3686 = vmatpush.msrb.mxu3 %v10051_v20  ;;  %v10350_v5 = vpop.f32.mrf.mxu0  ;;  %v2609_v11 = vadd.f32 %v13211_v40, %v2514_v23 }
 0x542   : > { %v10352_v9 = vpop.f32.mrf.mxu1 }
 0x543   : > { %v10354_v4 = vmax.f32 %v2606_v29, %v3249_v0  ;;  %3687 = vmatpush.msrb.mxu3 %v10035_v59  ;;  %v13212_v0 = vld [vmem:[#allocation111_spill] sm:$0xff] }
 0x544   : > { %3455 = vmatmul.f32.gmra.mxu2 %v9498_v56  ;;  %v13213_v59 = vld [vmem:[#allocation139_spill] sm:$0xff] }
 0x545   : > { %v2517_v42 = vadd.f32 %v13213_v59, %v13212_v0 }
 0x547   : > { %v10360_v17 = vpop.f32.mrf.mxu2  ;;  %v2612_v33 = vadd.f32 %v13214_v18, %v2517_v42  ;;  %v10385_v42 = vld [vmem:[%s12720_s5] sm:$0xff]  ;;  %v13220_v18 = vld [vmem:[#allocation145_spill] sm:$0xff] }
 0x548   : > { %v3251_v54 = vpop.f32.mrf.mxu3  ;;  %13218 = vst [vmem:[#allocation86_spill] sm:$0xff] %v10385_v42  ;;  %3688 = vmatmul.f32.vlgmr.msrb.gmra.mxu3 %v10385_v42  ;;  %v13224_v42 = vld [vmem:[#allocation123_spill] sm:$0xff] }
 0x549   : > { %v3252_v60 = vadd.f32 %v3251_v54, %v10109_v12  ;;  %v10364_v20 = vpop.f32.mrf.mxu0  ;;  %v13215_v12 = vld [vmem:[#allocation115_spill] sm:$0xff]  ;;  %v13216_v54 = vld [vmem:[#allocation142_spill] sm:$0xff] }
 0x54a   : > { %v10366_v62 = vpop.f32.mrf.mxu1  ;;  %v2520_v55 = vadd.f32 %v13216_v54, %v13215_v12 }
 0x54b   : > { %v10368_v29 = vmax.f32 %v2609_v11, %v3252_v60  ;;  %v13217_v60 = vld [vmem:[#allocation51_spill] sm:$0xff] }
 0x54c   : > { %v2615_v22 = vadd.f32 %v13217_v60, %v2520_v55  ;;  %v10397_v60 = vld [vmem:[%s12720_s5 + $0x10] sm:$0xff] }
 0x54d   : > { %13222 = vst [vmem:[#allocation94_spill] sm:$0xff] %v10397_v60 }
 0x54f   : > { %v10372_v56 = vpop.f32.mrf.mxu2 }
 0x550   : > { %v3254_v38 = vpop.f32.mrf.mxu3  ;;  %3691 = vmatmul.f32.gmra.mxu3 %v10397_v60  ;;  %v13229_v60 = vld [vmem:[#allocation152_spill] sm:$0xff] }
 0x551   : > { %v3255_v47 = vadd.f32 %v3254_v38, %v10125_v36  ;;  %v3322_v63 = vpop.f32.mrf.mxu0  ;;  %v13219_v38 = vld [vmem:[#allocation119_spill] sm:$0xff] }
 0x552   : > { %v3515_v23 = vpop.f32.mrf.mxu1 }
 0x553   : > { %v10376_v40 = vmax.f32 %v2612_v33, %v3255_v47  ;;  %v2523_v33 = vadd.f32 %v13220_v18, %v13219_v38  ;;  %v2526_v38 = vadd.f32 %v13225_v35, %v13224_v42 }
 0x555   : > { %v2618_v55 = vadd.f32 %v13221_v14, %v2523_v33  ;;  %v2621_v14 = vadd.f32 %v13226_v1, %v2526_v38  ;;  %v13231_v1 = vld [vmem:[#allocation156_spill] sm:$0xff] }
 0x557   : > { %v3414_v37 = vpop.f32.mrf.mxu2 }
 0x558   : > { %v3257_v11 = vpop.f32.mrf.mxu3 }
 0x559   : > { %v3258_v59 = vadd.f32 %v3257_v11, %v10141_v19  ;;  %v3325_v0 = vpop.f32.mrf.mxu0 }
 0x55a   : > { %v3518_v47 = vpop.f32.mrf.mxu1 }
 0x55b   : > { %v10388_v36 = vmax.f32 %v2615_v22, %v3258_v59 }
 0x55f   : > { %v3417_v12 = vpop.f32.mrf.mxu2 }
 0x560   : > { %v3260_v54 = vpop.f32.mrf.mxu3 }
 0x561   : > { %v3261_v19 = vadd.f32 %v3260_v54, %v10157_v52  ;;  %v3328_v11 = vpop.f32.mrf.mxu0  ;;  %v10409_v54 = vld [vmem:[%s12720_s5 + $0x20] sm:$0xff] }
 0x562   : > { %v3521_v59 = vpop.f32.mrf.mxu1  ;;  %13227 = vst [vmem:[#allocation46_spill] sm:$0xff] %v10409_v54  ;;  %3694 = vmatmul.f32.gmra.mxu3 %v10409_v54 }
 0x563   : > { %v10400_v22 = vmax.f32 %v2618_v55, %v3261_v19  ;;  %v13228_v19 = vld [vmem:[#allocation9_spill] sm:$0xff] }
 0x564   : > { %v2529_v57 = vadd.f32 %v13229_v60, %v13228_v19  ;;  %v13235_v19 = vld [vmem:[#allocation167_spill] sm:$0xff] }
 0x565   : > { %13223 = vst [vmem:[#allocation18_spill] sm:$0xff] %v10400_v22 }
 0x566   : > { %v2624_v38 = vadd.f32 %v13231_v1, %v2529_v57  ;;  %v13234_v57 = vld [vmem:[#allocation121_spill] sm:$0xff] }
 0x567   : > { %v3420_v18 = vpop.f32.mrf.mxu2 }
 0x568   : > { %v3263_v24 = vpop.f32.mrf.mxu3 }
 0x569   : > { %v3264_v52 = vadd.f32 %v3263_v24, %v10173_v44  ;;  %v3331_v33 = vpop.f32.mrf.mxu0 }
 0x56a   : > { %v10416_v35 = vpop.f32.mrf.mxu1  ;;  %3697 = vmatmul.f32.gmra.mxu3 %v10425_v13  ;;  %v13243_v13 = vld [vmem:[#allocation161_spill] sm:$0xff] }
 0x56b   : > { %v10412_v55 = vmax.f32 %v2621_v14, %v3264_v52  ;;  %13230 = vst [vmem:[#allocation50_spill] sm:$0xff] %v10416_v35  ;;  %v13236_v35 = vld [vmem:[#allocation117_spill] sm:$0xff] }
 0x56f   : > { %v3423_v42 = vpop.f32.mrf.mxu2 }
 0x570   : > { %v3266_v61 = vpop.f32.mrf.mxu3  ;;  %v3424_v60 = vadd.f32 %v3423_v42, %v3328_v11  ;;  %v10444_v11 = vld [vmem:[%s12720_s5 + $0x40] sm:$0xff] }
 0x571   : > { %v3267_v44 = vadd.f32 %v3266_v61, %v10185_v15  ;;  %v10420_v24 = vpop.f32.mrf.mxu0  ;;  %v2784_v15 = vadd.f32 %v13235_v19, %v13234_v57  ;;  %v3421_v61 = vadd.f32 %v3420_v18, %v3325_v0  ;;  %v13240_v18 = vld [vmem:[#allocation113_spill] sm:$0xff] }
 0x572   : > { %13232 = vst [vmem:[#allocation91_spill] sm:$0xff] %v10420_v24  ;;  %v13237_v24 = vld [vmem:[#allocation165_spill] sm:$0xff]  ;;  %v10436_v48 = vpop.f32.mrf.mxu1  ;;  %v3519_v57 = vadd.f32 %v3518_v47, %v3424_v60  ;;  %3700 = vmatmul.f32.gmra.mxu3 %v10444_v11  ;;  %v13249_v60 = vld [vmem:[#allocation178_spill] sm:$0xff] }
 0x573   : > { %v10428_v14 = vmax.f32 %v2624_v38, %v3267_v44  ;;  %v2781_v54 = vadd.f32 %v13237_v24, %v13236_v35  ;;  %13238 = vst [vmem:[#allocation19_spill] sm:$0xff] %v10436_v48  ;;  %v2879_v42 = vadd.f32 %v10007_v16, %v2784_v15  ;;  %v3418_v44 = vadd.f32 %v3417_v12, %v3322_v63 }
 0x574   : > { %v3516_v19 = vadd.f32 %v3515_v23, %v3421_v61  ;;  %v3412_v63 = vadd.f32 %v10372_v56, %v10350_v5  ;;  %v13247_v5 = vld [vmem:[#allocation101_spill] sm:$0xff] }
 0x575   : > { %3734 = vmatpush.msrb.mxu0 %v10428_v14  ;;  %v2876_v24 = vadd.f32 %v9995_v10, %v2781_v54  ;;  %v3513_v47 = vadd.f32 %v10366_v62, %v3418_v44  ;;  %v13244_v10 = vld [vmem:[#allocation105_spill] sm:$0xff]  ;;  %v13252_v44 = vld [vmem:[#allocation176_spill] sm:$0xff] }
 0x576   : > { %v10478_v61 = vld [vmem:[%s12720_s5 + $0x50] sm:$0xff] }
 0x577   : > { %3735 = vmatpush.msrb.mxu0 %v10412_v55  ;;  %v3426_v52 = vpop.f32.mrf.mxu2  ;;  %v3583_v12 = vmax.f32 %v2876_v24, %v3519_v57  ;;  %v13255_v24 = vld [vmem:[#allocation174_spill] sm:$0xff] }
 0x578   : > { %v3427_v1 = vadd.f32 %v3426_v52, %v3331_v33  ;;  %v13241_v33 = vld [vmem:[#allocation163_spill] sm:$0xff]  ;;  %v3415_v52 = vadd.f32 %v3414_v37, %v10364_v20  ;;  %v13246_v37 = vld [vmem:[#allocation180_spill] sm:$0xff] }
 0x579   : > { %3736 = vmatpush.msrb.mxu0 %v10400_v22  ;;  %v10439_v38 = vpop.f32.mrf.mxu0  ;;  %v2778_v35 = vadd.f32 %v13241_v33, %v13240_v18  ;;  %v3403_v18 = vadd.f32 %v10327_v34, %v10292_v7  ;;  %v13254_v33 = vld [vmem:[#allocation151_spill] sm:$0xff]  ;;  %v13256_v34 = vld [vmem:[#allocation88_spill] sm:$0xff] }
 0x57a   : > { %13239 = vst [vmem:[#allocation49_spill] sm:$0xff] %v10439_v38  ;;  %v3522_v0 = vadd.f32 %v3521_v59, %v3427_v1  ;;  %v13242_v38 = vld [vmem:[#allocation109_spill] sm:$0xff]  ;;  %v13245_v59 = vld [vmem:[#allocation159_spill] sm:$0xff]  ;;  %v3510_v54 = vadd.f32 %v10352_v9, %v3415_v52  ;;  %3703 = vmatmul.f32.gmra.mxu3 %v10478_v61 }
 0x57b   : > { %3737 = vmatpush.msrb.mxu0 %v10388_v36  ;;  %v2775_v22 = vadd.f32 %v13243_v13, %v13242_v38  ;;  %v2873_v16 = vadd.f32 %v9983_v28, %v2778_v35  ;;  %v2772_v20 = vadd.f32 %v13245_v59, %v13244_v10  ;;  %v3409_v28 = vadd.f32 %v10360_v17, %v10332_v49  ;;  %v13250_v1 = vld [vmem:[#allocation97_spill] sm:$0xff]  ;;  %v13251_v38 = vld [vmem:[#allocation154_spill] sm:$0xff] }
 0x57c   : > { %v3585_v48 = vmax.f32 %v2879_v42, %v3522_v0  ;;  %v3406_v17 = vadd.f32 %v10345_v26, %v10312_v41  ;;  %v3507_v49 = vadd.f32 %v10334_v6, %v3412_v63  ;;  %v2766_v42 = vadd.f32 %v13251_v38, %v13250_v1  ;;  %v10486_v0 = vpop.f32.mrf.mxu1  ;;  %v13253_v26 = vld [vmem:[#allocation93_spill] sm:$0xff]  ;;  %v13257_v63 = vld [vmem:[#allocation147_spill] sm:$0xff]  ;;  %v13269_v38 = vld [vmem:[#allocation166_spill] sm:$0xff] }
 0x57d   : > { %3738 = vmatpush.msrb.mxu0 %v10376_v40  ;;  %v2870_v23 = vadd.f32 %v13246_v37, %v2775_v22  ;;  %v3581_v62 = vmax.f32 %v2873_v16, %v3516_v19  ;;  %v2867_v15 = vadd.f32 %v13249_v60, %v2772_v20  ;;  %v3504_v41 = vadd.f32 %v10314_v21, %v3409_v28  ;;  %v10503_v21 = vld [vmem:[%s12720_s5 + $0x8] sm:$0xff]  ;;  %v13259_v20 = vld [vmem:[#allocation83_spill] sm:$0xff]  ;;  %v13261_v28 = vld [vmem:[#allocation170_spill] sm:$0xff] }
 0x57e   : > { %3784 = vmatpush.msra.mxu2 %v3585_v48  ;;  %4074 = vmatpush.msra.mxu1 %v3585_v48  ;;  %v13248_v48 = vld [vmem:[#allocation157_spill] sm:$0xff]  ;;  %v2763_v35 = vadd.f32 %v13254_v33, %v13253_v26  ;;  %v2861_v52 = vadd.f32 %v13255_v24, %v2766_v42  ;;  %v3400_v19 = vadd.f32 %v10307_v53, %v10273_v43  ;;  %v13260_v37 = vld [vmem:[#allocation144_spill] sm:$0xff]  ;;  %v10551_v33 = vld [vmem:[%s12720_s5 + $0x18] sm:$0xff] }
 0x57f   : > { %3739 = vmatpush.msrb.mxu0 %v10368_v29  ;;  %v10464_v13 = vpop.f32.mrf.mxu2  ;;  %v2769_v56 = vadd.f32 %v13248_v48, %v13247_v5  ;;  %v3579_v9 = vmax.f32 %v2870_v23, %v3513_v47  ;;  %v3577_v6 = vmax.f32 %v2867_v15, %v3510_v54  ;;  %v3501_v16 = vadd.f32 %v10294_v31, %v3406_v17  ;;  %v13263_v5 = vld [vmem:[#allocation141_spill] sm:$0xff]  ;;  %v13275_v24 = vld [vmem:[#allocation135_spill] sm:$0xff] }
 0x580   : > { %3785 = vmatpush.msra.mxu2 %v3583_v12  ;;  %4075 = vmatpush.msra.mxu1 %v3583_v12  ;;  %v2760_v47 = vadd.f32 %v13257_v63, %v13256_v34  ;;  %v13258_v12 = vld [vmem:[#allocation172_spill] sm:$0xff]  ;;  %v3397_v43 = vadd.f32 %v10287_v3, %v10257_v8  ;;  %v3498_v31 = vadd.f32 %v10275_v30, %v3403_v18  ;;  %v13262_v3 = vld [vmem:[#allocation78_spill] sm:$0xff]  ;;  %v13271_v18 = vld [vmem:[#allocation17_spill] sm:$0xff] }
 0x581   : > { %3740 = vmatpush.msrb.mxu0 %v10354_v4  ;;  %v10473_v22 = vpop.f32.mrf.mxu0  ;;  %v2864_v57 = vadd.f32 %v13252_v44, %v2769_v56  ;;  %v2858_v10 = vadd.f32 %v13258_v12, %v2763_v35  ;;  %v3573_v53 = vmax.f32 %v2861_v52, %v3504_v41  ;;  %v2757_v23 = vadd.f32 %v13260_v37, %v13259_v20  ;;  %v13264_v56 = vld [vmem:[#allocation168_spill] sm:$0xff]  ;;  %v13282_v37 = vld [vmem:[#allocation34_spill] sm:$0xff] }
 0x582   : > { %3786 = vmatpush.msra.mxu2 %v3581_v62  ;;  %4076 = vmatpush.msra.mxu1 %v3581_v62  ;;  %v2855_v54 = vadd.f32 %v13261_v28, %v2760_v47  ;;  %v3394_v62 = vadd.f32 %v10269_v39, %v10241_v27  ;;  %v3495_v8 = vadd.f32 %v10259_v45, %v3400_v19  ;;  %v13265_v45 = vld [vmem:[#allocation42_spill] sm:$0xff]  ;;  %v13266_v39 = vld [vmem:[#allocation47_spill] sm:$0xff]  ;;  %v13274_v35 = vld [vmem:[#allocation68_spill] sm:$0xff] }
 0x583   : > { %3741 = vmatpush.msrb.mxu0 %v10336_v46  ;;  %v3575_v7 = vmax.f32 %v2864_v57, %v3507_v49  ;;  %v3571_v30 = vmax.f32 %v2858_v10, %v3501_v16  ;;  %v2754_v48 = vadd.f32 %v13263_v5, %v13262_v3  ;;  %v2852_v60 = vadd.f32 %v13264_v56, %v2757_v23  ;;  %v13267_v49 = vld [vmem:[#allocation73_spill] sm:$0xff]  ;;  %v13270_v57 = vld [vmem:[#allocation76_spill] sm:$0xff]  ;;  %v13279_v10 = vld [vmem:[#allocation63_spill] sm:$0xff] }
 0x584   : > { %3787 = vmatpush.msra.mxu2 %v3579_v9  ;;  %4077 = vmatpush.msra.mxu1 %v3579_v9  ;;  %v3391_v27 = vadd.f32 %v10253_v25, %v10222_v58  ;;  %v3569_v17 = vmax.f32 %v2855_v54, %v3498_v31  ;;  %v13268_v9 = vld [vmem:[#allocation138_spill] sm:$0xff]  ;;  %v10542_v44 = vpop.f32.mrf.mxu1  ;;  %v3388_v41 = vadd.f32 %v13271_v18, %v13270_v57  ;;  %v13273_v58 = vld [vmem:[#allocation81_spill] sm:$0xff]  ;;  %v13276_v16 = vld [vmem:[#allocation164_spill] sm:$0xff] }
 0x585   : > { %3742 = vmatpush.msrb.mxu0 %v10316_v32  ;;  %v2751_v1 = vadd.f32 %v13268_v9, %v13267_v49  ;;  %v2849_v42 = vadd.f32 %v13269_v38, %v2754_v48  ;;  %v3567_v25 = vmax.f32 %v2852_v60, %v3495_v8  ;;  %v2748_v52 = vadd.f32 %v13275_v24, %v13274_v35  ;;  %v13277_v34 = vld [vmem:[#allocation84_spill] sm:$0xff]  ;;  %v13285_v3 = vld [vmem:[#allocation15_spill] sm:$0xff]  ;;  %v13289_v49 = vld [vmem:[#allocation89_spill] sm:$0xff] }
 0x586   : > { %3788 = vmatpush.msra.mxu2 %v3577_v6  ;;  %4078 = vmatpush.msra.mxu1 %v3577_v6  ;;  %v13272_v6 = vld [vmem:[#allocation44_spill] sm:$0xff]  ;;  %v3486_v63 = vadd.f32 %v13277_v34, %v3391_v27  ;;  %v3483_v23 = vadd.f32 %v13282_v37, %v3388_v41  ;;  %v13286_v56 = vld [vmem:[#allocation79_spill] sm:$0xff]  ;;  %v13291_v38 = vld [vmem:[#allocation38_spill] sm:$0xff] }
 0x587   : > { %3743 = vmatpush.msrb.mxu0 %v10296_v50  ;;  %v10509_v59 = vpop.f32.mrf.mxu2  ;;  %v3489_v26 = vadd.f32 %v13272_v6, %v3394_v62  ;;  %v13278_v47 = vld [vmem:[#allocation16_spill] sm:$0xff]  ;;  %v10570_v62 = vld [vmem:[%s12720_s5 + $0x70] sm:$0xff]  ;;  %v10595_v9 = vld [vmem:[%s12720_s5 + $0x80] sm:$0xff] }
 0x588   : > { %3789 = vmatpush.msra.mxu2 %v3575_v7  ;;  %4079 = vmatpush.msra.mxu1 %v3575_v7  ;;  %v2846_v7 = vadd.f32 %v13276_v16, %v2751_v1  ;;  %v13283_v28 = vld [vmem:[#allocation40_spill] sm:$0xff]  ;;  %v13290_v1 = vld [vmem:[#allocation66_spill] sm:$0xff]  ;;  %v10625_v35 = vld [vmem:[%s12720_s5 + $0x90] sm:$0xff] }
 0x589   : > { %3962 = vmatpush.msra.mxu0 %v10277_v2  ;;  %v10527_v2 = vld [vmem:[%s12720_s5 + $0x60] sm:$0xff]  ;;  %v10532_v15 = vpop.f32.mrf.mxu0  ;;  %v13284_v8 = vld [vmem:[#allocation160_spill] sm:$0xff]  ;;  %v13293_v57 = vld [vmem:[#allocation26_spill] sm:$0xff] }
 0x58a   : > { %6715 = vmatmul.msk.f32.vlgmr.msrb.gmra.mxu0 %vm3632_vm6, %v10503_v21  ;;  %3790 = vmatpush.msra.mxu2 %v3573_v53  ;;  %v3563_v54 = vmax.f32 %v2846_v7, %v3489_v26  ;;  %v10581_v27 = vld [vmem:[%s12720_s5 + $0x28] sm:$0xff]  ;;  %v10608_v18 = vld [vmem:[%s12720_s5 + $0x38] sm:$0xff]  ;;  %v13294_v26 = vld [vmem:[#allocation69_spill] sm:$0xff] }
 0x58b   : > { %3963 = vmatpush.msra.mxu0 %v10261_v51  ;;  %4080 = vmatpush.msra.mxu1 %v3573_v53  ;;  %v3492_v51 = vadd.f32 %v13265_v45, %v3397_v43  ;;  %v13280_v43 = vld [vmem:[#allocation132_spill] sm:$0xff]  ;;  %v13281_v53 = vld [vmem:[#allocation162_spill] sm:$0xff] }
 0x58c   : > { %3706 = vmatmul.f32.gmra.mxu3 %v10527_v2  ;;  %3791 = vmatpush.msra.mxu2 %v3571_v30  ;;  %v2745_v31 = vadd.f32 %v13280_v43, %v13279_v10  ;;  %v2843_v20 = vadd.f32 %v13281_v53, %v2748_v52  ;;  %v10583_v45 = vpop.f32.mrf.mxu1  ;;  %v13297_v24 = vld [vmem:[#allocation12_spill] sm:$0xff]  ;;  %v13299_v52 = vld [vmem:[#allocation57_spill] sm:$0xff]  ;;  %v10674_v43 = vld [vmem:[%s12720_s5 + $0xc0] sm:$0xff] }
 0x58d   : > { %3964 = vmatpush.msra.mxu0 %v13266_v39  ;;  %4081 = vmatpush.msra.mxu1 %v3571_v30  ;;  %v3565_v12 = vmax.f32 %v2849_v42, %v3492_v51  ;;  %v13287_v39 = vld [vmem:[#allocation36_spill] sm:$0xff]  ;;  %v13292_v42 = vld [vmem:[#allocation86_spill] sm:$0xff] }
 0x58e   : > { %3792 = vmatpush.msra.mxu2 %v3569_v17  ;;  %v2840_v30 = vadd.f32 %v13284_v8, %v2745_v31  ;;  %v3561_v5 = vmax.f32 %v2843_v20, %v3486_v63  ;;  %v10636_v16 = vld [vmem:[%s12720_s5 + $0x48] sm:$0xff]  ;;  %v13300_v63 = vld [vmem:[#allocation46_spill] sm:$0xff]  ;;  %v13302_v8 = vld [vmem:[#allocation149_spill] sm:$0xff] }
 0x58f   : > { %3965 = vmatpush.msra.mxu0 %v13273_v58  ;;  %4082 = vmatpush.msra.mxu1 %v3569_v17  ;;  %v10555_v19 = vpop.f32.mrf.mxu2  ;;  %v13288_v17 = vld [vmem:[#allocation14_spill] sm:$0xff]  ;;  %v10669_v10 = vld [vmem:[%s12720_s5 + $0x68] sm:$0xff] }
 0x590   : > { %3793 = vmatpush.msra.mxu2 %v3567_v25  ;;  %v3559_v60 = vmax.f32 %v2840_v30, %v3483_v23  ;;  %v10683_v53 = vld [vmem:[%s12720_s5 + $0x78] sm:$0xff]  ;;  %v13303_v30 = vld [vmem:[#allocation184_spill] sm:$0xff] }
 0x591   : > { %3966 = vmatpush.msra.mxu0 %v13278_v47  ;;  %4083 = vmatpush.msra.mxu1 %v3567_v25  ;;  %v10575_v48 = vpop.f32.mrf.mxu0  ;;  %v13295_v25 = vld [vmem:[#allocation28_spill] sm:$0xff]  ;;  %v10660_v47 = vld [vmem:[%s12720_s5 + $0xb0] sm:$0xff] }
 0x592   : > { %6716 = vmatmul.msk.f32.gmra.mxu0 %vm3632_vm6, %v10551_v33  ;;  %3794 = vmatpush.msra.mxu2 %v3565_v12 }
 0x593   : > { %3967 = vmatpush.msra.mxu0 %v13283_v28  ;;  %4084 = vmatpush.msra.mxu1 %v3565_v12  ;;  %v13301_v12 = vld [vmem:[#allocation98_spill] sm:$0xff]  ;;  %v10691_v28 = vld [vmem:[%s12720_s5 + $0x88] sm:$0xff] }
 0x594   : > { %3709 = vmatmul.f32.gmra.mxu3 %v10570_v62  ;;  %3795 = vmatpush.msra.mxu2 %v3563_v54  ;;  %v10616_v58 = vpop.f32.mrf.mxu1 }
 0x595   : > { %3968 = vmatpush.msra.mxu0 %v13285_v3  ;;  %4085 = vmatpush.msra.mxu1 %v3563_v54  ;;  %v2814_v3 = vadd.f32 %v13303_v30, %v13302_v8 }
 0x596   : > { %3796 = vmatpush.msra.mxu2 %v3561_v5 }
 0x597   : > { %3969 = vmatpush.msra.mxu0 %v13286_v56  ;;  %4086 = vmatpush.msra.mxu1 %v3561_v5  ;;  %v10585_v51 = vpop.f32.mrf.mxu2 }
 0x598   : > { %3797 = vmatpush.msra.mxu2 %v3559_v60 }
 0x599   : > { %3970 = vmatpush.msra.mxu0 %v13287_v39  ;;  %4087 = vmatpush.msra.mxu1 %v3559_v60  ;;  %v10610_v41 = vpop.f32.mrf.mxu0  ;;  %v13304_v60 = vld [vmem:[#allocation146_spill] sm:$0xff]  ;;  %v13305_v39 = vld [vmem:[#allocation183_spill] sm:$0xff] }
 0x59a   : > { %6717 = vmatmul.msk.f32.gmra.mxu0 %vm3632_vm6, %v10581_v27  ;;  %3798 = vmatpush.msra.mxu2 %v13289_v49 }
 0x59b   : > { %3971 = vmatpush.msra.mxu0 %v13288_v17  ;;  %4088 = vmatpush.msra.mxu1 %v13289_v49  ;;  %v2811_v17 = vadd.f32 %v13305_v39, %v13304_v60  ;;  %v3436_v60 = vadd.f32 %v10555_v19, %v10473_v22  ;;  %v13325_v22 = vld [vmem:[#allocation22_spill] sm:$0xff] }
 0x59c   : > { %3712 = vmatmul.f32.gmra.mxu3 %v10595_v9  ;;  %3799 = vmatpush.msra.mxu2 %v13291_v38 }
 0x59d   : > { %3972 = vmatpush.msra.mxu0 %v13290_v1  ;;  %4089 = vmatpush.msra.mxu1 %v13291_v38 }
 0x59e   : > { %3800 = vmatmul.f32.vlgmr.msra.gmra.mxu2 %v13292_v42 }
 0x59f   : > { %3973 = vmatpush.msra.mxu0 %v13293_v57  ;;  %4024 = vmatpush.msrb.mxu2 %v10428_v14  ;;  %v10612_v6 = vpop.f32.mrf.mxu2  ;;  %v13296_v14 = vld [vmem:[#allocation18_spill] sm:$0xff] }
 0x5a1   : > { %3974 = vmatpush.msra.mxu0 %v13294_v26  ;;  %4025 = vmatpush.msrb.mxu2 %v10412_v55  ;;  %v13298_v55 = vld [vmem:[#allocation94_spill] sm:$0xff]  ;;  %v3352_v34 = vpop.f32.mrf.mxu0  ;;  %v13307_v26 = vld [vmem:[#allocation143_spill] sm:$0xff] }
 0x5a2   : > { %6718 = vmatmul.msk.f32.gmra.mxu0 %vm3632_vm6, %v10608_v18 }
 0x5a3   : > { %3975 = vmatpush.msra.mxu0 %v13295_v25  ;;  %4026 = vmatpush.msrb.mxu2 %v13296_v14  ;;  %v13308_v25 = vld [vmem:[#allocation182_spill] sm:$0xff] }
 0x5a4   : > { %3715 = vmatmul.f32.gmra.mxu3 %v10625_v35  ;;  %v2808_v14 = vadd.f32 %v13308_v25, %v13307_v26  ;;  %v13323_v26 = vld [vmem:[#allocation129_spill] sm:$0xff] }
 0x5a5   : > { %3976 = vmatpush.msra.mxu0 %v13297_v24  ;;  %4027 = vmatpush.msrb.mxu2 %v10388_v36  ;;  %v10645_v36 = vld [vmem:[%s12720_s5 + $0xa0] sm:$0xff]  ;;  %v13309_v24 = vld [vmem:[#allocation30_spill] sm:$0xff]  ;;  %v13324_v25 = vld [vmem:[#allocation173_spill] sm:$0xff] }
 0x5a6   : > { %3803 = vmatmul.f32.gmra.mxu2 %v13298_v55  ;;  %v2906_v55 = vadd.f32 %v13309_v24, %v2811_v17 }
 0x5a7   : > { %3977 = vmatpush.msra.mxu0 %v13299_v52  ;;  %4028 = vmatpush.msrb.mxu2 %v10376_v40  ;;  %v3444_v7 = vpop.f32.mrf.mxu2  ;;  %v3542_v40 = vpop.f32.mrf.mxu1 }
 0x5a8   : > { %v3445_v52 = vadd.f32 %v3444_v7, %v10610_v41  ;;  %v13313_v41 = vld [vmem:[#allocation137_spill] sm:$0xff]  ;;  %v13314_v7 = vld [vmem:[#allocation179_spill] sm:$0xff] }
 0x5a9   : > { %4029 = vmatpush.msrb.mxu2 %v10368_v29  ;;  %v10654_v29 = vld [vmem:[%s12720_s5 + $0x58] sm:$0xff] }
 0x5aa   : > { %6719 = vmatmul.msk.f32.gmra.mxu0 %vm3632_vm6, %v10636_v16  ;;  %v3540_v30 = vadd.f32 %v10616_v58, %v3445_v52 }
 0x5ab   : > { %4030 = vmatpush.msrb.mxu2 %v10354_v4 }
 0x5ac   : > { %3718 = vmatmul.f32.gmra.mxu3 %v10645_v36 }
 0x5ad   : > { %4031 = vmatpush.msrb.mxu2 %v10336_v46  ;;  %v3355_v46 = vpop.f32.mrf.mxu0 }
 0x5ae   : > { %3806 = vmatmul.f32.gmra.mxu2 %v13300_v63 }
 0x5af   : > { %4032 = vmatpush.msrb.mxu2 %v10316_v32  ;;  %v3447_v4 = vpop.f32.mrf.mxu2  ;;  %v3545_v32 = vpop.f32.mrf.mxu1 }
 0x5b0   : > { %v3448_v38 = vadd.f32 %v3447_v4, %v3352_v34  ;;  %v3442_v34 = vadd.f32 %v10612_v6, %v10575_v48  ;;  %v13316_v6 = vld [vmem:[#allocation134_spill] sm:$0xff] }
 0x5b1   : > { %4033 = vmatpush.msrb.mxu2 %v10296_v50 }
 0x5b2   : > { %6720 = vmatmul.msk.f32.gmra.mxu0 %vm3632_vm6, %v10654_v29  ;;  %v3543_v4 = vadd.f32 %v3542_v40, %v3448_v38  ;;  %v13317_v40 = vld [vmem:[#allocation177_spill] sm:$0xff]  ;;  %v3537_v39 = vadd.f32 %v10583_v45, %v3442_v34  ;;  %v13326_v45 = vld [vmem:[#allocation91_spill] sm:$0xff] }
 0x5b3   : > { %v3430_v24 = vadd.f32 %v10464_v13, %v13326_v45  ;;  %v13331_v13 = vld [vmem:[#allocation125_spill] sm:$0xff] }
 0x5b4   : > { %3721 = vmatmul.f32.gmra.mxu3 %v10660_v47  ;;  %v6761_v45 = vld [vmem:[%s12720_s5 + $0x170] sm:$0xff] }
 0x5b5   : > { %v3358_v31 = vpop.f32.mrf.mxu0 }
 0x5b6   : > { %3809 = vmatmul.f32.gmra.mxu2 %v13301_v12  ;;  %v13310_v12 = vld [vmem:[#allocation140_spill] sm:$0xff] }
 0x5b7   : > { %v3450_v50 = vpop.f32.mrf.mxu2  ;;  %v3548_v20 = vpop.f32.mrf.mxu1 }
 0x5b8   : > { %v3451_v5 = vadd.f32 %v3450_v50, %v3355_v46  ;;  %v13311_v50 = vld [vmem:[#allocation181_spill] sm:$0xff] }
 0x5ba   : > { %6721 = vmatmul.msk.f32.gmra.mxu0 %vm3632_vm6, %v10669_v10  ;;  %v3546_v63 = vadd.f32 %v3545_v32, %v3451_v5  ;;  %v2802_v32 = vadd.f32 %v13314_v7, %v13313_v41  ;;  %v13318_v5 = vld [vmem:[#allocation13_spill] sm:$0xff]  ;;  %v13334_v7 = vld [vmem:[#allocation50_spill] sm:$0xff] }
 0x5bc   : > { %3724 = vmatmul.f32.gmra.mxu3 %v10674_v43 }
 0x5bd   : > { %v3361_v54 = vpop.f32.mrf.mxu0 }
 0x5be   : > { %3812 = vmatmul.f32.gmra.mxu2 %v10444_v11 }
 0x5bf   : > { %v3453_v37 = vpop.f32.mrf.mxu2  ;;  %v3551_v49 = vpop.f32.mrf.mxu1 }
 0x5c0   : > { %v3454_v23 = vadd.f32 %v3453_v37, %v3358_v31  ;;  %v2805_v31 = vadd.f32 %v13311_v50, %v13310_v12  ;;  %v13312_v37 = vld [vmem:[#allocation74_spill] sm:$0xff]  ;;  %v13329_v50 = vld [vmem:[#allocation64_spill] sm:$0xff] }
 0x5c2   : > { %6722 = vmatmul.msk.f32.gmra.mxu0 %vm3632_vm6, %v10683_v53  ;;  %v3549_v42 = vadd.f32 %v3548_v20, %v3454_v23  ;;  %v10713_v23 = vld [vmem:[%s12720_s5 + $0x98] sm:$0xff] }
 0x5c4   : > { %v3603_v20 = vmax.f32 %v2906_v55, %v3549_v42  ;;  %v3531_v55 = vadd.f32 %v10486_v0, %v3436_v60  ;;  %v13332_v0 = vld [vmem:[#allocation169_spill] sm:$0xff] }
 0x5c5   : > { %v2787_v34 = vadd.f32 %v13332_v0, %v13331_v13 }
 0x5c6   : > { %3815 = vmatmul.f32.gmra.mxu2 %v10478_v61  ;;  %v13306_v61 = vld [vmem:[#allocation71_spill] sm:$0xff] }
 0x5c7   : > { %v3456_v11 = vpop.f32.mrf.mxu2  ;;  %v2909_v1 = vadd.f32 %v13306_v61, %v2814_v3  ;;  %v2799_v3 = vadd.f32 %v13317_v40, %v13316_v6  ;;  %v10762_v40 = vld [vmem:[%s12720_s5 + $0xb8] sm:$0xff] }
 0x5c8   : > { %v3457_v56 = vadd.f32 %v3456_v11, %v3361_v54  ;;  %v2903_v54 = vadd.f32 %v13312_v37, %v2808_v14  ;;  %v13315_v11 = vld [vmem:[#allocation32_spill] sm:$0xff]  ;;  %v2793_v14 = vadd.f32 %v13324_v25, %v13323_v26  ;;  %v6754_v25 = vld [vmem:[%s12720_s5 + $0x138] sm:$0xff] }
 0x5c9   : > { %v2900_v8 = vadd.f32 %v13315_v11, %v2805_v31 }
 0x5ca   : > { %6723 = vmatmul.msk.f32.gmra.mxu0 %vm3632_vm6, %v10691_v28  ;;  %v3552_v57 = vadd.f32 %v3551_v49, %v3457_v56  ;;  %v3601_v48 = vmax.f32 %v2903_v54, %v3546_v63  ;;  %v2897_v56 = vadd.f32 %v13318_v5, %v2802_v32  ;;  %v13321_v49 = vld [vmem:[#allocation61_spill] sm:$0xff]  ;;  %v13328_v63 = vld [vmem:[#allocation171_spill] sm:$0xff]  ;;  %v2888_v31 = vadd.f32 %v13329_v50, %v2793_v14 }
 0x5cb   : > { %v3599_v17 = vmax.f32 %v2900_v8, %v3543_v4  ;;  %v2894_v61 = vadd.f32 %v13321_v49, %v2799_v3  ;;  %v13333_v4 = vld [vmem:[#allocation24_spill] sm:$0xff]  ;;  %v3525_v32 = vadd.f32 %v13334_v7, %v3430_v24  ;;  %v13335_v8 = vld [vmem:[#allocation185_spill] sm:$0xff]  ;;  %v10768_v3 = vpop.f32.mrf.mxu3  ;;  %v10874_v49 = vld [vmem:[%s12720_s5 + $0x118] sm:$0xff] }
 0x5cc   : > { %v3605_v46 = vmax.f32 %v2909_v1, %v3552_v57  ;;  %v13322_v1 = vld [vmem:[#allocation49_spill] sm:$0xff]  ;;  %v3597_v57 = vmax.f32 %v2897_v56, %v3540_v30  ;;  %v3591_v11 = vmax.f32 %v2888_v31, %v3531_v55  ;;  %v10840_v56 = vld [vmem:[%s12720_s5 + $0xf8] sm:$0xff]  ;;  %v6756_v24 = vld [vmem:[%s12720_s5 + $0x148] sm:$0xff] }
 0x5cd   : > { %v3433_v38 = vadd.f32 %v10509_v59, %v13322_v1  ;;  %v3595_v52 = vmax.f32 %v2894_v61, %v3537_v39  ;;  %v10745_v59 = vld [vmem:[%s12720_s5 + $0xa8] sm:$0xff] }
 0x5ce   : > { %3818 = vmatmul.f32.gmra.mxu2 %v10527_v2  ;;  %3846 = vmatpush.msra.mxu3 %v3605_v46  ;;  %v3439_v2 = vadd.f32 %v10585_v51, %v10532_v15  ;;  %v13319_v15 = vld [vmem:[#allocation131_spill] sm:$0xff] }
 0x5cf   : > { %v13320_v51 = vld [vmem:[#allocation175_spill] sm:$0xff] }
 0x5d0   : > { %3847 = vmatpush.msra.mxu3 %v3603_v20  ;;  %v2796_v58 = vadd.f32 %v13320_v51, %v13319_v15  ;;  %v3534_v42 = vadd.f32 %v10542_v44, %v3439_v2  ;;  %v13327_v44 = vld [vmem:[#allocation127_spill] sm:$0xff]  ;;  %v2882_v2 = vadd.f32 %v13335_v8, %v2787_v34  ;;  %v6762_v34 = vld [vmem:[%s12720_s5 + $0x178] sm:$0xff] }
 0x5d1   : > { %v2790_v12 = vadd.f32 %v13328_v63, %v13327_v44  ;;  %v6763_v44 = vld [vmem:[%s12720_s5 + $0x180] sm:$0xff]  ;;  %v6758_v63 = vld [vmem:[%s12720_s5 + $0x158] sm:$0xff] }
 0x5d2   : > { %6724 = vmatmul.msk.f32.gmra.mxu0 %vm3632_vm6, %v10713_v23  ;;  %3848 = vmatpush.msra.mxu3 %v3601_v48  ;;  %v2891_v19 = vadd.f32 %v13325_v22, %v2796_v58  ;;  %v3587_v6 = vmax.f32 %v2882_v2, %v3525_v32  ;;  %v6764_v32 = vld [vmem:[%s12720_s5 + $0x188] sm:$0xff]  ;;  %v6766_v2 = vld [vmem:[%s12720_s5 + $0x198] sm:$0xff] }
 0x5d3   : > { %v2885_v41 = vadd.f32 %v13333_v4, %v2790_v12 }
 0x5d4   : > { %3849 = vmatpush.msra.mxu3 %v3599_v17  ;;  %v3593_v54 = vmax.f32 %v2891_v19, %v3534_v42  ;;  %v10892_v42 = vld [vmem:[%s12720_s5 + $0x128] sm:$0xff] }
 0x5d6   : > { %3821 = vmatmul.f32.gmra.mxu2 %v10570_v62  ;;  %3850 = vmatpush.msra.mxu3 %v3597_v57  ;;  %v13330_v62 = vld [vmem:[#allocation19_spill] sm:$0xff] }
 0x5d7   : > { %v3528_v37 = vadd.f32 %v13330_v62, %v3433_v38  ;;  %v6765_v62 = vld [vmem:[%s12720_s5 + $0x190] sm:$0xff] }
 0x5d8   : > { %3851 = vmatpush.msra.mxu3 %v3595_v52 }
 0x5d9   : > { %v3589_v30 = vmax.f32 %v2885_v41, %v3528_v37  ;;  %v6760_v37 = vld [vmem:[%s12720_s5 + $0x168] sm:$0xff] }
 0x5da   : > { %6725 = vmatmul.msk.f32.gmra.mxu0 %vm3632_vm6, %v10745_v59  ;;  %3852 = vmatpush.msra.mxu3 %v3593_v54 }
 0x5dc   : > { %3853 = vmatpush.msra.mxu3 %v3591_v11 }
 0x5de   : > { %3824 = vmatmul.f32.gmra.mxu2 %v10595_v9  ;;  %3854 = vmatpush.msra.mxu3 %v3589_v30  ;;  %v10774_v9 = vld [vmem:[%s12720_s5 + $0xc8] sm:$0xff] }
 0x5e0   : > { %3855 = vmatpush.msra.mxu3 %v3587_v6 }
 0x5e1   : > { %6728 = vmatmul.msk.f32.vlgmr.msra.gmra.mxu3 %vm3632_vm6, %v10503_v21  ;;  %v6741_v21 = vld [vmem:[%s12720_s5 + $0xd0] sm:$0xff] }
 0x5e2   : > { %6726 = vmatmul.msk.f32.gmra.mxu0 %vm3632_vm6, %v10762_v40  ;;  %4136 = vmatpush.msrb.mxu3 %v3605_v46 }
 0x5e3   : > { %4090 = vmatmul.f32.vlgmr.msra.gmra.mxu1 %v6741_v21 }
 0x5e4   : > { %4137 = vmatpush.msrb.mxu3 %v3603_v20  ;;  %v10824_v20 = vld [vmem:[%s12720_s5 + $0xe8] sm:$0xff] }
 0x5e6   : > { %3827 = vmatmul.f32.gmra.mxu2 %v10625_v35  ;;  %4138 = vmatpush.msrb.mxu3 %v3601_v48  ;;  %v10783_v35 = vpop.f32.mrf.mxu3 }
 0x5e8   : > { %4139 = vmatpush.msrb.mxu3 %v3599_v17  ;;  %v10856_v17 = vld [vmem:[%s12720_s5 + $0x108] sm:$0xff] }
 0x5e9   : > { %6729 = vmatmul.msk.f32.gmra.mxu3 %vm3632_vm6, %v10551_v33  ;;  %v6743_v33 = vld [vmem:[%s12720_s5 + $0xe0] sm:$0xff] }
 0x5ea   : > { %6727 = vmatmul.msk.f32.gmra.mxu0 %vm3632_vm6, %v10774_v9  ;;  %4140 = vmatpush.msrb.mxu3 %v3597_v57 }
 0x5eb   : > { %4093 = vmatmul.f32.gmra.mxu1 %v6743_v33 }
 0x5ec   : > { %4141 = vmatpush.msrb.mxu3 %v3595_v52 }
 0x5ee   : > { %3830 = vmatmul.f32.gmra.mxu2 %v10645_v36  ;;  %4142 = vmatpush.msrb.mxu3 %v3593_v54  ;;  %v10792_v46 = vpop.f32.mrf.mxu3 }
 0x5f0   : > { %4143 = vmatpush.msrb.mxu3 %v3591_v11 }
 0x5f1   : > { %6730 = vmatmul.msk.f32.gmra.mxu3 %vm3632_vm6, %v10581_v27  ;;  %v6745_v27 = vld [vmem:[%s12720_s5 + $0xf0] sm:$0xff] }
 0x5f2   : > { %3978 = vmatmul.f32.vlgmr.msra.gmra.mxu0 %v6741_v21  ;;  %4144 = vmatpush.msrb.mxu3 %v3589_v30 }
 0x5f3   : > { %4096 = vmatmul.f32.gmra.mxu1 %v6745_v27 }
 0x5f4   : > { %4145 = vmatpush.msrb.mxu3 %v3587_v6 }
 0x5f6   : > { %3833 = vmatmul.f32.gmra.mxu2 %v10660_v47  ;;  %v10800_v36 = vpop.f32.mrf.mxu3  ;;  %v6747_v47 = vld [vmem:[%s12720_s5 + $0x100] sm:$0xff] }
 0x5f9   : > { %6731 = vmatmul.msk.f32.gmra.mxu3 %vm3632_vm6, %v10608_v18  ;;  %v10810_v18 = vld [vmem:[%s12720_s5 + $0xd8] sm:$0xff] }
 0x5fa   : > { %3981 = vmatmul.f32.gmra.mxu0 %v6743_v33 }
 0x5fb   : > { %4099 = vmatmul.f32.gmra.mxu1 %v6747_v47 }
 0x5fe   : > { %3836 = vmatmul.f32.gmra.mxu2 %v10674_v43  ;;  %v10826_v48 = vpop.f32.mrf.mxu3 }
 0x601   : > { %6732 = vmatmul.msk.f32.gmra.mxu3 %vm3632_vm6, %v10636_v16  ;;  %v6749_v16 = vld [vmem:[%s12720_s5 + $0x110] sm:$0xff] }
 0x602   : > { %3984 = vmatmul.f32.gmra.mxu0 %v6745_v27 }
 0x603   : > { %4102 = vmatmul.f32.gmra.mxu1 %v6749_v16 }
 0x606   : > { %6767 = vmatmul.msk.f32.vlgmr.msrb.gmra.mxu2 %vm3632_vm6, %v10810_v18  ;;  %v10842_v60 = vpop.f32.mrf.mxu3 }
 0x607   : > { %v10814_v43 = vpop.f32.mrf.mxu0 }
 0x609   : > { %6733 = vmatmul.msk.f32.gmra.mxu3 %vm3632_vm6, %v10654_v29  ;;  %v6751_v29 = vld [vmem:[%s12720_s5 + $0x120] sm:$0xff] }
 0x60a   : > { %3987 = vmatmul.f32.gmra.mxu0 %v6747_v47 }
 0x60b   : > { %4105 = vmatmul.f32.gmra.mxu1 %v6751_v29 }
 0x60e   : > { %6768 = vmatmul.msk.f32.gmra.mxu2 %vm3632_vm6, %v10824_v20 }
 0x60f   : > { %v10830_v5 = vpop.f32.mrf.mxu0  ;;  %v10860_v15 = vpop.f32.mrf.mxu3 }
 0x611   : > { %6734 = vmatmul.msk.f32.gmra.mxu3 %vm3632_vm6, %v10669_v10  ;;  %v6753_v10 = vld [vmem:[%s12720_s5 + $0x130] sm:$0xff] }
 0x612   : > { %3990 = vmatmul.f32.gmra.mxu0 %v6749_v16 }
 0x613   : > { %4108 = vmatmul.f32.gmra.mxu1 %v6753_v10 }
 0x616   : > { %6769 = vmatmul.msk.f32.gmra.mxu2 %vm3632_vm6, %v10840_v56 }
 0x617   : > { %v10846_v39 = vpop.f32.mrf.mxu0  ;;  %v10882_v38 = vpop.f32.mrf.mxu3 }
 0x619   : > { %6735 = vmatmul.msk.f32.gmra.mxu3 %vm3632_vm6, %v10683_v53  ;;  %v6755_v53 = vld [vmem:[%s12720_s5 + $0x140] sm:$0xff] }
 0x61a   : > { %3993 = vmatmul.f32.gmra.mxu0 %v6751_v29 }
 0x61b   : > { %4111 = vmatmul.f32.gmra.mxu1 %v6755_v53 }
 0x61e   : > { %6770 = vmatmul.msk.f32.gmra.mxu2 %vm3632_vm6, %v10856_v17 }
 0x61f   : > { %v10862_v51 = vpop.f32.mrf.mxu0  ;;  %v10908_v14 = vpop.f32.mrf.mxu3 }
 0x621   : > { %v10864_v58 = vpop.f32.mrf.mxu2  ;;  %6736 = vmatmul.msk.f32.gmra.mxu3 %vm3632_vm6, %v10691_v28  ;;  %v6757_v28 = vld [vmem:[%s12720_s5 + $0x150] sm:$0xff] }
 0x622   : > { %3996 = vmatmul.f32.gmra.mxu0 %v6753_v10 }
 0x623   : > { %4114 = vmatmul.f32.gmra.mxu1 %v6757_v28 }
 0x626   : > { %6771 = vmatmul.msk.f32.gmra.mxu2 %vm3632_vm6, %v10874_v49 }
 0x627   : > { %v10878_v61 = vpop.f32.mrf.mxu0  ;;  %v10923_v55 = vpop.f32.mrf.mxu3 }
 0x629   : > { %v10880_v1 = vpop.f32.mrf.mxu2  ;;  %6737 = vmatmul.msk.f32.gmra.mxu3 %vm3632_vm6, %v10713_v23  ;;  %v6759_v23 = vld [vmem:[%s12720_s5 + $0x160] sm:$0xff] }
 0x62a   : > { %3999 = vmatmul.f32.gmra.mxu0 %v6755_v53 }
 0x62b   : > { %4117 = vmatmul.f32.gmra.mxu1 %v6759_v23 }
 0x62e   : > { %6772 = vmatmul.msk.f32.gmra.mxu2 %vm3632_vm6, %v10892_v42 }
 0x62f   : > { %v10896_v57 = vpop.f32.mrf.mxu0  ;;  %v10939_v12 = vpop.f32.mrf.mxu3 }
 0x631   : > { %v10898_v26 = vpop.f32.mrf.mxu2  ;;  %6738 = vmatmul.msk.f32.gmra.mxu3 %vm3632_vm6, %v10745_v59 }
 0x632   : > { %13336 = vst [vmem:[#allocation53_spill] sm:$0xff] %v10898_v26  ;;  %4002 = vmatmul.f32.gmra.mxu0 %v6757_v28 }
 0x633   : > { %4120 = vmatmul.f32.gmra.mxu1 %v6761_v45 }
 0x636   : > { %6773 = vmatmul.msk.f32.gmra.mxu2 %vm3632_vm6, %v6754_v25 }
 0x637   : > { %v10911_v22 = vpop.f32.mrf.mxu0  ;;  %v10958_v0 = vpop.f32.mrf.mxu3 }
 0x639   : > { %v10913_v19 = vpop.f32.mrf.mxu2  ;;  %6739 = vmatmul.msk.f32.gmra.mxu3 %vm3632_vm6, %v10762_v40 }
 0x63a   : > { %13337 = vst [vmem:[#allocation96_spill] sm:$0xff] %v10913_v19  ;;  %4005 = vmatmul.f32.gmra.mxu0 %v6759_v23 }
 0x63b   : > { %4123 = vmatmul.f32.gmra.mxu1 %v6763_v44 }
 0x63e   : > { %6774 = vmatmul.msk.f32.gmra.mxu2 %vm3632_vm6, %v6756_v24 }
 0x63f   : > { %v10926_v52 = vpop.f32.mrf.mxu0  ;;  %v10972_v7 = vpop.f32.mrf.mxu3 }
 0x641   : > { %v10928_v59 = vpop.f32.mrf.mxu2  ;;  %6740 = vmatmul.msk.f32.gmra.mxu3 %vm3632_vm6, %v10774_v9 }
 0x642   : > { %13338 = vst [vmem:[#allocation102_spill] sm:$0xff] %v10928_v59  ;;  %4008 = vmatmul.f32.gmra.mxu0 %v6761_v45 }
 0x643   : > { %4126 = vmatmul.f32.gmra.mxu1 %v6765_v62 }
 0x646   : > { %6775 = vmatmul.msk.f32.gmra.mxu2 %vm3632_vm6, %v6758_v63 }
 0x647   : > { %v10941_v50 = vpop.f32.mrf.mxu0 }
 0x649   : > { %v10943_v31 = vpop.f32.mrf.mxu2  ;;  %6780 = vmatmul.msk.f32.vlgmr.msrb.gmra.mxu3 %vm3632_vm6, %v10810_v18 }
 0x64a   : > { %13339 = vst [vmem:[#allocation20_spill] sm:$0xff] %v10943_v31  ;;  %4011 = vmatmul.f32.gmra.mxu0 %v6763_v44 }
 0x64e   : > { %6776 = vmatmul.msk.f32.gmra.mxu2 %vm3632_vm6, %v6760_v37 }
 0x64f   : > { %v10954_v54 = vpop.f32.mrf.mxu0 }
 0x651   : > { %v10956_v13 = vpop.f32.mrf.mxu2  ;;  %6781 = vmatmul.msk.f32.gmra.mxu3 %vm3632_vm6, %v10824_v20 }
 0x652   : > { %13340 = vst [vmem:[#allocation52_spill] sm:$0xff] %v10956_v13  ;;  %4014 = vmatmul.f32.gmra.mxu0 %v6765_v62 }
 0x656   : > { %6777 = vmatmul.msk.f32.gmra.mxu2 %vm3632_vm6, %v6762_v34 }
 0x657   : > { %v10966_v4 = vpop.f32.mrf.mxu0 }
 0x659   : > { %v10968_v41 = vpop.f32.mrf.mxu2  ;;  %6782 = vmatmul.msk.f32.gmra.mxu3 %vm3632_vm6, %v10840_v56 }
 0x65a   : > { %13341 = vst [vmem:[#allocation56_spill] sm:$0xff] %v10968_v41 }
 0x65e   : > { %6778 = vmatmul.msk.f32.gmra.mxu2 %vm3632_vm6, %v6764_v32 }
 0x65f   : > { %v10978_v11 = vpop.f32.mrf.mxu0 }
 0x661   : > { %v10980_v8 = vpop.f32.mrf.mxu2  ;;  %6783 = vmatmul.msk.f32.gmra.mxu3 %vm3632_vm6, %v10856_v17 }
 0x662   : > { %13342 = vst [vmem:[#allocation100_spill] sm:$0xff] %v10980_v8 }
 0x664   : > { %v3857_v30 = vpop.f32.mrf.mxu3 }
 0x665   : > { %v10988_v6 = vadd.f32 %v3857_v30, %v10864_v58 }
 0x666   : > { %6779 = vmatmul.msk.f32.gmra.mxu2 %vm3632_vm6, %v6766_v2 }
 0x667   : > { %13343 = vst [vmem:[#allocation106_spill] sm:$0xff] %v10988_v6  ;;  %v10991_v40 = vpop.f32.mrf.mxu0 }
 0x669   : > { %v10993_v9 = vpop.f32.mrf.mxu2  ;;  %6784 = vmatmul.msk.f32.gmra.mxu3 %vm3632_vm6, %v10874_v49 }
 0x66a   : > { %13344 = vst [vmem:[#allocation23_spill] sm:$0xff] %v10993_v9 }
 0x66c   : > { %v3860_v21 = vpop.f32.mrf.mxu3 }
 0x66d   : > { %v10998_v33 = vadd.f32 %v3860_v21, %v10880_v1  ;;  %v11051_v21 = vpop.f32.mrf.mxu1 }
 0x66e   : > { %13357 = vst [vmem:[#allocation31_spill] sm:$0xff] %v11051_v21 }
 0x66f   : > { %13345 = vst [vmem:[#allocation54_spill] sm:$0xff] %v10998_v33  ;;  %v11000_v27 = vpop.f32.mrf.mxu0 }
 0x671   : > { %v11002_v47 = vpop.f32.mrf.mxu2  ;;  %6785 = vmatmul.msk.f32.gmra.mxu3 %vm3632_vm6, %v10892_v42 }
 0x672   : > { %13346 = vst [vmem:[#allocation60_spill] sm:$0xff] %v11002_v47 }
 0x674   : > { %v11006_v18 = vpop.f32.mrf.mxu3 }
 0x675   : > { %13347 = vst [vmem:[#allocation104_spill] sm:$0xff] %v11006_v18  ;;  %v11057_v26 = vpop.f32.mrf.mxu1 }
 0x676   : > { %13360 = vst [vmem:[#allocation112_spill] sm:$0xff] %v11057_v26 }
 0x677   : > { %v11010_v20 = vpop.f32.mrf.mxu0 }
 0x679   : > { %v11008_v16 = vpop.f32.mrf.mxu2  ;;  %6786 = vmatmul.msk.f32.gmra.mxu3 %vm3632_vm6, %v6754_v25 }
 0x67a   : > { %13348 = vst [vmem:[#allocation110_spill] sm:$0xff] %v11008_v16 }
 0x67c   : > { %v11013_v29 = vpop.f32.mrf.mxu3 }
 0x67d   : > { %13349 = vst [vmem:[#allocation27_spill] sm:$0xff] %v11013_v29 }
 0x67f   : > { %v11018_v10 = vpop.f32.mrf.mxu0 }
 0x681   : > { %v11015_v56 = vpop.f32.mrf.mxu2  ;;  %6787 = vmatmul.msk.f32.gmra.mxu3 %vm3632_vm6, %v6756_v24 }
 0x682   : > { %13350 = vst [vmem:[#allocation58_spill] sm:$0xff] %v11015_v56 }
 0x684   : > { %v11020_v17 = vpop.f32.mrf.mxu3 }
 0x685   : > { %13351 = vst [vmem:[#allocation65_spill] sm:$0xff] %v11020_v17  ;;  %v11061_v17 = vpop.f32.mrf.mxu1 }
 0x686   : > { %13362 = vst [vmem:[#allocation11_spill] sm:$0xff] %v11061_v17 }
 0x687   : > { %v11027_v49 = vpop.f32.mrf.mxu0 }
 0x689   : > { %v11022_v58 = vpop.f32.mrf.mxu2  ;;  %6788 = vmatmul.msk.f32.gmra.mxu3 %vm3632_vm6, %v6758_v63 }
 0x68c   : > { %v11025_v53 = vpop.f32.mrf.mxu3 }
 0x68d   : > { %13352 = vst [vmem:[#allocation108_spill] sm:$0xff] %v11025_v53  ;;  %v11065_v21 = vpop.f32.mrf.mxu1 }
 0x68e   : > { %13364 = vst [vmem:[#allocation158_spill] sm:$0xff] %v11065_v21  ;;  %v3779_v21 = vadd.f32 %v10978_v11, %v10958_v0 }
 0x68f   : > { %v11034_v42 = vpop.f32.mrf.mxu0 }
 0x691   : > { %v11029_v1 = vpop.f32.mrf.mxu2  ;;  %6789 = vmatmul.msk.f32.gmra.mxu3 %vm3632_vm6, %v6760_v37 }
 0x694   : > { %v11032_v28 = vpop.f32.mrf.mxu3 }
 0x695   : > { %13353 = vst [vmem:[#allocation55_spill] sm:$0xff] %v11032_v28  ;;  %v11069_v41 = vpop.f32.mrf.mxu1 }
 0x696   : > { %13366 = vst [vmem:[#allocation67_spill] sm:$0xff] %v11069_v41 }
 0x697   : > { %v3994_v24 = vpop.f32.mrf.mxu0 }
 0x699   : > { %v11036_v23 = vpop.f32.mrf.mxu2  ;;  %6790 = vmatmul.msk.f32.gmra.mxu3 %vm3632_vm6, %v6762_v34 }
 0x69c   : > { %v11039_v25 = vpop.f32.mrf.mxu3 }
 0x69d   : > { %13354 = vst [vmem:[#allocation10_spill] sm:$0xff] %v11039_v25  ;;  %v11075_v17 = vpop.f32.mrf.mxu1 }
 0x69e   : > { %13369 = vst [vmem:[#allocation122_spill] sm:$0xff] %v11075_v17 }
 0x69f   : > { %v3997_v62 = vpop.f32.mrf.mxu0 }
 0x6a1   : > { %v11041_v45 = vpop.f32.mrf.mxu2  ;;  %6791 = vmatmul.msk.f32.gmra.mxu3 %vm3632_vm6, %v6764_v32 }
 0x6a4   : > { %v11044_v44 = vpop.f32.mrf.mxu3 }
 0x6a5   : > { %13355 = vst [vmem:[#allocation114_spill] sm:$0xff] %v11044_v44  ;;  %v11089_v0 = vpop.f32.mrf.mxu1 }
 0x6a7   : > { %v4000_v6 = vpop.f32.mrf.mxu0 }
 0x6a9   : > { %v11046_v63 = vpop.f32.mrf.mxu2  ;;  %6792 = vmatmul.msk.f32.gmra.mxu3 %vm3632_vm6, %v6766_v2 }
 0x6ac   : > { %v11049_v37 = vpop.f32.mrf.mxu3 }
 0x6ad   : > { %13356 = vst [vmem:[#allocation155_spill] sm:$0xff] %v11049_v37 }
 0x6af   : > { %v4003_v32 = vpop.f32.mrf.mxu0 }
 0x6b1   : > { %v4050_v30 = vpop.f32.mrf.mxu2 }
 0x6b4   : > { %v11053_v34 = vpop.f32.mrf.mxu3 }
 0x6b5   : > { %13358 = vst [vmem:[#allocation62_spill] sm:$0xff] %v11053_v34 }
 0x6b7   : > { %v4006_v59 = vpop.f32.mrf.mxu0 }
 0x6b9   : > { %v4053_v33 = vpop.f32.mrf.mxu2 }
 0x6bc   : > { %v11055_v18 = vpop.f32.mrf.mxu3 }
 0x6bd   : > { %13359 = vst [vmem:[#allocation70_spill] sm:$0xff] %v11055_v18 }
 0x6bf   : > { %v4009_v28 = vpop.f32.mrf.mxu0 }
 0x6c1   : > { %v4056_v29 = vpop.f32.mrf.mxu2 }
 0x6c2   : > { %v4057_v11 = vadd.f32 %v4056_v29, %v4000_v6 }
 0x6c4   : > { %v11059_v19 = vpop.f32.mrf.mxu3 }
 0x6c5   : > { %13361 = vst [vmem:[#allocation59_spill] sm:$0xff] %v11059_v19 }
 0x6c7   : > { %v4012_v44 = vpop.f32.mrf.mxu0 }
 0x6c9   : > { %v4059_v2 = vpop.f32.mrf.mxu2 }
 0x6cc   : > { %v11063_v53 = vpop.f32.mrf.mxu3 }
 0x6cd   : > { %13363 = vst [vmem:[#allocation118_spill] sm:$0xff] %v11063_v53 }
 0x6cf   : > { %v4015_v9 = vpop.f32.mrf.mxu0 }
 0x6d1   : > { %v4062_v31 = vpop.f32.mrf.mxu2 }
 0x6d2   : > { %v4063_v41 = vadd.f32 %v4062_v31, %v4006_v59  ;;  %v4054_v59 = vadd.f32 %v4053_v33, %v3997_v62  ;;  %v11117_v33 = vpop.f32.mrf.mxu1 }
 0x6d4   : > { %v11067_v13 = vpop.f32.mrf.mxu3 }
 0x6d5   : > { %13365 = vst [vmem:[#allocation35_spill] sm:$0xff] %v11067_v13  ;;  %v3782_v13 = vadd.f32 %v10991_v40, %v10972_v7  ;;  %v3770_v7 = vadd.f32 %v10941_v50, %v10908_v14  ;;  %v3764_v14 = vadd.f32 %v10911_v22, %v10860_v15  ;;  %v4051_v50 = vadd.f32 %v4050_v30, %v3994_v24  ;;  %v11162_v24 = vld [vmem:[%s12721_s6 + $0x18] sm:$0xff]  ;;  %v11169_v30 = vld [vmem:[%s12721_s6 + $0x20] sm:$0xff] }
 0x6d6   : > { %v3758_v15 = vadd.f32 %v10878_v61, %v10826_v48  ;;  %v4045_v22 = vadd.f32 %v11041_v45, %v11027_v49  ;;  %v3752_v48 = vadd.f32 %v10846_v39, %v10792_v46  ;;  %v4039_v61 = vadd.f32 %v11029_v1, %v11010_v20 }
 0x6d7   : > { %v3746_v46 = vadd.f32 %v10814_v43, %v10768_v3  ;;  %v11138_v3 = vld [vmem:[%s12721_s6] sm:$0xff] }
 0x6d9   : > { %v4065_v25 = vpop.f32.mrf.mxu2 }
 0x6da   : > { %v4066_v47 = vadd.f32 %v4065_v25, %v4009_v28  ;;  %v4115_v28 = vpop.f32.mrf.mxu1 }
 0x6dc   : > { %v11071_v26 = vpop.f32.mrf.mxu3 }
 0x6dd   : > { %13367 = vst [vmem:[#allocation75_spill] sm:$0xff] %v11071_v26  ;;  %v3776_v26 = vadd.f32 %v10966_v4, %v10939_v12  ;;  %v4198_v4 = vmax.f32 %v3764_v14, %v4054_v59  ;;  %v11180_v59 = vld [vmem:[%s12721_s6 + $0x28] sm:$0xff] }
 0x6df   : > { %v4206_v17 = vmax.f32 %v3776_v26, %v4066_v47 }
 0x6e1   : > { %v4068_v8 = vpop.f32.mrf.mxu2  ;;  %v11101_v12 = vmax.f32 %v4206_v17, 0.0 }
 0x6e2   : > { %v4069_v34 = vadd.f32 %v4068_v8, %v4012_v44  ;;  %v3773_v8 = vadd.f32 %v10954_v54, %v10923_v55  ;;  %v4060_v44 = vadd.f32 %v4059_v2, %v4003_v32  ;;  %v3767_v55 = vadd.f32 %v10926_v52, %v10882_v38  ;;  %v13370_v2 = vld [vmem:[#allocation110_spill] sm:$0xff] }
 0x6e3   : > { %v3761_v38 = vadd.f32 %v10896_v57, %v10842_v60  ;;  %v4048_v52 = vadd.f32 %v11046_v63, %v11034_v42  ;;  %v3755_v60 = vadd.f32 %v10862_v51, %v10800_v36  ;;  %v4042_v57 = vadd.f32 %v11036_v23, %v11018_v10  ;;  %v11148_v42 = vld [vmem:[%s12721_s6 + $0x8] sm:$0xff] }
 0x6e4   : > { %v11073_v37 = vpop.f32.mrf.mxu3  ;;  %v4208_v56 = vmax.f32 %v3779_v21, %v4069_v34  ;;  %v4204_v40 = vmax.f32 %v3773_v8, %v4063_v41  ;;  %v4202_v26 = vmax.f32 %v3770_v7, %v4060_v44  ;;  %v4200_v31 = vmax.f32 %v3767_v55, %v4057_v11  ;;  %v13371_v8 = vld [vmem:[#allocation70_spill] sm:$0xff]  ;;  %v13373_v11 = vld [vmem:[#allocation59_spill] sm:$0xff] }
 0x6e5   : > { %13368 = vst [vmem:[#allocation116_spill] sm:$0xff] %v11073_v37  ;;  %v4196_v6 = vmax.f32 %v3761_v38, %v4051_v50  ;;  %v4194_v47 = vmax.f32 %v3758_v15, %v4048_v52  ;;  %v4192_v29 = vmax.f32 %v3755_v60, %v4045_v22  ;;  %v3749_v36 = vadd.f32 %v10830_v5, %v10783_v35  ;;  %v13372_v7 = vld [vmem:[#allocation58_spill] sm:$0xff]  ;;  %v13376_v38 = vld [vmem:[#allocation23_spill] sm:$0xff] }
 0x6e6   : > { %v4230_v54 = vmax.f32 %v4204_v40, 0.0  ;;  %v4228_v41 = vmax.f32 %v4202_v26, 0.0  ;;  %v4036_v51 = vadd.f32 %v11022_v58, %v11000_v27  ;;  %v4190_v10 = vmax.f32 %v3752_v48, %v4042_v57  ;;  %v4118_v58 = vpop.f32.mrf.mxu1  ;;  %v13374_v26 = vld [vmem:[#allocation60_spill] sm:$0xff]  ;;  %v13377_v52 = vld [vmem:[#allocation155_spill] sm:$0xff] }
 0x6e7   : > { %v4188_v39 = vmax.f32 %v3749_v36, %v4039_v61  ;;  %v4218_v20 = vmax.f32 %v4192_v29, 0.0  ;;  %v3891_v44 = vadd.f32 %v13371_v8, %v13370_v2  ;;  %v3894_v40 = vadd.f32 %v13373_v11, %v13372_v7  ;;  %v13380_v48 = vld [vmem:[#allocation56_spill] sm:$0xff]  ;;  %v13381_v61 = vld [vmem:[#allocation10_spill] sm:$0xff]  ;;  %v13393_v2 = vld [vmem:[#allocation27_spill] sm:$0xff] }
 0x6e8   : > { %v4186_v49 = vmax.f32 %v3746_v46, %v4036_v51  ;;  %v4216_v1 = vmax.f32 %v4190_v10, 0.0  ;;  %v3879_v29 = vadd.f32 %v13381_v61, %v13380_v48  ;;  %v13382_v10 = vld [vmem:[#allocation52_spill] sm:$0xff]  ;;  %v13403_v48 = vld [vmem:[#allocation106_spill] sm:$0xff] }
 0x6e9   : > { %v4071_v53 = vpop.f32.mrf.mxu2  ;;  %v4214_v35 = vmax.f32 %v4188_v39, 0.0  ;;  %v13384_v39 = vld [vmem:[#allocation122_spill] sm:$0xff] }
 0x6ea   : > { %v4072_v19 = vadd.f32 %v4071_v53, %v4015_v9  ;;  %v4226_v9 = vmax.f32 %v4200_v31, 0.0  ;;  %v4220_v53 = vmax.f32 %v4194_v47, 0.0  ;;  %v4212_v27 = vmax.f32 %v4186_v49, 0.0 }
 0x6ec   : > { %v4210_v18 = vmax.f32 %v3782_v13, %v4072_v19  ;;  %v11083_v37 = vpop.f32.mrf.mxu3  ;;  %v11095_v19 = vmax.f32 %v4208_v56, 0.0  ;;  %v4222_v56 = vmax.f32 %v4196_v6, 0.0  ;;  %v13378_v6 = vld [vmem:[#allocation100_spill] sm:$0xff] }
 0x6ee   : > { %v11087_v16 = vmax.f32 %v4210_v18, 0.0  ;;  %v4224_v18 = vmax.f32 %v4198_v4, 0.0  ;;  %v4121_v25 = vpop.f32.mrf.mxu1  ;;  %v3885_v4 = vadd.f32 %v13377_v52, %v13376_v38  ;;  %v6849_v52 = vld [vmem:[%s12721_s6 + $0xb8] sm:$0xff] }
 0x6f0   : > { %4286 = vmatpush.msrb.mxu0 %v11087_v16  ;;  %4576 = vmatpush.msrb.mxu1 %v11087_v16 }
 0x6f2   : > { %4287 = vmatpush.msrb.mxu0 %v11095_v19  ;;  %4577 = vmatpush.msrb.mxu1 %v11095_v19 }
 0x6f4   : > { %4288 = vmatpush.msrb.mxu0 %v11101_v12  ;;  %4578 = vmatpush.msrb.mxu1 %v11101_v12  ;;  %v11107_v13 = vpop.f32.mrf.mxu3 }
 0x6f6   : > { %4289 = vmatpush.msrb.mxu0 %v4230_v54  ;;  %4579 = vmatpush.msrb.mxu1 %v4230_v54  ;;  %v4124_v63 = vpop.f32.mrf.mxu1 }
 0x6f8   : > { %4290 = vmatpush.msrb.mxu0 %v4228_v41  ;;  %4580 = vmatpush.msrb.mxu1 %v4228_v41 }
 0x6fa   : > { %4291 = vmatpush.msrb.mxu0 %v4226_v9  ;;  %4581 = vmatpush.msrb.mxu1 %v4226_v9 }
 0x6fc   : > { %4292 = vmatpush.msrb.mxu0 %v4224_v18  ;;  %4582 = vmatpush.msrb.mxu1 %v4224_v18  ;;  %v11127_v17 = vpop.f32.mrf.mxu3 }
 0x6fe   : > { %4293 = vmatpush.msrb.mxu0 %v4222_v56  ;;  %4583 = vmatpush.msrb.mxu1 %v4222_v56  ;;  %v4127_v21 = vpop.f32.mrf.mxu1 }
 0x700   : > { %4294 = vmatpush.msrb.mxu0 %v4220_v53  ;;  %4584 = vmatpush.msrb.mxu1 %v4220_v53 }
 0x702   : > { %4295 = vmatpush.msrb.mxu0 %v4218_v20  ;;  %4585 = vmatpush.msrb.mxu1 %v4218_v20 }
 0x704   : > { %4296 = vmatpush.msrb.mxu0 %v4216_v1  ;;  %4586 = vmatpush.msrb.mxu1 %v4216_v1  ;;  %v4168_v5 = vpop.f32.mrf.mxu3 }
 0x705   : > { %v4169_v57 = vadd.f32 %v4168_v5, %v11117_v33  ;;  %v11208_v33 = vld [vmem:[%s12721_s6 + $0x30] sm:$0xff] }
 0x706   : > { %4297 = vmatpush.msrb.mxu0 %v4214_v35  ;;  %4587 = vmatpush.msrb.mxu1 %v4214_v35 }
 0x707   : > { %v4201_v49 = vmax.f32 %v3879_v29, %v4169_v57 }
 0x708   : > { %4298 = vmatpush.msrb.mxu0 %v4212_v27  ;;  %4588 = vmatpush.msrb.mxu1 %v4212_v27 }
 0x709   : > { %6793 = vmatmul.msk.f32.vlgmr.msrb.gmra.mxu0 %vm4249_vm7, %v11138_v3 }
 0x70a   : > { %4431 = vmatpush.msra.mxu0 %v11087_v16  ;;  %v11155_v16 = vld [vmem:[%s12721_s6 + $0x10] sm:$0xff] }
 0x70c   : > { %4432 = vmatpush.msra.mxu0 %v11095_v19  ;;  %v4171_v43 = vpop.f32.mrf.mxu3 }
 0x70e   : > { %4433 = vmatpush.msra.mxu0 %v11101_v12  ;;  %v13375_v12 = vld [vmem:[#allocation62_spill] sm:$0xff] }
 0x70f   : > { %v3888_v14 = vadd.f32 %v13375_v12, %v13374_v26  ;;  %v13397_v26 = vld [vmem:[#allocation104_spill] sm:$0xff] }
 0x710   : > { %4434 = vmatpush.msra.mxu0 %v4230_v54 }
 0x711   : > { %6794 = vmatmul.msk.f32.gmra.mxu0 %vm4249_vm7, %v11148_v42 }
 0x712   : > { %4435 = vmatpush.msra.mxu0 %v4228_v41  ;;  %v4172_v41 = vadd.f32 %v4171_v43, %v4115_v28  ;;  %v13386_v28 = vld [vmem:[#allocation108_spill] sm:$0xff] }
 0x714   : > { %4436 = vmatpush.msra.mxu0 %v4226_v9  ;;  %v4174_v23 = vpop.f32.mrf.mxu3  ;;  %v13379_v9 = vld [vmem:[#allocation114_spill] sm:$0xff] }
 0x715   : > { %v4175_v50 = vadd.f32 %v4174_v23, %v4118_v58  ;;  %v3882_v60 = vadd.f32 %v13379_v9, %v13378_v6  ;;  %v13388_v58 = vld [vmem:[#allocation102_spill] sm:$0xff]  ;;  %v13389_v23 = vld [vmem:[#allocation65_spill] sm:$0xff] }
 0x716   : > { %4437 = vmatpush.msra.mxu0 %v4224_v18 }
 0x717   : > { %v4205_v47 = vmax.f32 %v3885_v4, %v4175_v50  ;;  %v4203_v36 = vmax.f32 %v3882_v60, %v4172_v41  ;;  %v13399_v50 = vld [vmem:[#allocation35_spill] sm:$0xff]  ;;  %v13401_v41 = vld [vmem:[#allocation118_spill] sm:$0xff] }
 0x718   : > { %4438 = vmatpush.msra.mxu0 %v4222_v56  ;;  %v4166_v56 = vadd.f32 %v11127_v17, %v11089_v0  ;;  %v6848_v17 = vld [vmem:[%s12721_s6 + $0xb0] sm:$0xff]  ;;  %v13400_v4 = vld [vmem:[#allocation31_spill] sm:$0xff]  ;;  %v13402_v60 = vld [vmem:[#allocation54_spill] sm:$0xff] }
 0x719   : > { %6795 = vmatmul.msk.f32.gmra.mxu0 %vm4249_vm7, %v11155_v16  ;;  %v11216_v0 = vmax.f32 %v4205_v47, 0.0  ;;  %6859 = vmatmul.msk.f32.vlgmr.msrb.gmra.mxu1 %vm4249_vm7, %v6848_v17  ;;  %v4229_v43 = vmax.f32 %v4203_v36, 0.0 }
 0x71a   : > { %4439 = vmatpush.msra.mxu0 %v4220_v53  ;;  %v13383_v53 = vld [vmem:[#allocation55_spill] sm:$0xff] }
 0x71b   : > { %v3876_v46 = vadd.f32 %v13383_v53, %v13382_v10  ;;  %v6850_v10 = vld [vmem:[%s12721_s6 + $0xc0] sm:$0xff] }
 0x71c   : > { %4440 = vmatpush.msra.mxu0 %v4218_v20  ;;  %v4177_v45 = vpop.f32.mrf.mxu3  ;;  %v4163_v20 = vadd.f32 %v11107_v13, %v13384_v39  ;;  %v13387_v13 = vld [vmem:[#allocation67_spill] sm:$0xff]  ;;  %v6851_v39 = vld [vmem:[%s12721_s6 + $0xc8] sm:$0xff] }
 0x71d   : > { %v4178_v19 = vadd.f32 %v4177_v45, %v4121_v25  ;;  %v4160_v5 = vadd.f32 %v11083_v37, %v13387_v13  ;;  %v3870_v25 = vadd.f32 %v13389_v23, %v13388_v58  ;;  %v13390_v45 = vld [vmem:[#allocation158_spill] sm:$0xff]  ;;  %v13394_v37 = vld [vmem:[#allocation11_spill] sm:$0xff]  ;;  %v4897_v23 = vld [vmem:[%s12722_s7 + $0x70] sm:$0xff] }
 0x71e   : > { %4441 = vmatpush.msra.mxu0 %v4216_v1  ;;  %v13385_v1 = vld [vmem:[#allocation20_spill] sm:$0xff]  ;;  %v4903_v13 = vld [vmem:[%s12722_s7 + $0xa0] sm:$0xff] }
 0x71f   : > { %v4207_v15 = vmax.f32 %v3888_v14, %v4178_v19  ;;  %v4195_v11 = vmax.f32 %v3870_v25, %v4160_v5  ;;  %v11241_v19 = vld [vmem:[%s12721_s6 + $0x38] sm:$0xff]  ;;  %v13398_v14 = vld [vmem:[#allocation112_spill] sm:$0xff]  ;;  %v6820_v5 = vld [vmem:[%s12721_s6 + $0x80] sm:$0xff] }
 0x720   : > { %4442 = vmatpush.msra.mxu0 %v4214_v35  ;;  %v3873_v35 = vadd.f32 %v13386_v28, %v13385_v1  ;;  %v4909_v1 = vld [vmem:[%s12722_s7 + $0xd0] sm:$0xff]  ;;  %v4907_v28 = vld [vmem:[%s12722_s7 + $0xc0] sm:$0xff] }
 0x721   : > { %6796 = vmatmul.msk.f32.gmra.mxu0 %vm4249_vm7, %v11162_v24  ;;  %v11203_v51 = vmax.f32 %v4207_v15, 0.0  ;;  %6860 = vmatmul.msk.f32.gmra.mxu1 %vm4249_vm7, %v6849_v52  ;;  %v4148_v15 = vadd.f32 %v13401_v41, %v13400_v4  ;;  %v4221_v9 = vmax.f32 %v4195_v11, 0.0  ;;  %v6858_v58 = vld [vmem:[%s12721_s6 + $0x100] sm:$0xff]  ;;  %v4908_v41 = vld [vmem:[%s12722_s7 + $0xc8] sm:$0xff] }
 0x722   : > { %4443 = vmatpush.msra.mxu0 %v4212_v27  ;;  %v4199_v27 = vmax.f32 %v3876_v46, %v4166_v56  ;;  %v11260_v56 = vld [vmem:[%s12721_s6 + $0x40] sm:$0xff]  ;;  %v11275_v46 = vld [vmem:[%s12721_s6 + $0x48] sm:$0xff] }
 0x723   : > { %v4187_v61 = vmax.f32 %v13403_v48, %v4148_v15  ;;  %v4895_v25 = vld [vmem:[%s12722_s7 + $0x60] sm:$0xff] }
 0x724   : > { %v4180_v62 = vpop.f32.mrf.mxu3 }
 0x725   : > { %v4181_v34 = vadd.f32 %v4180_v62, %v4124_v63  ;;  %v13391_v63 = vld [vmem:[#allocation116_spill] sm:$0xff]  ;;  %v4213_v53 = vmax.f32 %v4187_v61, 0.0 }
 0x726   : > { %v4157_v62 = vadd.f32 %v13391_v63, %v13390_v45  ;;  %v6821_v45 = vld [vmem:[%s12721_s6 + $0x88] sm:$0xff]  ;;  %v4893_v63 = vld [vmem:[%s12722_s7 + $0x50] sm:$0xff] }
 0x727   : > { %v4209_v31 = vmax.f32 %v3891_v44, %v4181_v34  ;;  %v4227_v34 = vmax.f32 %v4201_v49, 0.0  ;;  %v13395_v44 = vld [vmem:[#allocation75_spill] sm:$0xff]  ;;  %v6856_v49 = vld [vmem:[%s12721_s6 + $0xf0] sm:$0xff]  ;;  %v4900_v61 = vld [vmem:[%s12722_s7 + $0x88] sm:$0xff] }
 0x728   : > { %v4154_v7 = vadd.f32 %v13395_v44, %v13394_v37  ;;  %v6823_v37 = vld [vmem:[%s12721_s6 + $0x98] sm:$0xff] }
 0x729   : > { %6797 = vmatmul.msk.f32.gmra.mxu0 %vm4249_vm7, %v11169_v30  ;;  %v11195_v18 = vmax.f32 %v4209_v31, 0.0  ;;  %v4151_v31 = vadd.f32 %v13399_v50, %v13398_v14  ;;  %6861 = vmatmul.msk.f32.gmra.mxu1 %vm4249_vm7, %v6850_v10  ;;  %v4914_v50 = vld [vmem:[%s12722_s7 + $0xf8] sm:$0xff] }
 0x72b   : > { %v4189_v57 = vmax.f32 %v13402_v60, %v4151_v31  ;;  %v4912_v31 = vld [vmem:[%s12722_s7 + $0xe8] sm:$0xff] }
 0x72c   : > { %v4183_v32 = vpop.f32.mrf.mxu3 }
 0x72d   : > { %v4184_v55 = vadd.f32 %v4183_v32, %v4127_v21  ;;  %v4197_v21 = vmax.f32 %v3873_v35, %v4163_v20  ;;  %v13392_v32 = vld [vmem:[#allocation96_spill] sm:$0xff]  ;;  %v4215_v36 = vmax.f32 %v4189_v57, 0.0  ;;  %v4905_v35 = vld [vmem:[%s12722_s7 + $0xb0] sm:$0xff]  ;;  %v4902_v57 = vld [vmem:[%s12722_s7 + $0x98] sm:$0xff] }
 0x72e   : > { %v3867_v8 = vadd.f32 %v13393_v2, %v13392_v32  ;;  %v6855_v20 = vld [vmem:[%s12721_s6 + $0xe8] sm:$0xff]  ;;  %v6822_v32 = vld [vmem:[%s12721_s6 + $0x90] sm:$0xff] }
 0x72f   : > { %v4211_v54 = vmax.f32 %v3894_v40, %v4184_v55  ;;  %v4225_v40 = vmax.f32 %v4199_v27, 0.0  ;;  %v13396_v55 = vld [vmem:[#allocation53_spill] sm:$0xff]  ;;  %v4223_v38 = vmax.f32 %v4197_v21, 0.0 }
 0x730   : > { %v3864_v12 = vadd.f32 %v13397_v26, %v13396_v55  ;;  %v4901_v27 = vld [vmem:[%s12722_s7 + $0x90] sm:$0xff] }
 0x731   : > { %6798 = vmatmul.msk.f32.gmra.mxu0 %vm4249_vm7, %v11180_v59  ;;  %v11188_v22 = vmax.f32 %v4211_v54, 0.0  ;;  %v4193_v54 = vmax.f32 %v3867_v8, %v4157_v62  ;;  %6862 = vmatmul.msk.f32.gmra.mxu1 %vm4249_vm7, %v6851_v39  ;;  %v4891_v62 = vld [vmem:[%s12722_s7 + $0x40] sm:$0xff]  ;;  %v4889_v21 = vld [vmem:[%s12722_s7 + $0x30] sm:$0xff] }
 0x732   : > { %v4191_v6 = vmax.f32 %v3864_v12, %v4154_v7  ;;  %v4885_v2 = vld [vmem:[%s12722_s7 + $0x10] sm:$0xff]  ;;  %v4883_v8 = vld [vmem:[%s12722_s7] sm:$0xff] }
 0x733   : > { %4336 = vmatpush.msra.mxu2 %v11188_v22  ;;  %4626 = vmatpush.msra.mxu3 %v11188_v22  ;;  %v4219_v47 = vmax.f32 %v4193_v54, 0.0  ;;  %v11457_v7 = vld [vmem:[%s12721_s6 + $0xa0] sm:$0xff] }
 0x734   : > { %v4217_v29 = vmax.f32 %v4191_v6, 0.0  ;;  %v4906_v6 = vld [vmem:[%s12722_s7 + $0xb8] sm:$0xff] }
 0x735   : > { %4337 = vmatpush.msra.mxu2 %v11195_v18  ;;  %4627 = vmatpush.msra.mxu3 %v11195_v18 }
 0x737   : > { %4338 = vmatpush.msra.mxu2 %v11203_v51  ;;  %4628 = vmatpush.msra.mxu3 %v11203_v51 }
 0x739   : > { %6799 = vmatmul.msk.f32.gmra.mxu0 %vm4249_vm7, %v11208_v33  ;;  %4339 = vmatpush.msra.mxu2 %v11216_v0 }
 0x73a   : > { %4629 = vmatpush.msra.mxu3 %v11216_v0 }
 0x73b   : > { %4340 = vmatpush.msra.mxu2 %v4229_v43 }
 0x73c   : > { %4630 = vmatpush.msra.mxu3 %v4229_v43 }
 0x73d   : > { %4341 = vmatpush.msra.mxu2 %v4227_v34 }
 0x73e   : > { %4631 = vmatpush.msra.mxu3 %v4227_v34 }
 0x73f   : > { %4342 = vmatpush.msra.mxu2 %v4225_v40 }
 0x740   : > { %4632 = vmatpush.msra.mxu3 %v4225_v40 }
 0x741   : > { %6800 = vmatmul.msk.f32.gmra.mxu0 %vm4249_vm7, %v11241_v19  ;;  %4343 = vmatpush.msra.mxu2 %v4223_v38 }
 0x742   : > { %4633 = vmatpush.msra.mxu3 %v4223_v38 }
 0x743   : > { %4344 = vmatpush.msra.mxu2 %v4221_v9 }
 0x744   : > { %4634 = vmatpush.msra.mxu3 %v4221_v9 }
 0x745   : > { %4345 = vmatpush.msra.mxu2 %v4219_v47 }
 0x746   : > { %4635 = vmatpush.msra.mxu3 %v4219_v47 }
 0x747   : > { %4346 = vmatpush.msra.mxu2 %v4217_v29 }
 0x748   : > { %4636 = vmatpush.msra.mxu3 %v4217_v29 }
 0x749   : > { %6801 = vmatmul.msk.f32.gmra.mxu0 %vm4249_vm7, %v11260_v56  ;;  %4347 = vmatpush.msra.mxu2 %v4215_v36 }
 0x74a   : > { %4637 = vmatpush.msra.mxu3 %v4215_v36 }
 0x74b   : > { %4348 = vmatpush.msra.mxu2 %v4213_v53 }
 0x74c   : > { %4638 = vmatpush.msra.mxu3 %v4213_v53  ;;  %6804 = vmatmul.msk.f32.vlgmr.msra.gmra.mxu2 %vm4249_vm7, %v11138_v3  ;;  %v11292_v3 = vld [vmem:[%s12721_s6 + $0x50] sm:$0xff] }
 0x74d   : > { %6870 = vmatmul.msk.f32.vlgmr.msra.gmra.mxu3 %vm4249_vm7, %v6848_v17  ;;  %4481 = vmatpush.msrb.mxu2 %v11188_v22  ;;  %v6852_v22 = vld [vmem:[%s12721_s6 + $0xd0] sm:$0xff]  ;;  %v11368_v17 = vld [vmem:[%s12721_s6 + $0x78] sm:$0xff] }
 0x74e   : > { %6863 = vmatmul.msk.f32.gmra.mxu1 %vm4249_vm7, %v6852_v22 }
 0x74f   : > { %4482 = vmatpush.msrb.mxu2 %v11195_v18  ;;  %v6853_v18 = vld [vmem:[%s12721_s6 + $0xd8] sm:$0xff] }
 0x751   : > { %6802 = vmatmul.msk.f32.gmra.mxu0 %vm4249_vm7, %v11275_v46  ;;  %4483 = vmatpush.msrb.mxu2 %v11203_v51  ;;  %v6854_v51 = vld [vmem:[%s12721_s6 + $0xe0] sm:$0xff] }
 0x753   : > { %4484 = vmatpush.msrb.mxu2 %v11216_v0  ;;  %v4913_v0 = vld [vmem:[%s12722_s7 + $0xf0] sm:$0xff] }
 0x754   : > { %6805 = vmatmul.msk.f32.gmra.mxu2 %vm4249_vm7, %v11148_v42  ;;  %v11306_v42 = vld [vmem:[%s12721_s6 + $0x58] sm:$0xff]  ;;  %5017 = vmatpush.msrb.mxu0 %v4913_v0 }
 0x755   : > { %6871 = vmatmul.msk.f32.gmra.mxu3 %vm4249_vm7, %v6849_v52  ;;  %4485 = vmatpush.msrb.mxu2 %v4229_v43  ;;  %v4899_v43 = vld [vmem:[%s12722_s7 + $0x80] sm:$0xff]  ;;  %v4910_v52 = vld [vmem:[%s12722_s7 + $0xd8] sm:$0xff] }
 0x756   : > { %6864 = vmatmul.msk.f32.gmra.mxu1 %vm4249_vm7, %v6853_v18 }
 0x757   : > { %4486 = vmatpush.msrb.mxu2 %v4227_v34  ;;  %v4887_v34 = vld [vmem:[%s12722_s7 + $0x20] sm:$0xff] }
 0x759   : > { %6803 = vmatmul.msk.f32.gmra.mxu0 %vm4249_vm7, %v11292_v3  ;;  %4487 = vmatpush.msrb.mxu2 %v4225_v40  ;;  %v11468_v40 = vld [vmem:[%s12721_s6 + $0xa8] sm:$0xff] }
 0x75b   : > { %4488 = vmatpush.msrb.mxu2 %v4223_v38 }
 0x75c   : > { %6806 = vmatmul.msk.f32.gmra.mxu2 %vm4249_vm7, %v11155_v16  ;;  %v11320_v16 = vld [vmem:[%s12721_s6 + $0x60] sm:$0xff] }
 0x75d   : > { %6872 = vmatmul.msk.f32.gmra.mxu3 %vm4249_vm7, %v6850_v10  ;;  %4489 = vmatpush.msrb.mxu2 %v4221_v9  ;;  %v4904_v9 = vld [vmem:[%s12722_s7 + $0xa8] sm:$0xff] }
 0x75e   : > { %6865 = vmatmul.msk.f32.gmra.mxu1 %vm4249_vm7, %v6854_v51 }
 0x75f   : > { %4490 = vmatpush.msrb.mxu2 %v4219_v47 }
 0x761   : > { %6826 = vmatmul.msk.f32.vlgmr.msra.gmra.mxu0 %vm4249_vm7, %v11306_v42  ;;  %4491 = vmatpush.msrb.mxu2 %v4217_v29 }
 0x763   : > { %4492 = vmatpush.msrb.mxu2 %v4215_v36  ;;  %v4896_v36 = vld [vmem:[%s12722_s7 + $0x68] sm:$0xff] }
 0x764   : > { %6807 = vmatmul.msk.f32.gmra.mxu2 %vm4249_vm7, %v11162_v24  ;;  %v11334_v24 = vld [vmem:[%s12721_s6 + $0x68] sm:$0xff] }
 0x765   : > { %6873 = vmatmul.msk.f32.gmra.mxu3 %vm4249_vm7, %v6851_v39  ;;  %4493 = vmatpush.msrb.mxu2 %v4213_v53  ;;  %v4894_v53 = vld [vmem:[%s12722_s7 + $0x58] sm:$0xff]  ;;  %v4892_v39 = vld [vmem:[%s12722_s7 + $0x48] sm:$0xff] }
 0x766   : > { %6866 = vmatmul.msk.f32.gmra.mxu1 %vm4249_vm7, %v6855_v20 }
 0x769   : > { %6827 = vmatmul.msk.f32.gmra.mxu0 %vm4249_vm7, %v11320_v16 }
 0x76c   : > { %6808 = vmatmul.msk.f32.gmra.mxu2 %vm4249_vm7, %v11169_v30  ;;  %v11348_v30 = vld [vmem:[%s12721_s6 + $0x70] sm:$0xff] }
 0x76d   : > { %6874 = vmatmul.msk.f32.gmra.mxu3 %vm4249_vm7, %v6852_v22 }
 0x76e   : > { %6867 = vmatmul.msk.f32.gmra.mxu1 %vm4249_vm7, %v6856_v49 }
 0x771   : > { %6828 = vmatmul.msk.f32.gmra.mxu0 %vm4249_vm7, %v11334_v24 }
 0x774   : > { %6809 = vmatmul.msk.f32.gmra.mxu2 %vm4249_vm7, %v11180_v59  ;;  %v4911_v59 = vld [vmem:[%s12722_s7 + $0xe0] sm:$0xff] }
 0x775   : > { %6875 = vmatmul.msk.f32.gmra.mxu3 %vm4249_vm7, %v6853_v18  ;;  %5018 = vmatpush.msrb.mxu0 %v4911_v59  ;;  %v4888_v18 = vld [vmem:[%s12722_s7 + $0x28] sm:$0xff] }
 0x777   : > { %5019 = vmatpush.msrb.mxu0 %v4909_v1 }
 0x779   : > { %6829 = vmatmul.msk.f32.gmra.mxu0 %vm4249_vm7, %v11348_v30 }
 0x77a   : > { %5020 = vmatpush.msrb.mxu0 %v4907_v28 }
 0x77c   : > { %6810 = vmatmul.msk.f32.gmra.mxu2 %vm4249_vm7, %v11208_v33  ;;  %v6857_v33 = vld [vmem:[%s12721_s6 + $0xf8] sm:$0xff]  ;;  %5021 = vmatpush.msrb.mxu0 %v4905_v35 }
 0x77d   : > { %6876 = vmatmul.msk.f32.gmra.mxu3 %vm4249_vm7, %v6854_v51  ;;  %6868 = vmatmul.msk.f32.gmra.mxu1 %vm4249_vm7, %v6857_v33  ;;  %v4886_v51 = vld [vmem:[%s12722_s7 + $0x18] sm:$0xff] }
 0x77e   : > { %5022 = vmatpush.msrb.mxu0 %v4903_v13 }
 0x780   : > { %5023 = vmatpush.msrb.mxu0 %v4901_v27 }
 0x781   : > { %6830 = vmatmul.msk.f32.gmra.mxu0 %vm4249_vm7, %v11368_v17 }
 0x782   : > { %5024 = vmatpush.msrb.mxu0 %v4899_v43 }
 0x784   : > { %6811 = vmatmul.msk.f32.gmra.mxu2 %vm4249_vm7, %v11241_v19  ;;  %5025 = vmatpush.msrb.mxu0 %v4897_v23 }
 0x785   : > { %6877 = vmatmul.msk.f32.gmra.mxu3 %vm4249_vm7, %v6855_v20  ;;  %6869 = vmatmul.msk.f32.gmra.mxu1 %vm4249_vm7, %v6858_v58  ;;  %v4884_v20 = vld [vmem:[%s12722_s7 + $0x8] sm:$0xff] }
 0x786   : > { %5026 = vmatpush.msrb.mxu0 %v4895_v25  ;;  %v11450_v44 = vpop.f32.mrf.mxu0 }
 0x788   : > { %5027 = vmatpush.msrb.mxu0 %v4893_v63 }
 0x789   : > { %6831 = vmatmul.msk.f32.gmra.mxu0 %vm4249_vm7, %v6820_v5 }
 0x78a   : > { %5028 = vmatpush.msrb.mxu0 %v4891_v62 }
 0x78c   : > { %6812 = vmatmul.msk.f32.gmra.mxu2 %vm4249_vm7, %v11260_v56  ;;  %5029 = vmatpush.msrb.mxu0 %v4889_v21  ;;  %v4898_v56 = vld [vmem:[%s12722_s7 + $0x78] sm:$0xff] }
 0x78d   : > { %6878 = vmatmul.msk.f32.gmra.mxu3 %vm4249_vm7, %v6856_v49 }
 0x78e   : > { %5030 = vmatpush.msrb.mxu0 %v4887_v34  ;;  %v11461_v11 = vpop.f32.mrf.mxu0 }
 0x790   : > { %5031 = vmatpush.msrb.mxu0 %v4885_v2 }
 0x791   : > { %6832 = vmatmul.msk.f32.gmra.mxu0 %vm4249_vm7, %v6821_v45 }
 0x792   : > { %5032 = vmatpush.msrb.mxu0 %v4883_v8 }
 0x794   : > { %6813 = vmatmul.msk.f32.gmra.mxu2 %vm4249_vm7, %v11275_v46  ;;  %5217 = vmatpush.msra.mxu0 %v4914_v50 }
 0x795   : > { %6879 = vmatmul.msk.f32.gmra.mxu3 %vm4249_vm7, %v6857_v33 }
 0x796   : > { %v11474_v19 = vpop.f32.mrf.mxu0  ;;  %v4590_v54 = vpop.f32.mrf.mxu1  ;;  %5218 = vmatpush.msra.mxu0 %v4912_v31 }
 0x797   : > { %4795 = vrot.lane.b32.xlu2 %v4590_v54, %s7169_s20 }
 0x798   : > { %5219 = vmatpush.msra.mxu0 %v4910_v52 }
 0x799   : > { %6833 = vmatmul.msk.f32.gmra.mxu0 %vm4249_vm7, %v6822_v32 }
 0x79a   : > { %5220 = vmatpush.msra.mxu0 %v4908_v41 }
 0x79c   : > { %6814 = vmatmul.msk.f32.gmra.mxu2 %vm4249_vm7, %v11292_v3  ;;  %5221 = vmatpush.msra.mxu0 %v4906_v6 }
 0x79d   : > { %6880 = vmatmul.msk.f32.gmra.mxu3 %vm4249_vm7, %v6858_v58 }
 0x79e   : > { %v11479_v55 = vpop.f32.mrf.mxu0  ;;  %v4593_v60 = vpop.f32.mrf.mxu1  ;;  %5222 = vmatpush.msra.mxu0 %v4904_v9 }
 0x79f   : > { %4799 = vrot.lane.b32.xlu2 %v4593_v60, %s7169_s20 }
 0x7a0   : > { %5223 = vmatpush.msra.mxu0 %v4902_v57 }
 0x7a1   : > { %6834 = vmatmul.msk.f32.gmra.mxu0 %vm4249_vm7, %v6823_v37 }
 0x7a2   : > { %5224 = vmatpush.msra.mxu0 %v4900_v61 }
 0x7a4   : > { %6837 = vmatmul.msk.f32.vlgmr.msrb.gmra.mxu2 %vm4249_vm7, %v11306_v42  ;;  %5225 = vmatpush.msra.mxu0 %v4898_v56  ;;  %v4890_v42 = vld [vmem:[%s12722_s7 + $0x38] sm:$0xff] }
 0x7a6   : > { %v11485_v26 = vpop.f32.mrf.mxu0  ;;  %v4596_v10 = vpop.f32.mrf.mxu1  ;;  %5226 = vmatpush.msra.mxu0 %v4896_v36 }
 0x7a7   : > { %4803 = vrot.lane.b32.xlu2 %v4596_v10, %s7169_s20 }
 0x7a8   : > { %5227 = vmatpush.msra.mxu0 %v4894_v53 }
 0x7a9   : > { %6835 = vmatmul.msk.f32.gmra.mxu0 %vm4249_vm7, %v11457_v7 }
 0x7aa   : > { %5228 = vmatpush.msra.mxu0 %v4892_v39 }
 0x7ac   : > { %6838 = vmatmul.msk.f32.gmra.mxu2 %vm4249_vm7, %v11320_v16  ;;  %5229 = vmatpush.msra.mxu0 %v4890_v42 }
 0x7ae   : > { %v11499_v38 = vpop.f32.mrf.mxu0  ;;  %v4599_v16 = vpop.f32.mrf.mxu1  ;;  %5230 = vmatpush.msra.mxu0 %v4888_v18 }
 0x7af   : > { %4807 = vrot.lane.b32.xlu2 %v4599_v16, %s7169_s20 }
 0x7b0   : > { %5231 = vmatpush.msra.mxu0 %v4886_v51 }
 0x7b1   : > { %6836 = vmatmul.msk.f32.gmra.mxu0 %vm4249_vm7, %v11468_v40 }
 0x7b2   : > { %5232 = vmatpush.msra.mxu0 %v4884_v20 }
 0x7b4   : > { %6839 = vmatmul.msk.f32.gmra.mxu2 %vm4249_vm7, %v11334_v24 }
 0x7b6   : > { %v11523_v47 = vpop.f32.mrf.mxu0 }
 0x7b9   : > { %5033 = vmatmul.f32.vlgmr.msrb.gmra.mxu0 %v11450_v44 }
 0x7bc   : > { %6840 = vmatmul.msk.f32.gmra.mxu2 %vm4249_vm7, %v11348_v30 }
 0x7be   : > { %v11548_v22 = vpop.f32.mrf.mxu0 }
 0x7c1   : > { %5036 = vmatmul.f32.gmra.mxu0 %v11461_v11 }
 0x7c4   : > { %6841 = vmatmul.msk.f32.gmra.mxu2 %vm4249_vm7, %v11368_v17 }
 0x7c6   : > { %v11571_v49 = vpop.f32.mrf.mxu0 }
 0x7c9   : > { %5039 = vmatmul.f32.gmra.mxu0 %v11474_v19 }
 0x7cb   : > { %v4602_v0 = vpop.f32.mrf.mxu1 }
 0x7cc   : > { %6842 = vmatmul.msk.f32.gmra.mxu2 %vm4249_vm7, %v6820_v5  ;;  %4811 = vrot.lane.b32.xlu2 %v4602_v0, %s7169_s20 }
 0x7ce   : > { %v11581_v28 = vpop.f32.mrf.mxu0 }
 0x7cf   : > { %v11488_v12 = vpop.f32.mrf.mxu2 }
 0x7d0   : > { %v4640_v14 = vpop.f32.mrf.mxu3 }
 0x7d1   : > { %5042 = vmatmul.f32.gmra.mxu0 %v11479_v55  ;;  %4797 = vrot.lane.b32.xlu0 %v4640_v14, %s7169_s20  ;;  %v4979_v14 = vld [vmem:[%s12722_s7 + $0x300] sm:$0x3f] }
 0x7d2   : > { %6881 = vmatpush.msk.msrb.mxu3 %vm5010_vm8, %v4979_v14 }
 0x7d3   : > { %v4605_v1 = vpop.f32.mrf.mxu1 }
 0x7d4   : > { %6843 = vmatmul.msk.f32.gmra.mxu2 %vm4249_vm7, %v6821_v45  ;;  %4815 = vrot.lane.b32.xlu2 %v4605_v1, %s7169_s20 }
 0x7d6   : > { %v11588_v5 = vpop.f32.mrf.mxu0 }
 0x7d7   : > { %v11505_v4 = vpop.f32.mrf.mxu2 }
 0x7d8   : > { %v4643_v15 = vpop.f32.mrf.mxu3 }
 0x7d9   : > { %5045 = vmatmul.f32.gmra.mxu0 %v11485_v26  ;;  %4801 = vrot.lane.b32.xlu0 %v4643_v15, %s7169_s20 }
 0x7db   : > { %v4608_v13 = vpop.f32.mrf.mxu1 }
 0x7dc   : > { %6844 = vmatmul.msk.f32.gmra.mxu2 %vm4249_vm7, %v6822_v32  ;;  %4819 = vrot.lane.b32.xlu2 %v4608_v13, %s7169_s20  ;;  %v4977_v13 = vld [vmem:[%s12722_s7 + $0x2f0] sm:$0xff] }
 0x7dd   : > { %5117 = vmatpush.msra.mxu1 %v4977_v13 }
 0x7de   : > { %v4445_v45 = vpop.f32.mrf.mxu0 }
 0x7df   : > { %v11525_v48 = vpop.f32.mrf.mxu2 }
 0x7e0   : > { %v4646_v29 = vpop.f32.mrf.mxu3 }
 0x7e1   : > { %5048 = vmatmul.f32.gmra.mxu0 %v11499_v38  ;;  %4805 = vrot.lane.b32.xlu0 %v4646_v29, %s7169_s20 }
 0x7e3   : > { %v4611_v58 = vpop.f32.mrf.mxu1 }
 0x7e4   : > { %6845 = vmatmul.msk.f32.gmra.mxu2 %vm4249_vm7, %v6823_v37  ;;  %4823 = vrot.lane.b32.xlu2 %v4611_v58, %s7169_s20  ;;  %v4941_v58 = vld [vmem:[%s12722_s7 + $0x1d0] sm:$0xff] }
 0x7e6   : > { %v4448_v34 = vpop.f32.mrf.mxu0 }
 0x7e7   : > { %v11543_v46 = vpop.f32.mrf.mxu2 }
 0x7e8   : > { %v4649_v3 = vpop.f32.mrf.mxu3 }
 0x7e9   : > { %5051 = vmatmul.f32.gmra.mxu0 %v11523_v47  ;;  %4809 = vrot.lane.b32.xlu0 %v4649_v3, %s7169_s20 }
 0x7eb   : > { %v4614_v63 = vpop.f32.mrf.mxu1 }
 0x7ec   : > { %6846 = vmatmul.msk.f32.gmra.mxu2 %vm4249_vm7, %v11457_v7  ;;  %4827 = vrot.lane.b32.xlu2 %v4614_v63, %s7169_s20  ;;  %v4973_v63 = vld [vmem:[%s12722_s7 + $0x2d0] sm:$0xff] }
 0x7ef   : > { %v11564_v24 = vpop.f32.mrf.mxu2 }
 0x7f0   : > { %v4652_v30 = vpop.f32.mrf.mxu3 }
 0x7f1   : > { %5054 = vmatmul.f32.gmra.mxu0 %v11548_v22  ;;  %4813 = vrot.lane.b32.xlu0 %v4652_v30, %s7169_s20  ;;  %v4945_v30 = vld [vmem:[%s12722_s7 + $0x1f0] sm:$0xff] }
 0x7f2   : > { %5067 = vmatpush.msra.mxu2 %v4945_v30 }
 0x7f4   : > { %6847 = vmatmul.msk.f32.gmra.mxu2 %vm4249_vm7, %v11468_v40 }
 0x7f7   : > { %v11576_v59 = vpop.f32.mrf.mxu2 }
 0x7f8   : > { %v4655_v17 = vpop.f32.mrf.mxu3 }
 0x7f9   : > { %5057 = vmatmul.f32.gmra.mxu0 %v11571_v49  ;;  %4817 = vrot.lane.b32.xlu0 %v4655_v17, %s7169_s20 }
 0x7fa   : > { %v4617_v32 = vpop.f32.mrf.mxu1 }
 0x7fb   : > { %4831 = vrot.lane.b32.xlu2 %v4617_v32, %s7169_s20 }
 0x7ff   : > { %v11583_v33 = vpop.f32.mrf.mxu2 }
 0x800   : > { %v4658_v35 = vpop.f32.mrf.mxu3 }
 0x801   : > { %5060 = vmatmul.f32.gmra.mxu0 %v11581_v28  ;;  %4821 = vrot.lane.b32.xlu0 %v4658_v35, %s7169_s20 }
 0x802   : > { %v4620_v37 = vpop.f32.mrf.mxu1 }
 0x803   : > { %4835 = vrot.lane.b32.xlu2 %v4620_v37, %s7169_s20  ;;  %v4935_v37 = vld [vmem:[%s12722_s7 + $0x1a0] sm:$0xff] }
 0x807   : > { %v11590_v27 = vpop.f32.mrf.mxu2 }
 0x808   : > { %v4661_v43 = vpop.f32.mrf.mxu3 }
 0x809   : > { %5063 = vmatmul.f32.gmra.mxu0 %v11588_v5  ;;  %4825 = vrot.lane.b32.xlu0 %v4661_v43, %s7169_s20 }
 0x80f   : > { %v11595_v23 = vpop.f32.mrf.mxu2 }
 0x810   : > { %v4664_v25 = vpop.f32.mrf.mxu3 }
 0x811   : > { %5233 = vmatmul.f32.vlgmr.msra.gmra.mxu0 %v11450_v44  ;;  %4829 = vrot.lane.b32.xlu0 %v4664_v25, %s7169_s20  ;;  %v4451_v44 = vpop.f32.mrf.mxu0  ;;  %v4939_v25 = vld [vmem:[%s12722_s7 + $0x1c0] sm:$0xff] }
 0x817   : > { %v11600_v62 = vpop.f32.mrf.mxu2 }
 0x818   : > { %v4667_v21 = vpop.f32.mrf.mxu3 }
 0x819   : > { %5236 = vmatmul.f32.gmra.mxu0 %v11461_v11  ;;  %4833 = vrot.lane.b32.xlu0 %v4667_v21, %s7169_s20  ;;  %v11612_v11 = vpop.permute.xlu2 %4795 }
 0x81f   : > { %v11605_v2 = vpop.f32.mrf.mxu2 }
 0x820   : > { %v4670_v8 = vpop.f32.mrf.mxu3 }
 0x821   : > { %5239 = vmatmul.f32.gmra.mxu0 %v11474_v19  ;;  %4837 = vrot.lane.b32.xlu0 %v4670_v8, %s7169_s20  ;;  %v4454_v19 = vpop.f32.mrf.mxu0  ;;  %v4971_v8 = vld [vmem:[%s12722_s7 + $0x2c0] sm:$0xff]  ;;  %s6276_s20 = sshll.u32 %s513_s29, 3 }
 0x827   : > { %v4495_v7 = vpop.f32.mrf.mxu2 }
 0x828   : > { %v7047_v40 = vpack.i.bf16 %v4495_v7, %v4445_v45 }
 0x829   : > { %5242 = vmatmul.f32.gmra.mxu0 %v11479_v55  ;;  %v11620_v55 = vpop.permute.xlu2 %4799  ;;  %v4457_v52 = vpop.f32.mrf.mxu0 }
 0x82a   : > { %7048 = vrot.lane.b32.xlu1 %v7047_v40, %s7170_s1  ;;  %v4969_v40 = vld [vmem:[%s12722_s7 + $0x2b0] sm:$0xff] }
 0x82f   : > { %v4498_v50 = vpop.f32.mrf.mxu2 }
 0x830   : > { %v7052_v31 = vpack.i.bf16 %v4498_v50, %v4448_v34  ;;  %v4937_v34 = vld [vmem:[%s12722_s7 + $0x1b0] sm:$0xff]  ;;  %v4967_v50 = vld [vmem:[%s12722_s7 + $0x2a0] sm:$0xff] }
 0x831   : > { %5245 = vmatmul.f32.gmra.mxu0 %v11485_v26  ;;  %v11625_v9 = vpop.permute.xlu2 %4803  ;;  %v4460_v60 = vpop.f32.mrf.mxu0 }
 0x832   : > { %7053 = vrot.lane.b32.xlu1 %v7052_v31, %s7170_s1  ;;  %v4931_v31 = vld [vmem:[%s12722_s7 + $0x180] sm:$0xff] }
 0x837   : > { %v4501_v54 = vpop.f32.mrf.mxu2 }
 0x838   : > { %v7057_v41 = vpack.i.bf16 %v4501_v54, %v4451_v44  ;;  %v4965_v54 = vld [vmem:[%s12722_s7 + $0x290] sm:$0xff] }
 0x839   : > { %5248 = vmatmul.f32.gmra.mxu0 %v11499_v38  ;;  %v11636_v29 = vpop.permute.xlu2 %4807  ;;  %v4463_v36 = vpop.f32.mrf.mxu0 }
 0x83a   : > { %7058 = vrot.lane.b32.xlu1 %v7057_v41, %s7170_s1  ;;  %v4963_v41 = vld [vmem:[%s12722_s7 + $0x280] sm:$0xff] }
 0x83f   : > { %v4504_v15 = vpop.f32.mrf.mxu2 }
 0x840   : > { %v7062_v6 = vpack.i.bf16 %v4504_v15, %v4454_v19  ;;  %v4933_v19 = vld [vmem:[%s12722_s7 + $0x190] sm:$0xff]  ;;  %v4927_v15 = vld [vmem:[%s12722_s7 + $0x160] sm:$0xff] }
 0x841   : > { %5251 = vmatmul.f32.gmra.mxu0 %v11523_v47  ;;  %v4466_v42 = vpop.f32.mrf.mxu0 }
 0x842   : > { %7063 = vrot.lane.b32.xlu1 %v7062_v6, %s7170_s1 }
 0x843   : > { %v4798_v26 = vpop.permute.xlu0 %4797 }
 0x844   : > { %v11630_v57 = vsel %vm2256_vm5, %v11612_v11, %v4798_v26 }
 0x845   : > { %6882 = vmatmul.msk.f32.vlgmr.msrb.gmra.mxu3 %vm4987_vm9, %v11630_v57 }
 0x847   : > { %v4507_v38 = vpop.f32.mrf.mxu2 }
 0x848   : > { %v7067_v61 = vpack.i.bf16 %v4507_v38, %v4457_v52  ;;  %v4929_v52 = vld [vmem:[%s12722_s7 + $0x170] sm:$0xff] }
 0x849   : > { %5254 = vmatmul.f32.gmra.mxu0 %v11548_v22  ;;  %v11652_v22 = vpop.permute.xlu2 %4811  ;;  %v4469_v1 = vpop.f32.mrf.mxu0  ;;  %v4961_v38 = vld [vmem:[%s12722_s7 + $0x270] sm:$0xff] }
 0x84a   : > { %7068 = vrot.lane.b32.xlu1 %v7067_v61, %s7170_s1 }
 0x84b   : > { %v4802_v47 = vpop.permute.xlu0 %4801 }
 0x84c   : > { %v11640_v56 = vsel %vm2256_vm5, %v11620_v55, %v4802_v47  ;;  %v4925_v47 = vld [vmem:[%s12722_s7 + $0x150] sm:$0xff] }
 0x84d   : > { %6883 = vmatmul.msk.f32.gmra.mxu3 %vm4987_vm9, %v11640_v56 }
 0x84f   : > { %v4510_v10 = vpop.f32.mrf.mxu2 }
 0x850   : > { %v7072_v53 = vpack.i.bf16 %v4510_v10, %v4460_v60  ;;  %v4959_v10 = vld [vmem:[%s12722_s7 + $0x260] sm:$0xff] }
 0x851   : > { %5257 = vmatmul.f32.gmra.mxu0 %v11571_v49  ;;  %v4943_v49 = vld [vmem:[%s12722_s7 + $0x1e0] sm:$0xff]  ;;  %v11668_v0 = vpop.permute.xlu2 %4815  ;;  %v4472_v7 = vpop.f32.mrf.mxu0 }
 0x852   : > { %7073 = vrot.lane.b32.xlu1 %v7072_v53, %s7170_s1  ;;  %5068 = vmatpush.msra.mxu2 %v4943_v49  ;;  %v4953_v49 = vld [vmem:[%s12722_s7 + $0x230] sm:$0xff] }
 0x853   : > { %v4806_v39 = vpop.permute.xlu0 %4805 }
 0x854   : > { %v11648_v3 = vsel %vm2256_vm5, %v11625_v9, %v4806_v39  ;;  %5069 = vmatpush.msra.mxu2 %v4941_v58  ;;  %v4923_v39 = vld [vmem:[%s12722_s7 + $0x140] sm:$0xff]  ;;  %v4949_v58 = vld [vmem:[%s12722_s7 + $0x210] sm:$0xff] }
 0x855   : > { %6884 = vmatmul.msk.f32.gmra.mxu3 %vm4987_vm9, %v11648_v3 }
 0x856   : > { %5070 = vmatpush.msra.mxu2 %v4939_v25  ;;  %v4947_v25 = vld [vmem:[%s12722_s7 + $0x200] sm:$0xff] }
 0x857   : > { %v4513_v18 = vpop.f32.mrf.mxu2 }
 0x858   : > { %v7077_v16 = vpack.i.bf16 %v4513_v18, %v4463_v36  ;;  %5071 = vmatpush.msra.mxu2 %v4937_v34  ;;  %v4921_v18 = vld [vmem:[%s12722_s7 + $0x130] sm:$0xff] }
 0x859   : > { %5260 = vmatmul.f32.gmra.mxu0 %v11581_v28  ;;  %v11696_v32 = vpop.permute.xlu2 %4819  ;;  %v4475_v36 = vpop.f32.mrf.mxu0 }
 0x85a   : > { %7078 = vrot.lane.b32.xlu1 %v7077_v16, %s7170_s1  ;;  %5072 = vmatpush.msra.mxu2 %v4935_v37  ;;  %v4955_v16 = vld [vmem:[%s12722_s7 + $0x240] sm:$0xff] }
 0x85b   : > { %v4810_v51 = vpop.permute.xlu0 %4809 }
 0x85c   : > { %v11658_v20 = vsel %vm2256_vm5, %v11636_v29, %v4810_v51  ;;  %5073 = vmatpush.msra.mxu2 %v4933_v19  ;;  %v4919_v51 = vld [vmem:[%s12722_s7 + $0x120] sm:$0xff] }
 0x85d   : > { %6885 = vmatmul.msk.f32.gmra.mxu3 %vm4987_vm9, %v11658_v20 }
 0x85e   : > { %5074 = vmatpush.msra.mxu2 %v4931_v31 }
 0x85f   : > { %v4516_v17 = vpop.f32.mrf.mxu2 }
 0x860   : > { %v7082_v28 = vpack.i.bf16 %v4516_v17, %v4466_v42  ;;  %5075 = vmatpush.msra.mxu2 %v4929_v52  ;;  %v4957_v42 = vld [vmem:[%s12722_s7 + $0x250] sm:$0xff] }
 0x861   : > { %5263 = vmatmul.f32.gmra.mxu0 %v11588_v5  ;;  %v4975_v5 = vld [vmem:[%s12722_s7 + $0x2e0] sm:$0xff]  ;;  %v11736_v60 = vpop.permute.xlu2 %4823 }
 0x862   : > { %7083 = vrot.lane.b32.xlu1 %v7082_v28, %s7170_s1  ;;  %5118 = vmatpush.msra.mxu1 %v4975_v5  ;;  %v4951_v28 = vld [vmem:[%s12722_s7 + $0x220] sm:$0xff] }
 0x863   : > { %v4814_v35 = vpop.permute.xlu0 %4813  ;;  %5076 = vmatpush.msra.mxu2 %v4927_v15  ;;  %v4915_v5 = vld [vmem:[%s12722_s7 + $0x100] sm:$0xff] }
 0x864   : > { %v11677_v43 = vsel %vm2256_vm5, %v11652_v22, %v4814_v35  ;;  %5119 = vmatpush.msra.mxu1 %v4973_v63  ;;  %v4917_v35 = vld [vmem:[%s12722_s7 + $0x110] sm:$0xff] }
 0x865   : > { %6886 = vmatmul.msk.f32.gmra.mxu3 %vm4987_vm9, %v11677_v43  ;;  %5077 = vmatpush.msra.mxu2 %v4925_v47 }
 0x866   : > { %5120 = vmatpush.msra.mxu1 %v4971_v8 }
 0x867   : > { %v4519_v45 = vpop.f32.mrf.mxu2  ;;  %5078 = vmatpush.msra.mxu2 %v4923_v39 }
 0x868   : > { %v7087_v21 = vpack.i.bf16 %v4519_v45, %v4469_v1  ;;  %5121 = vmatpush.msra.mxu1 %v4969_v40 }
 0x869   : > { %5079 = vmatpush.msra.mxu2 %v4921_v18  ;;  %v11778_v1 = vpop.permute.xlu2 %4827 }
 0x86a   : > { %7088 = vrot.lane.b32.xlu1 %v7087_v21, %s7170_s1  ;;  %5122 = vmatpush.msra.mxu1 %v4967_v50  ;;  %v4980_v21 = vld [vmem:[%s12722_s7 + $0x308] sm:$0x3f] }
 0x86b   : > { %v4818_v44 = vpop.permute.xlu0 %4817  ;;  %5080 = vmatpush.msra.mxu2 %v4919_v51  ;;  %6893 = vmatpush.msk.msra.mxu3 %vm5010_vm8, %v4980_v21  ;;  %v4940_v51 = vld [vmem:[%s12722_s7 + $0x1c8] sm:$0xff] }
 0x86c   : > { %v11710_v14 = vsel %vm2256_vm5, %v11668_v0, %v4818_v44  ;;  %5123 = vmatpush.msra.mxu1 %v4965_v54  ;;  %v4932_v21 = vld [vmem:[%s12722_s7 + $0x188] sm:$0xff] }
 0x86d   : > { %6887 = vmatmul.msk.f32.gmra.mxu3 %vm4987_vm9, %v11710_v14  ;;  %5081 = vmatpush.msra.mxu2 %v4917_v35  ;;  %v4978_v35 = vld [vmem:[%s12722_s7 + $0x2f8] sm:$0xff] }
 0x86e   : > { %5124 = vmatpush.msra.mxu1 %v4963_v41 }
 0x86f   : > { %v4522_v26 = vpop.f32.mrf.mxu2  ;;  %5082 = vmatpush.msra.mxu2 %v4915_v5  ;;  %v4934_v5 = vld [vmem:[%s12722_s7 + $0x198] sm:$0xff] }
 0x870   : > { %5125 = vmatpush.msra.mxu1 %v4961_v38  ;;  %v7092_v53 = vpack.i.bf16 %v4475_v36, %v4522_v26 }
 0x871   : > { %v11805_v34 = vpop.permute.xlu2 %4831 }
 0x872   : > { %4731 = vrot.lane.b32.xlu1 %v4472_v7, %s7170_s1  ;;  %5126 = vmatpush.msra.mxu1 %v4959_v10 }
 0x873   : > { %v4822_v6 = vpop.permute.xlu0 %4821 }
 0x874   : > { %v11743_v61 = vsel %vm2256_vm5, %v11696_v32, %v4822_v6  ;;  %5127 = vmatpush.msra.mxu1 %v4957_v42  ;;  %v4946_v42 = vld [vmem:[%s12722_s7 + $0x1f8] sm:$0xff] }
 0x875   : > { %6888 = vmatmul.msk.f32.gmra.mxu3 %vm4987_vm9, %v11743_v61  ;;  %5267 = vmatpush.msrb.mxu2 %v4946_v42 }
 0x876   : > { %5128 = vmatpush.msra.mxu1 %v4955_v16 }
 0x877   : > { %v4525_v13 = vpop.f32.mrf.mxu2 }
 0x878   : > { %5129 = vmatpush.msra.mxu1 %v4953_v49 }
 0x879   : > { %v11814_v44 = vpop.permute.xlu2 %4835 }
 0x87a   : > { %7093 = vrot.lane.b32.xlu1 %v7092_v53, %s7170_s1  ;;  %5130 = vmatpush.msra.mxu1 %v4951_v28  ;;  %v4938_v28 = vld [vmem:[%s12722_s7 + $0x1b8] sm:$0xff] }
 0x87b   : > { %v4826_v30 = vpop.permute.xlu0 %4825 }
 0x87c   : > { %v11774_v17 = vsel %vm2256_vm5, %v11736_v60, %v4826_v30  ;;  %5131 = vmatpush.msra.mxu1 %v4949_v58  ;;  %v4974_v58 = vld [vmem:[%s12722_s7 + $0x2d8] sm:$0xff] }
 0x87d   : > { %6889 = vmatmul.msk.f32.gmra.mxu3 %vm4987_vm9, %v11774_v17 }
 0x87e   : > { %5132 = vmatpush.msra.mxu1 %v4947_v25 }
 0x880   : > { %5317 = vmatpush.msrb.mxu1 %v4978_v35 }
 0x882   : > { %4737 = vrot.lane.b32.xlu1 %v4525_v13, %s7170_s1 }
 0x883   : > { %v4830_v45 = vpop.permute.xlu0 %4829 }
 0x884   : > { %v11798_v63 = vsel %vm2256_vm5, %v11778_v1, %v4830_v45 }
 0x885   : > { %6890 = vmatmul.msk.f32.gmra.mxu3 %vm4987_vm9, %v11798_v63 }
 0x88b   : > { %v4834_v8 = vpop.permute.xlu0 %4833 }
 0x88c   : > { %v11810_v37 = vsel %vm2256_vm5, %v11805_v34, %v4834_v8 }
 0x88d   : > { %6891 = vmatmul.msk.f32.gmra.mxu3 %vm4987_vm9, %v11810_v37 }
 0x893   : > { %v4838_v7 = vpop.permute.xlu0 %4837 }
 0x894   : > { %v11818_v40 = vsel %vm2256_vm5, %v11814_v44, %v4838_v7 }
 0x895   : > { %6892 = vmatmul.msk.f32.gmra.mxu3 %vm4987_vm9, %v11818_v40 }
 0x89c   : > { %v7049_v19 = vpop.permute.xlu1 %7048 }
 0x89d   : > { %6894 = vmatmul.msk.f32.vlgmr.msra.gmra.mxu3 %vm4987_vm9, %v11630_v57  ;;  %v7051_v50 = vunpack.i.h.bf16 %v7049_v19  ;;  %v7050_v31 = vunpack.i.l.bf16 %v7049_v19  ;;  %v4972_v19 = vld [vmem:[%s12722_s7 + $0x2c8] sm:$0xff] }
 0x89f   : > { %v4740_v54 = vsel %vm4739_vm10, %v7050_v31, %v7051_v50  ;;  %v11827_v52 = vsel %vm4739_vm10, %v11488_v12, %v7050_v31  ;;  %v4930_v50 = vld [vmem:[%s12722_s7 + $0x178] sm:$0xff]  ;;  %v4968_v31 = vld [vmem:[%s12722_s7 + $0x2a8] sm:$0xff] }
 0x8a0   : > { %5083 = vmatmul.f32.vlgmr.msra.gmra.mxu2 %v11827_v52  ;;  %v11832_v41 = vsel %vm2256_vm5, %v4740_v54, %v11612_v11 }
 0x8a1   : > { %5133 = vmatmul.f32.vlgmr.msra.gmra.mxu1 %v11832_v41 }
 0x8a4   : > { %v7054_v15 = vpop.permute.xlu1 %7053 }
 0x8a5   : > { %6895 = vmatmul.msk.f32.gmra.mxu3 %vm4987_vm9, %v11640_v56  ;;  %v7056_v57 = vunpack.i.h.bf16 %v7054_v15  ;;  %v7055_v6 = vunpack.i.l.bf16 %v7054_v15 }
 0x8a7   : > { %v11839_v26 = vsel %vm4739_vm10, %v11505_v4, %v7055_v6  ;;  %v4741_v12 = vsel %vm4739_vm10, %v7055_v6, %v7056_v57  ;;  %v4926_v6 = vld [vmem:[%s12722_s7 + $0x158] sm:$0xff] }
 0x8a8   : > { %5086 = vmatmul.f32.gmra.mxu2 %v11839_v26  ;;  %v11845_v11 = vsel %vm2256_vm5, %v4741_v12, %v11620_v55  ;;  %v4966_v12 = vld [vmem:[%s12722_s7 + $0x298] sm:$0xff] }
 0x8a9   : > { %5136 = vmatmul.f32.gmra.mxu1 %v11845_v11 }
 0x8ac   : > { %v7059_v38 = vpop.permute.xlu1 %7058 }
 0x8ad   : > { %6896 = vmatmul.msk.f32.gmra.mxu3 %vm4987_vm9, %v11648_v3  ;;  %v7061_v56 = vunpack.i.h.bf16 %v7059_v38  ;;  %v7060_v47 = vunpack.i.l.bf16 %v7059_v38  ;;  %v4924_v38 = vld [vmem:[%s12722_s7 + $0x148] sm:$0xff] }
 0x8af   : > { %v11852_v4 = vsel %vm4739_vm10, %v11525_v48, %v7060_v47  ;;  %v4742_v36 = vsel %vm4739_vm10, %v7060_v47, %v7061_v56 }
 0x8b0   : > { %5089 = vmatmul.f32.gmra.mxu2 %v11852_v4  ;;  %v11858_v55 = vsel %vm2256_vm5, %v4742_v36, %v11625_v9  ;;  %v4964_v36 = vld [vmem:[%s12722_s7 + $0x288] sm:$0xff] }
 0x8b1   : > { %5139 = vmatmul.f32.gmra.mxu1 %v11858_v55 }
 0x8b4   : > { %v7064_v10 = vpop.permute.xlu1 %7063 }
 0x8b5   : > { %6897 = vmatmul.msk.f32.gmra.mxu3 %vm4987_vm9, %v11658_v20  ;;  %v7066_v3 = vunpack.i.h.bf16 %v7064_v10  ;;  %v7065_v53 = vunpack.i.l.bf16 %v7064_v10  ;;  %v4944_v20 = vld [vmem:[%s12722_s7 + $0x1e8] sm:$0xff]  ;;  %v4962_v10 = vld [vmem:[%s12722_s7 + $0x278] sm:$0xff] }
 0x8b6   : > { %5268 = vmatpush.msrb.mxu2 %v4944_v20 }
 0x8b7   : > { %v11865_v48 = vsel %vm4739_vm10, %v11543_v46, %v7065_v53  ;;  %v4743_v39 = vsel %vm4739_vm10, %v7065_v53, %v7066_v3  ;;  %v4960_v3 = vld [vmem:[%s12722_s7 + $0x268] sm:$0xff] }
 0x8b8   : > { %5092 = vmatmul.f32.gmra.mxu2 %v11865_v48  ;;  %v11871_v9 = vsel %vm2256_vm5, %v4743_v39, %v11636_v29  ;;  %v4942_v29 = vld [vmem:[%s12722_s7 + $0x1d8] sm:$0xff] }
 0x8b9   : > { %5142 = vmatmul.f32.gmra.mxu1 %v11871_v9  ;;  %5269 = vmatpush.msrb.mxu2 %v4942_v29  ;;  %v4918_v39 = vld [vmem:[%s12722_s7 + $0x118] sm:$0xff] }
 0x8bb   : > { %5270 = vmatpush.msrb.mxu2 %v4940_v51  ;;  %v4956_v51 = vld [vmem:[%s12722_s7 + $0x248] sm:$0xff] }
 0x8bc   : > { %v7069_v46 = vpop.permute.xlu1 %7068 }
 0x8bd   : > { %6898 = vmatmul.msk.f32.gmra.mxu3 %vm4987_vm9, %v11677_v43  ;;  %v7071_v18 = vunpack.i.h.bf16 %v7069_v46  ;;  %v7070_v16 = vunpack.i.l.bf16 %v7069_v46  ;;  %5271 = vmatpush.msrb.mxu2 %v4938_v28  ;;  %v4958_v46 = vld [vmem:[%s12722_s7 + $0x258] sm:$0xff] }
 0x8bf   : > { %v11890_v30 = vsel %vm4739_vm10, %v11564_v24, %v7070_v16  ;;  %v4744_v49 = vsel %vm4739_vm10, %v7070_v16, %v7071_v18  ;;  %v4976_v24 = vld [vmem:[%s12722_s7 + $0x2e8] sm:$0xff] }
 0x8c0   : > { %5095 = vmatmul.f32.gmra.mxu2 %v11890_v30  ;;  %v11896_v43 = vsel %vm2256_vm5, %v4744_v49, %v11652_v22  ;;  %v4936_v22 = vld [vmem:[%s12722_s7 + $0x1a8] sm:$0xff]  ;;  %5318 = vmatpush.msrb.mxu1 %v4976_v24  ;;  %v4950_v24 = vld [vmem:[%s12722_s7 + $0x218] sm:$0xff] }
 0x8c1   : > { %5145 = vmatmul.f32.gmra.mxu1 %v11896_v43  ;;  %5272 = vmatpush.msrb.mxu2 %v4936_v22  ;;  %v4916_v18 = vld [vmem:[%s12722_s7 + $0x108] sm:$0xff] }
 0x8c2   : > { %5319 = vmatpush.msrb.mxu1 %v4974_v58  ;;  %v4952_v49 = vld [vmem:[%s12722_s7 + $0x228] sm:$0xff] }
 0x8c3   : > { %5273 = vmatpush.msrb.mxu2 %v4934_v5 }
 0x8c4   : > { %v7074_v13 = vpop.permute.xlu1 %7073  ;;  %5320 = vmatpush.msrb.mxu1 %v4972_v19 }
 0x8c5   : > { %6899 = vmatmul.msk.f32.gmra.mxu3 %vm4987_vm9, %v11710_v14  ;;  %v7076_v25 = vunpack.i.h.bf16 %v7074_v13  ;;  %v7075_v45 = vunpack.i.l.bf16 %v7074_v13  ;;  %5274 = vmatpush.msrb.mxu2 %v4932_v21 }
 0x8c7   : > { %v11924_v8 = vsel %vm4739_vm10, %v11576_v59, %v7075_v45  ;;  %v4745_v7 = vsel %vm4739_vm10, %v7075_v45, %v7076_v25  ;;  %v4970_v59 = vld [vmem:[%s12722_s7 + $0x2b8] sm:$0xff]  ;;  %5275 = vmatpush.msrb.mxu2 %v4930_v50  ;;  %v5431_v25 = vld [vmem:[%s12724_s9 + $0x70] sm:$0xff]  ;;  %v5430_v45 = vld [vmem:[%s12724_s9 + $0x68] sm:$0xff] }
 0x8c8   : > { %5098 = vmatmul.f32.gmra.mxu2 %v11924_v8  ;;  %v11930_v14 = vsel %vm2256_vm5, %v4745_v7, %v11668_v0  ;;  %v4928_v0 = vld [vmem:[%s12722_s7 + $0x168] sm:$0xff]  ;;  %5321 = vmatpush.msrb.mxu1 %v4970_v59  ;;  %v5428_v59 = vld [vmem:[%s12724_s9 + $0x58] sm:$0xff] }
 0x8c9   : > { %5148 = vmatmul.f32.gmra.mxu1 %v11930_v14  ;;  %5276 = vmatpush.msrb.mxu2 %v4928_v0 }
 0x8ca   : > { %5322 = vmatpush.msrb.mxu1 %v4968_v31  ;;  %v5034_v31 = vpop.f32.mrf.mxu0 }
 0x8cb   : > { %5277 = vmatpush.msrb.mxu2 %v4926_v6  ;;  %v5424_v6 = vld [vmem:[%s12724_s9 + $0x38] sm:$0xff] }
 0x8cc   : > { %v7079_v54 = vpop.permute.xlu1 %7078  ;;  %5323 = vmatpush.msrb.mxu1 %v4966_v12  ;;  %v5184_v12 = vpop.f32.mrf.mxu3 }
 0x8cd   : > { %6900 = vmatmul.msk.f32.gmra.mxu3 %vm4987_vm9, %v11743_v61  ;;  %v7081_v15 = vunpack.i.h.bf16 %v7079_v54  ;;  %v7080_v57 = vunpack.i.l.bf16 %v7079_v54  ;;  %5278 = vmatpush.msrb.mxu2 %v4924_v38  ;;  %v5426_v54 = vld [vmem:[%s12724_s9 + $0x48] sm:$0xff] }
 0x8ce   : > { %5324 = vmatpush.msrb.mxu1 %v4964_v36  ;;  %v5420_v36 = vld [vmem:[%s12724_s9 + $0x18] sm:$0xff] }
 0x8cf   : > { %v11961_v56 = vsel %vm4739_vm10, %v11583_v33, %v7080_v57  ;;  %v4746_v61 = vsel %vm4739_vm10, %v7080_v57, %v7081_v15  ;;  %v4922_v33 = vld [vmem:[%s12722_s7 + $0x138] sm:$0xff]  ;;  %v5425_v57 = vld [vmem:[%s12724_s9 + $0x40] sm:$0xff] }
 0x8d0   : > { %5101 = vmatmul.f32.gmra.mxu2 %v11961_v56  ;;  %v11967_v47 = vsel %vm2256_vm5, %v4746_v61, %v11696_v32  ;;  %v4920_v32 = vld [vmem:[%s12722_s7 + $0x128] sm:$0xff]  ;;  %5325 = vmatpush.msrb.mxu1 %v4962_v10  ;;  %v5421_v61 = vld [vmem:[%s12724_s9 + $0x20] sm:$0xff] }
 0x8d1   : > { %5151 = vmatmul.f32.gmra.mxu1 %v11967_v47  ;;  %5279 = vmatpush.msrb.mxu2 %v4922_v33  ;;  %v5419_v33 = vld [vmem:[%s12724_s9 + $0x10] sm:$0xff] }
 0x8d2   : > { %5326 = vmatpush.msrb.mxu1 %v4960_v3  ;;  %v5037_v38 = vpop.f32.mrf.mxu0 }
 0x8d3   : > { %5280 = vmatpush.msrb.mxu2 %v4920_v32  ;;  %v5417_v32 = vld [vmem:[%s12724_s9] sm:$0xff] }
 0x8d4   : > { %v7084_v53 = vpop.permute.xlu1 %7083  ;;  %5327 = vmatpush.msrb.mxu1 %v4958_v46  ;;  %v5187_v10 = vpop.f32.mrf.mxu3 }
 0x8d5   : > { %6901 = vmatmul.msk.f32.gmra.mxu3 %vm4987_vm9, %v11774_v17  ;;  %v7086_v42 = vunpack.i.h.bf16 %v7084_v53  ;;  %v7085_v20 = vunpack.i.l.bf16 %v7084_v53  ;;  %5281 = vmatpush.msrb.mxu2 %v4918_v39  ;;  %v12128_v53 = vld [vmem:[%s12723_s8] sm:$0x3] }
 0x8d6   : > { %5328 = vmatpush.msrb.mxu1 %v4956_v51 }
 0x8d7   : > { %v11998_v16 = vsel %vm4739_vm10, %v11590_v27, %v7085_v20  ;;  %v4747_v29 = vsel %vm4739_vm10, %v7085_v20, %v7086_v42  ;;  %5282 = vmatpush.msrb.mxu2 %v4916_v18  ;;  %v4954_v27 = vld [vmem:[%s12722_s7 + $0x238] sm:$0xff]  ;;  %v6930_v42 = vld [vmem:[%s12724_s9 + $0x148] sm:$0xff]  ;;  %v6929_v20 = vld [vmem:[%s12724_s9 + $0x140] sm:$0xff] }
 0x8d8   : > { %5104 = vmatmul.f32.gmra.mxu2 %v11998_v16  ;;  %v12004_v17 = vsel %vm2256_vm5, %v4747_v29, %v11736_v60  ;;  %5329 = vmatpush.msrb.mxu1 %v4954_v27  ;;  %v6928_v18 = vld [vmem:[%s12724_s9 + $0x138] sm:$0xff] }
 0x8d9   : > { %5154 = vmatmul.f32.gmra.mxu1 %v12004_v17 }
 0x8da   : > { %5330 = vmatpush.msrb.mxu1 %v4952_v49 }
 0x8dc   : > { %v7089_v28 = vpop.permute.xlu1 %7088  ;;  %5331 = vmatpush.msrb.mxu1 %v4950_v24  ;;  %v12116_v3 = vpop.f32.mrf.mxu3  ;;  %v6925_v24 = vld [vmem:[%s12724_s9 + $0x120] sm:$0xff] }
 0x8dd   : > { %6902 = vmatmul.msk.f32.gmra.mxu3 %vm4987_vm9, %v11798_v63  ;;  %v7091_v60 = vunpack.i.h.bf16 %v7089_v28  ;;  %v7090_v35 = vunpack.i.l.bf16 %v7089_v28  ;;  %v4948_v63 = vld [vmem:[%s12722_s7 + $0x208] sm:$0xff] }
 0x8de   : > { %5332 = vmatpush.msrb.mxu1 %v4948_v63  ;;  %v6924_v63 = vld [vmem:[%s12724_s9 + $0x118] sm:$0xff] }
 0x8df   : > { %v12023_v22 = vsel %vm4739_vm10, %v11595_v23, %v7090_v35  ;;  %v4748_v13 = vsel %vm4739_vm10, %v7090_v35, %v7091_v60  ;;  %v6926_v60 = vld [vmem:[%s12724_s9 + $0x128] sm:$0xff] }
 0x8e0   : > { %5107 = vmatmul.f32.gmra.mxu2 %v12023_v22  ;;  %v12029_v5 = vsel %vm2256_vm5, %v4748_v13, %v11778_v1  ;;  %v5432_v1 = vld [vmem:[%s12724_s9 + $0x78] sm:$0xff] }
 0x8e1   : > { %5157 = vmatmul.f32.gmra.mxu1 %v12029_v5  ;;  %5482 = vmatpush.msrb.mxu0 %v5432_v1 }
 0x8e3   : > { %5483 = vmatpush.msrb.mxu0 %v5431_v25 }
 0x8e4   : > { %v4732_v58 = vpop.permute.xlu1 %4731 }
 0x8e5   : > { %6903 = vmatmul.msk.f32.gmra.mxu3 %vm4987_vm9, %v11810_v37  ;;  %v12039_v23 = vsel %vm4739_vm10, %v11600_v62, %v4732_v58  ;;  %5484 = vmatpush.msrb.mxu0 %v5430_v45 }
 0x8e8   : > { %5110 = vmatmul.f32.gmra.mxu2 %v12039_v23 }
 0x8ec   : > { %v7094_v37 = vpop.permute.xlu1 %7093 }
 0x8ed   : > { %6904 = vmatmul.msk.f32.gmra.mxu3 %vm4987_vm9, %v11818_v40  ;;  %v7096_v62 = vunpack.i.h.bf16 %v7094_v37  ;;  %v7095_v21 = vunpack.i.l.bf16 %v7094_v37  ;;  %v5429_v40 = vld [vmem:[%s12724_s9 + $0x60] sm:$0xff] }
 0x8ee   : > { %5485 = vmatpush.msrb.mxu0 %v5429_v40 }
 0x8ef   : > { %v12055_v7 = vsel %vm4739_vm10, %v11605_v2, %v7096_v62  ;;  %v4749_v19 = vsel %vm4739_vm10, %v4732_v58, %v7095_v21  ;;  %v5427_v2 = vld [vmem:[%s12724_s9 + $0x50] sm:$0xff]  ;;  %v6921_v21 = vld [vmem:[%s12724_s9 + $0x100] sm:$0xff] }
 0x8f0   : > { %5113 = vmatmul.f32.gmra.mxu2 %v12055_v7  ;;  %v12061_v50 = vsel %vm2256_vm5, %v4749_v19, %v11805_v34  ;;  %5486 = vmatpush.msrb.mxu0 %v5428_v59  ;;  %v6920_v59 = vld [vmem:[%s12724_s9 + $0xf8] sm:$0xff] }
 0x8f1   : > { %5160 = vmatmul.f32.gmra.mxu1 %v12061_v50 }
 0x8f2   : > { %5487 = vmatpush.msrb.mxu0 %v5427_v2 }
 0x8f4   : > { %v4738_v0 = vpop.permute.xlu1 %4737  ;;  %5488 = vmatpush.msrb.mxu0 %v5426_v54 }
 0x8f5   : > { %v4750_v34 = vsel %vm4739_vm10, %v7096_v62, %v4738_v0  ;;  %v6919_v0 = vld [vmem:[%s12724_s9 + $0xf0] sm:$0xff] }
 0x8f6   : > { %v12080_v15 = vsel %vm2256_vm5, %v4750_v34, %v11814_v44  ;;  %5489 = vmatpush.msrb.mxu0 %v5425_v57  ;;  %v5422_v44 = vld [vmem:[%s12724_s9 + $0x28] sm:$0xff]  ;;  %v6917_v57 = vld [vmem:[%s12724_s9 + $0xe0] sm:$0xff]  ;;  %vm6183_vm5 = vcmask 80896  }
 0x8f8   : > { %5283 = vmatmul.f32.vlgmr.msrb.gmra.mxu2 %v11827_v52  ;;  %v5423_v52 = vld [vmem:[%s12724_s9 + $0x30] sm:$0xff]  ;;  %5490 = vmatpush.msrb.mxu0 %v5424_v6 }
 0x8f9   : > { %5163 = vmatmul.f32.gmra.mxu1 %v12080_v15 }
 0x8fa   : > { %5491 = vmatpush.msrb.mxu0 %v5423_v52 }
 0x8fc   : > { %5492 = vmatpush.msrb.mxu0 %v5422_v44 }
 0x8fe   : > { %5493 = vmatpush.msrb.mxu0 %v5421_v61 }
 0x900   : > { %5286 = vmatmul.f32.gmra.mxu2 %v11839_v26  ;;  %5494 = vmatpush.msrb.mxu0 %v5420_v36  ;;  %v5040_v26 = vpop.f32.mrf.mxu0 }
 0x901   : > { %5333 = vmatmul.f32.vlgmr.msrb.gmra.mxu1 %v11832_v41  ;;  %v5418_v41 = vld [vmem:[%s12724_s9 + $0x8] sm:$0xff] }
 0x902   : > { %5495 = vmatpush.msrb.mxu0 %v5419_v33 }
 0x904   : > { %5496 = vmatpush.msrb.mxu0 %v5418_v41 }
 0x906   : > { %5497 = vmatpush.msrb.mxu0 %v5417_v32 }
 0x908   : > { %5289 = vmatmul.f32.gmra.mxu2 %v11852_v4  ;;  %v12118_v4 = vpop.f32.mrf.mxu0 }
 0x909   : > { %5336 = vmatmul.f32.gmra.mxu1 %v11845_v11  ;;  %v6932_v11 = vld [vmem:[%s12724_s9 + $0x158] sm:$0xff] }
 0x90a   : > { %5614 = vmatpush.msra.mxu1 %v6932_v11 }
 0x910   : > { %5292 = vmatmul.f32.gmra.mxu2 %v11865_v48  ;;  %v12130_v48 = vpop.f32.mrf.mxu3  ;;  %v12135_v39 = vpop.f32.mrf.mxu0 }
 0x911   : > { %5339 = vmatmul.f32.gmra.mxu1 %v11858_v55  ;;  %v6931_v55 = vld [vmem:[%s12724_s9 + $0x150] sm:$0xff] }
 0x912   : > { %5615 = vmatpush.msra.mxu1 %v6931_v55  ;;  %v6944_v55 = vld [vmem:[%s12724_s9 + $0x1b8] sm:$0xf] }
 0x913   : > { %6945 = vmatpush.msk.msrb.mxu3 %vm1895_vm1, %v6944_v55  ;;  %v12343_v55 = vperm.slane %v12128_v53, 1 }
 0x914   : > { %5616 = vmatpush.msra.mxu1 %v6930_v42  ;;  %v6943_v42 = vld [vmem:[%s12724_s9 + $0x1b0] sm:$0xff] }
 0x915   : > { %5669 = vmatpush.msrb.mxu3 %v6943_v42 }
 0x916   : > { %5617 = vmatpush.msra.mxu1 %v6929_v20 }
 0x918   : > { %5295 = vmatmul.f32.gmra.mxu2 %v11890_v30  ;;  %5618 = vmatpush.msra.mxu1 %v6928_v18  ;;  %v12155_v27 = vpop.f32.mrf.mxu3  ;;  %v5442_v18 = vld [vmem:[%s12724_s9 + $0xc8] sm:$0xff] }
 0x919   : > { %5342 = vmatmul.f32.gmra.mxu1 %v11871_v9  ;;  %v12138_v9 = vperm.slane %v12128_v53, 0 }
 0x91b   : > { %v5035_v46 = vadd.f32 %v5034_v31, %v12138_v9  ;;  %v5038_v13 = vadd.f32 %v5037_v38, %v12138_v9  ;;  %v5041_v40 = vadd.f32 %v5040_v26, %v12138_v9  ;;  %v5044_v6 = vadd.f32 %v12118_v4, %v12138_v9 }
 0x91e   : > { %v5134_v30 = vpop.f32.mrf.mxu1 }
 0x920   : > { %5298 = vmatmul.f32.gmra.mxu2 %v11924_v8  ;;  %v6927_v8 = vld [vmem:[%s12724_s9 + $0x130] sm:$0xff]  ;;  %v5199_v37 = vpop.f32.mrf.mxu3 }
 0x921   : > { %5345 = vmatmul.f32.gmra.mxu1 %v11896_v43  ;;  %v12157_v43 = vpop.f32.mrf.mxu0 }
 0x922   : > { %5619 = vmatpush.msra.mxu1 %v6927_v8 }
 0x923   : > { %v5084_v29 = vpop.f32.mrf.mxu2 }
 0x924   : > { %v5085_v51 = vadd.f32 %v5084_v29, %v5035_v46  ;;  %5620 = vmatpush.msra.mxu1 %v6926_v60  ;;  %v6942_v29 = vld [vmem:[%s12724_s9 + $0x1a8] sm:$0xff] }
 0x925   : > { %5670 = vmatpush.msrb.mxu3 %v6942_v29 }
 0x926   : > { %v5135_v49 = vadd.f32 %v5134_v30, %v5085_v51  ;;  %v5137_v28 = vpop.f32.mrf.mxu1  ;;  %5621 = vmatpush.msra.mxu1 %v6925_v24  ;;  %v5443_v30 = vld [vmem:[%s12724_s9 + $0xd0] sm:$0xff]  ;;  %v5441_v51 = vld [vmem:[%s12724_s9 + $0xc0] sm:$0xff] }
 0x927   : > { %v5439_v24 = vld [vmem:[%s12724_s9 + $0xb0] sm:$0xff] }
 0x928   : > { %v12162_v35 = vadd.f32 %v5184_v12, %v5135_v49  ;;  %5301 = vmatmul.f32.gmra.mxu2 %v11961_v56  ;;  %5622 = vmatpush.msra.mxu1 %v6924_v63  ;;  %v6923_v56 = vld [vmem:[%s12724_s9 + $0x110] sm:$0xff]  ;;  %v5202_v52 = vpop.f32.mrf.mxu3 }
 0x929   : > { %5348 = vmatmul.f32.gmra.mxu1 %v11930_v14  ;;  %v6922_v14 = vld [vmem:[%s12724_s9 + $0x108] sm:$0xff]  ;;  %v12186_v19 = vpop.f32.mrf.mxu0 }
 0x92a   : > { %5498 = vmatmul.f32.vlgmr.msrb.gmra.mxu0 %v12162_v35  ;;  %5623 = vmatpush.msra.mxu1 %v6923_v56  ;;  %v5053_v8 = vadd.f32 %v12186_v19, %v12138_v9  ;;  %v5438_v56 = vld [vmem:[%s12724_s9 + $0xa8] sm:$0xff] }
 0x92b   : > { %v5087_v58 = vpop.f32.mrf.mxu2 }
 0x92c   : > { %v5088_v1 = vadd.f32 %v5087_v58, %v5038_v13  ;;  %5624 = vmatpush.msra.mxu1 %v6922_v14  ;;  %v6939_v13 = vld [vmem:[%s12724_s9 + $0x190] sm:$0xff] }
 0x92e   : > { %v5138_v25 = vadd.f32 %v5137_v28, %v5088_v1  ;;  %v5140_v45 = vpop.f32.mrf.mxu1  ;;  %5625 = vmatpush.msra.mxu1 %v6921_v21  ;;  %v5440_v28 = vld [vmem:[%s12724_s9 + $0xb8] sm:$0xff] }
 0x930   : > { %v12180_v62 = vadd.f32 %v5187_v10, %v5138_v25  ;;  %5304 = vmatmul.f32.gmra.mxu2 %v11998_v16  ;;  %5626 = vmatpush.msra.mxu1 %v6920_v59  ;;  %v12221_v10 = vpop.f32.mrf.mxu3  ;;  %v6938_v25 = vld [vmem:[%s12724_s9 + $0x188] sm:$0xff]  ;;  %v6936_v59 = vld [vmem:[%s12724_s9 + $0x178] sm:$0xff] }
 0x931   : > { %5351 = vmatmul.f32.gmra.mxu1 %v11967_v47  ;;  %v6918_v47 = vld [vmem:[%s12724_s9 + $0xe8] sm:$0xff]  ;;  %v12211_v44 = vpop.f32.mrf.mxu0 }
 0x932   : > { %5501 = vmatmul.f32.gmra.mxu0 %v12180_v62  ;;  %5627 = vmatpush.msra.mxu1 %v6919_v0  ;;  %v5056_v14 = vadd.f32 %v12211_v44, %v12138_v9  ;;  %v6935_v0 = vld [vmem:[%s12724_s9 + $0x170] sm:$0xff] }
 0x933   : > { %v5090_v2 = vpop.f32.mrf.mxu2 }
 0x934   : > { %v5091_v16 = vadd.f32 %v5090_v2, %v5041_v40  ;;  %5628 = vmatpush.msra.mxu1 %v6918_v47  ;;  %v5436_v40 = vld [vmem:[%s12724_s9 + $0x98] sm:$0xff]  ;;  %v6934_v47 = vld [vmem:[%s12724_s9 + $0x168] sm:$0xff] }
 0x936   : > { %v5141_v31 = vadd.f32 %v5140_v45, %v5091_v16  ;;  %v5143_v34 = vpop.f32.mrf.mxu1  ;;  %5629 = vmatpush.msra.mxu1 %v6917_v57  ;;  %v5437_v45 = vld [vmem:[%s12724_s9 + $0xa0] sm:$0xff]  ;;  %v5435_v16 = vld [vmem:[%s12724_s9 + $0x90] sm:$0xff] }
 0x937   : > { %v5433_v57 = vld [vmem:[%s12724_s9 + $0x80] sm:$0xff] }
 0x938   : > { %v12201_v54 = vadd.f32 %v12116_v3, %v5141_v31  ;;  %5307 = vmatmul.f32.gmra.mxu2 %v12023_v22 }
 0x939   : > { %5354 = vmatmul.f32.gmra.mxu1 %v12004_v17  ;;  %v5047_v17 = vadd.f32 %v12135_v39, %v12138_v9  ;;  %v12223_v26 = vpop.f32.mrf.mxu0 }
 0x93a   : > { %5504 = vmatmul.f32.gmra.mxu0 %v12201_v54 }
 0x93b   : > { %v5093_v12 = vpop.f32.mrf.mxu2 }
 0x93c   : > { %v5094_v38 = vadd.f32 %v5093_v12, %v5044_v6  ;;  %v5059_v6 = vadd.f32 %v12223_v26, %v12138_v9 }
 0x93e   : > { %v5144_v61 = vadd.f32 %v5143_v34, %v5094_v38  ;;  %v5146_v22 = vpop.f32.mrf.mxu1  ;;  %v5434_v34 = vld [vmem:[%s12724_s9 + $0x88] sm:$0xff] }
 0x940   : > { %v12214_v36 = vadd.f32 %v12130_v48, %v5144_v61  ;;  %5310 = vmatmul.f32.gmra.mxu2 %v12039_v23  ;;  %v5444_v48 = vld [vmem:[%s12724_s9 + $0xd8] sm:$0xf] }
 0x941   : > { %5357 = vmatmul.f32.gmra.mxu1 %v12029_v5  ;;  %v5050_v5 = vadd.f32 %v12157_v43, %v12138_v9  ;;  %6905 = vmatpush.msk.msra.mxu2 %vm1895_vm1, %v5444_v48  ;;  %v12243_v39 = vpop.f32.mrf.mxu0  ;;  %v6940_v43 = vld [vmem:[%s12724_s9 + $0x198] sm:$0xff] }
 0x942   : > { %5507 = vmatmul.f32.gmra.mxu0 %v12214_v36 }
 0x943   : > { %v5096_v33 = vpop.f32.mrf.mxu2  ;;  %5537 = vmatpush.msra.mxu2 %v5443_v30 }
 0x944   : > { %v5097_v41 = vadd.f32 %v5096_v33, %v5047_v17  ;;  %v5062_v33 = vadd.f32 %v12243_v39, %v12138_v9 }
 0x945   : > { %5538 = vmatpush.msra.mxu2 %v5442_v18 }
 0x946   : > { %v5147_v32 = vadd.f32 %v5146_v22, %v5097_v41  ;;  %v5149_v3 = vpop.f32.mrf.mxu1 }
 0x947   : > { %5539 = vmatpush.msra.mxu2 %v5441_v51 }
 0x948   : > { %v12226_v4 = vadd.f32 %v12155_v27, %v5147_v32  ;;  %5313 = vmatmul.f32.gmra.mxu2 %v12055_v7  ;;  %v12241_v7 = vpop.f32.mrf.mxu3 }
 0x949   : > { %5360 = vmatmul.f32.gmra.mxu1 %v12061_v50  ;;  %5540 = vmatpush.msra.mxu2 %v5440_v28  ;;  %v5064_v1 = vpop.f32.mrf.mxu0 }
 0x94a   : > { %5510 = vmatmul.f32.gmra.mxu0 %v12226_v4 }
 0x94b   : > { %v5099_v23 = vpop.f32.mrf.mxu2  ;;  %5541 = vmatpush.msra.mxu2 %v5439_v24 }
 0x94c   : > { %v5100_v11 = vadd.f32 %v5099_v23, %v5050_v5 }
 0x94d   : > { %5542 = vmatpush.msra.mxu2 %v5438_v56 }
 0x94e   : > { %v5150_v50 = vadd.f32 %v5149_v3, %v5100_v11  ;;  %v5152_v46 = vpop.f32.mrf.mxu1  ;;  %v5065_v11 = vadd.f32 %v5064_v1, %v12138_v9 }
 0x94f   : > { %5543 = vmatpush.msra.mxu2 %v5437_v45 }
 0x950   : > { %v12251_v20 = vadd.f32 %v5199_v37, %v5150_v50  ;;  %v5211_v63 = vpop.f32.mrf.mxu3 }
 0x951   : > { %5363 = vmatmul.f32.gmra.mxu1 %v12080_v15  ;;  %v6941_v15 = vld [vmem:[%s12724_s9 + $0x1a0] sm:$0xff]  ;;  %5544 = vmatpush.msra.mxu2 %v5436_v40  ;;  %v5234_v44 = vpop.f32.mrf.mxu0 }
 0x952   : > { %5513 = vmatmul.f32.gmra.mxu0 %v12251_v20  ;;  %5671 = vmatpush.msrb.mxu3 %v6941_v15 }
 0x953   : > { %v5102_v27 = vpop.f32.mrf.mxu2  ;;  %5545 = vmatpush.msra.mxu2 %v5435_v16 }
 0x954   : > { %v5103_v49 = vadd.f32 %v5102_v27, %v5053_v8  ;;  %5672 = vmatpush.msrb.mxu3 %v6940_v43 }
 0x955   : > { %5546 = vmatpush.msra.mxu2 %v5434_v34 }
 0x956   : > { %v5153_v60 = vadd.f32 %v5152_v46, %v5103_v49  ;;  %5673 = vmatpush.msrb.mxu3 %v6939_v13  ;;  %v5155_v21 = vpop.f32.mrf.mxu1  ;;  %v5235_v46 = vadd.f32 %v5234_v44, %v12343_v55 }
 0x957   : > { %5547 = vmatpush.msra.mxu2 %v5433_v57 }
 0x958   : > { %v12281_v58 = vadd.f32 %v5202_v52, %v5153_v60  ;;  %5674 = vmatpush.msrb.mxu3 %v6938_v25  ;;  %v5214_v52 = vpop.f32.mrf.mxu3 }
 0x959   : > { %5630 = vmatmul.f32.vlgmr.msra.gmra.mxu1 %v12162_v35  ;;  %v6937_v35 = vld [vmem:[%s12724_s9 + $0x180] sm:$0xff]  ;;  %v5237_v32 = vpop.f32.mrf.mxu0 }
 0x95a   : > { %5516 = vmatmul.f32.gmra.mxu0 %v12281_v58  ;;  %5675 = vmatpush.msrb.mxu3 %v6937_v35  ;;  %v5238_v15 = vadd.f32 %v5237_v32, %v12343_v55 }
 0x95b   : > { %v5105_v37 = vpop.f32.mrf.mxu2 }
 0x95c   : > { %v5106_v19 = vadd.f32 %v5105_v37, %v5056_v14  ;;  %5676 = vmatpush.msrb.mxu3 %v6936_v59 }
 0x95e   : > { %v5156_v2 = vadd.f32 %v5155_v21, %v5106_v19  ;;  %5677 = vmatpush.msrb.mxu3 %v6935_v0  ;;  %v5158_v61 = vpop.f32.mrf.mxu1 }
 0x960   : > { %v12312_v31 = vadd.f32 %v12221_v10, %v5156_v2  ;;  %5678 = vmatpush.msrb.mxu3 %v6934_v47  ;;  %v5384_v41 = vpop.f32.mrf.mxu3 }
 0x961   : > { %5633 = vmatmul.f32.gmra.mxu1 %v12180_v62  ;;  %v6933_v62 = vld [vmem:[%s12724_s9 + $0x160] sm:$0xff]  ;;  %v5240_v39 = vpop.f32.mrf.mxu0 }
 0x962   : > { %5519 = vmatmul.f32.gmra.mxu0 %v12312_v31  ;;  %5679 = vmatpush.msrb.mxu3 %v6933_v62  ;;  %v5241_v60 = vadd.f32 %v5240_v39, %v12343_v55 }
 0x963   : > { %v5108_v12 = vpop.f32.mrf.mxu2 }
 0x964   : > { %v5109_v38 = vadd.f32 %v5108_v12, %v5059_v6 }
 0x966   : > { %v5159_v22 = vadd.f32 %v5158_v61, %v5109_v38 }
 0x968   : > { %v12331_v17 = vadd.f32 %v12241_v7, %v5159_v22  ;;  %v5387_v7 = vpop.f32.mrf.mxu3 }
 0x969   : > { %5636 = vmatmul.f32.gmra.mxu1 %v12201_v54  ;;  %v5243_v53 = vpop.f32.mrf.mxu0 }
 0x96a   : > { %5522 = vmatmul.f32.gmra.mxu0 %v12331_v17  ;;  %v5244_v45 = vadd.f32 %v5243_v53, %v12343_v55 }
 0x96b   : > { %v5111_v10 = vpop.f32.mrf.mxu2 }
 0x96c   : > { %v5112_v26 = vadd.f32 %v5111_v10, %v5062_v33 }
 0x96e   : > { %v5161_v3 = vpop.f32.mrf.mxu1 }
 0x96f   : > { %v5162_v5 = vadd.f32 %v5161_v3, %v5112_v26 }
 0x970   : > { %v5390_v51 = vpop.f32.mrf.mxu3 }
 0x971   : > { %v12337_v23 = vadd.f32 %v5211_v63, %v5162_v5  ;;  %5639 = vmatmul.f32.gmra.mxu1 %v12214_v36  ;;  %v5246_v13 = vpop.f32.mrf.mxu0 }
 0x972   : > { %v5247_v59 = vadd.f32 %v5246_v13, %v12343_v55 }
 0x973   : > { %v5114_v48 = vpop.f32.mrf.mxu2  ;;  %5525 = vmatmul.f32.gmra.mxu0 %v12337_v23 }
 0x974   : > { %v5115_v54 = vadd.f32 %v5114_v48, %v5065_v11 }
 0x976   : > { %v5164_v50 = vpop.f32.mrf.mxu1 }
 0x977   : > { %v5165_v30 = vadd.f32 %v5164_v50, %v5115_v54 }
 0x978   : > { %v5393_v24 = vpop.f32.mrf.mxu3 }
 0x979   : > { %v12345_v42 = vadd.f32 %v5214_v52, %v5165_v30  ;;  %5642 = vmatmul.f32.gmra.mxu1 %v12226_v4  ;;  %v5249_v37 = vpop.f32.mrf.mxu0 }
 0x97a   : > { %v5250_v6 = vadd.f32 %v5249_v37, %v12343_v55 }
 0x97b   : > { %v5284_v36 = vpop.f32.mrf.mxu2  ;;  %5528 = vmatmul.f32.gmra.mxu0 %v12345_v42 }
 0x97c   : > { %v5285_v9 = vadd.f32 %v5284_v36, %v5235_v46 }
 0x97e   : > { %v5334_v18 = vpop.f32.mrf.mxu1 }
 0x97f   : > { %v5335_v29 = vadd.f32 %v5334_v18, %v5285_v9 }
 0x981   : > { %v5385_v8 = vadd.f32 %v5384_v41, %v5335_v29  ;;  %5645 = vmatmul.f32.gmra.mxu1 %v12251_v20  ;;  %v5252_v34 = vpop.f32.mrf.mxu0 }
 0x983   : > { %v5287_v27 = vpop.f32.mrf.mxu2  ;;  %6906 = vmatmul.msk.f32.vlgmr.msra.gmra.mxu2 %vm5445_vm11, %v5385_v8  ;;  %6946 = vmatmul.msk.f32.vlgmr.msrb.gmra.mxu3 %vm5445_vm11, %v5385_v8 }
 0x984   : > { %v5288_v4 = vadd.f32 %v5287_v27, %v5238_v15 }
 0x986   : > { %v5337_v49 = vpop.f32.mrf.mxu1 }
 0x987   : > { %v5338_v28 = vadd.f32 %v5337_v49, %v5288_v4 }
 0x989   : > { %v5388_v43 = vadd.f32 %v5387_v7, %v5338_v28  ;;  %5648 = vmatmul.f32.gmra.mxu1 %v12281_v58  ;;  %v5396_v58 = vpop.f32.mrf.mxu3  ;;  %v5255_v61 = vpop.f32.mrf.mxu0 }
 0x98a   : > { %v5256_v3 = vadd.f32 %v5255_v61, %v12343_v55 }
 0x98b   : > { %v5290_v63 = vpop.f32.mrf.mxu2  ;;  %6907 = vmatmul.msk.f32.gmra.mxu2 %vm5445_vm11, %v5388_v43  ;;  %6947 = vmatmul.msk.f32.gmra.mxu3 %vm5445_vm11, %v5388_v43 }
 0x98c   : > { %v5291_v20 = vadd.f32 %v5290_v63, %v5241_v60 }
 0x98e   : > { %v5340_v1 = vpop.f32.mrf.mxu1 }
 0x98f   : > { %v5341_v56 = vadd.f32 %v5340_v1, %v5291_v20 }
 0x991   : > { %v5391_v25 = vadd.f32 %v5390_v51, %v5341_v56  ;;  %5651 = vmatmul.f32.gmra.mxu1 %v12312_v31  ;;  %v5399_v0 = vpop.f32.mrf.mxu3 }
 0x993   : > { %v5293_v14 = vpop.f32.mrf.mxu2  ;;  %6908 = vmatmul.msk.f32.gmra.mxu2 %vm5445_vm11, %v5391_v25  ;;  %6948 = vmatmul.msk.f32.gmra.mxu3 %vm5445_vm11, %v5391_v25 }
 0x994   : > { %v5294_v35 = vadd.f32 %v5293_v14, %v5244_v45 }
 0x996   : > { %v5343_v21 = vpop.f32.mrf.mxu1 }
 0x997   : > { %v5344_v19 = vadd.f32 %v5343_v21, %v5294_v35 }
 0x999   : > { %v5394_v40 = vadd.f32 %v5393_v24, %v5344_v19  ;;  %5654 = vmatmul.f32.gmra.mxu1 %v12331_v17  ;;  %v5402_v38 = vpop.f32.mrf.mxu3  ;;  %v5253_v17 = vadd.f32 %v5252_v34, %v12343_v55 }
 0x99b   : > { %v5296_v2 = vpop.f32.mrf.mxu2  ;;  %6909 = vmatmul.msk.f32.gmra.mxu2 %vm5445_vm11, %v5394_v40  ;;  %6949 = vmatmul.msk.f32.gmra.mxu3 %vm5445_vm11, %v5394_v40 }
 0x99c   : > { %v5297_v16 = vadd.f32 %v5296_v2, %v5247_v59 }
 0x99e   : > { %v5346_v31 = vpop.f32.mrf.mxu1 }
 0x99f   : > { %v5347_v47 = vadd.f32 %v5346_v31, %v5297_v16 }
 0x9a1   : > { %v5397_v57 = vadd.f32 %v5396_v58, %v5347_v47  ;;  %5657 = vmatmul.f32.gmra.mxu1 %v12337_v23  ;;  %v5405_v5 = vpop.f32.mrf.mxu3  ;;  %v5258_v23 = vpop.f32.mrf.mxu0 }
 0x9a2   : > { %v5259_v39 = vadd.f32 %v5258_v23, %v12343_v55 }
 0x9a3   : > { %v5299_v52 = vpop.f32.mrf.mxu2  ;;  %6910 = vmatmul.msk.f32.gmra.mxu2 %vm5445_vm11, %v5397_v57  ;;  %6950 = vmatmul.msk.f32.gmra.mxu3 %vm5445_vm11, %v5397_v57 }
 0x9a4   : > { %v5300_v62 = vadd.f32 %v5299_v52, %v5250_v6 }
 0x9a6   : > { %v5349_v44 = vpop.f32.mrf.mxu1 }
 0x9a7   : > { %v5350_v12 = vadd.f32 %v5349_v44, %v5300_v62 }
 0x9a9   : > { %v5400_v22 = vadd.f32 %v5399_v0, %v5350_v12  ;;  %5660 = vmatmul.f32.gmra.mxu1 %v12345_v42  ;;  %v5408_v42 = vpop.f32.mrf.mxu3  ;;  %v5261_v36 = vpop.f32.mrf.mxu0 }
 0x9aa   : > { %v5262_v51 = vadd.f32 %v5261_v36, %v12343_v55 }
 0x9ab   : > { %v5302_v33 = vpop.f32.mrf.mxu2  ;;  %6911 = vmatmul.msk.f32.gmra.mxu2 %vm5445_vm11, %v5400_v22  ;;  %6951 = vmatmul.msk.f32.gmra.mxu3 %vm5445_vm11, %v5400_v22 }
 0x9ac   : > { %v5303_v10 = vadd.f32 %v5302_v33, %v5253_v17 }
 0x9ae   : > { %v5352_v41 = vpop.f32.mrf.mxu1 }
 0x9af   : > { %v5353_v26 = vadd.f32 %v5352_v41, %v5303_v10 }
 0x9b1   : > { %v5403_v32 = vadd.f32 %v5402_v38, %v5353_v26  ;;  %v5411_v15 = vpop.f32.mrf.mxu3  ;;  %v5264_v4 = vpop.f32.mrf.mxu0 }
 0x9b2   : > { %v5265_v43 = vadd.f32 %v5264_v4, %v12343_v55 }
 0x9b3   : > { %v5305_v11 = vpop.f32.mrf.mxu2  ;;  %6912 = vmatmul.msk.f32.gmra.mxu2 %vm5445_vm11, %v5403_v32  ;;  %6952 = vmatmul.msk.f32.gmra.mxu3 %vm5445_vm11, %v5403_v32 }
 0x9b4   : > { %v5306_v48 = vadd.f32 %v5305_v11, %v5256_v3 }
 0x9b6   : > { %v5355_v54 = vpop.f32.mrf.mxu1 }
 0x9b7   : > { %v5356_v7 = vadd.f32 %v5355_v54, %v5306_v48 }
 0x9b9   : > { %v5406_v50 = vadd.f32 %v5405_v5, %v5356_v7  ;;  %v5414_v20 = vpop.f32.mrf.mxu3  ;;  %v5499_v56 = vpop.f32.mrf.mxu0 }
 0x9bb   : > { %v5308_v30 = vpop.f32.mrf.mxu2  ;;  %6913 = vmatmul.msk.f32.gmra.mxu2 %vm5445_vm11, %v5406_v50  ;;  %6953 = vmatmul.msk.f32.gmra.mxu3 %vm5445_vm11, %v5406_v50 }
 0x9bc   : > { %v5309_v46 = vadd.f32 %v5308_v30, %v5259_v39 }
 0x9be   : > { %v5358_v9 = vpop.f32.mrf.mxu1 }
 0x9bf   : > { %v5359_v18 = vadd.f32 %v5358_v9, %v5309_v46 }
 0x9c1   : > { %v5409_v29 = vadd.f32 %v5408_v42, %v5359_v18  ;;  %v5502_v45 = vpop.f32.mrf.mxu0 }
 0x9c3   : > { %v5311_v53 = vpop.f32.mrf.mxu2  ;;  %6914 = vmatmul.msk.f32.gmra.mxu2 %vm5445_vm11, %v5409_v29  ;;  %6954 = vmatmul.msk.f32.gmra.mxu3 %vm5445_vm11, %v5409_v29 }
 0x9c4   : > { %v5312_v8 = vadd.f32 %v5311_v53, %v5262_v51 }
 0x9c6   : > { %v5361_v27 = vpop.f32.mrf.mxu1 }
 0x9c7   : > { %v5362_v49 = vadd.f32 %v5361_v27, %v5312_v8 }
 0x9c9   : > { %v5412_v28 = vadd.f32 %v5411_v15, %v5362_v49  ;;  %v5505_v58 = vpop.f32.mrf.mxu0 }
 0x9cb   : > { %v5314_v60 = vpop.f32.mrf.mxu2  ;;  %6915 = vmatmul.msk.f32.gmra.mxu2 %vm5445_vm11, %v5412_v28  ;;  %6955 = vmatmul.msk.f32.gmra.mxu3 %vm5445_vm11, %v5412_v28 }
 0x9cc   : > { %v5315_v24 = vadd.f32 %v5314_v60, %v5265_v43 }
 0x9ce   : > { %v5364_v13 = vpop.f32.mrf.mxu1 }
 0x9cf   : > { %v5365_v63 = vadd.f32 %v5364_v13, %v5315_v24 }
 0x9d1   : > { %v5415_v1 = vadd.f32 %v5414_v20, %v5365_v63  ;;  %v5508_v0 = vpop.f32.mrf.mxu0 }
 0x9d3   : > { %6916 = vmatmul.msk.f32.gmra.mxu2 %vm5445_vm11, %v5415_v1  ;;  %6956 = vmatmul.msk.f32.gmra.mxu3 %vm5445_vm11, %v5415_v1 }
 0x9d6   : > { %v5631_v25 = vpop.f32.mrf.mxu1 }
 0x9d9   : > { %v5511_v44 = vpop.f32.mrf.mxu0 }
 0x9de   : > { %v5634_v14 = vpop.f32.mrf.mxu1 }
 0x9e1   : > { %v5514_v41 = vpop.f32.mrf.mxu0 }
 0x9e6   : > { %v5637_v35 = vpop.f32.mrf.mxu1 }
 0x9e9   : > { %v5517_v5 = vpop.f32.mrf.mxu0 }
 0x9ee   : > { %v5640_v34 = vpop.f32.mrf.mxu1 }
 0x9f1   : > { %v5520_v50 = vpop.f32.mrf.mxu0 }
 0x9f6   : > { %v5643_v38 = vpop.f32.mrf.mxu1 }
 0x9f9   : > { %v5523_v46 = vpop.f32.mrf.mxu0 }
 0x9fe   : > { %v5646_v26 = vpop.f32.mrf.mxu1 }
 0xa01   : > { %v5526_v29 = vpop.f32.mrf.mxu0 }
 0xa06   : > { %v5549_v55 = vpop.f32.mrf.mxu2  ;;  %v5681_v21 = vpop.f32.mrf.mxu3 }
 0xa07   : > { %v5550_v37 = vadd.f32 %v5549_v55, %v5499_v56  ;;  %v5682_v19 = vadd.f32 %v5681_v21, %v5631_v25  ;;  %v5649_v11 = vpop.f32.mrf.mxu1 }
 0xa09   : > { %v12388_v40 = vmax.f32 %v5550_v37, %v5682_v19  ;;  %v5529_v15 = vpop.f32.mrf.mxu0 }
 0xa0e   : > { %v5552_v59 = vpop.f32.mrf.mxu2  ;;  %v5684_v16 = vpop.f32.mrf.mxu3 }
 0xa0f   : > { %v5553_v2 = vadd.f32 %v5552_v59, %v5502_v45  ;;  %v5685_v31 = vadd.f32 %v5684_v16, %v5634_v14  ;;  %v5652_v39 = vpop.f32.mrf.mxu1 }
 0xa11   : > { %v12390_v47 = vmax.f32 %v5553_v2, %v5685_v31  ;;  %v5725_v31 = vld [vmem:[%s12725_s10] sm:$0xff] }
 0xa16   : > { %v5555_v57 = vpop.f32.mrf.mxu2  ;;  %v5687_v52 = vpop.f32.mrf.mxu3 }
 0xa17   : > { %v5556_v6 = vadd.f32 %v5555_v57, %v5505_v58  ;;  %v5688_v62 = vadd.f32 %v5687_v52, %v5637_v35  ;;  %v5655_v36 = vpop.f32.mrf.mxu1  ;;  %v5727_v57 = vld [vmem:[%s12725_s10 + $0x10] sm:$0xff]  ;;  %v5728_v52 = vld [vmem:[%s12725_s10 + $0x18] sm:$0xff] }
 0xa19   : > { %v12392_v12 = vmax.f32 %v5556_v6, %v5688_v62  ;;  %v6965_v6 = vld [vmem:[%s12725_s10 + $0x40] sm:$0xff]  ;;  %v6966_v62 = vld [vmem:[%s12725_s10 + $0x48] sm:$0xff] }
 0xa1e   : > { %v5558_v61 = vpop.f32.mrf.mxu2  ;;  %v5690_v17 = vpop.f32.mrf.mxu3 }
 0xa1f   : > { %v5559_v22 = vadd.f32 %v5558_v61, %v5508_v0  ;;  %v5691_v33 = vadd.f32 %v5690_v17, %v5640_v34  ;;  %v5658_v51 = vpop.f32.mrf.mxu1  ;;  %v6962_v0 = vld [vmem:[%s12725_s10 + $0x28] sm:$0xff]  ;;  %v6963_v34 = vld [vmem:[%s12725_s10 + $0x30] sm:$0xff] }
 0xa21   : > { %v5717_v10 = vmax.f32 %v5559_v22, %v5691_v33 }
 0xa26   : > { %v5561_v32 = vpop.f32.mrf.mxu2  ;;  %v5693_v3 = vpop.f32.mrf.mxu3 }
 0xa27   : > { %v5661_v4 = vpop.f32.mrf.mxu1  ;;  %v5562_v21 = vadd.f32 %v5561_v32, %v5511_v44  ;;  %v5694_v19 = vadd.f32 %v5693_v3, %v5643_v38  ;;  %v5729_v44 = vld [vmem:[%s12725_s10 + $0x20] sm:$0xff] }
 0xa29   : > { %v5718_v16 = vmax.f32 %v5562_v21, %v5694_v19  ;;  %v6014_v21 = vld [vmem:[%s12727_s12 + $0xc0] sm:$0xff] }
 0xa2a   : > { %v5998_v19 = vld [vmem:[%s12727_s12 + $0x40] sm:$0xff] }
 0xa2e   : > { %v5564_v23 = vpop.f32.mrf.mxu2  ;;  %v5696_v48 = vpop.f32.mrf.mxu3 }
 0xa2f   : > { %v5565_v55 = vadd.f32 %v5564_v23, %v5514_v41  ;;  %v5697_v35 = vadd.f32 %v5696_v48, %v5646_v26 }
 0xa31   : > { %v5719_v2 = vmax.f32 %v5565_v55, %v5697_v35  ;;  %v6050_v55 = vld [vmem:[%s12727_s12 + $0x1e0] sm:$0xff]  ;;  %v6032_v35 = vld [vmem:[%s12727_s12 + $0x150] sm:$0xff] }
 0xa36   : > { %v5567_v54 = vpop.f32.mrf.mxu2  ;;  %v5699_v7 = vpop.f32.mrf.mxu3 }
 0xa37   : > { %v5568_v45 = vadd.f32 %v5567_v54, %v5517_v5  ;;  %v5700_v14 = vadd.f32 %v5699_v7, %v5649_v11 }
 0xa39   : > { %v5720_v59 = vmax.f32 %v5568_v45, %v5700_v14  ;;  %v6033_v45 = vld [vmem:[%s12727_s12 + $0x158] sm:$0xff]  ;;  %v6015_v14 = vld [vmem:[%s12727_s12 + $0xc8] sm:$0xff] }
 0xa3e   : > { %v5570_v30 = vpop.f32.mrf.mxu2  ;;  %v5702_v42 = vpop.f32.mrf.mxu3 }
 0xa3f   : > { %v5571_v1 = vadd.f32 %v5570_v30, %v5520_v50  ;;  %v5703_v56 = vadd.f32 %v5702_v42, %v5652_v39  ;;  %v5841_v42 = vld [vmem:[%s12726_s11] sm:$0xff] }
 0xa41   : > { %v5721_v37 = vmax.f32 %v5571_v1, %v5703_v56  ;;  %v6016_v1 = vld [vmem:[%s12727_s12 + $0xd0] sm:$0xff] }
 0xa42   : > { %v6000_v56 = vld [vmem:[%s12727_s12 + $0x50] sm:$0xff] }
 0xa46   : > { %v5573_v9 = vpop.f32.mrf.mxu2  ;;  %v5705_v18 = vpop.f32.mrf.mxu3 }
 0xa47   : > { %v5574_v13 = vadd.f32 %v5573_v9, %v5523_v46  ;;  %v5706_v63 = vadd.f32 %v5705_v18, %v5655_v36  ;;  %v6973_v46 = vld [vmem:[%s12726_s11 + $0x8] sm:$0xff]  ;;  %v6975_v36 = vld [vmem:[%s12726_s11 + $0x10] sm:$0xff]  ;;  %v6977_v9 = vld [vmem:[%s12726_s11 + $0x18] sm:$0xff] }
 0xa48   : > { %v6979_v18 = vld [vmem:[%s12726_s11 + $0x20] sm:$0xff] }
 0xa49   : > { %v5722_v58 = vmax.f32 %v5574_v13, %v5706_v63  ;;  %v6001_v13 = vld [vmem:[%s12727_s12 + $0x58] sm:$0xff]  ;;  %v6034_v63 = vld [vmem:[%s12727_s12 + $0x160] sm:$0xff] }
 0xa4e   : > { %v5576_v53 = vpop.f32.mrf.mxu2  ;;  %v5708_v8 = vpop.f32.mrf.mxu3 }
 0xa4f   : > { %v5577_v43 = vadd.f32 %v5576_v53, %v5526_v29  ;;  %v5709_v60 = vadd.f32 %v5708_v8, %v5658_v51  ;;  %v6021_v29 = vld [vmem:[%s12727_s12 + $0xf8] sm:$0xff]  ;;  %v6020_v51 = vld [vmem:[%s12727_s12 + $0xf0] sm:$0xff] }
 0xa50   : > { %v6005_v53 = vld [vmem:[%s12727_s12 + $0x78] sm:$0xff]  ;;  %v6004_v8 = vld [vmem:[%s12727_s12 + $0x70] sm:$0xff] }
 0xa51   : > { %v5723_v25 = vmax.f32 %v5577_v43, %v5709_v60  ;;  %v6002_v43 = vld [vmem:[%s12727_s12 + $0x60] sm:$0xff]  ;;  %v6035_v60 = vld [vmem:[%s12727_s12 + $0x168] sm:$0xff] }
 0xa56   : > { %v5579_v27 = vpop.f32.mrf.mxu2  ;;  %v5711_v28 = vpop.f32.mrf.mxu3 }
 0xa57   : > { %v5580_v49 = vadd.f32 %v5579_v27, %v5529_v15  ;;  %v5712_v24 = vadd.f32 %v5711_v28, %v5661_v4  ;;  %v6019_v15 = vld [vmem:[%s12727_s12 + $0xe8] sm:$0xff]  ;;  %v6037_v27 = vld [vmem:[%s12727_s12 + $0x178] sm:$0xff]  ;;  %v6018_v28 = vld [vmem:[%s12727_s12 + $0xe0] sm:$0xff] }
 0xa58   : > { %v6003_v4 = vld [vmem:[%s12727_s12 + $0x68] sm:$0xff] }
 0xa59   : > { %v5724_v20 = vmax.f32 %v5580_v49, %v5712_v24  ;;  %v6036_v49 = vld [vmem:[%s12727_s12 + $0x170] sm:$0xff]  ;;  %v6017_v24 = vld [vmem:[%s12727_s12 + $0xd8] sm:$0xff] }
 0xa5b   : > { %5751 = vmatpush.msra.mxu0 %v5724_v20  ;;  %5804 = vmatpush.msrb.mxu2 %v5724_v20  ;;  %v6052_v20 = vld [vmem:[%s12727_s12 + $0x1f0] sm:$0xf] }
 0xa5d   : > { %5752 = vmatpush.msra.mxu0 %v5723_v25  ;;  %5805 = vmatpush.msrb.mxu2 %v5723_v25  ;;  %v6051_v25 = vld [vmem:[%s12727_s12 + $0x1e8] sm:$0xff] }
 0xa5f   : > { %5753 = vmatpush.msra.mxu0 %v5722_v58  ;;  %5806 = vmatpush.msrb.mxu2 %v5722_v58  ;;  %v5999_v58 = vld [vmem:[%s12727_s12 + $0x48] sm:$0xff] }
 0xa61   : > { %5754 = vmatpush.msra.mxu0 %v5721_v37  ;;  %5807 = vmatpush.msrb.mxu2 %v5721_v37  ;;  %v6049_v37 = vld [vmem:[%s12727_s12 + $0x1d8] sm:$0xff] }
 0xa63   : > { %5755 = vmatpush.msra.mxu0 %v5720_v59  ;;  %5808 = vmatpush.msrb.mxu2 %v5720_v59 }
 0xa65   : > { %5756 = vmatpush.msra.mxu0 %v5719_v2  ;;  %5809 = vmatpush.msrb.mxu2 %v5719_v2  ;;  %v6031_v2 = vld [vmem:[%s12727_s12 + $0x148] sm:$0xff] }
 0xa67   : > { %5757 = vmatpush.msra.mxu0 %v5718_v16  ;;  %5810 = vmatpush.msrb.mxu2 %v5718_v16  ;;  %v6048_v16 = vld [vmem:[%s12727_s12 + $0x1d0] sm:$0xff] }
 0xa69   : > { %5758 = vmatpush.msra.mxu0 %v5717_v10  ;;  %5811 = vmatpush.msrb.mxu2 %v5717_v10 }
 0xa6b   : > { %5759 = vmatpush.msra.mxu0 %v12392_v12  ;;  %5812 = vmatpush.msrb.mxu2 %v12392_v12 }
 0xa6d   : > { %5760 = vmatpush.msra.mxu0 %v12390_v47  ;;  %5813 = vmatpush.msrb.mxu2 %v12390_v47  ;;  %v5726_v47 = vld [vmem:[%s12725_s10 + $0x8] sm:$0xff] }
 0xa6f   : > { %5761 = vmatpush.msra.mxu0 %v12388_v40  ;;  %5814 = vmatpush.msrb.mxu2 %v12388_v40  ;;  %v6964_v40 = vld [vmem:[%s12725_s10 + $0x38] sm:$0xff] }
 0xa70   : > { %6967 = vmatmul.msk.f32.vlgmr.msrb.gmra.mxu2 %vm5730_vm12, %v6962_v0  ;;  %6957 = vmatmul.msk.f32.vlgmr.msra.gmra.mxu0 %vm5730_vm12, %v5725_v31  ;;  %v6013_v0 = vld [vmem:[%s12727_s12 + $0xb8] sm:$0xff] }
 0xa71   : > { %6084 = vmatpush.msra.mxu2 %v6021_v29  ;;  %6064 = vmatpush.msrb.mxu0 %v6005_v53  ;;  %v5997_v31 = vld [vmem:[%s12727_s12 + $0x38] sm:$0xff]  ;;  %v6040_v29 = vld [vmem:[%s12727_s12 + $0x190] sm:$0xff] }
 0xa73   : > { %6085 = vmatpush.msra.mxu2 %v6020_v51  ;;  %6065 = vmatpush.msrb.mxu0 %v6004_v8  ;;  %v6039_v51 = vld [vmem:[%s12727_s12 + $0x188] sm:$0xff] }
 0xa75   : > { %6086 = vmatpush.msra.mxu2 %v6019_v15  ;;  %6066 = vmatpush.msrb.mxu0 %v6003_v4  ;;  %v6022_v15 = vld [vmem:[%s12727_s12 + $0x100] sm:$0xff] }
 0xa77   : > { %6087 = vmatpush.msra.mxu2 %v6018_v28  ;;  %6067 = vmatpush.msrb.mxu0 %v6002_v43 }
 0xa78   : > { %6968 = vmatmul.msk.f32.gmra.mxu2 %vm5730_vm12, %v6963_v34  ;;  %6958 = vmatmul.msk.f32.gmra.mxu0 %vm5730_vm12, %v5726_v47  ;;  %v6030_v34 = vld [vmem:[%s12727_s12 + $0x140] sm:$0xff]  ;;  %v6047_v47 = vld [vmem:[%s12727_s12 + $0x1c8] sm:$0xff] }
 0xa79   : > { %6088 = vmatpush.msra.mxu2 %v6017_v24  ;;  %6068 = vmatpush.msrb.mxu0 %v6001_v13  ;;  %v6150_v13 = vld [vmem:[%s12729_s14 + $0x30] sm:$0x3] }
 0xa7b   : > { %6089 = vmatpush.msra.mxu2 %v6016_v1  ;;  %6069 = vmatpush.msrb.mxu0 %v6000_v56  ;;  %v6147_v1 = vld [vmem:[%s12729_s14 + $0x18] sm:$0xff]  ;;  %v6146_v56 = vld [vmem:[%s12729_s14 + $0x10] sm:$0xff] }
 0xa7d   : > { %6090 = vmatpush.msra.mxu2 %v6015_v14  ;;  %6070 = vmatpush.msrb.mxu0 %v5999_v58  ;;  %v7097_v14 = vld [vmem:[%s12728_s13] ss:$0 sm:$0xff] }
 0xa7f   : > { %6091 = vmatpush.msra.mxu2 %v6014_v21  ;;  %6071 = vmatpush.msrb.mxu0 %v5998_v19 }
 0xa80   : > { %6969 = vmatmul.msk.f32.gmra.mxu2 %vm5730_vm12, %v6964_v40  ;;  %6959 = vmatmul.msk.f32.gmra.mxu0 %vm5730_vm12, %v5727_v57  ;;  %v6012_v40 = vld [vmem:[%s12727_s12 + $0xb0] sm:$0xff] }
 0xa81   : > { %v5996_v57 = vld [vmem:[%s12727_s12 + $0x30] sm:$0xff]  ;;  %6092 = vmatpush.msra.mxu2 %v6013_v0  ;;  %6072 = vmatpush.msrb.mxu0 %v5997_v31 }
 0xa83   : > { %6093 = vmatpush.msra.mxu2 %v6012_v40  ;;  %6073 = vmatpush.msrb.mxu0 %v5996_v57 }
 0xa88   : > { %6970 = vmatmul.msk.f32.gmra.mxu2 %vm5730_vm12, %v6965_v6  ;;  %6960 = vmatmul.msk.f32.gmra.mxu0 %vm5730_vm12, %v5728_v52  ;;  %v6029_v6 = vld [vmem:[%s12727_s12 + $0x138] sm:$0xff]  ;;  %v6011_v52 = vld [vmem:[%s12727_s12 + $0xa8] sm:$0xff] }
 0xa89   : > { %6094 = vmatpush.msra.mxu2 %v6011_v52 }
 0xa90   : > { %6971 = vmatmul.msk.f32.gmra.mxu2 %vm5730_vm12, %v6966_v62  ;;  %6961 = vmatmul.msk.f32.gmra.mxu0 %vm5730_vm12, %v5729_v44  ;;  %v5995_v62 = vld [vmem:[%s12727_s12 + $0x28] sm:$0xff] }
 0xa91   : > { %6074 = vmatpush.msrb.mxu0 %v5995_v62 }
 0xaed   : > { %v5763_v12 = vpop.f32.mrf.mxu0 }
 0xaf3   : > { %v5816_v38 = vpop.f32.mrf.mxu2 }
 0xaf4   : > { %v5831_v7 = vmax.f32 %v5763_v12, %v5816_v38  ;;  %v6028_v12 = vld [vmem:[%s12727_s12 + $0x130] sm:$0xff]  ;;  %v6010_v38 = vld [vmem:[%s12727_s12 + $0xa0] sm:$0xff] }
 0xaf5   : > { %v5766_v61 = vpop.f32.mrf.mxu0  ;;  %6095 = vmatpush.msra.mxu2 %v6010_v38 }
 0xaf6   : > { %v5836_v30 = vmax.f32 %v5831_v7, 0.0  ;;  %v6045_v7 = vld [vmem:[%s12727_s12 + $0x1b8] sm:$0xff] }
 0xafb   : > { %v5819_v22 = vpop.f32.mrf.mxu2 }
 0xafc   : > { %v5832_v48 = vmax.f32 %v5766_v61, %v5819_v22  ;;  %v5994_v61 = vld [vmem:[%s12727_s12 + $0x20] sm:$0xff] }
 0xafd   : > { %v5769_v17 = vpop.f32.mrf.mxu0  ;;  %6075 = vmatpush.msrb.mxu0 %v5994_v61 }
 0xafe   : > { %v5837_v39 = vmax.f32 %v5832_v48, 0.0  ;;  %v5991_v48 = vld [vmem:[%s12727_s12 + $0x8] sm:$0xff] }
 0xb03   : > { %v5822_v33 = vpop.f32.mrf.mxu2 }
 0xb04   : > { %v5833_v23 = vmax.f32 %v5769_v17, %v5822_v33  ;;  %v6027_v17 = vld [vmem:[%s12727_s12 + $0x128] sm:$0xff]  ;;  %v6046_v33 = vld [vmem:[%s12727_s12 + $0x1c0] sm:$0xff] }
 0xb05   : > { %v5772_v10 = vpop.f32.mrf.mxu0 }
 0xb06   : > { %v5838_v50 = vmax.f32 %v5833_v23, 0.0 }
 0xb0b   : > { %v5825_v41 = vpop.f32.mrf.mxu2 }
 0xb0c   : > { %v5834_v3 = vmax.f32 %v5772_v10, %v5825_v41  ;;  %v6009_v10 = vld [vmem:[%s12727_s12 + $0x98] sm:$0xff] }
 0xb0d   : > { %v5775_v26 = vpop.f32.mrf.mxu0  ;;  %v5993_v41 = vld [vmem:[%s12727_s12 + $0x18] sm:$0xff]  ;;  %6096 = vmatpush.msra.mxu2 %v6009_v10 }
 0xb0e   : > { %v5839_v54 = vmax.f32 %v5834_v3, 0.0  ;;  %v5992_v3 = vld [vmem:[%s12727_s12 + $0x10] sm:$0xff]  ;;  %6076 = vmatpush.msrb.mxu0 %v5993_v41 }
 0xb10   : > { %6077 = vmatpush.msrb.mxu0 %v5992_v3 }
 0xb12   : > { %6078 = vmatpush.msrb.mxu0 %v5991_v48 }
 0xb13   : > { %v5828_v32 = vpop.f32.mrf.mxu2 }
 0xb14   : > { %v5835_v5 = vmax.f32 %v5775_v26, %v5828_v32  ;;  %v6026_v26 = vld [vmem:[%s12727_s12 + $0x120] sm:$0xff]  ;;  %v6008_v32 = vld [vmem:[%s12727_s12 + $0x90] sm:$0xff] }
 0xb15   : > { %6097 = vmatpush.msra.mxu2 %v6008_v32 }
 0xb16   : > { %v5840_v11 = vmax.f32 %v5835_v5, 0.0  ;;  %v6007_v5 = vld [vmem:[%s12727_s12 + $0x88] sm:$0xff] }
 0xb17   : > { %6098 = vmatpush.msra.mxu2 %v6007_v5 }
 0xb18   : > { %5857 = vmatpush.msrb.mxu1 %v5840_v11  ;;  %5882 = vmatpush.msra.mxu3 %v5840_v11 }
 0xb1a   : > { %5858 = vmatpush.msrb.mxu1 %v5839_v54  ;;  %5883 = vmatpush.msra.mxu3 %v5839_v54 }
 0xb1c   : > { %5859 = vmatpush.msrb.mxu1 %v5838_v50  ;;  %5884 = vmatpush.msra.mxu3 %v5838_v50 }
 0xb1e   : > { %5860 = vmatpush.msrb.mxu1 %v5837_v39  ;;  %5885 = vmatpush.msra.mxu3 %v5837_v39 }
 0xb20   : > { %5861 = vmatpush.msrb.mxu1 %v5836_v30  ;;  %5886 = vmatpush.msra.mxu3 %v5836_v30 }
 0xb21   : > { %6972 = vmatmul.msk.f32.vlgmr.msrb.gmra.mxu1 %vm5842_vm13, %v5841_v42  ;;  %6974 = vmatmul.msk.f32.vlgmr.msra.gmra.mxu3 %vm5842_vm13, %v6973_v46  ;;  %v6006_v42 = vld [vmem:[%s12727_s12 + $0x80] sm:$0xff]  ;;  %v6025_v46 = vld [vmem:[%s12727_s12 + $0x118] sm:$0xff] }
 0xb22   : > { %5907 = vmatpush.msra.mxu1 %v5840_v11  ;;  %5932 = vmatpush.msrb.mxu3 %v5840_v11 }
 0xb23   : > { %6099 = vmatpush.msra.mxu2 %v6006_v42 }
 0xb24   : > { %5908 = vmatpush.msra.mxu1 %v5839_v54  ;;  %5933 = vmatpush.msrb.mxu3 %v5839_v54 }
 0xb26   : > { %5909 = vmatpush.msra.mxu1 %v5838_v50  ;;  %5934 = vmatpush.msrb.mxu3 %v5838_v50 }
 0xb28   : > { %5910 = vmatpush.msra.mxu1 %v5837_v39  ;;  %5935 = vmatpush.msrb.mxu3 %v5837_v39 }
 0xb2a   : > { %5911 = vmatpush.msra.mxu1 %v5836_v30  ;;  %5936 = vmatpush.msrb.mxu3 %v5836_v30 }
 0xb2b   : > { %6976 = vmatmul.msk.f32.vlgmr.msra.gmra.mxu1 %vm5842_vm13, %v6975_v36  ;;  %6978 = vmatmul.msk.f32.vlgmr.msrb.gmra.mxu3 %vm5842_vm13, %v6977_v9  ;;  %v6041_v36 = vld [vmem:[%s12727_s12 + $0x198] sm:$0xff]  ;;  %v6024_v9 = vld [vmem:[%s12727_s12 + $0x110] sm:$0xff] }
 0xb2c   : > { %5957 = vmatpush.msrb.mxu1 %v5840_v11  ;;  %6104 = vmatpush.msra.mxu3 %v6037_v27  ;;  %v6038_v27 = vld [vmem:[%s12727_s12 + $0x180] sm:$0xff] }
 0xb2e   : > { %5958 = vmatpush.msrb.mxu1 %v5839_v54  ;;  %6105 = vmatpush.msra.mxu3 %v6036_v49  ;;  %v5990_v54 = vld [vmem:[%s12727_s12] sm:$0xff] }
 0xb2f   : > { %6079 = vmatpush.msrb.mxu0 %v5990_v54 }
 0xb30   : > { %5959 = vmatpush.msrb.mxu1 %v5838_v50  ;;  %6106 = vmatpush.msra.mxu3 %v6035_v60  ;;  %v6044_v50 = vld [vmem:[%s12727_s12 + $0x1b0] sm:$0xff] }
 0xb31   : > { %6983 = vmatpush.msk.msra.mxu0 %vm6159_vm3, %v6150_v13 }
 0xb32   : > { %5960 = vmatpush.msrb.mxu1 %v5837_v39  ;;  %6107 = vmatpush.msra.mxu3 %v6034_v63  ;;  %v6043_v39 = vld [vmem:[%s12727_s12 + $0x1a8] sm:$0xff] }
 0xb33   : > { %v6149_v63 = vld [vmem:[%s12729_s14 + $0x28] sm:$0xff] }
 0xb34   : > { %5961 = vmatpush.msrb.mxu1 %v5836_v30  ;;  %6108 = vmatpush.msra.mxu3 %v6033_v45  ;;  %v6042_v30 = vld [vmem:[%s12727_s12 + $0x1a0] sm:$0xff] }
 0xb35   : > { %6980 = vmatmul.msk.f32.vlgmr.msrb.gmra.mxu1 %vm5842_vm13, %v6979_v18  ;;  %v6023_v18 = vld [vmem:[%s12727_s12 + $0x108] sm:$0xff]  ;;  %6173 = vmatpush.msra.mxu0 %v6149_v63  ;;  %v6144_v45 = vld [vmem:[%s12729_s14] sm:$0xff] }
 0xb36   : > { %6981 = vmatpush.msk.msra.mxu1 %vm1895_vm1, %v6052_v20  ;;  %6109 = vmatpush.msra.mxu3 %v6032_v35  ;;  %vm5988_vm1 = vcmask 130048   ;;  %v6148_v20 = vld [vmem:[%s12729_s14 + $0x20] sm:$0xff] }
 0xb37   : > { %6174 = vmatpush.msra.mxu0 %v6148_v20 }
 0xb38   : > { %6126 = vmatpush.msra.mxu1 %v6051_v25  ;;  %6110 = vmatpush.msra.mxu3 %v6031_v2  ;;  %v6145_v25 = vld [vmem:[%s12729_s14 + $0x8] sm:$0xff] }
 0xb39   : > { %6175 = vmatpush.msra.mxu0 %v6147_v1 }
 0xb3a   : > { %6127 = vmatpush.msra.mxu1 %v6050_v55  ;;  %6111 = vmatpush.msra.mxu3 %v6030_v34 }
 0xb3b   : > { %6176 = vmatpush.msra.mxu0 %v6146_v56 }
 0xb3c   : > { %6128 = vmatpush.msra.mxu1 %v6049_v37  ;;  %6112 = vmatpush.msra.mxu3 %v6029_v6 }
 0xb3d   : > { %6177 = vmatpush.msra.mxu0 %v6145_v25 }
 0xb3e   : > { %6129 = vmatpush.msra.mxu1 %v6048_v16  ;;  %6113 = vmatpush.msra.mxu3 %v6028_v12  ;;  %v7098_v16 = vld [vmem:[%s12730_s15] ss:$0 sm:$0xff] }
 0xb3f   : > { %6178 = vmatpush.msra.mxu0 %v6144_v45 }
 0xb40   : > { %6130 = vmatpush.msra.mxu1 %v6047_v47  ;;  %6114 = vmatpush.msra.mxu3 %v6027_v17 }
 0xb42   : > { %6131 = vmatpush.msra.mxu1 %v6046_v33  ;;  %6115 = vmatpush.msra.mxu3 %v6026_v26 }
 0xb44   : > { %6132 = vmatpush.msra.mxu1 %v6045_v7  ;;  %6116 = vmatpush.msra.mxu3 %v6025_v46 }
 0xb46   : > { %6133 = vmatpush.msra.mxu1 %v6044_v50  ;;  %6117 = vmatpush.msra.mxu3 %v6024_v9 }
 0xb48   : > { %6134 = vmatpush.msra.mxu1 %v6043_v39  ;;  %6118 = vmatpush.msra.mxu3 %v6023_v18 }
 0xb4a   : > { %6135 = vmatpush.msra.mxu1 %v6042_v30  ;;  %6119 = vmatpush.msra.mxu3 %v6022_v15 }
 0xb4c   : > { %6136 = vmatpush.msra.mxu1 %v6041_v36 }
 0xb4e   : > { %6137 = vmatpush.msra.mxu1 %v6040_v29 }
 0xb50   : > { %6138 = vmatpush.msra.mxu1 %v6039_v51 }
 0xb52   : > { %6139 = vmatpush.msra.mxu1 %v6038_v27 }
 0xb9e   : > { %v12539_v59 = vpop.f32.mrf.mxu1 }
 0xba4   : > { %v5888_v44 = vpop.f32.mrf.mxu3 }
 0xba5   : > { %5967 = vrot.lane.b32.xlu2 %v5888_v44, %s7171_s17  ;;  %s7173_s17 = smov 44  }
 0xba8   : > { %v5913_v22 = vpop.f32.mrf.mxu1 }
 0xba9   : > { %5971 = vrot.lane.b32.xlu0 %v5913_v22, %s7172_s23 }
 0xbae   : > { %v5938_v23 = vpop.f32.mrf.mxu3 }
 0xbaf   : > { %5975 = vrot.lane.b32.xlu1 %v5938_v23, %s7173_s17  ;;  %s6208_s17 = scalar_lea.hbm %s12731_s16, %s6986_s30 }
 0xbb0   : > { %s6212_s27 = sshll.u32 %s6208_s17, 4  ;;  %s6213_s27 = int_to_ptr.hbm [resolvable:$true] %s6212_s27 }
 0xbb1   : > { %s7117_s19 = sshra.s32 %s6213_s27, 4  ;;  %s7118_s19 = int_to_ptr.hbm [resolvable:$true] %s7117_s19 }
 0xbb2   : > { %v5963_v11 = vpop.f32.mrf.mxu1  ;;  %s7119_s2 = scalar_lea.hbm %s7118_s19, 8  ;;  %p7124_p0 = scmp.lt.s32.totalorder %s7118_s19, %s12731_s16 }
 0xbb3   : > { %5979 = vrot.lane.b32.xlu2 %v5963_v11, %s7174_s18  ;;  %s515_s18 = scalar_lea.vmem [#allocation2], %s6276_s20  ;;  %p7120_p11 = scmp.ne.s32.totalorder %s7118_s19, %s7119_s2 }
 0xbb4   : > { %s6210_s1 = sshll.u32 %s515_s18, 4  ;;  %s7123_s20 = scalar_lea.hbm %s12731_s16, 16  ;;  %s6211_s1 = int_to_ptr.vmem [resolvable:$true] %s6210_s1 }
 0xbb5   : > { %p7121_p12 = pnand %p7120_p11, %p7298_p5  ;;  %p7125_p1 = scmp.lt.s32.totalorder %s7123_s20, %s7119_s2 }
 0xbb7   : > { %p7122_p13 = pneg %p7121_p12  ;;  %p7126_p2 = por %p7125_p1, %p7124_p0 }
 0xbb9   : > { %p7127_p3 = pnand %p7126_p2, %p7122_p13 }
 0xbff   : > { %v5968_v53 = vpop.permute.xlu2 %5967 }
 0xc00   : > { %v5983_v8 = vsel %vm5982_vm14, %v12539_v59, %v5968_v53 }
 0xc01   : > { %6080 = vmatmul.f32.vlgmr.msrb.gmra.mxu0 %v5983_v8 }
 0xc0d   : > { %v5980_v28 = vpop.permute.xlu2 %5979 }
 0xc1b   : > { %v5972_v4 = vpop.permute.xlu0 %5971 }
 0xc1c   : > { %v5985_v49 = vsel %vm5984_vm15, %v5968_v53, %v5972_v4 }
 0xc1d   : > { %6100 = vmatmul.f32.vlgmr.msra.gmra.mxu2 %v5985_v49 }
 0xc21   : > { %v5976_v43 = vpop.permute.xlu1 %5975 }
 0xc22   : > { %v5987_v60 = vsel %vm5986_vm0, %v5972_v4, %v5976_v43  ;;  %v5989_v24 = vsel %vm5988_vm1, %v5976_v43, %v5980_v28 }
 0xc23   : > { %6120 = vmatmul.f32.vlgmr.msra.gmra.mxu3 %v5987_v60  ;;  %6982 = vmatmul.msk.f32.vlgmr.msra.gmra.mxu1 %vm6057_vm2, %v5989_v24 }
 0xc7e   : > { %v6081_v58 = vpop.f32.mrf.mxu0 }
 0xc7f   : > { %v6082_v35 = vadd.f32 %v7097_v14, %v6081_v58 }
 0xca0   : > { %v6101_v55 = vpop.f32.mrf.mxu2  ;;  %v6141_v59 = vpop.f32.mrf.mxu1 }
 0xca1   : > { %v6102_v37 = vadd.f32 %v6101_v55, %v6082_v35 }
 0xca6   : > { %v6121_v21 = vpop.f32.mrf.mxu3 }
 0xca7   : > { %v6122_v19 = vadd.f32 %v6121_v21, %v6102_v37 }
 0xca9   : > { %v6142_v2 = vadd.f32 %v6141_v59, %v6122_v19 }
 0xcab   : > { %6984 = vmatmul.msk.f32.vlgmr.msra.gmra.mxu0 %vm6155_vm4, %v6142_v2 }
 0xd28   : > { %v6180_v0 = vpop.f32.mrf.mxu0 }
 0xd29   : > { %v6181_v31 = vadd.f32 %v7098_v16, %v6180_v0 }
 0xd2b   : > { %v6184_v34 = vsel %vm6183_vm5, %v6181_v31, -inf }
 0xd2c   : > { %6185 = vmax.xlane.f32.xlu0 %v6184_v34 }
 0xd9f   : > { %v6186_v47 = vpop.xlane.xlu0 %6185 }
 0xda0   : > { %v6187_v40 = vsub.f32 %v6181_v31, %v6186_v47 }
 0xda2   : > { %v6188_v57 = vmul.f32 1.442695, %v6187_v40 }
 0xda4   : > { %7099 = vpow2.f32 %v6188_v57 }
 0xdaa   : > { %v7100_v6 = vpop.eup %7099 }
 0xdab   : > { %v6190_v52 = vsel %vm6183_vm5, %v7100_v6, 0.0 }
 0xdac   : > { %6191 = vadd.xlane.f32.xlu1 %v6190_v52 }
 0xe1f   : > { %v6192_v62 = vpop.xlane.xlu1 %6191 }
 0xe20   : > { %7101 = vlog2.f32 %v6192_v62 }
 0xe26   : > { %v7102_v44 = vpop.eup %7101 }
 0xe27   : > { %v6194_v12 = vmul.f32 0.6931472, %v7102_v44 }
 0xe29   : > { %v6195_v38 = vsub.f32 %v6187_v40, %v6194_v12 }
 0xe2b   : > { %6196 = vst.msk [vmem:[%s515_s18] sm:$0xff] %vm6183_vm5, %v6195_v38 }
 0xe2c   : > { %7130 = shalt.err (!%p7127_p3)
}
 0xe2d   : > { %7000 = dma.vmem_to_hbm [thread:$0]  (%p7298_p5), %s6211_s1, 128, %s6213_s27, %s6198_s26  }
 0xe2e PF: > { %p7006_p4 = scmp.ge.s32.totalorder %s7165_s24, 2  ;;  %s6224_s17 = sand.u32 1, %s7153_s21  }
 0xe2f   : > { %s6225_s18 = scalar_lea.sflag [#allocation3], %s6224_s17 }
 0xe30   : > { %p7003_p7 = pnand %p7006_p4, %p7302_p6 }
 0xe32   : > { %p7004_p8 = pneg %p7003_p7 }
 0xe34   : > { %7148 = dma.done.wait (%p7004_p8), %s6225_s18, 128  }
 0xe35   : > { %7150 = vsyncadd (%p7004_p8), %s6225_s18, 4294967168  ;;  %s13405_s24 = sld [smem:[#allocation6_spill]]  ;;  %s13408_s21 = smov %s7157_s22 }
 0xe36   : > { %s13406_s2 = sld [smem:[#allocation5_spill]] }
 0xe37   : > { %s13407_s23 = sld [smem:[#allocation7_spill]] }
 0xe3b   : > { %p26_p9 = scmp.ge.s32.totalorder %s13405_s24, 4  }
 0xe3c   : > { %s13409_s22 = smov %s13406_s2 }
 0xe3d   :  { %28 = sbr.rel (!%p26_p9) target bundleno = 7 (0x7), region = 131 }
 0xe42   :  { %6231 = vsyncpa [#allocation3], 1 }
 0xe43   :  { %6233 = vsyncpa [#allocation3 + $0x1], 1 }

</bundles_post_ra>
